<compile_context>
chip_gen: v7x
topology: tpu7x:2x2x1
jax: 0.10.0
libtpu: 0.0.40
codegen_flags: <defaults>
</compile_context>

<pallas_src>
import jax
import jax.numpy as jnp
import numpy as np
from jax.experimental import pallas as pl
from jax.experimental.pallas import tpu as pltpu

EPS = 1e-5  # PyTorch BatchNorm2d default


def residual_block_kernel(x_ref, w1_ref, g1_ref, be1_ref,
                          w2_ref, g2_ref, be2_ref,
                          ws_ref, gs_ref, bes_ref, o_ref):
    # x_ref : (N, Cin, H, W)   unpadded NCHW input
    # w1_ref: (Cout, 9*Cin)    conv1 3x3 weights, col order = (dy, dx, cin)
    # w2_ref: (Cout, 9*Cout)   conv2 3x3 weights
    # ws_ref: (Cout, Cin)      shortcut 1x1 weights
    # g*/be*: (Cout, 1)        BN gamma / beta (per-channel, broadcast along lanes)
    # o_ref : (N, Cout, H*W)   output, lane-dense last dim
    N, Cin, H, W = x_ref.shape
    Cout = o_ref.shape[1]
    HW = H * W
    cnt = float(N * HW)  # element count per channel for BN statistics
    f32 = jnp.float32

    def pad_hw(img):
        # (C, H, W) -> (C, H+2, W+2) zero halo, built as a value (no scratch ref).
        C = img.shape[0]
        zr = jnp.zeros((C, 1, W), f32)
        img = jnp.concatenate([zr, img, zr], axis=1)
        zc = jnp.zeros((C, H + 2, 1), f32)
        return jnp.concatenate([zc, img, zc], axis=2)

    def im2col_3x3(img_p):
        # (C, H+2, W+2) -> (9*C, H*W); row order = (dy, dx, c), col order = h*W + w.
        C = img_p.shape[0]
        taps = [img_p[:, dy:dy + H, dx:dx + W]
                for dy in range(3) for dx in range(3)]
        return jnp.concatenate(taps, axis=0).reshape(9 * C, HW)

    def bn_scale_shift(accs, g, b):
        # Single-pass training-mode BN folded into y*scale + shift (f32 throughout).
        s = sum(jnp.sum(a, axis=1, keepdims=True) for a in accs)          # (C, 1)
        ss = sum(jnp.sum(a * a, axis=1, keepdims=True) for a in accs)     # (C, 1)
        mean = s / cnt
        var = ss / cnt - mean * mean
        scale = g * jax.lax.rsqrt(var + EPS)
        shift = b - mean * scale
        return scale, shift

    x = x_ref[...]
    w1 = w1_ref[...]
    w2 = w2_ref[...]
    ws = ws_ref[...]

    # ---- conv1 (3x3, pad=1) and shortcut (1x1) pre-BN activations, per image ----
    # Transposed layout: activations are (Cout, H*W) so H*W sits on lanes.
    acc1 = []  # conv1 pre-BN
    acc3 = []  # shortcut pre-BN
    for n in range(N):
        p1 = im2col_3x3(pad_hw(x[n]))                                  # (9*Cin, HW)
        acc1.append(jnp.dot(w1, p1, preferred_element_type=f32))       # (Cout, HW)
        xin = p1[4 * Cin:5 * Cin, :]                                   # centre tap == interior
        acc3.append(jnp.dot(ws, xin, preferred_element_type=f32))      # (Cout, HW)
    # Conv biases omitted: a per-channel constant is cancelled by training-mode BN.

    s1, t1 = bn_scale_shift(acc1, g1_ref[...], be1_ref[...])
    y1 = [jnp.maximum(a * s1 + t1, 0.0) for a in acc1]                 # BN1 + ReLU, one pass

    # ---- conv2 (3x3, pad=1) on y1 ----
    acc2 = []
    for n in range(N):
        p2 = im2col_3x3(pad_hw(y1[n].reshape(Cout, H, W)))             # (9*Cout, HW)
        acc2.append(jnp.dot(w2, p2, preferred_element_type=f32))       # (Cout, HW)

    s2, t2 = bn_scale_shift(acc2, g2_ref[...], be2_ref[...])
    ssc, tsc = bn_scale_shift(acc3, gs_ref[...], bes_ref[...])

    outs = [jnp.maximum(acc2[n] * s2 + t2 + acc3[n] * ssc + tsc, 0.0)  # BN2 + BNs + add + ReLU
            for n in range(N)]
    o_ref[...] = jnp.stack(outs, axis=0)                               # (N, Cout, HW), lane-dense


def residual_block(x_nchw, p):
    """NCHW in / NCHW out. No wrapper transpose or pad; only a free reshape at the end."""
    x = x_nchw.astype(jnp.float32)
    N, Cin, H, W = x.shape
    Cout = p["w1"].shape[0]

    # PyTorch OIHW (Cout, Cin, 3, 3) -> (Cout, 9*Cin) with column order (dy, dx, cin),
    # matching the kernel's im2col row order.  Tiny one-time weight prep.
    w1r = jnp.transpose(p["w1"], (0, 2, 3, 1)).reshape(Cout, 9 * Cin)
    w2r = jnp.transpose(p["w2"], (0, 2, 3, 1)).reshape(Cout, 9 * Cout)
    wsr = p["ws"].reshape(Cout, Cin)

    def col(v):
        return v.reshape(Cout, 1).astype(jnp.float32)

    args = (x, w1r, col(p["g1"]), col(p["be1"]),
            w2r, col(p["g2"]), col(p["be2"]),
            wsr, col(p["gs"]), col(p["bes"]))

    vmem = pl.BlockSpec(memory_space=pltpu.MemorySpace.VMEM)
    out = pl.pallas_call(
        residual_block_kernel,
        out_shape=jax.ShapeDtypeStruct((N, Cout, H * W), jnp.float32),
        in_specs=[vmem] * len(args),
        out_specs=vmem,
        compiler_params=pltpu.CompilerParams(vmem_limit_bytes=32 * 1024 * 1024),
    )(*args)
    return out.reshape(N, Cout, H, W)  # already NCHW, pure reshape


def init_params(key, in_c, out_c):
    """Parameters in PyTorch layouts (conv weights OIHW, per-channel vectors)."""
    ks = jax.random.split(key, 12)
    f32 = jnp.float32
    return {
        "w1": 0.1 * jax.random.normal(ks[0], (out_c, in_c, 3, 3), f32),
        "b1": 0.1 * jax.random.normal(ks[1], (out_c,), f32),
        "g1": 1.0 + 0.1 * jax.random.normal(ks[2], (out_c,), f32),
        "be1": 0.1 * jax.random.normal(ks[3], (out_c,), f32),
        "w2": 0.1 * jax.random.normal(ks[4], (out_c, out_c, 3, 3), f32),
        "b2": 0.1 * jax.random.normal(ks[5], (out_c,), f32),
        "g2": 1.0 + 0.1 * jax.random.normal(ks[6], (out_c,), f32),
        "be2": 0.1 * jax.random.normal(ks[7], (out_c,), f32),
        "ws": 0.1 * jax.random.normal(ks[8], (out_c, in_c, 1, 1), f32),
        "bs": 0.1 * jax.random.normal(ks[9], (out_c,), f32),
        "gs": 1.0 + 0.1 * jax.random.normal(ks[10], (out_c,), f32),
        "bes": 0.1 * jax.random.normal(ks[11], (out_c,), f32),
    }


def ref_forward(x_nchw, p):
    """Pure-JAX reference mirroring the PyTorch module (training-mode BN, with conv biases)."""
    x = x_nchw.astype(jnp.float32)

    def conv(a, w, b, pad):
        y = jax.lax.conv_general_dilated(
            a, w, window_strides=(1, 1), padding=pad,
            dimension_numbers=("NCHW", "OIHW", "NCHW"))
        return y + b.reshape(1, -1, 1, 1)

    def bn(y, g, b):
        m = jnp.mean(y, axis=(0, 2, 3), keepdims=True)
        v = jnp.mean((y - m) ** 2, axis=(0, 2, 3), keepdims=True)
        return (y - m) / jnp.sqrt(v + EPS) * g.reshape(1, -1, 1, 1) + b.reshape(1, -1, 1, 1)

    y = jnp.maximum(bn(conv(x, p["w1"], p["b1"], "SAME"), p["g1"], p["be1"]), 0.0)
    y = bn(conv(y, p["w2"], p["b2"], "SAME"), p["g2"], p["be2"])
    s = bn(conv(x, p["ws"], p["bs"], "VALID"), p["gs"], p["bes"])
    return jnp.maximum(y + s, 0.0)


if __name__ == "__main__":
    key = jax.random.PRNGKey(0)
    kx, kp = jax.random.split(key)
    in_c, out_c = 4, 8
    x = jax.random.normal(kx, (2, in_c, 16, 16), jnp.float32)   # NCHW like PyTorch
    params = init_params(kp, in_c, out_c)

    out = jax.block_until_ready(residual_block(x, params))
    ref = jax.block_until_ready(ref_forward(x, params))

    assert out.shape == (2, out_c, 16, 16)
    np.testing.assert_allclose(np.asarray(out), np.asarray(ref), rtol=1e-4, atol=1e-4)
    print("KERNEL_OK")
</pallas_src>

<mosaic_0001>
module attributes {stable_mosaic.version = 11 : i64} {
  func.func @residual_block_kernel(%arg0: memref<2x4x16x16xf32, #tpu.memory_space<vmem>>, %arg1: memref<8x36xf32, #tpu.memory_space<vmem>>, %arg2: memref<8x1xf32, #tpu.memory_space<vmem>>, %arg3: memref<8x1xf32, #tpu.memory_space<vmem>>, %arg4: memref<8x72xf32, #tpu.memory_space<vmem>>, %arg5: memref<8x1xf32, #tpu.memory_space<vmem>>, %arg6: memref<8x1xf32, #tpu.memory_space<vmem>>, %arg7: memref<8x4xf32, #tpu.memory_space<vmem>>, %arg8: memref<8x1xf32, #tpu.memory_space<vmem>>, %arg9: memref<8x1xf32, #tpu.memory_space<vmem>>, %arg10: memref<2x8x256xf32, #tpu.memory_space<vmem>>) attributes {dimension_semantics = [], scalar_prefetch = 0 : i64, scratch_operands = 0 : i64, tpu.core_type = #tpu.core_type<tc>} {
    %c0 = arith.constant 0 : index
    %c0_0 = arith.constant 0 : index
    %c0_1 = arith.constant 0 : index
    %c0_2 = arith.constant 0 : index
    %0 = vector.load %arg0[%c0, %c0_0, %c0_1, %c0_2] : memref<2x4x16x16xf32, #tpu.memory_space<vmem>>, vector<2x4x16x16xf32>
    %c0_3 = arith.constant 0 : index
    %c0_4 = arith.constant 0 : index
    %1 = vector.load %arg1[%c0_3, %c0_4] : memref<8x36xf32, #tpu.memory_space<vmem>>, vector<8x36xf32>
    %c0_5 = arith.constant 0 : index
    %c0_6 = arith.constant 0 : index
    %2 = vector.load %arg4[%c0_5, %c0_6] : memref<8x72xf32, #tpu.memory_space<vmem>>, vector<8x72xf32>
    %c0_7 = arith.constant 0 : index
    %c0_8 = arith.constant 0 : index
    %3 = vector.load %arg7[%c0_7, %c0_8] : memref<8x4xf32, #tpu.memory_space<vmem>>, vector<8x4xf32>
    %4 = vector.extract_strided_slice %0 {offsets = [0, 0, 0, 0], sizes = [1, 4, 16, 16], strides = [1, 1, 1, 1]} : vector<2x4x16x16xf32> to vector<1x4x16x16xf32>
    %5 = vector.shape_cast %4 : vector<1x4x16x16xf32> to vector<4x16x16xf32>
    %cst = arith.constant 0.000000e+00 : f32
    %6 = vector.broadcast %cst : f32 to vector<4x1x16xf32>
    %7 = tpu.concatenate %6, %5, %6 in 1 : vector<4x1x16xf32>, vector<4x16x16xf32>, vector<4x1x16xf32> -> vector<4x18x16xf32>
    %cst_9 = arith.constant 0.000000e+00 : f32
    %8 = vector.broadcast %cst_9 : f32 to vector<4x18x1xf32>
    %9 = tpu.concatenate %8, %7, %8 in 2 : vector<4x18x1xf32>, vector<4x18x16xf32>, vector<4x18x1xf32> -> vector<4x18x18xf32>
    %10 = vector.extract_strided_slice %9 {offsets = [0, 0, 0], sizes = [4, 16, 16], strides = [1, 1, 1]} : vector<4x18x18xf32> to vector<4x16x16xf32>
    %11 = vector.extract_strided_slice %9 {offsets = [0, 0, 1], sizes = [4, 16, 16], strides = [1, 1, 1]} : vector<4x18x18xf32> to vector<4x16x16xf32>
    %12 = vector.extract_strided_slice %9 {offsets = [0, 0, 2], sizes = [4, 16, 16], strides = [1, 1, 1]} : vector<4x18x18xf32> to vector<4x16x16xf32>
    %13 = vector.extract_strided_slice %9 {offsets = [0, 1, 0], sizes = [4, 16, 16], strides = [1, 1, 1]} : vector<4x18x18xf32> to vector<4x16x16xf32>
    %14 = vector.extract_strided_slice %9 {offsets = [0, 1, 1], sizes = [4, 16, 16], strides = [1, 1, 1]} : vector<4x18x18xf32> to vector<4x16x16xf32>
    %15 = vector.extract_strided_slice %9 {offsets = [0, 1, 2], sizes = [4, 16, 16], strides = [1, 1, 1]} : vector<4x18x18xf32> to vector<4x16x16xf32>
    %16 = vector.extract_strided_slice %9 {offsets = [0, 2, 0], sizes = [4, 16, 16], strides = [1, 1, 1]} : vector<4x18x18xf32> to vector<4x16x16xf32>
    %17 = vector.extract_strided_slice %9 {offsets = [0, 2, 1], sizes = [4, 16, 16], strides = [1, 1, 1]} : vector<4x18x18xf32> to vector<4x16x16xf32>
    %18 = vector.extract_strided_slice %9 {offsets = [0, 2, 2], sizes = [4, 16, 16], strides = [1, 1, 1]} : vector<4x18x18xf32> to vector<4x16x16xf32>
    %19 = tpu.concatenate %10, %11, %12, %13, %14, %15, %16, %17, %18 in 0 : vector<4x16x16xf32>, vector<4x16x16xf32>, vector<4x16x16xf32>, vector<4x16x16xf32>, vector<4x16x16xf32>, vector<4x16x16xf32>, vector<4x16x16xf32>, vector<4x16x16xf32>, vector<4x16x16xf32> -> vector<36x16x16xf32>
    %20 = vector.shape_cast %19 : vector<36x16x16xf32> to vector<36x256xf32>
    %cst_10 = arith.constant dense<0.000000e+00> : vector<8x256xf32>
    %21 = tpu.matmul %1, %20, %cst_10 {dimension_numbers = #tpu.dot_dimension_numbers<[1], [0], [0], [1], [0, 0, 1, 1], [], []>} : vector<8x36xf32>, vector<36x256xf32>, vector<8x256xf32> -> vector<8x256xf32>
    %22 = vector.extract_strided_slice %20 {offsets = [16, 0], sizes = [4, 256], strides = [1, 1]} : vector<36x256xf32> to vector<4x256xf32>
    %cst_11 = arith.constant dense<0.000000e+00> : vector<8x256xf32>
    %23 = tpu.matmul %3, %22, %cst_11 {dimension_numbers = #tpu.dot_dimension_numbers<[1], [0], [0], [1], [0, 0, 1, 1], [], []>} : vector<8x4xf32>, vector<4x256xf32>, vector<8x256xf32> -> vector<8x256xf32>
    %24 = vector.extract_strided_slice %0 {offsets = [1, 0, 0, 0], sizes = [1, 4, 16, 16], strides = [1, 1, 1, 1]} : vector<2x4x16x16xf32> to vector<1x4x16x16xf32>
    %25 = vector.shape_cast %24 : vector<1x4x16x16xf32> to vector<4x16x16xf32>
    %cst_12 = arith.constant 0.000000e+00 : f32
    %26 = vector.broadcast %cst_12 : f32 to vector<4x1x16xf32>
    %27 = tpu.concatenate %26, %25, %26 in 1 : vector<4x1x16xf32>, vector<4x16x16xf32>, vector<4x1x16xf32> -> vector<4x18x16xf32>
    %cst_13 = arith.constant 0.000000e+00 : f32
    %28 = vector.broadcast %cst_13 : f32 to vector<4x18x1xf32>
    %29 = tpu.concatenate %28, %27, %28 in 2 : vector<4x18x1xf32>, vector<4x18x16xf32>, vector<4x18x1xf32> -> vector<4x18x18xf32>
    %30 = vector.extract_strided_slice %29 {offsets = [0, 0, 0], sizes = [4, 16, 16], strides = [1, 1, 1]} : vector<4x18x18xf32> to vector<4x16x16xf32>
    %31 = vector.extract_strided_slice %29 {offsets = [0, 0, 1], sizes = [4, 16, 16], strides = [1, 1, 1]} : vector<4x18x18xf32> to vector<4x16x16xf32>
    %32 = vector.extract_strided_slice %29 {offsets = [0, 0, 2], sizes = [4, 16, 16], strides = [1, 1, 1]} : vector<4x18x18xf32> to vector<4x16x16xf32>
    %33 = vector.extract_strided_slice %29 {offsets = [0, 1, 0], sizes = [4, 16, 16], strides = [1, 1, 1]} : vector<4x18x18xf32> to vector<4x16x16xf32>
    %34 = vector.extract_strided_slice %29 {offsets = [0, 1, 1], sizes = [4, 16, 16], strides = [1, 1, 1]} : vector<4x18x18xf32> to vector<4x16x16xf32>
    %35 = vector.extract_strided_slice %29 {offsets = [0, 1, 2], sizes = [4, 16, 16], strides = [1, 1, 1]} : vector<4x18x18xf32> to vector<4x16x16xf32>
    %36 = vector.extract_strided_slice %29 {offsets = [0, 2, 0], sizes = [4, 16, 16], strides = [1, 1, 1]} : vector<4x18x18xf32> to vector<4x16x16xf32>
    %37 = vector.extract_strided_slice %29 {offsets = [0, 2, 1], sizes = [4, 16, 16], strides = [1, 1, 1]} : vector<4x18x18xf32> to vector<4x16x16xf32>
    %38 = vector.extract_strided_slice %29 {offsets = [0, 2, 2], sizes = [4, 16, 16], strides = [1, 1, 1]} : vector<4x18x18xf32> to vector<4x16x16xf32>
    %39 = tpu.concatenate %30, %31, %32, %33, %34, %35, %36, %37, %38 in 0 : vector<4x16x16xf32>, vector<4x16x16xf32>, vector<4x16x16xf32>, vector<4x16x16xf32>, vector<4x16x16xf32>, vector<4x16x16xf32>, vector<4x16x16xf32>, vector<4x16x16xf32>, vector<4x16x16xf32> -> vector<36x16x16xf32>
    %40 = vector.shape_cast %39 : vector<36x16x16xf32> to vector<36x256xf32>
    %cst_14 = arith.constant dense<0.000000e+00> : vector<8x256xf32>
    %41 = tpu.matmul %1, %40, %cst_14 {dimension_numbers = #tpu.dot_dimension_numbers<[1], [0], [0], [1], [0, 0, 1, 1], [], []>} : vector<8x36xf32>, vector<36x256xf32>, vector<8x256xf32> -> vector<8x256xf32>
    %42 = vector.extract_strided_slice %40 {offsets = [16, 0], sizes = [4, 256], strides = [1, 1]} : vector<36x256xf32> to vector<4x256xf32>
    %cst_15 = arith.constant dense<0.000000e+00> : vector<8x256xf32>
    %43 = tpu.matmul %3, %42, %cst_15 {dimension_numbers = #tpu.dot_dimension_numbers<[1], [0], [0], [1], [0, 0, 1, 1], [], []>} : vector<8x4xf32>, vector<4x256xf32>, vector<8x256xf32> -> vector<8x256xf32>
    %c0_16 = arith.constant 0 : index
    %c0_17 = arith.constant 0 : index
    %44 = vector.load %arg2[%c0_16, %c0_17] : memref<8x1xf32, #tpu.memory_space<vmem>>, vector<8x1xf32>
    %c0_18 = arith.constant 0 : index
    %c0_19 = arith.constant 0 : index
    %45 = vector.load %arg3[%c0_18, %c0_19] : memref<8x1xf32, #tpu.memory_space<vmem>>, vector<8x1xf32>
    %cst_20 = arith.constant dense<0.000000e+00> : vector<8xf32>
    %46 = vector.multi_reduction <add>, %21, %cst_20 [1] : vector<8x256xf32> to vector<8xf32>
    %47 = vector.shape_cast %46 : vector<8xf32> to vector<8x1xf32>
    %cst_21 = arith.constant 0.000000e+00 : f32
    %48 = vector.broadcast %cst_21 : f32 to vector<8x1xf32>
    %49 = arith.addf %48, %47 : vector<8x1xf32>
    %cst_22 = arith.constant dense<0.000000e+00> : vector<8xf32>
    %50 = vector.multi_reduction <add>, %41, %cst_22 [1] : vector<8x256xf32> to vector<8xf32>
    %51 = vector.shape_cast %50 : vector<8xf32> to vector<8x1xf32>
    %52 = arith.addf %49, %51 : vector<8x1xf32>
    %53 = arith.mulf %21, %21 : vector<8x256xf32>
    %cst_23 = arith.constant dense<0.000000e+00> : vector<8xf32>
    %54 = vector.multi_reduction <add>, %53, %cst_23 [1] : vector<8x256xf32> to vector<8xf32>
    %55 = vector.shape_cast %54 : vector<8xf32> to vector<8x1xf32>
    %cst_24 = arith.constant 0.000000e+00 : f32
    %56 = vector.broadcast %cst_24 : f32 to vector<8x1xf32>
    %57 = arith.addf %56, %55 : vector<8x1xf32>
    %58 = arith.mulf %41, %41 : vector<8x256xf32>
    %cst_25 = arith.constant dense<0.000000e+00> : vector<8xf32>
    %59 = vector.multi_reduction <add>, %58, %cst_25 [1] : vector<8x256xf32> to vector<8xf32>
    %60 = vector.shape_cast %59 : vector<8xf32> to vector<8x1xf32>
    %61 = arith.addf %57, %60 : vector<8x1xf32>
    %cst_26 = arith.constant 5.120000e+02 : f32
    %62 = vector.broadcast %cst_26 : f32 to vector<8x1xf32>
    %63 = arith.divf %52, %62 : vector<8x1xf32>
    %cst_27 = arith.constant 5.120000e+02 : f32
    %64 = vector.broadcast %cst_27 : f32 to vector<8x1xf32>
    %65 = arith.divf %61, %64 : vector<8x1xf32>
    %66 = arith.mulf %63, %63 : vector<8x1xf32>
    %67 = arith.subf %65, %66 : vector<8x1xf32>
    %cst_28 = arith.constant 9.99999974E-6 : f32
    %68 = vector.broadcast %cst_28 : f32 to vector<8x1xf32>
    %69 = arith.addf %67, %68 : vector<8x1xf32>
    %70 = math.rsqrt %69 : vector<8x1xf32>
    %71 = arith.mulf %44, %70 : vector<8x1xf32>
    %72 = arith.mulf %63, %71 : vector<8x1xf32>
    %73 = arith.subf %45, %72 : vector<8x1xf32>
    %74 = vector.broadcast %71 : vector<8x1xf32> to vector<8x256xf32>
    %75 = arith.mulf %21, %74 : vector<8x256xf32>
    %76 = vector.broadcast %73 : vector<8x1xf32> to vector<8x256xf32>
    %77 = arith.addf %75, %76 : vector<8x256xf32>
    %cst_29 = arith.constant 0.000000e+00 : f32
    %78 = vector.broadcast %cst_29 : f32 to vector<8x256xf32>
    %79 = arith.maximumf %77, %78 : vector<8x256xf32>
    %80 = vector.broadcast %71 : vector<8x1xf32> to vector<8x256xf32>
    %81 = arith.mulf %41, %80 : vector<8x256xf32>
    %82 = vector.broadcast %73 : vector<8x1xf32> to vector<8x256xf32>
    %83 = arith.addf %81, %82 : vector<8x256xf32>
    %cst_30 = arith.constant 0.000000e+00 : f32
    %84 = vector.broadcast %cst_30 : f32 to vector<8x256xf32>
    %85 = arith.maximumf %83, %84 : vector<8x256xf32>
    %86 = vector.shape_cast %79 : vector<8x256xf32> to vector<8x16x16xf32>
    %cst_31 = arith.constant 0.000000e+00 : f32
    %87 = vector.broadcast %cst_31 : f32 to vector<8x1x16xf32>
    %88 = tpu.concatenate %87, %86, %87 in 1 : vector<8x1x16xf32>, vector<8x16x16xf32>, vector<8x1x16xf32> -> vector<8x18x16xf32>
    %cst_32 = arith.constant 0.000000e+00 : f32
    %89 = vector.broadcast %cst_32 : f32 to vector<8x18x1xf32>
    %90 = tpu.concatenate %89, %88, %89 in 2 : vector<8x18x1xf32>, vector<8x18x16xf32>, vector<8x18x1xf32> -> vector<8x18x18xf32>
    %91 = vector.extract_strided_slice %90 {offsets = [0, 0, 0], sizes = [8, 16, 16], strides = [1, 1, 1]} : vector<8x18x18xf32> to vector<8x16x16xf32>
    %92 = vector.extract_strided_slice %90 {offsets = [0, 0, 1], sizes = [8, 16, 16], strides = [1, 1, 1]} : vector<8x18x18xf32> to vector<8x16x16xf32>
    %93 = vector.extract_strided_slice %90 {offsets = [0, 0, 2], sizes = [8, 16, 16], strides = [1, 1, 1]} : vector<8x18x18xf32> to vector<8x16x16xf32>
    %94 = vector.extract_strided_slice %90 {offsets = [0, 1, 0], sizes = [8, 16, 16], strides = [1, 1, 1]} : vector<8x18x18xf32> to vector<8x16x16xf32>
    %95 = vector.extract_strided_slice %90 {offsets = [0, 1, 1], sizes = [8, 16, 16], strides = [1, 1, 1]} : vector<8x18x18xf32> to vector<8x16x16xf32>
    %96 = vector.extract_strided_slice %90 {offsets = [0, 1, 2], sizes = [8, 16, 16], strides = [1, 1, 1]} : vector<8x18x18xf32> to vector<8x16x16xf32>
    %97 = vector.extract_strided_slice %90 {offsets = [0, 2, 0], sizes = [8, 16, 16], strides = [1, 1, 1]} : vector<8x18x18xf32> to vector<8x16x16xf32>
    %98 = vector.extract_strided_slice %90 {offsets = [0, 2, 1], sizes = [8, 16, 16], strides = [1, 1, 1]} : vector<8x18x18xf32> to vector<8x16x16xf32>
    %99 = vector.extract_strided_slice %90 {offsets = [0, 2, 2], sizes = [8, 16, 16], strides = [1, 1, 1]} : vector<8x18x18xf32> to vector<8x16x16xf32>
    %100 = tpu.concatenate %91, %92, %93, %94, %95, %96, %97, %98, %99 in 0 : vector<8x16x16xf32>, vector<8x16x16xf32>, vector<8x16x16xf32>, vector<8x16x16xf32>, vector<8x16x16xf32>, vector<8x16x16xf32>, vector<8x16x16xf32>, vector<8x16x16xf32>, vector<8x16x16xf32> -> vector<72x16x16xf32>
    %101 = vector.shape_cast %100 : vector<72x16x16xf32> to vector<72x256xf32>
    %cst_33 = arith.constant dense<0.000000e+00> : vector<8x256xf32>
    %102 = tpu.matmul %2, %101, %cst_33 {dimension_numbers = #tpu.dot_dimension_numbers<[1], [0], [0], [1], [0, 0, 1, 1], [], []>} : vector<8x72xf32>, vector<72x256xf32>, vector<8x256xf32> -> vector<8x256xf32>
    %103 = vector.shape_cast %85 : vector<8x256xf32> to vector<8x16x16xf32>
    %cst_34 = arith.constant 0.000000e+00 : f32
    %104 = vector.broadcast %cst_34 : f32 to vector<8x1x16xf32>
    %105 = tpu.concatenate %104, %103, %104 in 1 : vector<8x1x16xf32>, vector<8x16x16xf32>, vector<8x1x16xf32> -> vector<8x18x16xf32>
    %cst_35 = arith.constant 0.000000e+00 : f32
    %106 = vector.broadcast %cst_35 : f32 to vector<8x18x1xf32>
    %107 = tpu.concatenate %106, %105, %106 in 2 : vector<8x18x1xf32>, vector<8x18x16xf32>, vector<8x18x1xf32> -> vector<8x18x18xf32>
    %108 = vector.extract_strided_slice %107 {offsets = [0, 0, 0], sizes = [8, 16, 16], strides = [1, 1, 1]} : vector<8x18x18xf32> to vector<8x16x16xf32>
    %109 = vector.extract_strided_slice %107 {offsets = [0, 0, 1], sizes = [8, 16, 16], strides = [1, 1, 1]} : vector<8x18x18xf32> to vector<8x16x16xf32>
    %110 = vector.extract_strided_slice %107 {offsets = [0, 0, 2], sizes = [8, 16, 16], strides = [1, 1, 1]} : vector<8x18x18xf32> to vector<8x16x16xf32>
    %111 = vector.extract_strided_slice %107 {offsets = [0, 1, 0], sizes = [8, 16, 16], strides = [1, 1, 1]} : vector<8x18x18xf32> to vector<8x16x16xf32>
    %112 = vector.extract_strided_slice %107 {offsets = [0, 1, 1], sizes = [8, 16, 16], strides = [1, 1, 1]} : vector<8x18x18xf32> to vector<8x16x16xf32>
    %113 = vector.extract_strided_slice %107 {offsets = [0, 1, 2], sizes = [8, 16, 16], strides = [1, 1, 1]} : vector<8x18x18xf32> to vector<8x16x16xf32>
    %114 = vector.extract_strided_slice %107 {offsets = [0, 2, 0], sizes = [8, 16, 16], strides = [1, 1, 1]} : vector<8x18x18xf32> to vector<8x16x16xf32>
    %115 = vector.extract_strided_slice %107 {offsets = [0, 2, 1], sizes = [8, 16, 16], strides = [1, 1, 1]} : vector<8x18x18xf32> to vector<8x16x16xf32>
    %116 = vector.extract_strided_slice %107 {offsets = [0, 2, 2], sizes = [8, 16, 16], strides = [1, 1, 1]} : vector<8x18x18xf32> to vector<8x16x16xf32>
    %117 = tpu.concatenate %108, %109, %110, %111, %112, %113, %114, %115, %116 in 0 : vector<8x16x16xf32>, vector<8x16x16xf32>, vector<8x16x16xf32>, vector<8x16x16xf32>, vector<8x16x16xf32>, vector<8x16x16xf32>, vector<8x16x16xf32>, vector<8x16x16xf32>, vector<8x16x16xf32> -> vector<72x16x16xf32>
    %118 = vector.shape_cast %117 : vector<72x16x16xf32> to vector<72x256xf32>
    %cst_36 = arith.constant dense<0.000000e+00> : vector<8x256xf32>
    %119 = tpu.matmul %2, %118, %cst_36 {dimension_numbers = #tpu.dot_dimension_numbers<[1], [0], [0], [1], [0, 0, 1, 1], [], []>} : vector<8x72xf32>, vector<72x256xf32>, vector<8x256xf32> -> vector<8x256xf32>
    %c0_37 = arith.constant 0 : index
    %c0_38 = arith.constant 0 : index
    %120 = vector.load %arg5[%c0_37, %c0_38] : memref<8x1xf32, #tpu.memory_space<vmem>>, vector<8x1xf32>
    %c0_39 = arith.constant 0 : index
    %c0_40 = arith.constant 0 : index
    %121 = vector.load %arg6[%c0_39, %c0_40] : memref<8x1xf32, #tpu.memory_space<vmem>>, vector<8x1xf32>
    %cst_41 = arith.constant dense<0.000000e+00> : vector<8xf32>
    %122 = vector.multi_reduction <add>, %102, %cst_41 [1] : vector<8x256xf32> to vector<8xf32>
    %123 = vector.shape_cast %122 : vector<8xf32> to vector<8x1xf32>
    %cst_42 = arith.constant 0.000000e+00 : f32
    %124 = vector.broadcast %cst_42 : f32 to vector<8x1xf32>
    %125 = arith.addf %124, %123 : vector<8x1xf32>
    %cst_43 = arith.constant dense<0.000000e+00> : vector<8xf32>
    %126 = vector.multi_reduction <add>, %119, %cst_43 [1] : vector<8x256xf32> to vector<8xf32>
    %127 = vector.shape_cast %126 : vector<8xf32> to vector<8x1xf32>
    %128 = arith.addf %125, %127 : vector<8x1xf32>
    %129 = arith.mulf %102, %102 : vector<8x256xf32>
    %cst_44 = arith.constant dense<0.000000e+00> : vector<8xf32>
    %130 = vector.multi_reduction <add>, %129, %cst_44 [1] : vector<8x256xf32> to vector<8xf32>
    %131 = vector.shape_cast %130 : vector<8xf32> to vector<8x1xf32>
    %cst_45 = arith.constant 0.000000e+00 : f32
    %132 = vector.broadcast %cst_45 : f32 to vector<8x1xf32>
    %133 = arith.addf %132, %131 : vector<8x1xf32>
    %134 = arith.mulf %119, %119 : vector<8x256xf32>
    %cst_46 = arith.constant dense<0.000000e+00> : vector<8xf32>
    %135 = vector.multi_reduction <add>, %134, %cst_46 [1] : vector<8x256xf32> to vector<8xf32>
    %136 = vector.shape_cast %135 : vector<8xf32> to vector<8x1xf32>
    %137 = arith.addf %133, %136 : vector<8x1xf32>
    %cst_47 = arith.constant 5.120000e+02 : f32
    %138 = vector.broadcast %cst_47 : f32 to vector<8x1xf32>
    %139 = arith.divf %128, %138 : vector<8x1xf32>
    %cst_48 = arith.constant 5.120000e+02 : f32
    %140 = vector.broadcast %cst_48 : f32 to vector<8x1xf32>
    %141 = arith.divf %137, %140 : vector<8x1xf32>
    %142 = arith.mulf %139, %139 : vector<8x1xf32>
    %143 = arith.subf %141, %142 : vector<8x1xf32>
    %cst_49 = arith.constant 9.99999974E-6 : f32
    %144 = vector.broadcast %cst_49 : f32 to vector<8x1xf32>
    %145 = arith.addf %143, %144 : vector<8x1xf32>
    %146 = math.rsqrt %145 : vector<8x1xf32>
    %147 = arith.mulf %120, %146 : vector<8x1xf32>
    %148 = arith.mulf %139, %147 : vector<8x1xf32>
    %149 = arith.subf %121, %148 : vector<8x1xf32>
    %c0_50 = arith.constant 0 : index
    %c0_51 = arith.constant 0 : index
    %150 = vector.load %arg8[%c0_50, %c0_51] : memref<8x1xf32, #tpu.memory_space<vmem>>, vector<8x1xf32>
    %c0_52 = arith.constant 0 : index
    %c0_53 = arith.constant 0 : index
    %151 = vector.load %arg9[%c0_52, %c0_53] : memref<8x1xf32, #tpu.memory_space<vmem>>, vector<8x1xf32>
    %cst_54 = arith.constant dense<0.000000e+00> : vector<8xf32>
    %152 = vector.multi_reduction <add>, %23, %cst_54 [1] : vector<8x256xf32> to vector<8xf32>
    %153 = vector.shape_cast %152 : vector<8xf32> to vector<8x1xf32>
    %cst_55 = arith.constant 0.000000e+00 : f32
    %154 = vector.broadcast %cst_55 : f32 to vector<8x1xf32>
    %155 = arith.addf %154, %153 : vector<8x1xf32>
    %cst_56 = arith.constant dense<0.000000e+00> : vector<8xf32>
    %156 = vector.multi_reduction <add>, %43, %cst_56 [1] : vector<8x256xf32> to vector<8xf32>
    %157 = vector.shape_cast %156 : vector<8xf32> to vector<8x1xf32>
    %158 = arith.addf %155, %157 : vector<8x1xf32>
    %159 = arith.mulf %23, %23 : vector<8x256xf32>
    %cst_57 = arith.constant dense<0.000000e+00> : vector<8xf32>
    %160 = vector.multi_reduction <add>, %159, %cst_57 [1] : vector<8x256xf32> to vector<8xf32>
    %161 = vector.shape_cast %160 : vector<8xf32> to vector<8x1xf32>
    %cst_58 = arith.constant 0.000000e+00 : f32
    %162 = vector.broadcast %cst_58 : f32 to vector<8x1xf32>
    %163 = arith.addf %162, %161 : vector<8x1xf32>
    %164 = arith.mulf %43, %43 : vector<8x256xf32>
    %cst_59 = arith.constant dense<0.000000e+00> : vector<8xf32>
    %165 = vector.multi_reduction <add>, %164, %cst_59 [1] : vector<8x256xf32> to vector<8xf32>
    %166 = vector.shape_cast %165 : vector<8xf32> to vector<8x1xf32>
    %167 = arith.addf %163, %166 : vector<8x1xf32>
    %cst_60 = arith.constant 5.120000e+02 : f32
    %168 = vector.broadcast %cst_60 : f32 to vector<8x1xf32>
    %169 = arith.divf %158, %168 : vector<8x1xf32>
    %cst_61 = arith.constant 5.120000e+02 : f32
    %170 = vector.broadcast %cst_61 : f32 to vector<8x1xf32>
    %171 = arith.divf %167, %170 : vector<8x1xf32>
    %172 = arith.mulf %169, %169 : vector<8x1xf32>
    %173 = arith.subf %171, %172 : vector<8x1xf32>
    %cst_62 = arith.constant 9.99999974E-6 : f32
    %174 = vector.broadcast %cst_62 : f32 to vector<8x1xf32>
    %175 = arith.addf %173, %174 : vector<8x1xf32>
    %176 = math.rsqrt %175 : vector<8x1xf32>
    %177 = arith.mulf %150, %176 : vector<8x1xf32>
    %178 = arith.mulf %169, %177 : vector<8x1xf32>
    %179 = arith.subf %151, %178 : vector<8x1xf32>
    %180 = vector.broadcast %147 : vector<8x1xf32> to vector<8x256xf32>
    %181 = arith.mulf %102, %180 : vector<8x256xf32>
    %182 = vector.broadcast %149 : vector<8x1xf32> to vector<8x256xf32>
    %183 = arith.addf %181, %182 : vector<8x256xf32>
    %184 = vector.broadcast %177 : vector<8x1xf32> to vector<8x256xf32>
    %185 = arith.mulf %23, %184 : vector<8x256xf32>
    %186 = arith.addf %183, %185 : vector<8x256xf32>
    %187 = vector.broadcast %179 : vector<8x1xf32> to vector<8x256xf32>
    %188 = arith.addf %186, %187 : vector<8x256xf32>
    %cst_63 = arith.constant 0.000000e+00 : f32
    %189 = vector.broadcast %cst_63 : f32 to vector<8x256xf32>
    %190 = arith.maximumf %188, %189 : vector<8x256xf32>
    %191 = vector.broadcast %147 : vector<8x1xf32> to vector<8x256xf32>
    %192 = arith.mulf %119, %191 : vector<8x256xf32>
    %193 = vector.broadcast %149 : vector<8x1xf32> to vector<8x256xf32>
    %194 = arith.addf %192, %193 : vector<8x256xf32>
    %195 = vector.broadcast %177 : vector<8x1xf32> to vector<8x256xf32>
    %196 = arith.mulf %43, %195 : vector<8x256xf32>
    %197 = arith.addf %194, %196 : vector<8x256xf32>
    %198 = vector.broadcast %179 : vector<8x1xf32> to vector<8x256xf32>
    %199 = arith.addf %197, %198 : vector<8x256xf32>
    %cst_64 = arith.constant 0.000000e+00 : f32
    %200 = vector.broadcast %cst_64 : f32 to vector<8x256xf32>
    %201 = arith.maximumf %199, %200 : vector<8x256xf32>
    %202 = vector.shape_cast %190 : vector<8x256xf32> to vector<1x8x256xf32>
    %203 = vector.shape_cast %201 : vector<8x256xf32> to vector<1x8x256xf32>
    %204 = tpu.concatenate %202, %203 in 0 : vector<1x8x256xf32>, vector<1x8x256xf32> -> vector<2x8x256xf32>
    %c0_65 = arith.constant 0 : index
    %c0_66 = arith.constant 0 : index
    %c0_67 = arith.constant 0 : index
    %205 = vector.load %arg10[%c0_65, %c0_66, %c0_67] : memref<2x8x256xf32, #tpu.memory_space<vmem>>, vector<2x8x256xf32>
    tpu.vector_store %arg10[%c0_65, %c0_66, %c0_67], %204 {strides = array<i32>} : memref<2x8x256xf32, #tpu.memory_space<vmem>>, vector<2x8x256xf32>,
    return
  }
}

</mosaic_0001>

<bundles_post_ra>
// kernel: tpu_custom_call.1
= control target key start
LH: loop header
LB: loop body
LE: loop exit
PB: predicated region body
PF: predicated region fallthrough
CT: control target
= control target key end

     0   :  { %15 = vsyncpa [#allocation3], 0  ;;  %s22440_s0 = inlined_call_operand.hbm [shape: f32[2,4,16,16], index: 0, kind: input, shape index: {}]   ;;  %s22441_s1 = inlined_call_operand.vmem [shape: f32[8,36], index: 1, kind: input, shape index: {}]   ;;  %s22442_s2 = inlined_call_operand.vmem [shape: f32[8,1], index: 2, kind: input, shape index: {}]   ;;  %s22443_s3 = inlined_call_operand.vmem [shape: f32[8,1], index: 3, kind: input, shape index: {}]   ;;  %s22444_s4 = inlined_call_operand.vmem [shape: f32[8,72], index: 4, kind: input, shape index: {}]   ;;  %s22445_s5 = inlined_call_operand.vmem [shape: f32[8,1], index: 5, kind: input, shape index: {}]   ;;  %s22446_s6 = inlined_call_operand.vmem [shape: f32[8,1], index: 6, kind: input, shape index: {}]   ;;  %s22447_s7 = inlined_call_operand.vmem [shape: f32[8,4], index: 7, kind: input, shape index: {}]   ;;  %s22448_s8 = inlined_call_operand.vmem [shape: f32[8,1], index: 8, kind: input, shape index: {}]   ;;  %s22449_s9 = inlined_call_operand.vmem [shape: f32[8,1], index: 9, kind: input, shape index: {}]   ;;  %s22450_s10 = inlined_call_operand.hbm [shape: f32[2,8,256], index: 10, kind: output, shape index: {}]  }
   0x1   :  { %16 = vsyncpa [#allocation4], 0  ;;  %s13464_s13 = smov [#allocation2]   ;;  %s13416_s17 = scalar_lea.hbm %s22440_s0, 2048 }
   0x2   :  { %s22_s14 = sshll.u32 %s13464_s13, 4  ;;  %p13417_p0 = scmp.ne.s32.totalorder %s22440_s0, %s13416_s17  ;;  %s23_s14 = int_to_ptr.vmem [resolvable:$true] %s22_s14 }
   0x3   :  { %p13420_p1 = scmp.lt.u32.totalorder %s13416_s17, %s22440_s0 }
   0x5   :  { %p13422_p2 = pnand %p13420_p1, %p13417_p0 }
   0x7   :  { %13425 = shalt.err (!%p13422_p2)
}
   0x8   :  { %s13426_s22 = scalar_lea.vmem %s23_s14, 2048  ;;  %p13431_p4 = scmp.lt.s32.totalorder %s23_s14, %s23_s14 }
   0x9   :  { %p13427_p3 = scmp.ne.s32.totalorder %s23_s14, %s13426_s22  ;;  %p13432_p5 = scmp.lt.s32.totalorder %s13426_s22, %s13426_s22 }
   0xb   :  { %p13433_p6 = por %p13432_p5, %p13431_p4 }
   0xd   :  { %p13434_p7 = pnand %p13433_p6, %p13427_p3 }
   0xf   :  { %13437 = shalt.err (!%p13434_p7)
}
  0x10   :  { %s13465_s23 = smov 128   ;;  %s13466_s24 = smov 8  }
  0x11   :  { %28 = dma.hbm_to_vmem [thread:$0]  %s22440_s0, 2048, %s23_s14, [#allocation3], %s13465_s23, %s13465_s23, %s13466_s24  }
  0x12   :  { %13460 = dma.done.wait [#allocation3], 2048  }
  0x13   :  { %13461 = vsyncadd [#allocation3], 4294965248  ;;  %v51_v0 = vld [vmem:[#allocation2 + $0x8] sm:$0xff]  ;;  %vm77_vm0 = vcmask 1040384   ;;  %v50_v1 = vld [vmem:[#allocation2] sm:$0xff]  ;;  %s13467_s27 = smov 1   ;;  %v395_v52 = vlaneseq }
  0x14   :  { %v52_v2 = vld [vmem:[#allocation2 + $0x10] sm:$0xff]  ;;  %v79_v3 = vrot.slane %v51_v0, 7  ;;  %v78_v4 = vrot.slane %v50_v1, 7  ;;  %v53_v6 = vld [vmem:[#allocation2 + $0x18] sm:$0xff]  ;;  %v54_v12 = vld [vmem:[#allocation2 + $0x20] sm:$0xff]  ;;  %vm150_vm1 = vcmask 7168  }
  0x15   :  { %v81_v5 = vrot.slane %v52_v2, 7  ;;  %v82_v11 = vrot.slane %v53_v6, 7  ;;  %v55_v13 = vld [vmem:[#allocation2 + $0x28] sm:$0xff]  ;;  %v84_v16 = vrot.slane %v54_v12, 7  ;;  %v56_v18 = vld [vmem:[#allocation2 + $0x30] sm:$0xff]  ;;  %v57_v22 = vld [vmem:[#allocation2 + $0x38] sm:$0xff] }
  0x16   :  { %v102_v7 = vsel %vm77_vm0, %v79_v3, 0.0  ;;  %v98_v8 = vsel %vm77_vm0, 0.0, %v78_v4  ;;  %v80_v10 = vsel %vm77_vm0, %v78_v4, %v79_v3  ;;  %v85_v17 = vrot.slane %v55_v13, 7  ;;  %v58_v26 = vld [vmem:[#allocation2 + $0x40] sm:$0xff]  ;;  %v59_v27 = vld [vmem:[#allocation2 + $0x48] sm:$0xff]  ;;  %v60_v32 = vld [vmem:[#allocation2 + $0x50] sm:$0xff] }
  0x17   :  { %118 = vrot.lane.b32.xlu1 %v102_v7, %s13467_s27  ;;  %114 = vrot.lane.b32.xlu0 %v98_v8, %s13467_s27  ;;  %v99_v9 = vsel %vm77_vm0, 0.0, %v81_v5  ;;  %v103_v14 = vsel %vm77_vm0, %v82_v11, 0.0  ;;  %v83_v15 = vsel %vm77_vm0, %v81_v5, %v82_v11  ;;  %v100_v20 = vsel %vm77_vm0, 0.0, %v84_v16  ;;  %v61_v36 = vld [vmem:[#allocation2 + $0x58] sm:$0xff]  ;;  %s13468_s0 = smov 127   ;;  %s13470_s28 = smov 126  }
  0x18   :  { %v86_v19 = vsel %vm77_vm0, %v84_v16, %v85_v17  ;;  %v87_v21 = vrot.slane %v56_v18, 7  ;;  %v104_v24 = vsel %vm77_vm0, %v85_v17, 0.0  ;;  %v88_v25 = vrot.slane %v57_v22, 7  ;;  %s13473_s29 = smov 16   ;;  %s13474_s30 = smov 32  }
  0x19   :  { %v2142_v30 = vrot.slane %v58_v26, 7  ;;  %v2143_v31 = vrot.slane %v59_v27, 7  ;;  %v2145_v35 = vrot.slane %v60_v32, 7  ;;  %v2146_v39 = vrot.slane %v61_v36, 7  ;;  %s13475_s11 = smov 64   ;;  %s13476_s12 = smov 48  }
  0x1a   :  { %v101_v23 = vsel %vm77_vm0, 0.0, %v87_v21  ;;  %v105_v28 = vsel %vm77_vm0, %v88_v25, 0.0  ;;  %v89_v29 = vsel %vm77_vm0, %v87_v21, %v88_v25  ;;  %vm163_vm2 = vcmask 138240   ;;  %s13477_s13 = smov 96   ;;  %s13478_s14 = smov 80  }
  0x1b   :  { %120 = vrot.lane.b32.xlu1 %v99_v9, %s13467_s27  ;;  %116 = vrot.lane.b32.xlu0 %v80_v10, %s13467_s27  ;;  %v2144_v33 = vsel %vm77_vm0, %v2142_v30, %v2143_v31  ;;  %v2162_v34 = vsel %vm77_vm0, 0.0, %v2142_v30  ;;  %v2163_v37 = vsel %vm77_vm0, 0.0, %v2145_v35  ;;  %v2166_v38 = vsel %vm77_vm0, %v2143_v31, 0.0  ;;  %s13479_s15 = smov 112  }
  0x1c   :  { %v2167_v40 = vsel %vm77_vm0, %v2146_v39, 0.0  ;;  %v2147_v41 = vsel %vm77_vm0, %v2145_v35, %v2146_v39  ;;  %v13469_v50 = vmov 1983009808   ;;  %v13605_v59 = vshrl.u32 %v395_v52, 7 }
  0x1d   :  { %v393_v51 = vunpack.c.l.s4 %v13469_v50  ;;  %vm236_vm3 = vcmask 1046528   ;;  %vm313_vm4 = vcmask 1045504   ;;  %vm1894_vm5 = vcmask 130048  }
  0x1e   :  { %vm1900_vm6 = vcmask 261120   ;;  %vm1906_vm7 = vcmask 392192   ;;  %vm1912_vm8 = vcmask 523264   ;;  %vm1918_vm9 = vcmask 654336  }
  0x1f   :  { %124 = vrot.lane.b32.xlu1 %v103_v14, %s13467_s27  ;;  %122 = vrot.lane.b32.xlu0 %v83_v15, %s13467_s27  ;;  %v394_v58 = vunpack.c.0.s8 %v393_v51  ;;  %vm1924_vm10 = vcmask 785408   ;;  %vm1930_vm11 = vcmask 916480   ;;  %vm1975_vm12 = vcmask 1043456  }
  0x20   :  { %vm2053_vm13 = vcmask 31744   ;;  %vm1971_vm14 = vcmask 293888   ;;  %vm8258_vm15 = vcmask 588800  }
  0x21   :  { %v13617_v1 = vsub.s32 %v394_v58, %v13605_v59 }
  0x23   :  { %128 = vrot.lane.b32.xlu1 %v86_v19, %s13467_s27  ;;  %126 = vrot.lane.b32.xlu0 %v100_v20, %s13467_s27  ;;  %23329 = vst [vmem:[#allocation8_spill] sm:$0xff] %v13617_v1 }
  0x27   :  { %132 = vrot.lane.b32.xlu1 %v101_v23, %s13467_s27  ;;  %130 = vrot.lane.b32.xlu0 %v104_v24, %s13467_s27 }
  0x2b   :  { %136 = vrot.lane.b32.xlu1 %v105_v28, %s13467_s27  ;;  %134 = vrot.lane.b32.xlu0 %v89_v29, %s13467_s27 }
  0x2f   :  { %2180 = vrot.lane.b32.xlu0 %v2144_v33, %s13467_s27  ;;  %2178 = vrot.lane.b32.xlu1 %v2162_v34, %s13467_s27 }
  0x33   :  { %2184 = vrot.lane.b32.xlu0 %v2163_v37, %s13467_s27  ;;  %2182 = vrot.lane.b32.xlu1 %v2166_v38, %s13467_s27 }
  0x37   :  { %2188 = vrot.lane.b32.xlu0 %v2167_v40, %s13467_s27  ;;  %2186 = vrot.lane.b32.xlu1 %v2147_v41, %s13467_s27 }
  0x89   :  { %v119_v42 = vpop.permute.xlu1 %118  ;;  %v115_v43 = vpop.permute.xlu0 %114 }
  0x8a   :  { %v151_v44 = vsel %vm150_vm1, 0.0, %v115_v43  ;;  %v153_v60 = vsel %vm150_vm1, 0.0, %v119_v42 }
  0x8b   :  { %v13588_v45 = vsel %vm163_vm2, %v151_v44, 0.0  ;;  %v13614_v0 = vsel %vm163_vm2, %v153_v60, 0.0 }
  0x8c   :  { %184 = vrot.lane.b32.xlu0 %v13588_v45, %s13468_s0  ;;  %v240_v12 = vrot.slane %v13614_v0, 1  ;;  %v317_v13 = vrot.slane %v13614_v0, 2  ;;  %v237_v21 = vrot.slane %v13588_v45, 1 }
  0x8d   :  { %v121_v46 = vpop.permute.xlu1 %120  ;;  %v117_v47 = vpop.permute.xlu0 %116 }
  0x8e   :  { %v154_v48 = vsel %vm150_vm1, 0.0, %v121_v46  ;;  %v152_v49 = vsel %vm150_vm1, 0.0, %v117_v47 }
  0x8f   :  { %v13595_v53 = vsel %vm163_vm2, %v154_v48, 0.0  ;;  %v13598_v54 = vsel %vm163_vm2, %v152_v49, 0.0 }
  0x90   :  { %186 = vrot.lane.b32.xlu1 %v13598_v54, %s13468_s0  ;;  %188 = vrot.lane.b32.xlu0 %v13595_v53, %s13468_s0  ;;  %v238_v7 = vrot.slane %v13598_v54, 1  ;;  %v242_v24 = vrot.slane %v13595_v53, 1  ;;  %v315_v35 = vrot.slane %v13598_v54, 2 }
  0x91   :  { %v125_v55 = vpop.permute.xlu1 %124  ;;  %v123_v56 = vpop.permute.xlu0 %122 }
  0x92   :  { %v155_v57 = vsel %vm150_vm1, 0.0, %v123_v56  ;;  %v156_v4 = vsel %vm150_vm1, 0.0, %v125_v55  ;;  %v13662_v29 = vsel %vm236_vm3, %v237_v21, %v238_v7  ;;  %v13689_v48 = vsel %vm236_vm3, %v238_v7, %v240_v12 }
  0x93   :  { %v13609_v61 = vsel %vm163_vm2, %v155_v57, 0.0  ;;  %v169_v18 = vsel %vm163_vm2, %v156_v4, 0.0  ;;  %v13732_v12 = vsel %vm313_vm4, %v315_v35, %v317_v13 }
  0x94   :  { %190 = vrot.lane.b32.xlu1 %v13609_v61, %s13468_s0  ;;  %v245_v30 = vrot.slane %v169_v18, 1  ;;  %v243_v38 = vrot.slane %v13609_v61, 1  ;;  %v322_v55 = vrot.slane %v169_v18, 2  ;;  %v320_v58 = vrot.slane %v13609_v61, 2 }
  0x95   :  { %v129_v62 = vpop.permute.xlu1 %128  ;;  %v127_v63 = vpop.permute.xlu0 %126 }
  0x96   :  { %v158_v2 = vsel %vm150_vm1, 0.0, %v129_v62  ;;  %v157_v3 = vsel %vm150_vm1, 0.0, %v127_v63  ;;  %v13700_v56 = vsel %vm236_vm3, %v242_v24, %v243_v38  ;;  %v13703_v57 = vsel %vm236_vm3, %v243_v38, %v245_v30 }
  0x97   :  { %v13623_v5 = vsel %vm163_vm2, %v158_v2, 0.0  ;;  %v13626_v6 = vsel %vm163_vm2, %v157_v3, 0.0 }
  0x98   :  { %v1002_v8 = vcombine.low %v13598_v54, %v13623_v5  ;;  %v1003_v9 = vcombine.high %v13598_v54, %v13623_v5  ;;  %v390_v10 = vcombine.low %v13588_v45, %v13626_v6  ;;  %v391_v11 = vcombine.high %v13588_v45, %v13626_v6  ;;  %194 = vrot.lane.b32.xlu1 %v13623_v5, %s13468_s0 }
  0x99   :  { %192 = vrot.lane.b32.xlu0 %v13626_v6, %s13468_s0  ;;  %v133_v14 = vpop.permute.xlu1 %132  ;;  %v131_v15 = vpop.permute.xlu0 %130  ;;  %v247_v16 = vrot.slane %v13626_v6, 1  ;;  %v248_v17 = vrot.slane %v13623_v5, 1  ;;  %v325_v52 = vrot.slane %v13623_v5, 2 }
  0x9a   :  { %v160_v19 = vsel %vm150_vm1, 0.0, %v133_v14  ;;  %v159_v20 = vsel %vm150_vm1, 0.0, %v131_v15 }
  0x9b   :  { %v13650_v22 = vsel %vm163_vm2, %v160_v19, 0.0  ;;  %v172_v23 = vsel %vm163_vm2, %v159_v20, 0.0  ;;  %v13655_v25 = vsel %vm236_vm3, %v247_v16, %v248_v17  ;;  %v13750_v19 = vsel %vm313_vm4, %v320_v58, %v322_v55 }
  0x9c   :  { %v406_v26 = vcombine.low %v13595_v53, %v13650_v22  ;;  %v407_v27 = vcombine.high %v13595_v53, %v13650_v22  ;;  %v250_v28 = vrot.slane %v172_v23, 1  ;;  %v558_v33 = vcombine.low %v13662_v29, %v13655_v25 }
  0x9d   :  { %196 = vrot.lane.b32.xlu0 %v13650_v22, %s13468_s0  ;;  %v137_v31 = vpop.permute.xlu1 %136  ;;  %v135_v32 = vpop.permute.xlu0 %134  ;;  %v559_v34 = vcombine.high %v13662_v29, %v13655_v25  ;;  %v327_v40 = vrot.slane %v172_v23, 2  ;;  %v252_v43 = vrot.slane %v13650_v22, 1 }
  0x9e   :  { %v162_v36 = vsel %vm150_vm1, 0.0, %v137_v31  ;;  %v161_v37 = vsel %vm150_vm1, 0.0, %v135_v32  ;;  %v13675_v39 = vsel %vm236_vm3, %v248_v17, %v250_v28  ;;  %v13811_v55 = vrot.slane %v558_v33, %v13617_v1 }
  0x9f   :  { %v175_v41 = vsel %vm163_vm2, %v162_v36, 0.0  ;;  %v13679_v42 = vsel %vm163_vm2, %v161_v37, 0.0  ;;  %v1170_v49 = vcombine.low %v13689_v48, %v13675_v39  ;;  %v1171_v50 = vcombine.high %v13689_v48, %v13675_v39 }
  0xa0   :  { %v255_v44 = vrot.slane %v175_v41, 1  ;;  %v1018_v46 = vcombine.low %v13609_v61, %v13679_v42  ;;  %v1019_v47 = vcombine.high %v13609_v61, %v13679_v42  ;;  %198 = vrot.lane.b32.xlu1 %v13679_v42, %s13468_s0  ;;  %v253_v51 = vrot.slane %v13679_v42, 1 }
  0xa1   :  { %208 = vrot.lane.b32.xlu0 %v13588_v45, %s13470_s28  ;;  %v332_v60 = vrot.slane %v175_v41, 2  ;;  %v13715_v0 = vsel %vm313_vm4, %v325_v52, %v327_v40  ;;  %v330_v14 = vrot.slane %v13679_v42, 2  ;;  %v13736_v15 = vrot.slane %v1170_v49, %v13617_v1 }
  0xa2   :  { %v13707_v62 = vsel %vm236_vm3, %v252_v43, %v253_v51  ;;  %v13710_v63 = vsel %vm236_vm3, %v253_v51, %v255_v44  ;;  %v13739_v16 = vrot.slane %v1171_v50, %v13617_v1  ;;  %v1410_v13 = vcombine.low %v13732_v12, %v13715_v0 }
  0xa3   :  { %v574_v2 = vcombine.low %v13700_v56, %v13707_v62  ;;  %v575_v3 = vcombine.high %v13700_v56, %v13707_v62  ;;  %v1186_v4 = vcombine.low %v13703_v57, %v13710_v63  ;;  %v1187_v7 = vcombine.high %v13703_v57, %v13710_v63 }
  0xa4   :  { %210 = vrot.lane.b32.xlu1 %v13598_v54, %s13470_s28  ;;  %v1411_v20 = vcombine.high %v13732_v12, %v13715_v0  ;;  %v13759_v21 = vsel %vm313_vm4, %v330_v14, %v332_v60  ;;  %v13778_v36 = vrot.slane %v1410_v13, %v13617_v1  ;;  %v13814_v60 = vrot.slane %v1019_v47, %v13617_v1 }
  0xa5   :  { %212 = vrot.lane.b32.xlu0 %v13595_v53, %s13470_s28  ;;  %v13742_v17 = vrot.slane %v1186_v4, %v13617_v1  ;;  %v13745_v18 = vrot.slane %v1187_v7, %v13617_v1  ;;  %v1426_v31 = vcombine.low %v13750_v19, %v13759_v21  ;;  %v1427_v32 = vcombine.high %v13750_v19, %v13759_v21 }
  0xa6   :  { %v13789_v40 = vrot.slane %v1411_v20, %v13617_v1  ;;  %v13794_v41 = vrot.slane %v574_v2, %v13617_v1  ;;  %v13801_v49 = vrot.slane %v575_v3, %v13617_v1  ;;  %v13822_v2 = vrot.slane %v559_v34, %v13617_v1 }
  0xa7   :  { %v1234_v23 = vcombine.low %v13736_v15, %v13742_v17  ;;  %v13781_v37 = vrot.slane %v1426_v31, %v13617_v1  ;;  %v13784_v38 = vrot.slane %v1427_v32, %v13617_v1  ;;  %v13828_v3 = vrot.slane %v390_v10, %v13617_v1 }
  0xa8   :  { %214 = vrot.lane.b32.xlu1 %v13609_v61, %s13470_s28  ;;  %v13834_v33 = vrot.slane %v406_v26, %v13617_v1  ;;  %v622_v47 = vcombine.low %v13811_v55, %v13794_v41  ;;  %v13846_v10 = vrot.slane %v391_v11, %v13617_v1  ;;  %v13852_v26 = vrot.slane %v407_v27, %v13617_v1 }
  0xa9   :  { %216 = vrot.lane.b32.xlu0 %v13626_v6, %s13470_s28  ;;  %v13870_v27 = vrot.slane %v1003_v9, %v13617_v1  ;;  %v13880_v32 = vrot.slane %v1002_v8, %v13617_v1  ;;  %v13886_v51 = vrot.slane %v1018_v46, %v13617_v1  ;;  %v329_v54 = vrot.slane %v13650_v22, 2 }
  0xaa   :  { %v454_v4 = vcombine.low %v13828_v3, %v13834_v33 }
  0xab   :  { %v1066_v50 = vcombine.low %v13880_v32, %v13886_v51  ;;  %v13956_v61 = vsel %vm313_vm4, %v329_v54, %v330_v14 }
  0xac   :  { %218 = vrot.lane.b32.xlu1 %v13623_v5, %s13470_s28  ;;  %v62_v5 = vld [vmem:[#allocation2 + $0x60] sm:$0xff] }
  0xad   :  { %220 = vrot.lane.b32.xlu0 %v13650_v22, %s13470_s28  ;;  %v2148_v22 = vrot.slane %v62_v5, 7 }
  0xb0   :  { %222 = vrot.lane.b32.xlu1 %v13679_v42, %s13470_s28 }
  0xb1   :  { %265 = vrot.lane.b32.xlu0 %v13662_v29, %s13468_s0 }
  0xb4   :  { %267 = vrot.lane.b32.xlu1 %v13689_v48, %s13468_s0 }
  0xb5   :  { %269 = vrot.lane.b32.xlu0 %v13700_v56, %s13468_s0 }
  0xb8   :  { %271 = vrot.lane.b32.xlu1 %v13703_v57, %s13468_s0 }
  0xb9   :  { %273 = vrot.lane.b32.xlu0 %v13655_v25, %s13468_s0 }
  0xbc   :  { %275 = vrot.lane.b32.xlu1 %v13675_v39, %s13468_s0 }
  0xbd   :  { %277 = vrot.lane.b32.xlu0 %v13707_v62, %s13468_s0 }
  0xc0   :  { %279 = vrot.lane.b32.xlu1 %v13710_v63, %s13468_s0 }
  0xc1   :  { %289 = vrot.lane.b32.xlu0 %v13662_v29, %s13470_s28  ;;  %v314_v29 = vrot.slane %v13588_v45, 2 }
  0xc3   :  { %v13926_v46 = vsel %vm313_vm4, %v314_v29, %v315_v35 }
  0xc4   :  { %291 = vrot.lane.b32.xlu1 %v13689_v48, %s13470_s28  ;;  %v319_v48 = vrot.slane %v13595_v53, 2 }
  0xc5   :  { %293 = vrot.lane.b32.xlu0 %v13700_v56, %s13470_s28  ;;  %v2179_v56 = vpop.permute.xlu1 %2178 }
  0xc6   :  { %v13936_v45 = vsel %vm313_vm4, %v319_v48, %v320_v58  ;;  %v65_v58 = vld [vmem:[#allocation2 + $0x78] sm:$0xff]  ;;  %v22451_v48 = vmov 0.0  }
  0xc7   :  { %2127 = vmatprep.mubr.f32.mxu1 %v22451_v48  ;;  %2046 = vmatprep.mubr.f32.mxu0 %v22451_v48 }
  0xc8   :  { %295 = vrot.lane.b32.xlu1 %v13703_v57, %s13470_s28  ;;  %v2181_v57 = vpop.permute.xlu0 %2180 }
  0xc9   :  { %297 = vrot.lane.b32.xlu0 %v13655_v25, %s13470_s28  ;;  %v324_v25 = vrot.slane %v13626_v6, 2  ;;  %v63_v6 = vld [vmem:[#allocation2 + $0x68] sm:$0xff] }
  0xca   :  { %v2149_v35 = vrot.slane %v63_v6, 7 }
  0xcb   :  { %v13946_v53 = vsel %vm313_vm4, %v324_v25, %v325_v52 }
  0xcc   :  { %299 = vrot.lane.b32.xlu1 %v13675_v39, %s13470_s28  ;;  %v64_v39 = vld [vmem:[#allocation2 + $0x70] sm:$0xff]  ;;  %v2150_v42 = vsel %vm77_vm0, %v2148_v22, %v2149_v35  ;;  %v2185_v14 = vpop.permute.xlu0 %2184 }
  0xcd   :  { %301 = vrot.lane.b32.xlu0 %v13707_v62, %s13470_s28  ;;  %v2151_v52 = vrot.slane %v64_v39, 7  ;;  %v2164_v62 = vsel %vm77_vm0, 0.0, %v2148_v22  ;;  %v2214_v22 = vsel %vm150_vm1, 0.0, %v2179_v56 }
  0xce   :  { %v14005_v39 = vsel %vm163_vm2, %v2214_v22, 0.0 }
  0xcf   :  { %23333 = vst [vmem:[#allocation12_spill] sm:$0xff] %v14005_v39 }
  0xd0   :  { %303 = vrot.lane.b32.xlu1 %v13710_v63, %s13470_s28  ;;  %v2165_v63 = vsel %vm77_vm0, 0.0, %v2151_v52  ;;  %v13997_v6 = vpop.permute.xlu0 %2188 }
  0xd1   :  { %342 = vrot.lane.b32.xlu0 %v13926_v46, %s13468_s0  ;;  %23332 = vst [vmem:[#allocation11_spill] sm:$0xff] %v13997_v6 }
  0xd4   :  { %344 = vrot.lane.b32.xlu1 %v13732_v12, %s13468_s0 }
  0xd5   :  { %346 = vrot.lane.b32.xlu0 %v13936_v45, %s13468_s0 }
  0xd8   :  { %348 = vrot.lane.b32.xlu1 %v13750_v19, %s13468_s0 }
  0xd9   :  { %350 = vrot.lane.b32.xlu0 %v13946_v53, %s13468_s0 }
  0xdc   :  { %352 = vrot.lane.b32.xlu1 %v13715_v0, %s13468_s0 }
  0xdd   :  { %354 = vrot.lane.b32.xlu0 %v13956_v61, %s13468_s0 }
  0xe0   :  { %356 = vrot.lane.b32.xlu1 %v13759_v21, %s13468_s0 }
  0xe1   :  { %366 = vrot.lane.b32.xlu0 %v13926_v46, %s13470_s28 }
  0xe4   :  { %368 = vrot.lane.b32.xlu1 %v13732_v12, %s13470_s28  ;;  %v2152_v12 = vrot.slane %v65_v58, 7 }
  0xe5   :  { %370 = vrot.lane.b32.xlu0 %v13936_v45, %s13470_s28 }
  0xe6   :  { %v2169_v29 = vsel %vm77_vm0, %v2152_v12, 0.0  ;;  %v2153_v25 = vsel %vm77_vm0, %v2151_v52, %v2152_v12  ;;  %v13472_v12 = vmov 1934713408  }
  0xe8   :  { %372 = vrot.lane.b32.xlu1 %v13750_v19, %s13470_s28  ;;  %v2168_v19 = vsel %vm77_vm0, %v2149_v35, 0.0 }
  0xe9   :  { %374 = vrot.lane.b32.xlu0 %v13946_v53, %s13470_s28 }
  0xec   :  { %376 = vrot.lane.b32.xlu1 %v13715_v0, %s13470_s28  ;;  %v13983_v0 = vpop.permute.xlu1 %2182 }
  0xed   :  { %378 = vrot.lane.b32.xlu0 %v13956_v61, %s13470_s28  ;;  %23330 = vst [vmem:[#allocation9_spill] sm:$0xff] %v13983_v0 }
  0xf0   :  { %380 = vrot.lane.b32.xlu1 %v13759_v21, %s13470_s28  ;;  %v2215_v21 = vsel %vm150_vm1, 0.0, %v2181_v57  ;;  %v2187_v5 = vpop.permute.xlu1 %2186 }
  0xf1   :  { %2192 = vrot.lane.b32.xlu0 %v2150_v42, %s13467_s27  ;;  %v13995_v54 = vsel %vm163_vm2, %v2215_v21, 0.0  ;;  %v2218_v35 = vsel %vm150_vm1, 0.0, %v2187_v5  ;;  %v2217_v42 = vsel %vm150_vm1, 0.0, %v2185_v14  ;;  %v457_v14 = vunpack.c.l.s4 %v13472_v12 }
  0xf2   :  { %23331 = vst [vmem:[#allocation10_spill] sm:$0xff] %v13995_v54  ;;  %v14009_v52 = vsel %vm163_vm2, %v2218_v35, 0.0  ;;  %v14018_v58 = vsel %vm163_vm2, %v2217_v42, 0.0 }
  0xf3   :  { %23334 = vst [vmem:[#allocation13_spill] sm:$0xff] %v14009_v52  ;;  %23335 = vst [vmem:[#allocation14_spill] sm:$0xff] %v14018_v58 }
  0xf4   :  { %2190 = vrot.lane.b32.xlu1 %v2164_v62, %s13467_s27 }
  0xf5   :  { %2196 = vrot.lane.b32.xlu0 %v2165_v63, %s13467_s27 }
  0xf8   :  { %2194 = vrot.lane.b32.xlu1 %v2168_v19, %s13467_s27 }
  0xf9   :  { %2200 = vrot.lane.b32.xlu0 %v2169_v29, %s13467_s27 }
  0xfc   :  { %2198 = vrot.lane.b32.xlu1 %v2153_v25, %s13467_s27  ;;  %v458_v25 = vunpack.c.0.s8 %v457_v14 }
  0xfd   :  { %2248 = vrot.lane.b32.xlu0 %v13995_v54, %s13468_s0 }
  0xfe   :  { %v185_v57 = vpop.permute.xlu0 %184  ;;  %v14031_v8 = vsub.s32 %v458_v25, %v13605_v59 }
 0x100   :  { %2246 = vrot.lane.b32.xlu1 %v14005_v39, %s13468_s0  ;;  %23336 = vst [vmem:[#allocation15_spill] sm:$0xff] %v14031_v8  ;;  %v14049_v59 = vrot.slane %v454_v4, %v14031_v8  ;;  %v14064_v4 = vrot.slane %v1066_v50, %v14031_v8  ;;  %v14079_v50 = vrot.slane %v1234_v23, %v14031_v8 }
 0x101   :  { %2252 = vrot.lane.b32.xlu0 %v14009_v52, %s13468_s0  ;;  %v23345_v23 = vcombine.low %v13822_v2, %v13801_v49 }
 0x102   :  { %v14015_v56 = vpop.permute.xlu1 %186  ;;  %v189_v62 = vpop.permute.xlu0 %188  ;;  %23337 = vst [vmem:[#allocation16_spill] sm:$0xff] %v14049_v59  ;;  %23339 = vst [vmem:[#allocation18_spill] sm:$0xff] %v14064_v4 }
 0x103   :  { %23341 = vst [vmem:[#allocation20_spill] sm:$0xff] %v14079_v50  ;;  %v646_v11 = vrot.slane %v23345_v23, %v14031_v8 }
 0x104   :  { %2250 = vrot.lane.b32.xlu1 %v14018_v58, %s13468_s0 }
 0x106   :  { %v14022_v63 = vpop.permute.xlu1 %190 }
 0x10a   :  { %v14024_v29 = vpop.permute.xlu1 %194 }
 0x10b   :  { %v193_v19 = vpop.permute.xlu0 %192  ;;  %v1034_v35 = vcombine.low %v14015_v56, %v14024_v29 }
 0x10c   :  { %v422_v21 = vcombine.low %v185_v57, %v193_v19  ;;  %v423_v43 = vcombine.high %v185_v57, %v193_v19 }
 0x10d   :  { %v14038_v14 = vrot.slane %v1034_v35, %v13617_v1 }
 0x10e   :  { %v430_v42 = vrot.slane %v422_v21, %v13617_v1 }
 0x10f   :  { %v197_v5 = vpop.permute.xlu0 %196 }
 0x110   :  { %v438_v22 = vcombine.low %v189_v62, %v197_v5  ;;  %v439_v25 = vcombine.high %v189_v62, %v197_v5 }
 0x112   :  { %v446_v48 = vrot.slane %v438_v22, %v13617_v1  ;;  %v14033_v28 = vpop.permute.xlu1 %198  ;;  %v453_v62 = vrot.slane %v439_v25, %v13617_v1  ;;  %v14085_v25 = vrot.slane %v622_v47, %v14031_v8 }
 0x113   :  { %v1050_v12 = vcombine.low %v14022_v63, %v14033_v28  ;;  %v209_v44 = vpop.permute.xlu0 %208 }
 0x114   :  { %v486_v30 = vcombine.low %v430_v42, %v446_v48  ;;  %v487_v57 = vcombine.high %v430_v42, %v446_v48  ;;  %23342 = vst [vmem:[#allocation21_spill] sm:$0xff] %v14085_v25 }
 0x115   :  { %v14041_v9 = vrot.slane %v1050_v12, %v13617_v1  ;;  %v437_v12 = vrot.slane %v423_v43, %v13617_v1  ;;  %v23343_v43 = vcombine.high %v13811_v55, %v13794_v41  ;;  %v23346_v41 = vcombine.high %v13822_v2, %v13801_v49 }
 0x116   :  { %v14043_v24 = vpop.permute.xlu1 %210  ;;  %v14052_v21 = vrot.slane %v486_v30, %v14031_v8  ;;  %v501_v0 = vrot.slane %v487_v57, %v14031_v8  ;;  %v23348_v49 = vcombine.low %v13846_v10, %v13852_v26 }
 0x117   :  { %v1098_v22 = vcombine.low %v14038_v14, %v14041_v9  ;;  %v213_v35 = vpop.permute.xlu0 %212  ;;  %v502_v7 = vcombine.low %v437_v12, %v453_v62  ;;  %v503_v6 = vcombine.high %v437_v12, %v453_v62  ;;  %v653_v55 = vrot.slane %v23346_v41, %v14031_v8 }
 0x118   :  { %23338 = vst [vmem:[#allocation17_spill] sm:$0xff] %v14052_v21  ;;  %v478_v2 = vrot.slane %v23348_v49, %v14031_v8  ;;  %v519_v49 = vcombine.high %v14049_v59, %v14052_v21 }
 0x119   :  { %v14067_v30 = vrot.slane %v1098_v22, %v14031_v8  ;;  %v23344_v22 = vcombine.high %v13828_v3, %v13834_v33  ;;  %v510_v57 = vrot.slane %v502_v7, %v14031_v8  ;;  %v517_v7 = vrot.slane %v503_v6, %v14031_v8 }
 0x11a   :  { %v14058_v31 = vpop.permute.xlu1 %214 }
 0x11b   :  { %23340 = vst [vmem:[#allocation19_spill] sm:$0xff] %v14067_v30  ;;  %v217_v5 = vpop.permute.xlu0 %216 }
 0x11c   :  { %v526_v19 = vcombine.low %v209_v44, %v217_v5  ;;  %v527_v20 = vcombine.high %v209_v44, %v217_v5  ;;  %v637_v44 = vrot.slane %v23343_v43, %v14031_v8  ;;  %v469_v5 = vrot.slane %v23344_v22, %v14031_v8 }
 0x11e   :  { %v14073_v13 = vpop.permute.xlu1 %218  ;;  %v541_v3 = vrot.slane %v527_v20, %v13617_v1  ;;  %v23349_v20 = vcombine.high %v13846_v10, %v13852_v26  ;;  %v520_v26 = vcombine.low %v469_v5, %v501_v0 }
 0x11f   :  { %v221_v34 = vpop.permute.xlu0 %220  ;;  %v1138_v47 = vcombine.low %v14043_v24, %v14073_v13 }
 0x120   :  { %v542_v48 = vcombine.low %v213_v35, %v221_v34  ;;  %v543_v42 = vcombine.high %v213_v35, %v221_v34  ;;  %v534_v34 = vrot.slane %v526_v19, %v13617_v1  ;;  %v485_v19 = vrot.slane %v23349_v20, %v14031_v8 }
 0x121   :  { %v14126_v41 = vrot.slane %v1138_v47, %v13617_v1 }
 0x122   :  { %v550_v33 = vrot.slane %v542_v48, %v13617_v1  ;;  %v557_v35 = vrot.slane %v543_v42, %v13617_v1  ;;  %v14110_v43 = vpop.permute.xlu1 %222  ;;  %v524_v58 = vcombine.low %v485_v19, %v517_v7  ;;  %v525_v39 = vcombine.high %v485_v19, %v517_v7 }
 0x123   :  { %v1154_v12 = vcombine.low %v14058_v31, %v14110_v43  ;;  %v14114_v62 = vpop.permute.xlu0 %265 }
 0x124   :  { %23347 = vst [vmem:[#allocation22_spill] sm:$0xff] %v14114_v62  ;;  %v590_v48 = vcombine.low %v534_v34, %v550_v33  ;;  %v591_v42 = vcombine.high %v534_v34, %v550_v33  ;;  %v606_v22 = vcombine.low %v541_v3, %v557_v35  ;;  %v607_v23 = vcombine.high %v541_v3, %v557_v35 }
 0x125   :  { %v14129_v52 = vrot.slane %v1154_v12, %v13617_v1  ;;  %v521_v35 = vcombine.high %v469_v5, %v501_v0  ;;  %v522_v12 = vcombine.low %v478_v2, %v510_v57 }
 0x126   :  { %v14134_v54 = vpop.permute.xlu1 %267  ;;  %v14137_v10 = vrot.slane %v590_v48, %v14031_v8  ;;  %v605_v34 = vrot.slane %v591_v42, %v14031_v8  ;;  %v614_v3 = vrot.slane %v606_v22, %v14031_v8  ;;  %v621_v20 = vrot.slane %v607_v23, %v14031_v8 }
 0x127   :  { %23350 = vst [vmem:[#allocation23_spill] sm:$0xff] %v14134_v54  ;;  %v1202_v47 = vcombine.low %v14126_v41, %v14129_v52  ;;  %v14143_v33 = vpop.permute.xlu0 %269  ;;  %v523_v22 = vcombine.high %v478_v2, %v510_v57 }
 0x128   :  { %23351 = vst [vmem:[#allocation24_spill] sm:$0xff] %v14137_v10  ;;  %23352 = vst [vmem:[#allocation25_spill] sm:$0xff] %v14143_v33  ;;  %v655_v6 = vcombine.high %v14137_v10, %v14085_v25  ;;  %v656_v21 = vcombine.low %v605_v34, %v637_v44  ;;  %v657_v59 = vcombine.high %v605_v34, %v637_v44 }
 0x129   :  { %v14151_v42 = vrot.slane %v1202_v47, %v14031_v8  ;;  %v658_v30 = vcombine.low %v614_v3, %v646_v11  ;;  %v659_v44 = vcombine.high %v614_v3, %v646_v11  ;;  %v660_v34 = vcombine.low %v621_v20, %v653_v55 }
 0x12a   :  { %v14153_v4 = vpop.permute.xlu1 %271  ;;  %v14155_v0 = vpack.i.bf16 %v655_v6, %v519_v49  ;;  %v14157_v5 = vpack.i.bf16 %v656_v21, %v520_v26  ;;  %v14159_v23 = vpack.i.bf16 %v657_v59, %v521_v35  ;;  %v661_v47 = vcombine.high %v621_v20, %v653_v55 }
 0x12b   :  { %23353 = vst [vmem:[#allocation26_spill] sm:$0xff] %v14151_v42  ;;  %23354 = vst [vmem:[#allocation27_spill] sm:$0xff] %v14153_v4  ;;  %v14163_v25 = vpop.permute.xlu0 %273  ;;  %v14165_v2 = vpack.i.bf16 %v658_v30, %v522_v12  ;;  %v14167_v57 = vpack.i.bf16 %v659_v44, %v523_v22  ;;  %v14169_v19 = vpack.i.bf16 %v660_v34, %v524_v58 }
 0x12c   :  { %23355 = vst [vmem:[#allocation28_spill] sm:$0xff] %v14163_v25  ;;  %v14171_v49 = vpack.i.bf16 %v661_v47, %v525_v39  ;;  %v815_v58 = vcombine.high %v13936_v45, %v13956_v61  ;;  %v814_v39 = vcombine.low %v13936_v45, %v13956_v61  ;;  %v798_v12 = vcombine.low %v13926_v46, %v13946_v53 }
 0x12d   :  { %v799_v20 = vcombine.high %v13926_v46, %v13946_v53  ;;  %v1051_v6 = vcombine.high %v14022_v63, %v14033_v28  ;;  %v662_v22 = vcombine.low %v14114_v62, %v14163_v25  ;;  %v1035_v28 = vcombine.high %v14015_v56, %v14024_v29 }
 0x12e   :  { %v14173_v21 = vpop.permute.xlu1 %275  ;;  %v829_v45 = vrot.slane %v815_v58, %v13617_v1  ;;  %v822_v46 = vrot.slane %v814_v39, %v13617_v1  ;;  %v806_v48 = vrot.slane %v798_v12, %v13617_v1 }
 0x12f   :  { %23356 = vst [vmem:[#allocation29_spill] sm:$0xff] %v14173_v21  ;;  %v14175_v59 = vpop.permute.xlu0 %277  ;;  %v813_v58 = vrot.slane %v799_v20, %v13617_v1  ;;  %v1274_v10 = vcombine.low %v14134_v54, %v14173_v21  ;;  %v1065_v39 = vrot.slane %v1051_v6, %v13617_v1  ;;  %v14228_v56 = vrot.slane %v662_v22, %v13617_v1 }
 0x130   :  { %23357 = vst [vmem:[#allocation30_spill] sm:$0xff] %v14175_v59  ;;  %v678_v3 = vcombine.low %v14143_v33, %v14175_v59  ;;  %v1049_v22 = vrot.slane %v1035_v28, %v13617_v1  ;;  %v23370_v28 = vcombine.low %v13778_v36, %v13781_v37 }
 0x131   :  { %v878_v20 = vcombine.low %v813_v58, %v829_v45 }
 0x132   :  { %v14177_v7 = vpop.permute.xlu1 %279  ;;  %v14216_v53 = vrot.slane %v678_v3, %v13617_v1  ;;  %v14265_v62 = vrot.slane %v23370_v28, %v14031_v8 }
 0x133   :  { %23358 = vst [vmem:[#allocation31_spill] sm:$0xff] %v14177_v7  ;;  %v14179_v26 = vpop.permute.xlu0 %289  ;;  %v1290_v61 = vcombine.low %v14153_v4, %v14177_v7  ;;  %v879_v7 = vcombine.high %v813_v58, %v829_v45  ;;  %v863_v58 = vcombine.high %v806_v48, %v822_v46 }
 0x134   :  { %23359 = vst [vmem:[#allocation32_spill] sm:$0xff] %v14179_v26 }
 0x135   :  { %v14239_v54 = vrot.slane %v1290_v61, %v13617_v1 }
 0x136   :  { %v14181_v35 = vpop.permute.xlu1 %291 }
 0x137   :  { %23360 = vst [vmem:[#allocation33_spill] sm:$0xff] %v14181_v35  ;;  %v14183_v11 = vpop.permute.xlu0 %293  ;;  %23366 = vst [vmem:[#allocation39_spill] sm:$0xff] %v14239_v54 }
 0x138   :  { %23361 = vst [vmem:[#allocation34_spill] sm:$0xff] %v14183_v11 }
 0x13a   :  { %v14185_v30 = vpop.permute.xlu1 %295 }
 0x13b   :  { %23362 = vst [vmem:[#allocation35_spill] sm:$0xff] %v14185_v30  ;;  %v14189_v55 = vpop.permute.xlu0 %297 }
 0x13c   :  { %23363 = vst [vmem:[#allocation36_spill] sm:$0xff] %v14189_v55  ;;  %v694_v44 = vcombine.low %v14179_v26, %v14189_v55  ;;  %v1099_v26 = vcombine.high %v14038_v14, %v14041_v9  ;;  %v23371_v9 = vcombine.high %v13736_v15, %v13742_v17 }
 0x13e   :  { %v14205_v34 = vpop.permute.xlu1 %299  ;;  %v14231_v29 = vrot.slane %v694_v44, %v13617_v1  ;;  %v726_v44 = vcombine.low %v14228_v56, %v14216_v53  ;;  %v14299_v14 = vrot.slane %v23371_v9, %v14031_v8 }
 0x13f   :  { %23364 = vst [vmem:[#allocation37_spill] sm:$0xff] %v14205_v34  ;;  %v14210_v47 = vpop.permute.xlu0 %301  ;;  %v1306_v4 = vcombine.low %v14181_v35, %v14205_v34  ;;  %v862_v35 = vcombine.low %v806_v48, %v822_v46  ;;  %v14251_v34 = vrot.slane %v1274_v10, %v13617_v1  ;;  %v1115_v10 = vcombine.high %v1049_v22, %v1065_v39 }
 0x140   :  { %v710_v63 = vcombine.low %v14183_v11, %v14210_v47  ;;  %v14279_v28 = vrot.slane %v726_v44, %v14031_v8 }
 0x141   :  { %23367 = vst [vmem:[#allocation40_spill] sm:$0xff] %v14251_v34  ;;  %v14254_v45 = vrot.slane %v1306_v4, %v13617_v1  ;;  %v1155_v4 = vcombine.high %v14058_v31, %v14110_v43  ;;  %v1139_v31 = vcombine.high %v14043_v24, %v14073_v13  ;;  %v14290_v43 = vrot.slane %v863_v58, %v14031_v8 }
 0x142   :  { %v14234_v3 = vrot.slane %v710_v63, %v13617_v1  ;;  %v14236_v12 = vpop.permute.xlu1 %303  ;;  %v23372_v24 = vcombine.low %v13870_v27, %v13814_v60  ;;  %v14316_v15 = vrot.slane %v1115_v10, %v14031_v8  ;;  %v23374_v58 = vcombine.high %v13870_v27, %v13814_v60 }
 0x143   :  { %23365 = vst [vmem:[#allocation38_spill] sm:$0xff] %v14236_v12  ;;  %v1322_v21 = vcombine.low %v14185_v30, %v14236_v12  ;;  %v14243_v6 = vpop.permute.xlu0 %342  ;;  %23368 = vst [vmem:[#allocation41_spill] sm:$0xff] %v14254_v45  ;;  %v1114_v30 = vcombine.low %v1049_v22, %v1065_v39  ;;  %v14285_v39 = vrot.slane %v878_v20, %v14031_v8 }
 0x144   :  { %v758_v63 = vcombine.low %v14231_v29, %v14234_v3  ;;  %v14293_v22 = vrot.slane %v879_v7, %v14031_v8  ;;  %v14308_v13 = vrot.slane %v23372_v24, %v14031_v8  ;;  %v1169_v17 = vrot.slane %v1155_v4, %v13617_v1 }
 0x145   :  { %v14257_v61 = vrot.slane %v1322_v21, %v13617_v1  ;;  %v1338_v21 = vcombine.low %v14251_v34, %v14239_v54  ;;  %v14323_v9 = vrot.slane %v23374_v58, %v14031_v8  ;;  %v23376_v10 = vcombine.high %v13778_v36, %v13781_v37 }
 0x146   :  { %v14259_v12 = vpop.permute.xlu1 %344  ;;  %v14268_v25 = vrot.slane %v758_v63, %v14031_v8  ;;  %v14282_v63 = vrot.slane %v862_v35, %v14031_v8  ;;  %v14302_v35 = vrot.slane %v1114_v30, %v14031_v8  ;;  %v23377_v4 = vcombine.low %v13739_v16, %v13745_v18 }
 0x147   :  { %23369 = vst [vmem:[#allocation42_spill] sm:$0xff] %v14257_v61  ;;  %v1370_v48 = vcombine.low %v14254_v45, %v14257_v61  ;;  %v347_v46 = vpop.permute.xlu0 %346  ;;  %v14326_v24 = vrot.slane %v1338_v21, %v14031_v8  ;;  %v14335_v7 = vrot.slane %v23376_v10, %v14031_v8  ;;  %v23378_v60 = vcombine.low %v13789_v40, %v13784_v38 }
 0x148   :  { %v14341_v34 = vrot.slane %v23377_v4, %v14031_v8  ;;  %v1203_v21 = vcombine.high %v14126_v41, %v14129_v52  ;;  %v23379_v36 = vcombine.high %v13880_v32, %v13886_v51  ;;  %v1136_v51 = vcombine.low %v14323_v9, %v14316_v15 }
 0x149   :  { %v14311_v44 = vrot.slane %v1370_v48, %v14031_v8  ;;  %23375 = vst [vmem:[#allocation44_spill] sm:$0xff] %v14326_v24  ;;  %v14329_v48 = vrot.slane %v1099_v26, %v14031_v8  ;;  %v14347_v27 = vrot.slane %v23378_v60, %v14031_v8  ;;  %v1153_v26 = vrot.slane %v1139_v31, %v13617_v1  ;;  %v23380_v24 = vld [vmem:[#allocation19_spill] sm:$0xff] }
 0x14a   :  { %v349_v20 = vpop.permute.xlu1 %348  ;;  %v1081_v37 = vrot.slane %v23379_v36, %v14031_v8  ;;  %v1134_v60 = vcombine.low %v14308_v13, %v14302_v35  ;;  %v1137_v32 = vcombine.high %v14323_v9, %v14316_v15  ;;  %v14372_v61 = vrot.slane %v1203_v21, %v14031_v8 }
 0x14b   :  { %23373 = vst [vmem:[#allocation43_spill] sm:$0xff] %v14311_v44  ;;  %v351_v30 = vpop.permute.xlu0 %350  ;;  %v1218_v52 = vcombine.low %v1153_v26, %v1169_v17  ;;  %v1219_v41 = vcombine.high %v1153_v26, %v1169_v17 }
 0x14c   :  { %v830_v10 = vcombine.low %v14243_v6, %v351_v30  ;;  %v831_v4 = vcombine.high %v14243_v6, %v351_v30  ;;  %v23381_v6 = vld [vmem:[#allocation18_spill] sm:$0xff]  ;;  %v1132_v44 = vcombine.low %v1081_v37, %v14329_v48  ;;  %v1133_v26 = vcombine.high %v1081_v37, %v14329_v48 }
 0x14d   :  { %v1131_v30 = vcombine.high %v23381_v6, %v23380_v24  ;;  %v14382_v24 = vrot.slane %v1218_v52, %v14031_v8  ;;  %v14385_v21 = vrot.slane %v1219_v41, %v14031_v8 }
 0x14e   :  { %v353_v54 = vpop.permute.xlu1 %352  ;;  %v838_v55 = vrot.slane %v830_v10, %v13617_v1  ;;  %v845_v15 = vrot.slane %v831_v4, %v13617_v1 }
 0x14f   :  { %v355_v45 = vpop.permute.xlu0 %354  ;;  %v1442_v31 = vcombine.low %v14259_v12, %v353_v54  ;;  %v1443_v17 = vcombine.high %v14259_v12, %v353_v54 }
 0x150   :  { %v846_v36 = vcombine.low %v347_v46, %v355_v45  ;;  %v847_v58 = vcombine.high %v347_v46, %v355_v45 }
 0x151   :  { %v1450_v4 = vrot.slane %v1442_v31, %v13617_v1 }
 0x152   :  { %v854_v45 = vrot.slane %v846_v36, %v13617_v1  ;;  %v861_v46 = vrot.slane %v847_v58, %v13617_v1  ;;  %v357_v9 = vpop.permute.xlu1 %356  ;;  %v1457_v36 = vrot.slane %v1443_v17, %v13617_v1 }
 0x153   :  { %v1458_v6 = vcombine.low %v349_v20, %v357_v9  ;;  %v1459_v33 = vcombine.high %v349_v20, %v357_v9  ;;  %v14387_v54 = vpop.permute.xlu0 %366 }
 0x154   :  { %v894_v12 = vcombine.low %v838_v55, %v854_v45  ;;  %v895_v48 = vcombine.high %v838_v55, %v854_v45  ;;  %v910_v37 = vcombine.low %v845_v15, %v861_v46  ;;  %v911_v10 = vcombine.high %v845_v15, %v861_v46 }
 0x155   :  { %v1466_v58 = vrot.slane %v1458_v6, %v13617_v1  ;;  %v1473_v52 = vrot.slane %v1459_v33, %v13617_v1 }
 0x156   :  { %v918_v59 = vrot.slane %v910_v37, %v14031_v8  ;;  %v925_v41 = vrot.slane %v911_v10, %v14031_v8  ;;  %v14395_v11 = vpop.permute.xlu1 %368  ;;  %v14398_v20 = vrot.slane %v894_v12, %v14031_v8  ;;  %v909_v55 = vrot.slane %v895_v48, %v14031_v8 }
 0x157   :  { %v1506_v15 = vcombine.low %v1450_v4, %v1466_v58  ;;  %v1507_v45 = vcombine.high %v1450_v4, %v1466_v58  ;;  %v1522_v31 = vcombine.low %v1457_v36, %v1473_v52  ;;  %v1523_v46 = vcombine.high %v1457_v36, %v1473_v52  ;;  %v14401_v17 = vpop.permute.xlu0 %370 }
 0x158   :  { %v927_v33 = vcombine.high %v14282_v63, %v14398_v20  ;;  %v928_v9 = vcombine.low %v14290_v43, %v909_v55  ;;  %v929_v37 = vcombine.high %v14290_v43, %v909_v55  ;;  %v1267_v4 = vcombine.high %v14151_v42, %v14079_v50 }
 0x159   :  { %v14410_v12 = vrot.slane %v1506_v15, %v14031_v8  ;;  %v1521_v48 = vrot.slane %v1507_v45, %v14031_v8  ;;  %v1530_v10 = vrot.slane %v1522_v31, %v14031_v8  ;;  %v930_v43 = vcombine.low %v14285_v39, %v918_v59 }
 0x15a   :  { %v14416_v36 = vpop.permute.xlu1 %372  ;;  %v14418_v58 = vpack.i.bf16 %v1131_v30, %v927_v33  ;;  %v14420_v52 = vpack.i.bf16 %v1132_v44, %v928_v9  ;;  %v14422_v6 = vpack.i.bf16 %v1133_v26, %v929_v37  ;;  %v931_v45 = vcombine.high %v14285_v39, %v918_v59 }
 0x15b   :  { %v375_v15 = vpop.permute.xlu0 %374  ;;  %v932_v31 = vcombine.low %v14293_v22, %v925_v41  ;;  %v933_v50 = vcombine.high %v14293_v22, %v925_v41  ;;  %v1537_v42 = vrot.slane %v1523_v46, %v14031_v8  ;;  %v14431_v30 = vpack.i.bf16 %v1134_v60, %v930_v43 }
 0x15c   :  { %v1539_v44 = vcombine.high %v14265_v62, %v14410_v12  ;;  %v1269_v26 = vcombine.high %v14372_v61, %v14299_v14  ;;  %v23382_v33 = vcombine.high %v14308_v13, %v14302_v35  ;;  %v1541_v22 = vcombine.high %v14335_v7, %v1521_v48 }
 0x15d   :  { %v14442_v59 = vpack.i.bf16 %v1136_v51, %v932_v31  ;;  %v14444_v39 = vpack.i.bf16 %v1137_v32, %v933_v50  ;;  %v1268_v46 = vcombine.low %v14372_v61, %v14299_v14  ;;  %v1540_v37 = vcombine.low %v14335_v7, %v1521_v48 }
 0x15e   :  { %v14440_v9 = vpack.i.bf16 %v23382_v33, %v931_v45  ;;  %v14447_v41 = vpop.permute.xlu1 %376  ;;  %v14449_v60 = vpack.i.bf16 %v1539_v44, %v1267_v4  ;;  %v23383_v35 = vcombine.high %v13739_v16, %v13745_v18  ;;  %v14458_v43 = vpack.i.bf16 %v1541_v22, %v1269_v26 }
 0x15f   :  { %v379_v51 = vpop.permute.xlu0 %378  ;;  %v1271_v50 = vcombine.high %v14382_v24, %v14341_v34  ;;  %v1543_v32 = vcombine.high %v14347_v27, %v1530_v10  ;;  %v23384_v4 = vcombine.high %v13789_v40, %v13784_v38  ;;  %v14467_v14 = vpack.i.bf16 %v1540_v37, %v1268_v46 }
 0x160   :  { %v1265_v13 = vrot.slane %v23383_v35, %v14031_v8  ;;  %v1270_v7 = vcombine.low %v14382_v24, %v14341_v34  ;;  %v1542_v16 = vcombine.low %v14347_v27, %v1530_v10  ;;  %v950_v24 = vcombine.low %v14401_v17, %v379_v51 }
 0x161   :  { %v1505_v61 = vrot.slane %v23384_v4, %v14031_v8  ;;  %v14472_v18 = vpack.i.bf16 %v1543_v32, %v1271_v50  ;;  %v934_v46 = vcombine.low %v14387_v54, %v375_v15  ;;  %v951_v50 = vcombine.high %v14401_v17, %v379_v51 }
 0x162   :  { %v1272_v48 = vcombine.low %v14385_v21, %v1265_v13  ;;  %v381_v31 = vpop.permute.xlu1 %380  ;;  %v14475_v44 = vpack.i.bf16 %v1542_v16, %v1270_v7  ;;  %v958_v32 = vrot.slane %v950_v24, %v13617_v1  ;;  %v935_v16 = vcombine.high %v14387_v54, %v375_v15  ;;  %v23389_v15 = vld [vmem:[#allocation12_spill] sm:$0xff] }
 0x163   :  { %v1544_v45 = vcombine.low %v1505_v61, %v1537_v42  ;;  %v2193_v26 = vpop.permute.xlu0 %2192  ;;  %v1545_v4 = vcombine.high %v1505_v61, %v1537_v42  ;;  %v1546_v24 = vcombine.low %v14395_v11, %v14447_v41 }
 0x164   :  { %v2221_v38 = vsel %vm150_vm1, 0.0, %v2193_v26  ;;  %v949_v54 = vrot.slane %v935_v16, %v13617_v1 }
 0x165   :  { %v14477_v33 = vpack.i.bf16 %v1544_v45, %v1272_v48  ;;  %v14481_v40 = vsel %vm163_vm2, %v2221_v38, 0.0  ;;  %v942_v48 = vrot.slane %v934_v46, %v13617_v1  ;;  %v1273_v45 = vcombine.high %v14385_v21, %v1265_v13 }
 0x166   :  { %23385 = vst [vmem:[#allocation45_spill] sm:$0xff] %v14481_v40  ;;  %2256 = vrot.lane.b32.xlu0 %v14481_v40, %s13468_s0  ;;  %v2191_v34 = vpop.permute.xlu1 %2190  ;;  %v965_v38 = vrot.slane %v951_v50, %v13617_v1  ;;  %v1562_v21 = vcombine.low %v14416_v36, %v381_v31  ;;  %v1547_v50 = vcombine.high %v14395_v11, %v14447_v41 }
 0x167   :  { %v2220_v27 = vsel %vm150_vm1, 0.0, %v2191_v34  ;;  %v2197_v10 = vpop.permute.xlu0 %2196  ;;  %v967_v51 = vcombine.high %v942_v48, %v958_v32  ;;  %v14508_v34 = vpack.i.bf16 %v1545_v4, %v1273_v45  ;;  %v14538_v4 = vrot.slane %v1546_v24, %v13617_v1  ;;  %v23395_v24 = vld [vmem:[#allocation32_spill] sm:$0xff] }
 0x168   :  { %v14488_v22 = vsel %vm163_vm2, %v2220_v27, 0.0  ;;  %v2223_v37 = vsel %vm150_vm1, 0.0, %v2197_v10  ;;  %v982_v61 = vcombine.low %v949_v54, %v965_v38  ;;  %v1563_v27 = vcombine.high %v14416_v36, %v381_v31 }
 0x169   :  { %23386 = vst [vmem:[#allocation46_spill] sm:$0xff] %v14488_v22  ;;  %2254 = vrot.lane.b32.xlu1 %v14488_v22, %s13468_s0  ;;  %v14499_v7 = vsel %vm163_vm2, %v2223_v37, 0.0  ;;  %v14520_v13 = vrot.slane %v967_v51, %v14031_v8  ;;  %v14530_v10 = vrot.slane %v1562_v21, %v13617_v1  ;;  %v983_v37 = vcombine.high %v949_v54, %v965_v38  ;;  %v23392_v51 = vld [vmem:[#allocation30_spill] sm:$0xff]  ;;  %v23393_v54 = vld [vmem:[#allocation25_spill] sm:$0xff] }
 0x16a   :  { %v14494_v35 = vpop.permute.xlu1 %2194  ;;  %23387 = vst [vmem:[#allocation47_spill] sm:$0xff] %v14499_v7  ;;  %v14533_v46 = vrot.slane %v982_v61, %v14031_v8  ;;  %v1561_v11 = vrot.slane %v1547_v50, %v13617_v1  ;;  %v791_v38 = vcombine.high %v14279_v28, %v14268_v25  ;;  %v679_v21 = vcombine.high %v23393_v54, %v23392_v51  ;;  %v23394_v61 = vld [vmem:[#allocation36_spill] sm:$0xff] }
 0x16b   :  { %v14546_v36 = vrot.slane %v983_v37, %v14031_v8  ;;  %v1579_v31 = vcombine.high %v14538_v4, %v14530_v10 }
 0x16d   :  { %2258 = vrot.lane.b32.xlu1 %v14499_v7, %s13468_s0 }
 0x16e   :  { %v2199_v26 = vpop.permute.xlu1 %2198 }
 0x16f   :  { %v2224_v17 = vsel %vm150_vm1, 0.0, %v2199_v26 }
 0x170   :  { %v14511_v42 = vsel %vm163_vm2, %v2224_v17, 0.0  ;;  %v23391_v17 = vmov 0.0  }
 0x171   :  { %23388 = vst [vmem:[#allocation48_spill] sm:$0xff] %v14511_v42  ;;  %2260 = vrot.lane.b32.xlu0 %v14511_v42, %s13468_s0  ;;  %2270 = vrot.lane.b32.xlu1 %v23389_v15, %s13470_s28 }
 0x175   :  { %12639 = vrot.lane.b32.xlu0 %v14155_v0, %s13473_s29  ;;  %1647 = vrot.lane.b32.xlu1 %v14520_v13, %s13474_s30  ;;  %v1577_v0 = vrot.slane %v1563_v27, %v13617_v1 }
 0x177   :  { %v1594_v41 = vcombine.low %v1561_v11, %v1577_v0  ;;  %v1595_v45 = vcombine.high %v1561_v11, %v1577_v0  ;;  %v693_v0 = vrot.slane %v679_v21, %v13617_v1 }
 0x179   :  { %12644 = vrot.lane.b32.xlu0 %v14157_v5, %s13474_s30  ;;  %1687 = vrot.lane.b32.xlu1 %v14533_v46, %s13475_s11  ;;  %v14556_v5 = vrot.slane %v1579_v31, %v14031_v8  ;;  %v14563_v16 = vrot.slane %v1594_v41, %v14031_v8  ;;  %v14570_v26 = vrot.slane %v1595_v45, %v14031_v8 }
 0x17d   :  { %12649 = vrot.lane.b32.xlu0 %v14159_v23, %s13476_s12  ;;  %1727 = vrot.lane.b32.xlu1 %v14546_v36, %s13477_s13  ;;  %v966_v23 = vcombine.low %v942_v48, %v958_v32  ;;  %v727_v32 = vcombine.high %v14228_v56, %v14216_v53  ;;  %v695_v53 = vcombine.high %v23395_v24, %v23394_v61  ;;  %v23396_v56 = vld [vmem:[#allocation28_spill] sm:$0xff] }
 0x17f   :  { %v709_v31 = vrot.slane %v695_v53, %v13617_v1 }
 0x181   :  { %12654 = vrot.lane.b32.xlu0 %v14165_v2, %s13475_s11  ;;  %1787 = vrot.lane.b32.xlu1 %v14556_v5, %s13474_s30  ;;  %v759_v2 = vcombine.high %v14231_v29, %v14234_v3 }
 0x183   :  { %v773_v3 = vrot.slane %v759_v2, %v14031_v8 }
 0x185   :  { %12659 = vrot.lane.b32.xlu0 %v14167_v57, %s13478_s14  ;;  %1827 = vrot.lane.b32.xlu1 %v14563_v16, %s13475_s11  ;;  %v14581_v57 = vrot.slane %v966_v23, %v14031_v8  ;;  %v999_v23 = vcombine.high %v14520_v13, %v23391_v17  ;;  %v1000_v13 = vcombine.high %v14533_v46, %v23391_v17  ;;  %v23403_v46 = vld [vmem:[#allocation35_spill] sm:$0xff] }
 0x187   :  { %v998_v29 = vcombine.high %v14581_v57, %v23391_v17 }
 0x189   :  { %12664 = vrot.lane.b32.xlu0 %v14169_v19, %s13477_s13  ;;  %1867 = vrot.lane.b32.xlu1 %v14570_v26, %s13477_s13  ;;  %v23390_v19 = vld [vmem:[#allocation34_spill] sm:$0xff] }
 0x18a   :  { %v711_v48 = vcombine.high %v23390_v19, %v14210_v47  ;;  %v23397_v47 = vld [vmem:[#allocation22_spill] sm:$0xff] }
 0x18b   :  { %v663_v27 = vcombine.high %v23397_v47, %v23396_v56  ;;  %v23404_v56 = vld [vmem:[#allocation31_spill] sm:$0xff] }
 0x18c   :  { %v725_v37 = vrot.slane %v711_v48, %v13617_v1  ;;  %v23405_v47 = vld [vmem:[#allocation27_spill] sm:$0xff] }
 0x18d   :  { %12669 = vrot.lane.b32.xlu0 %v14171_v49, %s13479_s15  ;;  %1623 = vrot.lane.b32.xlu1 %v791_v38, %s13473_s29  ;;  %v741_v49 = vrot.slane %v727_v32, %v14031_v8 }
 0x18e   :  { %v774_v11 = vcombine.low %v709_v31, %v725_v37 }
 0x18f   :  { %v792_v50 = vcombine.low %v741_v49, %v773_v3  ;;  %v793_v41 = vcombine.high %v741_v49, %v773_v3  ;;  %v23399_v3 = vld [vmem:[#allocation41_spill] sm:$0xff] }
 0x190   :  { %v782_v2 = vrot.slane %v774_v11, %v14031_v8 }
 0x191   :  { %12674 = vrot.lane.b32.xlu0 %v14418_v58, %s13473_s29  ;;  %1627 = vrot.lane.b32.xlu1 %v998_v29, %s13473_s29  ;;  %v677_v58 = vrot.slane %v663_v27, %v13617_v1  ;;  %v23398_v29 = vld [vmem:[#allocation42_spill] sm:$0xff]  ;;  %v1291_v27 = vcombine.high %v23405_v47, %v23404_v56  ;;  %v23419_v47 = vld [vmem:[#allocation13_spill] sm:$0xff] }
 0x193   :  { %v742_v45 = vcombine.low %v677_v58, %v693_v0  ;;  %v743_v19 = vcombine.high %v677_v58, %v693_v0  ;;  %v23409_v58 = vld [vmem:[#allocation23_spill] sm:$0xff] }
 0x195   :  { %12679 = vrot.lane.b32.xlu0 %v14420_v52, %s13474_s30  ;;  %1643 = vrot.lane.b32.xlu1 %v792_v50, %s13474_s30  ;;  %v750_v52 = vrot.slane %v742_v45, %v14031_v8  ;;  %v23407_v50 = vld [vmem:[#allocation33_spill] sm:$0xff]  ;;  %v1001_v45 = vcombine.high %v14546_v36, %v23391_v17  ;;  %v1611_v36 = vcombine.high %v14556_v5, %v23391_v17 }
 0x196   :  { %v1612_v5 = vcombine.high %v14563_v16, %v23391_v17  ;;  %v1613_v16 = vcombine.high %v14570_v26, %v23391_v17 }
 0x197   :  { %v794_v38 = vcombine.low %v750_v52, %v782_v2  ;;  %v795_v32 = vcombine.high %v750_v52, %v782_v2  ;;  %v1305_v2 = vrot.slane %v1291_v27, %v13617_v1  ;;  %v23420_v27 = vld [vmem:[#allocation9_spill] sm:$0xff] }
 0x199   :  { %12684 = vrot.lane.b32.xlu0 %v14422_v6, %s13476_s12  ;;  %1663 = vrot.lane.b32.xlu1 %v793_v41, %s13476_s12  ;;  %v775_v6 = vcombine.high %v709_v31, %v725_v37  ;;  %v23406_v37 = vld [vmem:[#allocation37_spill] sm:$0xff] }
 0x19a   :  { %v1307_v0 = vcombine.high %v23407_v50, %v23406_v37  ;;  %v23408_v31 = vld [vmem:[#allocation29_spill] sm:$0xff]  ;;  %v2216_v37 = vsel %vm150_vm1, 0.0, %v23420_v27 }
 0x19b   :  { %v789_v48 = vrot.slane %v775_v6, %v14031_v8  ;;  %v1275_v11 = vcombine.high %v23409_v58, %v23408_v31  ;;  %v3078_v31 = vcombine.low %v23419_v47, %v14511_v42 }
 0x19c   :  { %v1321_v52 = vrot.slane %v1307_v0, %v13617_v1 }
 0x19d   :  { %12689 = vrot.lane.b32.xlu0 %v14431_v30, %s13475_s11  ;;  %1667 = vrot.lane.b32.xlu1 %v999_v23, %s13476_s12  ;;  %v1578_v30 = vcombine.low %v14538_v4, %v14530_v10  ;;  %v23400_v10 = vld [vmem:[#allocation39_spill] sm:$0xff]  ;;  %v23401_v4 = vld [vmem:[#allocation40_spill] sm:$0xff] }
 0x19e   :  { %v1339_v21 = vcombine.high %v23401_v4, %v23400_v10 }
 0x19f   :  { %v14638_v54 = vrot.slane %v1578_v30, %v14031_v8 }
 0x1a1   :  { %12694 = vrot.lane.b32.xlu0 %v14440_v9, %s13478_s14  ;;  %1683 = vrot.lane.b32.xlu1 %v794_v38, %s13475_s11  ;;  %v757_v9 = vrot.slane %v743_v19, %v14031_v8  ;;  %v1610_v24 = vcombine.high %v14638_v54, %v23391_v17  ;;  %v1289_v38 = vrot.slane %v1275_v11, %v13617_v1  ;;  %v23411_v19 = vld [vmem:[#allocation44_spill] sm:$0xff] }
 0x1a3   :  { %v796_v51 = vcombine.low %v757_v9, %v789_v48  ;;  %v797_v53 = vcombine.high %v757_v9, %v789_v48 }
 0x1a5   :  { %12699 = vrot.lane.b32.xlu0 %v14442_v59, %s13477_s13  ;;  %1703 = vrot.lane.b32.xlu1 %v795_v32, %s13478_s14  ;;  %v1371_v59 = vcombine.high %v23399_v3, %v23398_v29  ;;  %v23410_v32 = vld [vmem:[#allocation43_spill] sm:$0xff] }
 0x1a6   :  { %v1403_v30 = vcombine.high %v23411_v19, %v23410_v32 }
 0x1a7   :  { %v1385_v49 = vrot.slane %v1371_v59, %v14031_v8  ;;  %v1355_v59 = vcombine.high %v1289_v38, %v1305_v2 }
 0x1a9   :  { %12704 = vrot.lane.b32.xlu0 %v14444_v39, %s13479_s15  ;;  %1707 = vrot.lane.b32.xlu1 %v1000_v13, %s13478_s14  ;;  %v23402_v39 = vld [vmem:[#allocation38_spill] sm:$0xff]  ;;  %v1354_v13 = vcombine.low %v1289_v38, %v1305_v2  ;;  %v1369_v10 = vrot.slane %v1355_v59, %v14031_v8  ;;  %v2304_v2 = vrot.slane %v23419_v47, 1  ;;  %v23425_v38 = vld [vmem:[#allocation11_spill] sm:$0xff] }
 0x1aa   :  { %v1323_v61 = vcombine.high %v23403_v46, %v23402_v39  ;;  %v23413_v39 = vld [vmem:[#allocation14_spill] sm:$0xff] }
 0x1ab   :  { %v1362_v9 = vrot.slane %v1354_v13, %v14031_v8  ;;  %v2466_v26 = vcombine.low %v23413_v39, %v14499_v7 }
 0x1ac   :  { %v1337_v41 = vrot.slane %v1323_v61, %v13617_v1  ;;  %v23416_v61 = vld [vmem:[#allocation10_spill] sm:$0xff] }
 0x1ad   :  { %12709 = vrot.lane.b32.xlu0 %v14449_v60, %s13473_s29  ;;  %1723 = vrot.lane.b32.xlu1 %v796_v51, %s13477_s13  ;;  %v1353_v60 = vrot.slane %v1339_v21, %v14031_v8  ;;  %v14696_v21 = vpop.permute.xlu1 %2246  ;;  %v2299_v56 = vrot.slane %v23416_v61, 1  ;;  %v14734_v0 = vrot.slane %v2466_v26, %v13617_v1 }
 0x1ae   :  { %v1386_v6 = vcombine.low %v1321_v52, %v1337_v41  ;;  %23412 = vst [vmem:[#allocation34_spill] sm:$0xff] %v14696_v21 }
 0x1af   :  { %v1404_v23 = vcombine.low %v1353_v60, %v1385_v49  ;;  %v1405_v3 = vcombine.high %v1353_v60, %v1385_v49  ;;  %v2298_v49 = vrot.slane %v23389_v15, 1  ;;  %23422 = vst [vmem:[#allocation22_spill] sm:$0xff] %v14734_v0 }
 0x1b0   :  { %v1394_v48 = vrot.slane %v1386_v6, %v14031_v8  ;;  %v2219_v6 = vsel %vm150_vm1, 0.0, %v23425_v38 }
 0x1b1   :  { %1767 = vrot.lane.b32.xlu0 %v1610_v24, %s13473_s29  ;;  %1743 = vrot.lane.b32.xlu1 %v797_v53, %s13479_s15 }
 0x1b2   :  { %v1406_v29 = vcombine.low %v1362_v9, %v1394_v48 }
 0x1b5   :  { %1783 = vrot.lane.b32.xlu0 %v1404_v23, %s13474_s30  ;;  %1747 = vrot.lane.b32.xlu1 %v1001_v45, %s13479_s15  ;;  %v14747_v45 = vsel %vm236_vm3, %v2298_v49, %v2299_v56  ;;  %v2303_v23 = vrot.slane %v23413_v39, 1 }
 0x1b9   :  { %12719 = vrot.lane.b32.xlu0 %v14458_v43, %s13476_s12  ;;  %1763 = vrot.lane.b32.xlu1 %v1403_v30, %s13473_s29  ;;  %v1387_v43 = vcombine.high %v1321_v52, %v1337_v41  ;;  %v14752_v52 = vsel %vm163_vm2, %v2216_v37, 0.0  ;;  %v3062_v30 = vcombine.low %v23416_v61, %v14481_v40 }
 0x1ba   :  { %v2301_v59 = vrot.slane %v14752_v52, 1 }
 0x1bb   :  { %v1401_v51 = vrot.slane %v1387_v43, %v14031_v8 }
 0x1bc   :  { %v14821_v38 = vsel %vm236_vm3, %v2299_v56, %v2301_v59 }
 0x1bd   :  { %1807 = vrot.lane.b32.xlu0 %v1611_v36, %s13476_s12  ;;  %12714 = vrot.lane.b32.xlu1 %v14467_v14, %s13474_s30  ;;  %v1407_v14 = vcombine.high %v1362_v9, %v1394_v48  ;;  %v1408_v4 = vcombine.low %v1369_v10, %v1401_v51  ;;  %v14771_v9 = vrot.slane %v3078_v31, %v13617_v1 }
 0x1be   :  { %23435 = vst [vmem:[#allocation23_spill] sm:$0xff] %v14821_v38 }
 0x1bf   :  { %23428 = vst [vmem:[#allocation38_spill] sm:$0xff] %v14771_v9 }
 0x1c1   :  { %1823 = vrot.lane.b32.xlu0 %v1406_v29, %s13475_s11  ;;  %1803 = vrot.lane.b32.xlu1 %v1405_v3, %s13476_s12 }
 0x1c5   :  { %12729 = vrot.lane.b32.xlu0 %v14472_v18, %s13478_s14  ;;  %12724 = vrot.lane.b32.xlu1 %v14475_v44, %s13475_s11  ;;  %v1409_v18 = vcombine.high %v1369_v10, %v1401_v51  ;;  %v14694_v44 = vpop.permute.xlu0 %2200  ;;  %v14786_v51 = vsel %vm236_vm3, %v2303_v23, %v2304_v2  ;;  %v14789_v10 = vrot.slane %v3062_v30, %v13617_v1 }
 0x1c7   :  { %23430 = vst [vmem:[#allocation31_spill] sm:$0xff] %v14789_v10  ;;  %v3126_v37 = vcombine.low %v14789_v10, %v14771_v9 }
 0x1c9   :  { %1847 = vrot.lane.b32.xlu0 %v1612_v5, %s13478_s14  ;;  %1843 = vrot.lane.b32.xlu1 %v1407_v14, %s13478_s14  ;;  %v14706_v46 = vpop.permute.xlu0 %2248  ;;  %v14781_v5 = vsel %vm163_vm2, %v2219_v6, 0.0  ;;  %v14839_v56 = vrot.slane %v3126_v37, %v14031_v8 }
 0x1ca   :  { %23414 = vst [vmem:[#allocation30_spill] sm:$0xff] %v14706_v46 }
 0x1cb   :  { %23436 = vst [vmem:[#allocation43_spill] sm:$0xff] %v14839_v56  ;;  %v23442_v56 = vld [vmem:[#allocation21_spill] sm:$0xff] }
 0x1cd   :  { %1863 = vrot.lane.b32.xlu0 %v1408_v4, %s13477_s13  ;;  %12734 = vrot.lane.b32.xlu1 %v14477_v33, %s13477_s13  ;;  %v14708_v33 = vpop.permute.xlu1 %2250  ;;  %v14718_v24 = vpop.permute.xlu0 %2252 }
 0x1ce   :  { %23415 = vst [vmem:[#allocation25_spill] sm:$0xff] %v14708_v33  ;;  %23417 = vst [vmem:[#allocation36_spill] sm:$0xff] %v14718_v24 }
 0x1d1   :  { %12739 = vrot.lane.b32.xlu0 %v14508_v34, %s13479_s15  ;;  %1883 = vrot.lane.b32.xlu1 %v1409_v18, %s13479_s15  ;;  %v2450_v34 = vcombine.low %v23389_v15, %v14488_v22  ;;  %v2308_v18 = vrot.slane %v14488_v22, 1 }
 0x1d3   :  { %v14731_v50 = vrot.slane %v2450_v34, %v13617_v1  ;;  %v2222_v34 = vsel %vm150_vm1, 0.0, %v14494_v35  ;;  %v2306_v35 = vrot.slane %v14781_v5, 1 }
 0x1d4   :  { %v14824_v6 = vsel %vm163_vm2, %v2222_v34, 0.0 }
 0x1d5   :  { %1887 = vrot.lane.b32.xlu0 %v1613_v16, %s13479_s15  ;;  %2274 = vrot.lane.b32.xlu1 %v23413_v39, %s13470_s28  ;;  %23421 = vst [vmem:[#allocation28_spill] sm:$0xff] %v14731_v50  ;;  %v2514_v48 = vcombine.low %v14731_v50, %v14734_v0  ;;  %v2309_v16 = vrot.slane %v14481_v40, 1  ;;  %v2311_v23 = vrot.slane %v14824_v6, 1  ;;  %v14849_v55 = vsel %vm236_vm3, %v2304_v2, %v2306_v35  ;;  %v23445_v50 = vld [vmem:[#allocation17_spill] sm:$0xff] }
 0x1d6   :  { %23438 = vst [vmem:[#allocation9_spill] sm:$0xff] %v14849_v55 }
 0x1d7   :  { %v14802_v26 = vrot.slane %v2514_v48, %v14031_v8  ;;  %v14831_v48 = vsel %vm236_vm3, %v2308_v18, %v2309_v16  ;;  %v2313_v18 = vrot.slane %v14499_v7, 1  ;;  %v14867_v35 = vsel %vm236_vm3, %v2309_v16, %v2311_v23 }
 0x1d8   :  { %v14740_v58 = vpop.permute.xlu0 %2256  ;;  %23439 = vst [vmem:[#allocation11_spill] sm:$0xff] %v14867_v35 }
 0x1d9   :  { %2272 = vrot.lane.b32.xlu0 %v23416_v61, %s13470_s28  ;;  %2278 = vrot.lane.b32.xlu1 %v14488_v22, %s13470_s28  ;;  %23423 = vst [vmem:[#allocation42_spill] sm:$0xff] %v14740_v58  ;;  %v3094_v29 = vcombine.low %v14706_v46, %v14740_v58  ;;  %23431 = vst [vmem:[#allocation27_spill] sm:$0xff] %v14802_v26 }
 0x1db   :  { %v14720_v53 = vpop.permute.xlu1 %2254  ;;  %v14808_v27 = vrot.slane %v3094_v29, %v13617_v1  ;;  %v2314_v29 = vrot.slane %v14511_v42, 1 }
 0x1dc   :  { %23418 = vst [vmem:[#allocation32_spill] sm:$0xff] %v14720_v53  ;;  %v2482_v60 = vcombine.low %v14696_v21, %v14720_v53 }
 0x1dd   :  { %2276 = vrot.lane.b32.xlu0 %v23419_v47, %s13470_s28  ;;  %2282 = vrot.lane.b32.xlu1 %v14499_v7, %s13470_s28  ;;  %23433 = vst [vmem:[#allocation33_spill] sm:$0xff] %v14808_v27 }
 0x1de   :  { %v14763_v13 = vrot.slane %v2482_v60, %v13617_v1 }
 0x1df   :  { %v14742_v11 = vpop.permute.xlu1 %2258 }
 0x1e0   :  { %23424 = vst [vmem:[#allocation41_spill] sm:$0xff] %v14742_v11  ;;  %v2498_v41 = vcombine.low %v14708_v33, %v14742_v11  ;;  %23426 = vst [vmem:[#allocation39_spill] sm:$0xff] %v14763_v13 }
 0x1e1   :  { %2280 = vrot.lane.b32.xlu0 %v14481_v40, %s13470_s28  ;;  %2326 = vrot.lane.b32.xlu1 %v14747_v45, %s13468_s0 }
 0x1e2   :  { %v14766_v36 = vrot.slane %v2498_v41, %v13617_v1 }
 0x1e3   :  { %v14775_v3 = vpop.permute.xlu1 %2270  ;;  %v14777_v43 = vpop.permute.xlu0 %2260 }
 0x1e4   :  { %23427 = vst [vmem:[#allocation40_spill] sm:$0xff] %v14766_v36  ;;  %23429 = vst [vmem:[#allocation35_spill] sm:$0xff] %v14777_v43  ;;  %v2546_v14 = vcombine.low %v14763_v13, %v14766_v36  ;;  %v3110_v4 = vcombine.low %v14718_v24, %v14777_v43  ;;  %v2374_v43 = vrot.slane %v23389_v15, 2 }
 0x1e5   :  { %2284 = vrot.lane.b32.xlu0 %v14511_v42, %s13470_s28  ;;  %2330 = vrot.lane.b32.xlu1 %v14786_v51, %s13468_s0 }
 0x1e6   :  { %v14805_v49 = vrot.slane %v2546_v14, %v14031_v8  ;;  %v14813_v60 = vrot.slane %v3110_v4, %v13617_v1  ;;  %v2225_v14 = vsel %vm150_vm1, 0.0, %v14694_v44 }
 0x1e7   :  { %v14815_v31 = vpop.permute.xlu1 %1647  ;;  %v12640_v41 = vpop.permute.xlu0 %12639  ;;  %v14852_v44 = vsel %vm163_vm2, %v2225_v14, 0.0 }
 0x1e8   :  { %23432 = vst [vmem:[#allocation37_spill] sm:$0xff] %v14805_v49  ;;  %23434 = vst [vmem:[#allocation29_spill] sm:$0xff] %v14813_v60  ;;  %v3158_v30 = vcombine.low %v14808_v27, %v14813_v60  ;;  %v2316_v2 = vrot.slane %v14852_v44, 1  ;;  %v12642_v58 = vunpack.i.h.bf16 %v12640_v41  ;;  %v12641_v24 = vunpack.i.l.bf16 %v12640_v41  ;;  %v23444_v60 = vld [vmem:[#allocation16_spill] sm:$0xff] }
 0x1e9   :  { %2328 = vrot.lane.b32.xlu0 %v14821_v38, %s13468_s0  ;;  %2334 = vrot.lane.b32.xlu1 %v14831_v48, %s13468_s0  ;;  %v23446_v0 = vcombine.low %v23444_v60, %v23445_v50  ;;  %v23463_v49 = vld [vmem:[#allocation20_spill] sm:$0xff] }
 0x1ea   :  { %v14842_v59 = vrot.slane %v3158_v30, %v14031_v8  ;;  %v14859_v30 = vsel %vm236_vm3, %v2313_v18, %v2314_v29  ;;  %v14876_v37 = vsel %vm236_vm3, %v2314_v29, %v2316_v2  ;;  %v2375_v29 = vrot.slane %v23416_v61, 2 }
 0x1eb   :  { %v14844_v4 = vpop.permute.xlu1 %1687  ;;  %v12645_v34 = vpop.permute.xlu0 %12644  ;;  %23440 = vst [vmem:[#allocation49_spill] sm:$0xff] %v14876_v37 }
 0x1ec   :  { %23437 = vst [vmem:[#allocation44_spill] sm:$0xff] %v14842_v59  ;;  %v12647_v21 = vunpack.i.h.bf16 %v12645_v34  ;;  %v12646_v53 = vunpack.i.l.bf16 %v12645_v34  ;;  %v23441_v34 = vld [vmem:[#allocation24_spill] sm:$0xff]  ;;  %v14916_v60 = vsel %vm313_vm4, %v2374_v43, %v2375_v29 }
 0x1ed   :  { %2332 = vrot.lane.b32.xlu0 %v14849_v55, %s13468_s0  ;;  %2338 = vrot.lane.b32.xlu1 %v14859_v30, %s13468_s0  ;;  %v23443_v59 = vcombine.low %v23441_v34, %v23442_v56  ;;  %23447 = vst [vmem:[#allocation24_spill] sm:$0xff] %v14916_v60  ;;  %v2384_v34 = vrot.slane %v14488_v22, 2 }
 0x1ef   :  { %v14863_v17 = vpop.permute.xlu1 %1727  ;;  %v12650_v46 = vpop.permute.xlu0 %12649  ;;  %v1896_v27 = vsel %vm1894_vm5, %v23443_v59, %v12642_v58 }
 0x1f0   :  { %v12652_v2 = vunpack.i.h.bf16 %v12650_v46  ;;  %v12651_v33 = vunpack.i.l.bf16 %v12650_v46  ;;  %v1895_v46 = vsel %vm1894_vm5, %v23446_v0, %v12641_v24  ;;  %v2379_v0 = vrot.slane %v23413_v39, 2 }
 0x1f1   :  { %2336 = vrot.lane.b32.xlu0 %v14867_v35, %s13468_s0  ;;  %2350 = vrot.lane.b32.xlu1 %v14747_v45, %s13470_s28  ;;  %v1901_v61 = vsel %vm1900_vm6, %v1895_v46, %v12646_v53  ;;  %v2385_v46 = vrot.slane %v14481_v40, 2  ;;  %v23456_v40 = vcombine.low %v14282_v63, %v14398_v20 }
 0x1f2   :  { %v1907_v56 = vsel %vm1906_vm7, %v1901_v61, %v12651_v33 }
 0x1f3   :  { %v14873_v14 = vpop.permute.xlu1 %1787  ;;  %v12655_v18 = vpop.permute.xlu0 %12654 }
 0x1f4   :  { %v12657_v11 = vunpack.i.h.bf16 %v12655_v18  ;;  %v12656_v41 = vunpack.i.l.bf16 %v12655_v18  ;;  %v1902_v18 = vsel %vm1900_vm6, %v1896_v27, %v12647_v21 }
 0x1f5   :  { %2340 = vrot.lane.b32.xlu0 %v14876_v37, %s13468_s0  ;;  %2354 = vrot.lane.b32.xlu1 %v14786_v51, %s13470_s28  ;;  %v1908_v58 = vsel %vm1906_vm7, %v1902_v18, %v12652_v2 }
 0x1f6   :  { %v1913_v24 = vsel %vm1912_vm8, %v1907_v56, %v12656_v41  ;;  %v1914_v50 = vsel %vm1912_vm8, %v1908_v58, %v12657_v11  ;;  %v2380_v11 = vrot.slane %v23419_v47, 2  ;;  %v2382_v58 = vrot.slane %v14781_v5, 2 }
 0x1f7   :  { %v14882_v16 = vpop.permute.xlu1 %1827  ;;  %v12660_v23 = vpop.permute.xlu0 %12659  ;;  %v2387_v5 = vrot.slane %v14824_v6, 2  ;;  %v23455_v41 = vcombine.low %v14279_v28, %v14268_v25 }
 0x1f8   :  { %v12662_v13 = vunpack.i.h.bf16 %v12660_v23  ;;  %v12661_v36 = vunpack.i.l.bf16 %v12660_v23 }
 0x1f9   :  { %2352 = vrot.lane.b32.xlu0 %v14821_v38, %s13470_s28  ;;  %2358 = vrot.lane.b32.xlu1 %v14831_v48, %s13470_s28  ;;  %v14981_v6 = vsel %vm313_vm4, %v2385_v46, %v2387_v5 }
 0x1fa   :  { %v1919_v33 = vsel %vm1918_vm9, %v1913_v24, %v12661_v36  ;;  %v1920_v61 = vsel %vm1918_vm9, %v1914_v50, %v12662_v13  ;;  %v14954_v24 = vsel %vm313_vm4, %v2384_v34, %v2385_v46  ;;  %v2390_v50 = vrot.slane %v14511_v42, 2  ;;  %23453 = vst [vmem:[#allocation52_spill] sm:$0xff] %v14981_v6 }
 0x1fb   :  { %v14890_v10 = vpop.permute.xlu1 %1867  ;;  %v12665_v9 = vpop.permute.xlu0 %12664  ;;  %23450 = vst [vmem:[#allocation17_spill] sm:$0xff] %v14954_v24 }
 0x1fc   :  { %v12667_v15 = vunpack.i.h.bf16 %v12665_v9  ;;  %v12666_v26 = vunpack.i.l.bf16 %v12665_v9 }
 0x1fd   :  { %2356 = vrot.lane.b32.xlu0 %v14849_v55, %s13470_s28  ;;  %2362 = vrot.lane.b32.xlu1 %v14859_v30, %s13470_s28 }
 0x1fe   :  { %v1925_v59 = vsel %vm1924_vm10, %v1919_v33, %v12666_v26  ;;  %v1926_v23 = vsel %vm1924_vm10, %v1920_v61, %v12667_v15  ;;  %v2377_v26 = vrot.slane %v14752_v52, 2  ;;  %v14939_v15 = vsel %vm313_vm4, %v2379_v0, %v2380_v11 }
 0x1ff   :  { %v14910_v53 = vpop.permute.xlu1 %1623  ;;  %v12670_v21 = vpop.permute.xlu0 %12669  ;;  %23448 = vst [vmem:[#allocation21_spill] sm:$0xff] %v14939_v15 }
 0x200   :  { %v12672_v9 = vunpack.i.h.bf16 %v12670_v21  ;;  %v12671_v27 = vunpack.i.l.bf16 %v12670_v21  ;;  %v14951_v52 = vsel %vm313_vm4, %v2375_v29, %v2377_v26  ;;  %v14966_v29 = vsel %vm313_vm4, %v2380_v11, %v2382_v58 }
 0x201   :  { %2360 = vrot.lane.b32.xlu0 %v14867_v35, %s13470_s28  ;;  %2402 = vrot.lane.b32.xlu1 %v14916_v60, %s13468_s0  ;;  %23449 = vst [vmem:[#allocation16_spill] sm:$0xff] %v14951_v52  ;;  %23451 = vst [vmem:[#allocation50_spill] sm:$0xff] %v14966_v29 }
 0x202   :  { %v14926_v2 = vsel %vm1930_vm11, %v1925_v59, %v12671_v27  ;;  %v14929_v13 = vsel %vm1930_vm11, %v1926_v23, %v12672_v9  ;;  %v2389_v9 = vrot.slane %v14499_v7, 2  ;;  %v2392_v59 = vrot.slane %v14852_v44, 2 }
 0x203   :  { %v14931_v36 = vpop.permute.xlu1 %1627  ;;  %v14933_v43 = vpop.permute.xlu0 %12674 }
 0x204   :  { %v14969_v27 = vsel %vm313_vm4, %v2389_v9, %v2390_v50  ;;  %v14990_v26 = vsel %vm313_vm4, %v2390_v50, %v2392_v59  ;;  %v12676_v46 = vunpack.i.l.bf16 %v14933_v43 }
 0x205   :  { %2364 = vrot.lane.b32.xlu0 %v14876_v37, %s13470_s28  ;;  %2406 = vrot.lane.b32.xlu1 %v14939_v15, %s13468_s0  ;;  %23452 = vst [vmem:[#allocation51_spill] sm:$0xff] %v14969_v27  ;;  %23454 = vst [vmem:[#allocation53_spill] sm:$0xff] %v14990_v26 }
 0x206   :  { %v1898_v47 = vsel %vm1894_vm5, %v23456_v40, %v12676_v46 }
 0x207   :  { %v1644_v18 = vpop.permute.xlu1 %1643  ;;  %v14947_v56 = vpop.permute.xlu0 %12679 }
 0x208   :  { %v12681_v58 = vunpack.i.l.bf16 %v14947_v56 }
 0x209   :  { %2404 = vrot.lane.b32.xlu0 %v14951_v52, %s13468_s0  ;;  %2410 = vrot.lane.b32.xlu1 %v14954_v24, %s13468_s0 }
 0x20b   :  { %v1664_v21 = vpop.permute.xlu1 %1663  ;;  %v14961_v0 = vpop.permute.xlu0 %12684 }
 0x20c   :  { %v12686_v5 = vunpack.i.l.bf16 %v14961_v0 }
 0x20d   :  { %2408 = vrot.lane.b32.xlu0 %v14966_v29, %s13468_s0  ;;  %2414 = vrot.lane.b32.xlu1 %v14969_v27, %s13468_s0 }
 0x20f   :  { %v14975_v33 = vpop.permute.xlu1 %1667  ;;  %v14977_v61 = vpop.permute.xlu0 %12689 }
 0x210   :  { %v12691_v59 = vunpack.i.l.bf16 %v14977_v61 }
 0x211   :  { %2412 = vrot.lane.b32.xlu0 %v14981_v6, %s13468_s0  ;;  %2426 = vrot.lane.b32.xlu1 %v14916_v60, %s13470_s28 }
 0x213   :  { %v1684_v11 = vpop.permute.xlu1 %1683  ;;  %v14987_v23 = vpop.permute.xlu0 %12694 }
 0x214   :  { %v12696_v42 = vunpack.i.l.bf16 %v14987_v23 }
 0x215   :  { %2416 = vrot.lane.b32.xlu0 %v14990_v26, %s13468_s0  ;;  %2430 = vrot.lane.b32.xlu1 %v14939_v15, %s13470_s28 }
 0x217   :  { %v1704_v44 = vpop.permute.xlu1 %1703  ;;  %v14996_v34 = vpop.permute.xlu0 %12699 }
 0x218   :  { %v12701_v7 = vunpack.i.l.bf16 %v14996_v34 }
 0x219   :  { %2428 = vrot.lane.b32.xlu0 %v14951_v52, %s13470_s28  ;;  %2434 = vrot.lane.b32.xlu1 %v14954_v24, %s13470_s28  ;;  %v1897_v52 = vsel %vm1894_vm5, %v23455_v41, %v14910_v53 }
 0x21a   :  { %v1903_v39 = vsel %vm1900_vm6, %v1897_v52, %v1644_v18 }
 0x21b   :  { %v15004_v50 = vpop.permute.xlu1 %1707  ;;  %v15006_v9 = vpop.permute.xlu0 %12704  ;;  %v1909_v28 = vsel %vm1906_vm7, %v1903_v39, %v1664_v21 }
 0x21c   :  { %v12706_v63 = vunpack.i.l.bf16 %v15006_v9  ;;  %v1915_v40 = vsel %vm1912_vm8, %v1909_v28, %v1684_v11 }
 0x21d   :  { %2432 = vrot.lane.b32.xlu0 %v14966_v29, %s13470_s28  ;;  %2438 = vrot.lane.b32.xlu1 %v14969_v27, %s13470_s28  ;;  %v1904_v29 = vsel %vm1900_vm6, %v1898_v47, %v12681_v58  ;;  %v1921_v47 = vsel %vm1918_vm9, %v1915_v40, %v1704_v44  ;;  %v12677_v40 = vunpack.i.h.bf16 %v14933_v43  ;;  %v23459_v43 = vld [vmem:[#allocation18_spill] sm:$0xff] }
 0x21e   :  { %v1910_v53 = vsel %vm1906_vm7, %v1904_v29, %v12686_v5  ;;  %v23462_v27 = vld [vmem:[#allocation26_spill] sm:$0xff] }
 0x21f   :  { %v1724_v22 = vpop.permute.xlu1 %1723  ;;  %v12710_v25 = vpop.permute.xlu0 %12709  ;;  %v1916_v20 = vsel %vm1912_vm8, %v1910_v53, %v12691_v59 }
 0x220   :  { %v1922_v41 = vsel %vm1918_vm9, %v1916_v20, %v12696_v42  ;;  %v1927_v18 = vsel %vm1924_vm10, %v1921_v47, %v1724_v22  ;;  %v12712_v53 = vunpack.i.h.bf16 %v12710_v25 }
 0x221   :  { %2436 = vrot.lane.b32.xlu0 %v14981_v6, %s13470_s28  ;;  %v1928_v39 = vsel %vm1924_vm10, %v1922_v41, %v12701_v7  ;;  %v12711_v41 = vunpack.i.l.bf16 %v12710_v25  ;;  %v12687_v6 = vunpack.i.h.bf16 %v14961_v0  ;;  %v23460_v25 = vld [vmem:[#allocation19_spill] sm:$0xff] }
 0x222   :  { %v15042_v29 = vsel %vm1930_vm11, %v1928_v39, %v12706_v63  ;;  %v23457_v39 = vcombine.low %v23411_v19, %v23410_v32  ;;  %v23464_v32 = vcombine.low %v23462_v27, %v23463_v49  ;;  %v12697_v27 = vunpack.i.h.bf16 %v14987_v23 }
 0x223   :  { %v1744_v52 = vpop.permute.xlu1 %1743  ;;  %v1768_v46 = vpop.permute.xlu0 %1767  ;;  %v12707_v23 = vunpack.i.h.bf16 %v15006_v9 }
 0x224   :  { %v15039_v21 = vsel %vm1930_vm11, %v1927_v18, %v1744_v52  ;;  %v12682_v52 = vunpack.i.h.bf16 %v14947_v56  ;;  %v1937_v19 = vsel %vm1894_vm5, %v23464_v32, %v12711_v41 }
 0x225   :  { %2440 = vrot.lane.b32.xlu0 %v14990_v26, %s13470_s28  ;;  %v23458_v26 = vcombine.low %v14265_v62, %v14410_v12 }
 0x227   :  { %v15048_v11 = vpop.permute.xlu1 %1747  ;;  %v1784_v44 = vpop.permute.xlu0 %1783  ;;  %v1939_v60 = vsel %vm1894_vm5, %v23458_v26, %v12712_v53 }
 0x22b   :  { %v1764_v22 = vpop.permute.xlu1 %1763  ;;  %v12720_v58 = vpop.permute.xlu0 %12719 }
 0x22c   :  { %v1938_v42 = vsel %vm1894_vm5, %v23457_v39, %v1764_v22  ;;  %v12722_v39 = vunpack.i.h.bf16 %v12720_v58 }
 0x22d   :  { %v1943_v12 = vsel %vm1900_vm6, %v1938_v42, %v1784_v44 }
 0x22f   :  { %v12715_v5 = vpop.permute.xlu1 %12714  ;;  %v15050_v59 = vpop.permute.xlu0 %1807 }
 0x230   :  { %v12717_v47 = vunpack.i.h.bf16 %v12715_v5  ;;  %v12716_v18 = vunpack.i.l.bf16 %v12715_v5  ;;  %v23461_v5 = vcombine.low %v23459_v43, %v23460_v25  ;;  %v12692_v43 = vunpack.i.h.bf16 %v14977_v61 }
 0x231   :  { %v12721_v25 = vunpack.i.l.bf16 %v12720_v58 }
 0x232   :  { %v1936_v56 = vsel %vm1894_vm5, %v23461_v5, %v12677_v40  ;;  %v1944_v0 = vsel %vm1900_vm6, %v1939_v60, %v12717_v47  ;;  %v1942_v62 = vsel %vm1900_vm6, %v1937_v19, %v12716_v18  ;;  %v12702_v18 = vunpack.i.h.bf16 %v14996_v34 }
 0x233   :  { %v1804_v7 = vpop.permute.xlu1 %1803  ;;  %v1824_v28 = vpop.permute.xlu0 %1823  ;;  %v1941_v53 = vsel %vm1900_vm6, %v1936_v56, %v12682_v52  ;;  %v1949_v60 = vsel %vm1906_vm7, %v1944_v0, %v12722_v39  ;;  %v1940_v52 = vsel %vm1894_vm5, %v14638_v54, %v1768_v46 }
 0x234   :  { %v1948_v40 = vsel %vm1906_vm7, %v1943_v12, %v1804_v7  ;;  %v1946_v49 = vsel %vm1906_vm7, %v1941_v53, %v12687_v6  ;;  %v1945_v46 = vsel %vm1900_vm6, %v1940_v52, %v14873_v14 }
 0x235   :  { %v1953_v61 = vsel %vm1912_vm8, %v1948_v40, %v1824_v28  ;;  %v1951_v34 = vsel %vm1912_vm8, %v1946_v49, %v12692_v43  ;;  %v1950_v12 = vsel %vm1906_vm7, %v1945_v46, %v15050_v59 }
 0x237   :  { %v12725_v20 = vpop.permute.xlu1 %12724  ;;  %v12730_v63 = vpop.permute.xlu0 %12729 }
 0x238   :  { %v12727_v22 = vunpack.i.h.bf16 %v12725_v20  ;;  %v12726_v26 = vunpack.i.l.bf16 %v12725_v20  ;;  %v12732_v41 = vunpack.i.h.bf16 %v12730_v63  ;;  %v12731_v44 = vunpack.i.l.bf16 %v12730_v63 }
 0x239   :  { %v1947_v20 = vsel %vm1906_vm7, %v1942_v62, %v12721_v25  ;;  %v1899_v63 = vsel %vm1894_vm5, %v14581_v57, %v14931_v36 }
 0x23a   :  { %v1954_v42 = vsel %vm1912_vm8, %v1949_v60, %v12727_v22  ;;  %v1952_v6 = vsel %vm1912_vm8, %v1947_v20, %v12726_v26  ;;  %v1956_v22 = vsel %vm1918_vm9, %v1951_v34, %v12697_v27  ;;  %v1905_v27 = vsel %vm1900_vm6, %v1899_v63, %v14815_v31 }
 0x23b   :  { %v1844_v24 = vpop.permute.xlu1 %1843  ;;  %v1848_v15 = vpop.permute.xlu0 %1847  ;;  %v1959_v0 = vsel %vm1918_vm9, %v1954_v42, %v12732_v41  ;;  %v1961_v57 = vsel %vm1924_vm10, %v1956_v22, %v12702_v18  ;;  %v1911_v59 = vsel %vm1906_vm7, %v1905_v27, %v14975_v33  ;;  %v1955_v60 = vsel %vm1912_vm8, %v1950_v12, %v14882_v16 }
 0x23c   :  { %v1958_v56 = vsel %vm1918_vm9, %v1953_v61, %v1844_v24  ;;  %v1957_v24 = vsel %vm1918_vm9, %v1952_v6, %v12731_v44  ;;  %v1966_v53 = vsel %vm1930_vm11, %v1961_v57, %v12707_v23  ;;  %v2634_v41 = vcombine.low %v14786_v51, %v14859_v30 }
 0x23d   :  { %v2618_v31 = vcombine.low %v14747_v45, %v14831_v48  ;;  %v1917_v16 = vsel %vm1912_vm8, %v1911_v59, %v14844_v4  ;;  %v23467_v20 = vpack.c.bf16 %v15042_v29, %v15039_v21  ;;  %v3246_v29 = vcombine.low %v14849_v55, %v14876_v37 }
 0x23e   :  { %v1923_v33 = vsel %vm1918_vm9, %v1917_v16, %v15004_v50 }
 0x23f   :  { %v12735_v47 = vpop.permute.xlu1 %12734  ;;  %v1864_v5 = vpop.permute.xlu0 %1863  ;;  %v1929_v50 = vsel %vm1924_vm10, %v1923_v33, %v14863_v17  ;;  %v3230_v17 = vcombine.low %v14821_v38, %v14867_v35  ;;  %v15180_v34 = vrot.slane %v3246_v29, %v13617_v1  ;;  %v23513_v35 = vld [vmem:[#allocation39_spill] sm:$0xff] }
 0x240   :  { %v12737_v58 = vunpack.i.h.bf16 %v12735_v47  ;;  %v12736_v7 = vunpack.i.l.bf16 %v12735_v47  ;;  %v1963_v32 = vsel %vm1924_vm10, %v1958_v56, %v1864_v5  ;;  %v1960_v47 = vsel %vm1918_vm9, %v1955_v60, %v1848_v15 }
 0x241   :  { %v23465_v5 = vpack.c.bf16 %v14929_v13, %v14926_v2  ;;  %v1965_v15 = vsel %vm1924_vm10, %v1960_v47, %v14890_v10  ;;  %v15138_v2 = vrot.slane %v2634_v41, %v13617_v1  ;;  %v15152_v10 = vrot.slane %v2618_v31, %v13617_v1  ;;  %23470 = vst [vmem:[#allocation20_spill] sm:$0xff] %v15180_v34 }
 0x242   :  { %v1964_v62 = vsel %vm1924_vm10, %v1959_v0, %v12737_v58  ;;  %v1962_v36 = vsel %vm1924_vm10, %v1957_v24, %v12736_v7  ;;  %v1935_v7 = vsel %vm1930_vm11, %v1929_v50, %v15048_v11  ;;  %v23476_v24 = vld [vmem:[#allocation27_spill] sm:$0xff] }
 0x243   :  { %v1884_v28 = vpop.permute.xlu1 %1883  ;;  %v12740_v19 = vpop.permute.xlu0 %12739 }
 0x244   :  { %v12742_v9 = vunpack.i.h.bf16 %v12740_v19  ;;  %v12741_v39 = vunpack.i.l.bf16 %v12740_v19  ;;  %v1968_v54 = vsel %vm1930_vm11, %v1963_v32, %v1884_v28  ;;  %v15191_v19 = vrot.slane %v3230_v17, %v13617_v1 }
 0x245   :  { %12560 = vmatprep.subr.msk.mxu1 %vm1975_vm12, %v1968_v54 }
 0x246   :  { %v1969_v26 = vsel %vm1930_vm11, %v1964_v62, %v12742_v9  ;;  %12561 = vmatpush1.msk.msra.mxu1 %vm1975_vm12, %v15039_v21  ;;  %v1967_v14 = vsel %vm1930_vm11, %v1962_v36, %v12741_v39  ;;  %v2682_v21 = vcombine.low %v15152_v10, %v15138_v2  ;;  %23473 = vst [vmem:[#allocation56_spill] sm:$0xff] %v15191_v19 }
 0x247   :  { %v12575_v43 = vpack.c.bf16 %v1969_v26, %v1968_v54  ;;  %v15111_v25 = vpop.permute.xlu1 %2274  ;;  %v1888_v40 = vpop.permute.xlu0 %1887  ;;  %v12571_v49 = vpack.c.bf16 %v1967_v14, %v1966_v53  ;;  %v23475_v54 = vld [vmem:[#allocation37_spill] sm:$0xff]  ;;  %v3294_v57 = vcombine.low %v15191_v19, %v15180_v34 }
 0x248   :  { %v1970_v13 = vsel %vm1930_vm11, %v1965_v15, %v1888_v40  ;;  %v15186_v32 = vrot.slane %v2682_v21, %v14031_v8  ;;  %v2579_v46 = vcombine.high %v23476_v24, %v23475_v54  ;;  %v23506_v19 = vld [vmem:[#allocation13_spill] sm:$0xff] }
 0x249   :  { %12572 = vmatprep.subr.bf16.mxu0 %v12571_v49  ;;  %v15221_v40 = vrot.slane %v3294_v57, %v14031_v8 }
 0x24a   :  { %12574 = vmatpush1.bf16.msra.mxu0 %v23465_v5  ;;  %23472 = vst [vmem:[#allocation55_spill] sm:$0xff] %v15186_v32 }
 0x24b   :  { %v15125_v18 = vpop.permute.xlu1 %2278  ;;  %v15127_v42 = vpop.permute.xlu0 %2272  ;;  %12576 = vmatprep.subr.bf16.mxu0 %v12575_v43 }
 0x24c   :  { %23466 = vst [vmem:[#allocation18_spill] sm:$0xff] %v15127_v42  ;;  %v2586_v44 = vcombine.low %v14775_v3, %v15125_v18 }
 0x24e   :  { %12578 = vmatpush1.bf16.msra.mxu0 %v23467_v20  ;;  %v15165_v6 = vrot.slane %v2586_v44, %v13617_v1 }
 0x24f   :  { %v15146_v61 = vpop.permute.xlu1 %2282  ;;  %v15148_v4 = vpop.permute.xlu0 %2276  ;;  %12557 = vmatprep.subr.msk.mxu0 %vm1975_vm12, %v1970_v13 }
 0x250   :  { %23468 = vst [vmem:[#allocation19_spill] sm:$0xff] %v15148_v4  ;;  %v2602_v58 = vcombine.low %v15111_v25, %v15146_v61 }
 0x252   :  { %v15168_v23 = vrot.slane %v2602_v58, %v13617_v1  ;;  %12558 = vmatpush1.msk.msra.mxu0 %vm1975_vm12, %v1935_v7 }
 0x253   :  { %v15173_v52 = vpop.permute.xlu1 %2326  ;;  %v15175_v11 = vpop.permute.xlu0 %2280 }
 0x254   :  { %23469 = vst [vmem:[#allocation26_spill] sm:$0xff] %v15175_v11  ;;  %v2650_v56 = vcombine.low %v15165_v6, %v15168_v23  ;;  %v3198_v28 = vcombine.low %v15127_v42, %v15175_v11  ;;  %v23494_v42 = vld [vmem:[#allocation17_spill] sm:$0xff]  ;;  %v23495_v11 = vld [vmem:[#allocation24_spill] sm:$0xff] }
 0x256   :  { %v15183_v63 = vrot.slane %v2650_v56, %v14031_v8  ;;  %v15208_v36 = vrot.slane %v3198_v28, %v13617_v1 }
 0x257   :  { %v15193_v0 = vpop.permute.xlu1 %2330  ;;  %v15195_v22 = vpop.permute.xlu0 %2284 }
 0x258   :  { %23471 = vst [vmem:[#allocation54_spill] sm:$0xff] %v15183_v63  ;;  %23474 = vst [vmem:[#allocation57_spill] sm:$0xff] %v15195_v22  ;;  %v3214_v39 = vcombine.low %v15148_v4, %v15195_v22  ;;  %v2715_v62 = vcombine.high %v15183_v63, %v15186_v32  ;;  %v23491_v63 = vld [vmem:[#allocation51_spill] sm:$0xff]  ;;  %v23501_v4 = vld [vmem:[#allocation14_spill] sm:$0xff] }
 0x259   :  { %23477 = vst [vmem:[#allocation58_spill] sm:$0xff] %v15208_v36 }
 0x25a   :  { %v15211_v12 = vrot.slane %v3214_v39, %v13617_v1  ;;  %v12743_v26 = vpack.i.bf16 %v2715_v62, %v2579_v46 }
 0x25b   :  { %v15213_v53 = vpop.permute.xlu0 %2328  ;;  %v15217_v43 = vpop.permute.xlu1 %2334 }
 0x25c   :  { %23478 = vst [vmem:[#allocation59_spill] sm:$0xff] %v15211_v12  ;;  %23479 = vst [vmem:[#allocation60_spill] sm:$0xff] %v15213_v53  ;;  %v3262_v14 = vcombine.low %v15208_v36, %v15211_v12  ;;  %12744 = vrot.lane.b32.xlu1 %v12743_v26, %s13473_s29  ;;  %v2722_v13 = vcombine.low %v15173_v52, %v15217_v43  ;;  %v2603_v12 = vcombine.high %v15111_v25, %v15146_v61 }
 0x25d   :  { %v2859_v25 = vcombine.high %v23495_v11, %v23494_v42  ;;  %v2587_v61 = vcombine.high %v14775_v3, %v15125_v18  ;;  %v23530_v3 = vld [vmem:[#allocation32_spill] sm:$0xff]  ;;  %v23531_v18 = vld [vmem:[#allocation34_spill] sm:$0xff] }
 0x25e   :  { %v15224_v49 = vrot.slane %v3262_v14, %v14031_v8  ;;  %v15258_v7 = vrot.slane %v2722_v13, %v13617_v1 }
 0x25f   :  { %v15226_v27 = vpop.permute.xlu0 %2332  ;;  %v15230_v60 = vpop.permute.xlu1 %2338 }
 0x260   :  { %23480 = vst [vmem:[#allocation61_spill] sm:$0xff] %v15226_v27  ;;  %v2738_v16 = vcombine.low %v15193_v0, %v15230_v60 }
 0x262   :  { %v15249_v44 = vrot.slane %v2738_v16, %v13617_v1 }
 0x263   :  { %v15232_v41 = vpop.permute.xlu0 %2336  ;;  %v15234_v47 = vpop.permute.xlu1 %2350 }
 0x264   :  { %23481 = vst [vmem:[#allocation62_spill] sm:$0xff] %v15232_v41  ;;  %v2786_v29 = vcombine.low %v15258_v7, %v15249_v44  ;;  %v3334_v57 = vcombine.low %v15213_v53, %v15232_v41 }
 0x266   :  { %v15285_v16 = vrot.slane %v2786_v29, %v14031_v8  ;;  %v15300_v32 = vrot.slane %v3334_v57, %v13617_v1 }
 0x267   :  { %v15236_v5 = vpop.permute.xlu0 %2340  ;;  %v15238_v31 = vpop.permute.xlu1 %2354 }
 0x268   :  { %23482 = vst [vmem:[#allocation63_spill] sm:$0xff] %v15236_v5  ;;  %v3350_v39 = vcombine.low %v15226_v27, %v15236_v5  ;;  %23487 = vst [vmem:[#allocation68_spill] sm:$0xff] %v15285_v16  ;;  %v2858_v27 = vcombine.low %v23495_v11, %v23494_v42 }
 0x269   :  { %23490 = vst [vmem:[#allocation71_spill] sm:$0xff] %v15300_v32 }
 0x26b   :  { %v15242_v33 = vpop.permute.xlu0 %2352  ;;  %v15244_v15 = vpop.permute.xlu1 %2358 }
 0x26c   :  { %23483 = vst [vmem:[#allocation64_spill] sm:$0xff] %v15242_v33  ;;  %v2754_v20 = vcombine.low %v15234_v47, %v15244_v15 }
 0x26e   :  { %v15265_v17 = vrot.slane %v2754_v20, %v13617_v1  ;;  %v15291_v20 = vrot.slane %v3350_v39, %v13617_v1  ;;  %v23492_v39 = vld [vmem:[#allocation21_spill] sm:$0xff] }
 0x26f   :  { %v15253_v50 = vpop.permute.xlu0 %2356  ;;  %v15255_v58 = vpop.permute.xlu1 %2362  ;;  %v2874_v54 = vcombine.low %v23492_v39, %v23491_v63 }
 0x270   :  { %23484 = vst [vmem:[#allocation65_spill] sm:$0xff] %v15253_v50  ;;  %v2770_v21 = vcombine.low %v15238_v31, %v15255_v58  ;;  %23489 = vst [vmem:[#allocation70_spill] sm:$0xff] %v15291_v20  ;;  %v3398_v57 = vcombine.low %v15300_v32, %v15291_v20  ;;  %v2866_v20 = vrot.slane %v2858_v27, %v13617_v1 }
 0x271   :  { %v15331_v53 = vrot.slane %v2874_v54, %v13617_v1  ;;  %v23505_v54 = vld [vmem:[#allocation48_spill] sm:$0xff]  ;;  %v2651_v27 = vcombine.high %v15165_v6, %v15168_v23 }
 0x272   :  { %v15268_v56 = vrot.slane %v2770_v21, %v13617_v1  ;;  %v3079_v34 = vcombine.high %v23506_v19, %v23505_v54  ;;  %v2683_v19 = vcombine.high %v15152_v10, %v15138_v2  ;;  %v23516_v10 = vld [vmem:[#allocation22_spill] sm:$0xff] }
 0x273   :  { %v15270_v28 = vpop.permute.xlu0 %2360  ;;  %v15274_v46 = vpop.permute.xlu1 %2402 }
 0x274   :  { %23485 = vst [vmem:[#allocation66_spill] sm:$0xff] %v15270_v28  ;;  %v2818_v62 = vcombine.low %v15265_v17, %v15268_v56  ;;  %v3366_v26 = vcombine.low %v15242_v33, %v15270_v28  ;;  %v23498_v33 = vld [vmem:[#allocation46_spill] sm:$0xff]  ;;  %v23499_v28 = vld [vmem:[#allocation12_spill] sm:$0xff]  ;;  %v15388_v23 = vrot.slane %v3079_v34, %v13617_v1 }
 0x276   :  { %v15288_v13 = vrot.slane %v2818_v62, %v14031_v8  ;;  %v15303_v29 = vrot.slane %v3366_v26, %v13617_v1 }
 0x277   :  { %v15282_v14 = vpop.permute.xlu0 %2364  ;;  %v15293_v21 = vpop.permute.xlu1 %2406 }
 0x278   :  { %23486 = vst [vmem:[#allocation67_spill] sm:$0xff] %v15282_v14  ;;  %23488 = vst [vmem:[#allocation69_spill] sm:$0xff] %v15288_v13  ;;  %v3382_v59 = vcombine.low %v15253_v50, %v15282_v14  ;;  %v2851_v9 = vcombine.high %v15285_v16, %v15288_v13  ;;  %v23502_v50 = vld [vmem:[#allocation53_spill] sm:$0xff]  ;;  %v23503_v14 = vld [vmem:[#allocation50_spill] sm:$0xff] }
 0x27a   :  { %v15306_v62 = vrot.slane %v3382_v59, %v13617_v1  ;;  %3683 = vrot.lane.b32.xlu0 %v2851_v9, %s13473_s29  ;;  %v2635_v59 = vcombine.high %v14786_v51, %v14859_v30  ;;  %v2619_v9 = vcombine.high %v14747_v45, %v14831_v48  ;;  %v2451_v51 = vcombine.high %v23499_v28, %v23498_v33  ;;  %v23500_v30 = vld [vmem:[#allocation47_spill] sm:$0xff]  ;;  %v23508_v28 = vld [vmem:[#allocation10_spill] sm:$0xff] }
 0x27b   :  { %v15311_v24 = vpop.permute.xlu0 %2404  ;;  %v15319_v41 = vpop.permute.xlu1 %2410  ;;  %v2467_v22 = vcombine.high %v23501_v4, %v23500_v30  ;;  %v3486_v45 = vcombine.low %v23503_v14, %v23502_v50  ;;  %v23507_v4 = vld [vmem:[#allocation45_spill] sm:$0xff]  ;;  %v23509_v50 = vld [vmem:[#allocation52_spill] sm:$0xff] }
 0x27c   :  { %23493 = vst [vmem:[#allocation51_spill] sm:$0xff] %v15311_v24  ;;  %v3430_v26 = vcombine.low %v15303_v29, %v15306_v62  ;;  %v2890_v13 = vcombine.low %v15274_v46, %v15319_v41  ;;  %v15351_v32 = vrot.slane %v2635_v59, %v13617_v1  ;;  %v15359_v14 = vrot.slane %v2619_v9, %v13617_v1  ;;  %v23512_v30 = vld [vmem:[#allocation40_spill] sm:$0xff] }
 0x27d   :  { %v2922_v59 = vcombine.low %v2866_v20, %v15331_v53  ;;  %v15373_v9 = vrot.slane %v2451_v51, %v13617_v1  ;;  %v15385_v6 = vrot.slane %v2467_v22, %v13617_v1  ;;  %v15401_v22 = vrot.slane %v2651_v27, %v14031_v8 }
 0x27e   :  { %v15328_v5 = vrot.slane %v3430_v26, %v14031_v8  ;;  %v15346_v26 = vrot.slane %v3398_v57, %v14031_v8  ;;  %v23510_v57 = vld [vmem:[#allocation16_spill] sm:$0xff]  ;;  %v2898_v54 = vrot.slane %v2890_v13, %v13617_v1 }
 0x27f   :  { %v15335_v16 = vpop.permute.xlu0 %2408  ;;  %v15343_v48 = vpop.permute.xlu1 %2414  ;;  %v3470_v55 = vcombine.low %v23510_v57, %v23509_v50  ;;  %v2547_v57 = vcombine.high %v23513_v35, %v23512_v30  ;;  %v2923_v35 = vcombine.high %v2866_v20, %v15331_v53  ;;  %v15404_v34 = vrot.slane %v2922_v59, %v14031_v8 }
 0x280   :  { %23496 = vst [vmem:[#allocation21_spill] sm:$0xff] %v15328_v5  ;;  %23497 = vst [vmem:[#allocation17_spill] sm:$0xff] %v15335_v16  ;;  %v2906_v33 = vcombine.low %v15293_v21, %v15343_v48  ;;  %v2697_v59 = vrot.slane %v2683_v19, %v14031_v8 }
 0x281   :  { %23504 = vst [vmem:[#allocation24_spill] sm:$0xff] %v15346_v26  ;;  %v15380_v26 = vrot.slane %v3486_v45, %v13617_v1  ;;  %v23517_v45 = vld [vmem:[#allocation28_spill] sm:$0xff]  ;;  %23518 = vst [vmem:[#allocation14_spill] sm:$0xff] %v15404_v34  ;;  %v2937_v11 = vrot.slane %v2923_v35, %v14031_v8 }
 0x282   :  { %v2914_v37 = vrot.slane %v2906_v33, %v13617_v1  ;;  %v15394_v33 = vrot.slane %v3470_v55, %v13617_v1  ;;  %v2515_v30 = vcombine.high %v23517_v45, %v23516_v10  ;;  %v15412_v55 = vrot.slane %v2547_v57, %v14031_v8  ;;  %v23521_v10 = vld [vmem:[#allocation29_spill] sm:$0xff]  ;;  %v23523_v45 = vld [vmem:[#allocation44_spill] sm:$0xff] }
 0x283   :  { %v15370_v38 = vpop.permute.xlu0 %2412  ;;  %23514 = vst [vmem:[#allocation12_spill] sm:$0xff] %v15380_v26  ;;  %v15382_v5 = vpop.permute.xlu1 %2426 }
 0x284   :  { %23511 = vst [vmem:[#allocation46_spill] sm:$0xff] %v15370_v38  ;;  %v2954_v51 = vcombine.low %v2898_v54, %v2914_v37  ;;  %23515 = vst [vmem:[#allocation47_spill] sm:$0xff] %v15394_v33  ;;  %v3502_v2 = vcombine.low %v15311_v24, %v15370_v38  ;;  %v2955_v50 = vcombine.high %v2898_v54, %v2914_v37  ;;  %v23522_v37 = vld [vmem:[#allocation33_spill] sm:$0xff]  ;;  %v23524_v38 = vld [vmem:[#allocation43_spill] sm:$0xff] }
 0x285   :  { %v3534_v20 = vcombine.low %v15394_v33, %v15380_v26  ;;  %v3159_v54 = vcombine.high %v23522_v37, %v23521_v10  ;;  %v3191_v36 = vcombine.high %v23524_v38, %v23523_v45  ;;  %v23527_v10 = vld [vmem:[#allocation31_spill] sm:$0xff]  ;;  %v2716_v45 = vcombine.low %v15401_v22, %v2697_v59  ;;  %v23533_v26 = vld [vmem:[#allocation36_spill] sm:$0xff] }
 0x286   :  { %v15407_v13 = vrot.slane %v2954_v51, %v14031_v8  ;;  %v15432_v33 = vrot.slane %v3502_v2, %v13617_v1  ;;  %v15440_v51 = vrot.slane %v2955_v50, %v14031_v8  ;;  %v23528_v50 = vld [vmem:[#allocation41_spill] sm:$0xff] }
 0x287   :  { %v15409_v53 = vpop.permute.xlu0 %2416  ;;  %v15416_v24 = vpop.permute.xlu1 %2430  ;;  %v15449_v2 = vrot.slane %v3534_v20, %v14031_v8  ;;  %v2483_v20 = vcombine.high %v23531_v18, %v23530_v3 }
 0x288   :  { %23519 = vst [vmem:[#allocation48_spill] sm:$0xff] %v15407_v13  ;;  %23520 = vst [vmem:[#allocation13_spill] sm:$0xff] %v15409_v53  ;;  %v3518_v27 = vcombine.low %v15335_v16, %v15409_v53  ;;  %v2987_v57 = vcombine.high %v15404_v34, %v15407_v13  ;;  %v23526_v16 = vld [vmem:[#allocation38_spill] sm:$0xff]  ;;  %v2529_v13 = vrot.slane %v2515_v30, %v14031_v8 }
 0x289   :  { %23525 = vst [vmem:[#allocation45_spill] sm:$0xff] %v15432_v33  ;;  %v3127_v37 = vcombine.high %v23527_v10, %v23526_v16  ;;  %v3173_v30 = vrot.slane %v3159_v54, %v14031_v8  ;;  %v15464_v10 = vrot.slane %v2603_v12, %v13617_v1  ;;  %v2907_v54 = vcombine.high %v15293_v21, %v15343_v48 }
 0x28a   :  { %v15435_v19 = vrot.slane %v3518_v27, %v13617_v1  ;;  %v12748_v53 = vpack.i.bf16 %v3191_v36, %v2987_v57  ;;  %v23529_v36 = vld [vmem:[#allocation25_spill] sm:$0xff]  ;;  %v2580_v42 = vcombine.low %v2529_v13, %v15412_v55  ;;  %v2988_v35 = vcombine.low %v2937_v11, %v15440_v51 }
 0x28b   :  { %v15453_v27 = vpop.permute.xlu1 %2434  ;;  %v2499_v57 = vcombine.high %v23529_v36, %v23528_v50  ;;  %v3141_v34 = vrot.slane %v3127_v37, %v14031_v8  ;;  %v23532_v36 = vld [vmem:[#allocation35_spill] sm:$0xff]  ;;  %v2875_v12 = vcombine.high %v23492_v39, %v23491_v63  ;;  %v2891_v48 = vcombine.high %v15274_v46, %v15319_v41  ;;  %v23534_v39 = vld [vmem:[#allocation42_spill] sm:$0xff] }
 0x28c   :  { %v3566_v16 = vcombine.low %v15432_v33, %v15435_v19  ;;  %12749 = vrot.lane.b32.xlu1 %v12748_v53, %s13473_s29  ;;  %v2994_v53 = vcombine.low %v15382_v5, %v15453_v27  ;;  %v12753_v50 = vpack.i.bf16 %v2716_v45, %v2580_v42  ;;  %v3111_v3 = vcombine.high %v23533_v26, %v23532_v36  ;;  %v23535_v45 = vld [vmem:[#allocation30_spill] sm:$0xff] }
 0x28d   :  { %v15487_v21 = vrot.slane %v2499_v57, %v13617_v1  ;;  %v3192_v63 = vcombine.low %v3141_v34, %v3173_v30  ;;  %v15497_v42 = vrot.slane %v2483_v20, %v13617_v1  ;;  %v2717_v57 = vcombine.high %v15401_v22, %v2697_v59 }
 0x28e   :  { %v15467_v38 = vrot.slane %v3566_v16, %v14031_v8  ;;  %v15480_v16 = vrot.slane %v2587_v61, %v13617_v1  ;;  %v3095_v61 = vcombine.high %v23535_v45, %v23534_v39  ;;  %v15503_v37 = vrot.slane %v2907_v54, %v13617_v1 }
 0x28f   :  { %v15484_v18 = vpop.permute.xlu1 %2438  ;;  %v3002_v41 = vrot.slane %v2994_v53, %v13617_v1  ;;  %v15508_v33 = vrot.slane %v3111_v3, %v13617_v1  ;;  %v15511_v39 = vrot.slane %v2859_v25, %v13617_v1  ;;  %v15514_v20 = vrot.slane %v2875_v12, %v13617_v1 }
 0x290   :  { %v3010_v26 = vcombine.low %v15416_v24, %v15484_v18  ;;  %12754 = vrot.lane.b32.xlu1 %v12753_v50, %s13474_s30  ;;  %v2666_v36 = vcombine.low %v15480_v16, %v15464_v10  ;;  %v12758_v50 = vpack.i.bf16 %v3192_v63, %v2988_v35  ;;  %v2581_v45 = vcombine.high %v2529_v13, %v15412_v55 }
 0x291   :  { %v2562_v22 = vcombine.low %v15497_v42, %v15487_v21  ;;  %v2819_v59 = vcombine.high %v15265_v17, %v15268_v56  ;;  %v15522_v54 = vrot.slane %v2891_v48, %v13617_v1  ;;  %v15526_v25 = vrot.slane %v3095_v61, %v13617_v1 }
 0x292   :  { %v3018_v46 = vrot.slane %v3010_v26, %v13617_v1  ;;  %v2674_v35 = vrot.slane %v2666_v36, %v14031_v8  ;;  %v12763_v3 = vpack.i.bf16 %v2717_v57, %v2581_v45  ;;  %v2530_v13 = vcombine.low %v15373_v9, %v15385_v6 }
 0x293   :  { %v2787_v55 = vcombine.high %v15258_v7, %v15249_v44  ;;  %v2970_v17 = vcombine.low %v15522_v54, %v15503_v37  ;;  %v2989_v12 = vcombine.high %v2937_v11, %v15440_v51  ;;  %v23536_v48 = vcombine.high %v23508_v28, %v23507_v4 }
 0x294   :  { %v3026_v53 = vcombine.low %v3002_v41, %v3018_v46  ;;  %12759 = vrot.lane.b32.xlu1 %v12758_v50, %s13474_s30  ;;  %v3174_v63 = vcombine.low %v15526_v25, %v15508_v33  ;;  %v2938_v44 = vcombine.low %v15511_v39, %v15514_v20  ;;  %v23537_v7 = vcombine.low %v15359_v14, %v15351_v32 }
 0x295   :  { %v15543_v26 = vrot.slane %v23536_v48, %v13617_v1  ;;  %v2570_v36 = vrot.slane %v2562_v22, %v14031_v8  ;;  %v23538_v51 = vmov 0.0   ;;  %v3193_v28 = vcombine.high %v3141_v34, %v3173_v30 }
 0x296   :  { %v15536_v56 = vrot.slane %v3026_v53, %v14031_v8  ;;  %v2706_v61 = vrot.slane %v23537_v7, %v14031_v8  ;;  %v2833_v11 = vrot.slane %v2819_v59, %v14031_v8  ;;  %v2538_v57 = vrot.slane %v2530_v13, %v14031_v8 }
 0x297   :  { %v3142_v50 = vcombine.low %v15543_v26, %v15388_v23  ;;  %v15562_v45 = vrot.slane %v2970_v17, %v14031_v8  ;;  %v12768_v53 = vpack.i.bf16 %v3193_v28, %v2989_v12  ;;  %v2801_v22 = vrot.slane %v2787_v55, %v14031_v8  ;;  %v15571_v17 = vpop.permute.xlu0 %2428 }
 0x298   :  { %12764 = vrot.lane.b32.xlu1 %v12763_v3, %s13476_s12  ;;  %v3058_v4 = vcombine.high %v15536_v56, %v23538_v51  ;;  %v2718_v3 = vcombine.low %v2674_v35, %v2706_v61  ;;  %v3182_v48 = vrot.slane %v3174_v63, %v14031_v8  ;;  %v2946_v34 = vrot.slane %v2938_v44, %v14031_v8 }
 0x299   :  { %v2771_v30 = vcombine.high %v15238_v31, %v15255_v58  ;;  %v3027_v59 = vcombine.high %v3002_v41, %v3018_v46  ;;  %v2852_v13 = vcombine.low %v2801_v22, %v2833_v11  ;;  %v2582_v7 = vcombine.low %v2538_v57, %v2570_v36 }
 0x29a   :  { %3687 = vrot.lane.b32.xlu0 %v3058_v4, %s13473_s29  ;;  %v3150_v4 = vrot.slane %v3142_v50, %v14031_v8  ;;  %v2739_v55 = vcombine.high %v15193_v0, %v15230_v60  ;;  %v2755_v12 = vcombine.high %v15234_v47, %v15244_v15  ;;  %v2990_v31 = vcombine.low %v2946_v34, %v15562_v45 }
 0x29b   :  { %v12773_v63 = vpack.i.bf16 %v2718_v3, %v2582_v7  ;;  %v2723_v58 = vcombine.high %v15173_v52, %v15217_v43  ;;  %v15583_v41 = vrot.slane %v2771_v30, %v13617_v1  ;;  %v3041_v46 = vrot.slane %v3027_v59, %v14031_v8  ;;  %v15600_v50 = vpop.permute.xlu0 %2432 }
 0x29c   :  { %12769 = vrot.lane.b32.xlu1 %v12768_v53, %s13476_s12  ;;  %v3194_v44 = vcombine.low %v3150_v4, %v3182_v48  ;;  %v2667_v0 = vcombine.high %v15480_v16, %v15464_v10  ;;  %v2719_v60 = vcombine.high %v2674_v35, %v2706_v61  ;;  %v15590_v47 = vrot.slane %v2739_v55, %v13617_v1 }
 0x29d   :  { %v15593_v15 = vrot.slane %v2755_v12, %v13617_v1  ;;  %v2563_v43 = vcombine.high %v15497_v42, %v15487_v21  ;;  %v2699_v28 = vcombine.high %v15359_v14, %v15351_v32  ;;  %v2583_v53 = vcombine.high %v2538_v57, %v2570_v36 }
 0x29e   :  { %3703 = vrot.lane.b32.xlu0 %v2852_v13, %s13474_s30  ;;  %v12778_v52 = vpack.i.bf16 %v3194_v44, %v2990_v31  ;;  %v15603_v10 = vrot.slane %v2723_v58, %v13617_v1  ;;  %v3011_v35 = vcombine.high %v15416_v24, %v15484_v18  ;;  %v2853_v61 = vcombine.high %v2801_v22, %v2833_v11 }
 0x29f   :  { %v2834_v16 = vcombine.low %v15593_v15, %v15583_v41  ;;  %v2681_v21 = vrot.slane %v2667_v0, %v14031_v8  ;;  %v12783_v42 = vpack.i.bf16 %v2719_v60, %v2583_v53  ;;  %v2531_v32 = vcombine.high %v15373_v9, %v15385_v6 }
 0x2a0   :  { %12774 = vrot.lane.b32.xlu1 %v12773_v63, %s13475_s11  ;;  %v2802_v14 = vcombine.low %v15603_v10, %v15590_v47  ;;  %v2971_v36 = vcombine.high %v15522_v54, %v15503_v37  ;;  %v2995_v57 = vcombine.high %v15382_v5, %v15453_v27  ;;  %v2991_v24 = vcombine.high %v2946_v34, %v15562_v45  ;;  %v15633_v54 = vpop.permute.xlu0 %2436 }
 0x2a1   :  { %v2577_v18 = vrot.slane %v2563_v43, %v14031_v8  ;;  %v3175_v11 = vcombine.high %v15526_v25, %v15508_v33  ;;  %v2939_v9 = vcombine.high %v15511_v39, %v15514_v20  ;;  %v2713_v6 = vrot.slane %v2699_v28, %v14031_v8 }
 0x2a2   :  { %3707 = vrot.lane.b32.xlu0 %v3041_v46, %s13474_s30  ;;  %v15628_v22 = vrot.slane %v3011_v35, %v13617_v1  ;;  %v3059_v5 = vcombine.high %v3041_v46, %v23538_v51  ;;  %v3195_v27 = vcombine.high %v3150_v4, %v3182_v48  ;;  %v2842_v37 = vrot.slane %v2834_v16, %v14031_v8 }
 0x2a3   :  { %v2545_v45 = vrot.slane %v2531_v32, %v14031_v8  ;;  %v2720_v33 = vcombine.low %v2681_v21, %v2713_v6  ;;  %v3143_v39 = vcombine.high %v15543_v26, %v15388_v23  ;;  %v2985_v20 = vrot.slane %v2971_v36, %v14031_v8 }
 0x2a4   :  { %12779 = vrot.lane.b32.xlu1 %v12778_v52, %s13475_s11  ;;  %v3009_v25 = vrot.slane %v2995_v57, %v13617_v1  ;;  %v12788_v3 = vpack.i.bf16 %v3195_v27, %v2991_v24  ;;  %v2810_v34 = vrot.slane %v2802_v14, %v14031_v8  ;;  %v2953_v48 = vrot.slane %v2939_v9, %v14031_v8  ;;  %v15648_v55 = vpop.permute.xlu0 %2440  ;;  %v23539_v24 = vld [vmem:[#allocation45_spill] sm:$0xff]  ;;  %v23542_v27 = vld [vmem:[#allocation59_spill] sm:$0xff] }
 0x2a5   :  { %v3189_v30 = vrot.slane %v3175_v11, %v14031_v8  ;;  %v2584_v7 = vcombine.low %v2545_v45, %v2577_v18  ;;  %v3157_v4 = vrot.slane %v3143_v39, %v14031_v8  ;;  %v3622_v31 = vcombine.low %v15600_v50, %v15648_v55  ;;  %v23545_v39 = vld [vmem:[#allocation23_spill] sm:$0xff] }
 0x2a6   :  { %3723 = vrot.lane.b32.xlu0 %v2853_v61, %s13476_s12  ;;  %v3042_v59 = vcombine.low %v3009_v25, %v15628_v22  ;;  %v2854_v13 = vcombine.low %v2810_v34, %v2842_v37  ;;  %v2992_v26 = vcombine.low %v2953_v48, %v2985_v20  ;;  %v2721_v46 = vcombine.high %v2681_v21, %v2713_v6  ;;  %v23540_v6 = vld [vmem:[#allocation12_spill] sm:$0xff] }
 0x2a7   :  { %v12793_v23 = vpack.i.bf16 %v2720_v33, %v2584_v7  ;;  %v3196_v63 = vcombine.low %v3157_v4, %v3189_v30  ;;  %v2835_v44 = vcombine.high %v15593_v15, %v15583_v41  ;;  %v3606_v0 = vcombine.low %v15571_v17, %v15633_v54  ;;  %v23544_v33 = vld [vmem:[#allocation11_spill] sm:$0xff]  ;;  %v23552_v7 = vld [vmem:[#allocation52_spill] sm:$0xff] }
 0x2a8   :  { %12784 = vrot.lane.b32.xlu1 %v12783_v42, %s13478_s14  ;;  %v3050_v12 = vrot.slane %v3042_v59, %v14031_v8  ;;  %v2855_v60 = vcombine.high %v2810_v34, %v2842_v37  ;;  %v2585_v52 = vcombine.high %v2545_v45, %v2577_v18  ;;  %v2803_v43 = vcombine.high %v15603_v10, %v15590_v47  ;;  %v23543_v37 = vld [vmem:[#allocation58_spill] sm:$0xff]  ;;  %v23551_v59 = vld [vmem:[#allocation56_spill] sm:$0xff] }
 0x2a9   :  { %v12798_v58 = vpack.i.bf16 %v3196_v63, %v2992_v26  ;;  %v15663_v28 = vrot.slane %v3622_v31, %v13617_v1  ;;  %v2993_v16 = vcombine.high %v2953_v48, %v2985_v20  ;;  %v15667_v35 = vrot.slane %v3606_v0, %v13617_v1  ;;  %v23556_v31 = vld [vmem:[#allocation67_spill] sm:$0xff]  ;;  %v23559_v0 = vld [vmem:[#allocation17_spill] sm:$0xff] }
 0x2aa   :  { %3727 = vrot.lane.b32.xlu0 %v3059_v5, %s13476_s12  ;;  %v12803_v53 = vpack.i.bf16 %v2721_v46, %v2585_v52  ;;  %v3060_v41 = vcombine.high %v3050_v12, %v23538_v51  ;;  %v3197_v15 = vcombine.high %v3157_v4, %v3189_v30  ;;  %v2849_v61 = vrot.slane %v2835_v44, %v14031_v8  ;;  %v23550_v30 = vld [vmem:[#allocation20_spill] sm:$0xff]  ;;  %v23554_v4 = vld [vmem:[#allocation53_spill] sm:$0xff] }
 0x2ab   :  { %v3638_v47 = vcombine.low %v15667_v35, %v15663_v28  ;;  %v2817_v21 = vrot.slane %v2803_v43, %v14031_v8  ;;  %v3599_v42 = vcombine.high %v15449_v2, %v15467_v38  ;;  %v3043_v32 = vcombine.high %v3009_v25, %v15628_v22  ;;  %v23541_v22 = vld [vmem:[#allocation47_spill] sm:$0xff]  ;;  %v23546_v25 = vld [vmem:[#allocation49_spill] sm:$0xff] }
 0x2ac   :  { %12789 = vrot.lane.b32.xlu1 %v12788_v3, %s13478_s14  ;;  %v12808_v10 = vpack.i.bf16 %v3197_v15, %v2993_v16  ;;  %v3327_v36 = vcombine.high %v15224_v49, %v15221_v40  ;;  %v3431_v57 = vcombine.high %v15303_v29, %v15306_v62  ;;  %v3567_v18 = vcombine.high %v23539_v24, %v15435_v19  ;;  %v23547_v29 = vld [vmem:[#allocation9_spill] sm:$0xff]  ;;  %v23548_v3 = vld [vmem:[#allocation70_spill] sm:$0xff]  ;;  %v23549_v19 = vld [vmem:[#allocation71_spill] sm:$0xff] }
 0x2ad   :  { %v2856_v14 = vcombine.low %v2817_v21, %v2849_v61  ;;  %v15688_v9 = vrot.slane %v3638_v47, %v14031_v8  ;;  %v3535_v5 = vcombine.high %v23541_v22, %v23540_v6  ;;  %v3263_v45 = vcombine.high %v23543_v37, %v23542_v27  ;;  %v23558_v44 = vld [vmem:[#allocation13_spill] sm:$0xff]  ;;  %v23567_v6 = vld [vmem:[#allocation51_spill] sm:$0xff]  ;;  %v23568_v37 = vld [vmem:[#allocation26_spill] sm:$0xff] }
 0x2ae   :  { %3743 = vrot.lane.b32.xlu0 %v2854_v13, %s13475_s11  ;;  %v12813_v11 = vpack.i.bf16 %v3599_v42, %v3327_v36  ;;  %v3231_v20 = vcombine.high %v23545_v39, %v23544_v33  ;;  %v3247_v62 = vcombine.high %v23547_v29, %v23546_v25  ;;  %v3399_v34 = vcombine.high %v23549_v19, %v23548_v3  ;;  %v23560_v16 = vld [vmem:[#allocation57_spill] sm:$0xff]  ;;  %v23563_v42 = vld [vmem:[#allocation64_spill] sm:$0xff]  ;;  %v23564_v36 = vld [vmem:[#allocation63_spill] sm:$0xff] }
 0x2af   :  { %v3057_v48 = vrot.slane %v3043_v32, %v14031_v8  ;;  %v3295_v13 = vcombine.high %v23551_v59, %v23550_v30  ;;  %v3581_v52 = vrot.slane %v3567_v18, %v14031_v8  ;;  %v3670_v43 = vcombine.high %v15688_v9, %v23538_v51  ;;  %v23565_v24 = vld [vmem:[#allocation61_spill] sm:$0xff]  ;;  %v23569_v33 = vld [vmem:[#allocation18_spill] sm:$0xff]  ;;  %v23571_v25 = vld [vmem:[#allocation60_spill] sm:$0xff] }
 0x2b0   :  { %12794 = vrot.lane.b32.xlu1 %v12793_v23, %s13477_s13  ;;  %v23553_v23 = vld [vmem:[#allocation16_spill] sm:$0xff]  ;;  %v3277_v47 = vrot.slane %v3263_v45, %v14031_v8  ;;  %v3351_v18 = vcombine.high %v23565_v24, %v23564_v36  ;;  %v15731_v27 = vrot.slane %v3399_v34, %v14031_v8  ;;  %v3199_v45 = vcombine.high %v23569_v33, %v23568_v37  ;;  %v23570_v39 = vld [vmem:[#allocation62_spill] sm:$0xff] }
 0x2b1   :  { %v3471_v26 = vcombine.high %v23553_v23, %v23552_v7  ;;  %v3335_v29 = vcombine.high %v23571_v25, %v23570_v39  ;;  %v3309_v3 = vrot.slane %v3295_v13, %v14031_v8  ;;  %v15750_v30 = vrot.slane %v3247_v62, %v13617_v1 }
 0x2b2   :  { %3747 = vrot.lane.b32.xlu0 %v3050_v12, %s13475_s11  ;;  %v23555_v12 = vld [vmem:[#allocation50_spill] sm:$0xff]  ;;  %v15758_v23 = vrot.slane %v3351_v18, %v13617_v1 }
 0x2b3   :  { %v3487_v63 = vcombine.high %v23555_v12, %v23554_v4  ;;  %v3329_v4 = vcombine.high %v3277_v47, %v3309_v3  ;;  %v3485_v62 = vrot.slane %v3471_v26, %v13617_v1  ;;  %v3213_v12 = vrot.slane %v3199_v45, %v13617_v1 }
 0x2b4   :  { %12799 = vrot.lane.b32.xlu1 %v12798_v58, %s13477_s13  ;;  %v23557_v58 = vld [vmem:[#allocation65_spill] sm:$0xff] }
 0x2b5   :  { %v3383_v46 = vcombine.high %v23557_v58, %v23556_v31  ;;  %v15753_v59 = vrot.slane %v3487_v63, %v13617_v1  ;;  %v3349_v63 = vrot.slane %v3335_v29, %v13617_v1 }
 0x2b6   :  { %3763 = vrot.lane.b32.xlu0 %v2855_v60, %s13478_s14  ;;  %v3519_v60 = vcombine.high %v23559_v0, %v23558_v44 }
 0x2b7   :  { %v3550_v26 = vcombine.low %v3485_v62, %v15753_v59  ;;  %v3551_v25 = vcombine.high %v3485_v62, %v15753_v59 }
 0x2b8   :  { %12804 = vrot.lane.b32.xlu1 %v12803_v53, %s13479_s15  ;;  %v15717_v53 = vrot.slane %v3431_v57, %v14031_v8  ;;  %v2857_v57 = vcombine.high %v2817_v21, %v2849_v61  ;;  %v15742_v19 = vrot.slane %v3519_v60, %v13617_v1  ;;  %v3639_v61 = vcombine.high %v15667_v35, %v15663_v28 }
 0x2b9   :  { %v3061_v35 = vcombine.high %v3057_v48, %v23538_v51 }
 0x2ba   :  { %3767 = vrot.lane.b32.xlu0 %v3060_v41, %s13478_s14  ;;  %v23561_v41 = vld [vmem:[#allocation19_spill] sm:$0xff]  ;;  %v3464_v21 = vcombine.low %v15731_v27, %v15717_v53  ;;  %v3653_v0 = vrot.slane %v3639_v61, %v14031_v8  ;;  %v3465_v61 = vcombine.high %v15731_v27, %v15717_v53  ;;  %v3565_v53 = vrot.slane %v3551_v25, %v14031_v8 }
 0x2bb   :  { %v3215_v15 = vcombine.high %v23561_v41, %v23560_v16  ;;  %v3607_v16 = vcombine.high %v15571_v17, %v15633_v54  ;;  %v23572_v41 = vld [vmem:[#allocation21_spill] sm:$0xff]  ;;  %v3558_v17 = vrot.slane %v3550_v26, %v14031_v8 }
 0x2bc   :  { %12809 = vrot.lane.b32.xlu1 %v12808_v10, %s13479_s15  ;;  %v23562_v10 = vld [vmem:[#allocation66_spill] sm:$0xff]  ;;  %v3671_v36 = vcombine.high %v3653_v0, %v23538_v51 }
 0x2bd   :  { %v3367_v32 = vcombine.high %v23563_v42, %v23562_v10  ;;  %v3229_v13 = vrot.slane %v3215_v15, %v13617_v1  ;;  %v23573_v15 = vld [vmem:[#allocation24_spill] sm:$0xff]  ;;  %v3328_v42 = vcombine.low %v3277_v47, %v3309_v3  ;;  %v3621_v18 = vrot.slane %v3607_v16, %v13617_v1 }
 0x2be   :  { %3783 = vrot.lane.b32.xlu0 %v2856_v14, %s13477_s13  ;;  %v3549_v14 = vrot.slane %v3535_v5, %v14031_v8  ;;  %v15738_v5 = vrot.slane %v3383_v46, %v13617_v1  ;;  %v3623_v46 = vcombine.high %v15600_v50, %v15648_v55  ;;  %v3463_v50 = vcombine.high %v23573_v15, %v23572_v41 }
 0x2bf   :  { %v3381_v7 = vrot.slane %v3367_v32, %v13617_v1  ;;  %v3278_v60 = vcombine.low %v3213_v12, %v3229_v13  ;;  %v3279_v29 = vcombine.high %v3213_v12, %v3229_v13  ;;  %v3415_v3 = vcombine.high %v3349_v63, %v15758_v23 }
 0x2c0   :  { %12814 = vrot.lane.b32.xlu1 %v12813_v11, %s13473_s29  ;;  %v23566_v11 = vld [vmem:[#allocation46_spill] sm:$0xff]  ;;  %v3601_v34 = vcombine.high %v3549_v14, %v3581_v52  ;;  %v3600_v55 = vcombine.low %v3549_v14, %v3581_v52 }
 0x2c1   :  { %v3503_v22 = vcombine.high %v23567_v6, %v23566_v11  ;;  %v3446_v31 = vcombine.low %v3381_v7, %v15738_v5  ;;  %v3286_v54 = vrot.slane %v3278_v60, %v14031_v8  ;;  %v3447_v37 = vcombine.high %v3381_v7, %v15738_v5 }
 0x2c2   :  { %3787 = vrot.lane.b32.xlu0 %v3057_v48, %s13477_s13  ;;  %v12823_v44 = vpack.i.bf16 %v3601_v34, %v3329_v4  ;;  %v3245_v48 = vrot.slane %v3231_v20, %v13617_v1  ;;  %v3637_v20 = vrot.slane %v3623_v46, %v13617_v1  ;;  %v12818_v52 = vpack.i.bf16 %v3600_v55, %v3328_v42 }
 0x2c3   :  { %v3517_v28 = vrot.slane %v3503_v22, %v13617_v1  ;;  %v3454_v24 = vrot.slane %v3446_v31, %v14031_v8  ;;  %v3461_v59 = vrot.slane %v3447_v37, %v14031_v8  ;;  %v3293_v13 = vrot.slane %v3279_v29, %v14031_v8  ;;  %v15820_v31 = vld [vmem:[%s22447_s7] sm:$0xff] }
 0x2c4   :  { %3827 = vrot.lane.b32.xlu1 %v3670_v43, %s13473_s29  ;;  %v3414_v43 = vcombine.low %v3349_v63, %v15758_v23  ;;  %v3310_v10 = vcombine.low %v3245_v48, %v15750_v30  ;;  %v3654_v14 = vcombine.low %v3621_v18, %v3637_v20  ;;  %v3311_v5 = vcombine.high %v3245_v48, %v15750_v30  ;;  %v15831_v48 = vld [vmem:[%s22441_s1] sm:$0xff] }
 0x2c5   :  { %v3582_v58 = vcombine.low %v3517_v28, %v15742_v19  ;;  %v3583_v33 = vcombine.high %v3517_v28, %v15742_v19  ;;  %v3429_v28 = vrot.slane %v3415_v3, %v14031_v8  ;;  %v3655_v27 = vcombine.high %v3621_v18, %v3637_v20  ;;  %12562 = vmatmul.mubr.msk.f32.vlgmr.msra.gmra.mrb[0].mxu1 %vm2053_vm13, %v15820_v31 }
 0x2c6   :  { %3803 = vrot.lane.b32.xlu0 %v2857_v57, %s13479_s15  ;;  %v3422_v47 = vrot.slane %v3414_v43, %v14031_v8  ;;  %v3318_v6 = vrot.slane %v3310_v10, %v14031_v8  ;;  %v3662_v39 = vrot.slane %v3654_v14, %v14031_v8  ;;  %4094 = vmatprep.mubr.f32.mxu1 %v23538_v51 }
 0x2c7   :  { %v3590_v32 = vrot.slane %v3582_v58, %v14031_v8  ;;  %v3597_v19 = vrot.slane %v3583_v33, %v14031_v8  ;;  %v3468_v30 = vcombine.low %v3429_v28, %v3461_v59  ;;  %v3669_v63 = vrot.slane %v3655_v27, %v14031_v8  ;;  %12559 = vmatmul.mubr.msk.f32.vlgmr.msra.gmra.mrb[0].mxu0 %vm1971_vm14, %v15831_v48 }
 0x2c8   :  { %3843 = vrot.lane.b32.xlu1 %v3464_v21, %s13474_s30  ;;  %v3466_v11 = vcombine.low %v3422_v47, %v3454_v24  ;;  %v3331_v57 = vcombine.high %v3286_v54, %v3318_v6  ;;  %v3672_v34 = vcombine.high %v3662_v39, %v23538_v51  ;;  %v3330_v7 = vcombine.low %v3286_v54, %v3318_v6 }
 0x2c9   :  { %v3603_v22 = vcombine.high %v3558_v17, %v3590_v32  ;;  %v3602_v21 = vcombine.low %v3558_v17, %v3590_v32  ;;  %v3605_v4 = vcombine.high %v3565_v53, %v3597_v19  ;;  %v3467_v58 = vcombine.high %v3422_v47, %v3454_v24  ;;  %4171 = vmatprep.mubr.f32.mxu0 %v23538_v51 }
 0x2ca   :  { %3807 = vrot.lane.b32.xlu0 %v3061_v35, %s13479_s15  ;;  %v3325_v35 = vrot.slane %v3311_v5, %v14031_v8  ;;  %v3604_v46 = vcombine.low %v3565_v53, %v3597_v19  ;;  %v3469_v60 = vcombine.high %v3429_v28, %v3461_v59  ;;  %v23575_v5 = vld [vmem:[#allocation37_spill] sm:$0xff]  ;;  %v23578_v59 = vld [vmem:[#allocation55_spill] sm:$0xff] }
 0x2cb   :  { %v12833_v45 = vpack.i.bf16 %v3603_v22, %v3331_v57  ;;  %v12828_v23 = vpack.i.bf16 %v3602_v21, %v3330_v7  ;;  %v23574_v21 = vld [vmem:[#allocation27_spill] sm:$0xff]  ;;  %v23577_v7 = vld [vmem:[#allocation54_spill] sm:$0xff] }
 0x2cc   :  { %12824 = vrot.lane.b32.xlu1 %v12823_v44, %s13476_s12  ;;  %v3333_v62 = vcombine.high %v3293_v13, %v3325_v35  ;;  %v3673_v44 = vcombine.high %v3669_v63, %v23538_v51  ;;  %v23576_v19 = vcombine.low %v23574_v21, %v23575_v5  ;;  %v23580_v21 = vld [vmem:[#allocation68_spill] sm:$0xff]  ;;  %v23581_v5 = vld [vmem:[#allocation69_spill] sm:$0xff] }
 0x2ce   :  { %3823 = vrot.lane.b32.xlu0 %v3463_v50, %s13473_s29  ;;  %v12843_v12 = vpack.i.bf16 %v3605_v4, %v3333_v62  ;;  %v12745_v43 = vpop.permute.xlu1 %12744 }
 0x2cf   :  { %v12747_v22 = vunpack.i.h.bf16 %v12745_v43  ;;  %v12746_v57 = vunpack.i.l.bf16 %v12745_v43 }
 0x2d0   :  { %3867 = vrot.lane.b32.xlu1 %v3671_v36, %s13476_s12 }
 0x2d2   :  { %12819 = vrot.lane.b32.xlu0 %v12818_v52, %s13474_s30 }
 0x2d4   :  { %3883 = vrot.lane.b32.xlu1 %v3466_v11, %s13475_s11 }
 0x2d6   :  { %3847 = vrot.lane.b32.xlu0 %v3653_v0, %s13474_s30  ;;  %v3332_v0 = vcombine.low %v3293_v13, %v3325_v35  ;;  %v23579_v13 = vcombine.low %v23577_v7, %v23578_v59  ;;  %v23583_v7 = vld [vmem:[#allocation14_spill] sm:$0xff]  ;;  %v23584_v59 = vld [vmem:[#allocation48_spill] sm:$0xff] }
 0x2d8   :  { %12834 = vrot.lane.b32.xlu1 %v12833_v45, %s13478_s14  ;;  %v12838_v26 = vpack.i.bf16 %v3604_v46, %v3332_v0 }
 0x2da   :  { %3863 = vrot.lane.b32.xlu0 %v3465_v61, %s13476_s12 }
 0x2dc   :  { %3907 = vrot.lane.b32.xlu1 %v3672_v34, %s13478_s14  ;;  %v3954_v34 = vsel %vm1894_vm5, %v23576_v19, %v12746_v57  ;;  %v23582_v19 = vcombine.low %v23580_v21, %v23581_v5 }
 0x2de   :  { %12829 = vrot.lane.b32.xlu0 %v12828_v23, %s13475_s11  ;;  %v3955_v23 = vsel %vm1894_vm5, %v23579_v13, %v12747_v22  ;;  %v23585_v13 = vcombine.low %v23583_v7, %v23584_v59 }
 0x2e0   :  { %3923 = vrot.lane.b32.xlu1 %v3468_v30, %s13477_s13 }
 0x2e2   :  { %3887 = vrot.lane.b32.xlu0 %v3662_v39, %s13475_s11 }
 0x2e4   :  { %12844 = vrot.lane.b32.xlu1 %v12843_v12, %s13479_s15 }
 0x2e6   :  { %3903 = vrot.lane.b32.xlu0 %v3467_v58, %s13478_s14 }
 0x2e8   :  { %3947 = vrot.lane.b32.xlu1 %v3673_v44, %s13479_s15 }
 0x2ea   :  { %12839 = vrot.lane.b32.xlu0 %v12838_v26, %s13477_s13 }
 0x2ec   :  { %v3684_v10 = vpop.permute.xlu0 %3683 }
 0x2ee   :  { %3927 = vrot.lane.b32.xlu0 %v3669_v63, %s13477_s13 }
 0x2f2   :  { %3943 = vrot.lane.b32.xlu0 %v3469_v60, %s13479_s15 }
 0x2fe   :  { %v15840_v16 = vpop.permute.xlu1 %12749 }
 0x2ff   :  { %v12752_v59 = vunpack.i.h.bf16 %v15840_v16 }
 0x302   :  { %v12755_v50 = vpop.permute.xlu1 %12754 }
 0x303   :  { %v12757_v37 = vunpack.i.h.bf16 %v12755_v50  ;;  %v12756_v33 = vunpack.i.l.bf16 %v12755_v50 }
 0x305   :  { %v3960_v27 = vsel %vm1900_vm6, %v3955_v23, %v12757_v37  ;;  %v3959_v30 = vsel %vm1900_vm6, %v3954_v34, %v12756_v33  ;;  %v12751_v37 = vunpack.i.l.bf16 %v15840_v16  ;;  %v3956_v34 = vsel %vm1894_vm5, %v23582_v19, %v3684_v10 }
 0x306   :  { %v15842_v55 = vpop.permute.xlu1 %12759 }
 0x307   :  { %v12761_v33 = vunpack.i.l.bf16 %v15842_v55  ;;  %v3957_v23 = vsel %vm1894_vm5, %v23585_v13, %v12751_v37 }
 0x30a   :  { %v12765_v42 = vpop.permute.xlu1 %12764 }
 0x30b   :  { %v12767_v39 = vunpack.i.h.bf16 %v12765_v42  ;;  %v12766_v25 = vunpack.i.l.bf16 %v12765_v42 }
 0x30c   :  { %v15844_v32 = vpop.permute.xlu0 %3687 }
 0x30d   :  { %v3964_v12 = vsel %vm1906_vm7, %v3959_v30, %v12766_v25  ;;  %v3965_v63 = vsel %vm1906_vm7, %v3960_v27, %v12767_v39 }
 0x30e   :  { %v15846_v20 = vpop.permute.xlu1 %12769 }
 0x30f   :  { %v12771_v25 = vunpack.i.l.bf16 %v15846_v20 }
 0x310   :  { %v3704_v36 = vpop.permute.xlu0 %3703 }
 0x311   :  { %v3961_v27 = vsel %vm1900_vm6, %v3956_v34, %v3704_v36 }
 0x312   :  { %v12775_v24 = vpop.permute.xlu1 %12774 }
 0x313   :  { %v12777_v29 = vunpack.i.h.bf16 %v12775_v24  ;;  %v12776_v3 = vunpack.i.l.bf16 %v12775_v24 }
 0x314   :  { %v15848_v17 = vpop.permute.xlu0 %3707 }
 0x315   :  { %v3969_v58 = vsel %vm1912_vm8, %v3964_v12, %v12776_v3  ;;  %v3970_v46 = vsel %vm1912_vm8, %v3965_v63, %v12777_v29 }
 0x316   :  { %v15850_v54 = vpop.permute.xlu1 %12779 }
 0x317   :  { %v12781_v29 = vunpack.i.l.bf16 %v15850_v54 }
 0x318   :  { %v3724_v18 = vpop.permute.xlu0 %3723 }
 0x319   :  { %v3966_v12 = vsel %vm1906_vm7, %v3961_v27, %v3724_v18 }
 0x31a   :  { %v12785_v52 = vpop.permute.xlu1 %12784 }
 0x31b   :  { %v12787_v28 = vunpack.i.h.bf16 %v12785_v52  ;;  %v12786_v53 = vunpack.i.l.bf16 %v12785_v52 }
 0x31c   :  { %v15852_v47 = vpop.permute.xlu0 %3727 }
 0x31d   :  { %v3974_v0 = vsel %vm1918_vm9, %v3969_v58, %v12786_v53  ;;  %v3975_v26 = vsel %vm1918_vm9, %v3970_v46, %v12787_v28  ;;  %v3962_v53 = vsel %vm1900_vm6, %v3957_v23, %v12761_v33  ;;  %v12762_v23 = vunpack.i.h.bf16 %v15842_v55 }
 0x31e   :  { %v15854_v14 = vpop.permute.xlu1 %12789 }
 0x31f   :  { %v12791_v28 = vunpack.i.l.bf16 %v15854_v14  ;;  %v12792_v55 = vunpack.i.h.bf16 %v15854_v14 }
 0x320   :  { %v3744_v11 = vpop.permute.xlu0 %3743 }
 0x321   :  { %v3971_v58 = vsel %vm1912_vm8, %v3966_v12, %v3744_v11  ;;  %v23586_v12 = vcombine.low %v15224_v49, %v15221_v40  ;;  %v23590_v40 = vcombine.low %v15449_v2, %v15467_v38 }
 0x322   :  { %v12795_v6 = vpop.permute.xlu1 %12794 }
 0x323   :  { %v12797_v35 = vunpack.i.h.bf16 %v12795_v6  ;;  %v12796_v4 = vunpack.i.l.bf16 %v12795_v6 }
 0x324   :  { %v15856_v45 = vpop.permute.xlu0 %3747 }
 0x325   :  { %v3979_v50 = vsel %vm1924_vm10, %v3974_v0, %v12796_v4  ;;  %v3980_v42 = vsel %vm1924_vm10, %v3975_v26, %v12797_v35  ;;  %v3967_v4 = vsel %vm1906_vm7, %v3962_v53, %v12771_v25  ;;  %v12772_v53 = vunpack.i.h.bf16 %v15846_v20 }
 0x326   :  { %v15858_v61 = vpop.permute.xlu1 %12799  ;;  %v3972_v63 = vsel %vm1912_vm8, %v3967_v4, %v12781_v29  ;;  %v12782_v4 = vunpack.i.h.bf16 %v15850_v54 }
 0x327   :  { %v12801_v30 = vunpack.i.l.bf16 %v15858_v61 }
 0x328   :  { %v3764_v62 = vpop.permute.xlu0 %3763 }
 0x329   :  { %v3976_v0 = vsel %vm1918_vm9, %v3971_v58, %v3764_v62  ;;  %v23587_v58 = vld [vmem:[#allocation43_spill] sm:$0xff] }
 0x32a   :  { %v12805_v44 = vpop.permute.xlu1 %12804 }
 0x32b   :  { %v12807_v60 = vunpack.i.h.bf16 %v12805_v44  ;;  %v12806_v43 = vunpack.i.l.bf16 %v12805_v44  ;;  %v3977_v44 = vsel %vm1918_vm9, %v3972_v63, %v12791_v28 }
 0x32c   :  { %v15878_v24 = vpop.permute.xlu0 %3767  ;;  %v3982_v26 = vsel %vm1924_vm10, %v3977_v44, %v12801_v30  ;;  %v23588_v44 = vld [vmem:[#allocation44_spill] sm:$0xff] }
 0x32d   :  { %v15881_v52 = vsel %vm1930_vm11, %v3979_v50, %v12806_v43  ;;  %v15884_v6 = vsel %vm1930_vm11, %v3980_v42, %v12807_v60 }
 0x32e   :  { %v15886_v22 = vpop.permute.xlu1 %12809  ;;  %v12581_v57 = vpack.c.bf16 %v15884_v6, %v15881_v52 }
 0x32f   :  { %v12811_v10 = vunpack.i.l.bf16 %v15886_v22 }
 0x330   :  { %v3784_v39 = vpop.permute.xlu0 %3783 }
 0x331   :  { %v3981_v36 = vsel %vm1924_vm10, %v3976_v0, %v3784_v39  ;;  %v15918_v43 = vsel %vm1930_vm11, %v3982_v26, %v12811_v10  ;;  %v23589_v0 = vcombine.low %v23587_v58, %v23588_v44 }
 0x332   :  { %v12815_v3 = vpop.permute.xlu1 %12814 }
 0x333   :  { %v12816_v7 = vunpack.i.l.bf16 %v12815_v3  ;;  %v12817_v27 = vunpack.i.h.bf16 %v12815_v3  ;;  %v3989_v16 = vsel %vm1894_vm5, %v23589_v0, %v12752_v59 }
 0x334   :  { %v15906_v35 = vpop.permute.xlu0 %3787  ;;  %v3994_v3 = vsel %vm1900_vm6, %v3989_v16, %v12762_v23 }
 0x335   :  { %v3990_v10 = vsel %vm1894_vm5, %v23586_v12, %v12816_v7  ;;  %v3992_v49 = vsel %vm1894_vm5, %v23590_v40, %v12817_v27  ;;  %v12812_v27 = vunpack.i.h.bf16 %v15886_v22 }
 0x336   :  { %v3828_v46 = vpop.permute.xlu1 %3827 }
 0x338   :  { %v3804_v60 = vpop.permute.xlu0 %3803 }
 0x339   :  { %v15921_v18 = vsel %vm1930_vm11, %v3981_v36, %v3804_v60  ;;  %v3999_v60 = vsel %vm1906_vm7, %v3994_v3, %v12772_v53  ;;  %v12802_v53 = vunpack.i.h.bf16 %v15858_v61 }
 0x33a   :  { %v12585_v50 = vpack.c.bf16 %v15918_v43, %v15921_v18  ;;  %v3844_v11 = vpop.permute.xlu1 %3843  ;;  %v4004_v14 = vsel %vm1912_vm8, %v3999_v60, %v12782_v4 }
 0x33b   :  { %v4009_v12 = vsel %vm1918_vm9, %v4004_v14, %v12792_v55 }
 0x33c   :  { %v15925_v42 = vpop.permute.xlu0 %3807 }
 0x33e   :  { %v12825_v37 = vpop.permute.xlu1 %12824 }
 0x33f   :  { %v12826_v26 = vunpack.i.l.bf16 %v12825_v37 }
 0x340   :  { %v3824_v33 = vpop.permute.xlu0 %3823 }
 0x342   :  { %v3868_v62 = vpop.permute.xlu1 %3867 }
 0x344   :  { %v12820_v25 = vpop.permute.xlu0 %12819 }
 0x345   :  { %v12821_v13 = vunpack.i.l.bf16 %v12820_v25  ;;  %v12822_v63 = vunpack.i.h.bf16 %v12820_v25  ;;  %v23591_v25 = vcombine.low %v23573_v15, %v23572_v41  ;;  %v3993_v41 = vsel %vm1894_vm5, %v15688_v9, %v3828_v46 }
 0x346   :  { %v3884_v39 = vpop.permute.xlu1 %3883  ;;  %v4014_v9 = vsel %vm1924_vm10, %v4009_v12, %v12802_v53  ;;  %v13480_v53 = vmov 0  }
 0x347   :  { %v3995_v36 = vsel %vm1900_vm6, %v3990_v10, %v12821_v13  ;;  %v3991_v7 = vsel %vm1894_vm5, %v23591_v25, %v3824_v33  ;;  %v3997_v59 = vsel %vm1900_vm6, %v3992_v49, %v12822_v63  ;;  %v12827_v10 = vunpack.i.h.bf16 %v12825_v37  ;;  %12848 = vset.pattern.permute.xlu1 %v13480_v53  ;;  %12849 = vset.pattern.permute.xlu0 %v13480_v53 }
 0x348   :  { %v3848_v29 = vpop.permute.xlu0 %3847  ;;  %v4000_v23 = vsel %vm1906_vm7, %v3995_v36, %v12826_v26  ;;  %v3996_v33 = vsel %vm1900_vm6, %v3991_v7, %v3844_v11 }
 0x349   :  { %v4002_v58 = vsel %vm1906_vm7, %v3997_v59, %v12827_v10 }
 0x34a   :  { %v12835_v21 = vpop.permute.xlu1 %12834 }
 0x34b   :  { %v12836_v15 = vunpack.i.l.bf16 %v12835_v21  ;;  %v12837_v16 = vunpack.i.h.bf16 %v12835_v21 }
 0x34c   :  { %v3864_v5 = vpop.permute.xlu0 %3863 }
 0x34d   :  { %v4001_v63 = vsel %vm1906_vm7, %v3996_v33, %v3864_v5 }
 0x34e   :  { %v15927_v19 = vpop.permute.xlu1 %3907  ;;  %v4006_v11 = vsel %vm1912_vm8, %v4001_v63, %v3884_v39 }
 0x350   :  { %v12830_v34 = vpop.permute.xlu0 %12829 }
 0x351   :  { %v12831_v20 = vunpack.i.l.bf16 %v12830_v34  ;;  %v12832_v13 = vunpack.i.h.bf16 %v12830_v34  ;;  %v3998_v34 = vsel %vm1900_vm6, %v3993_v41, %v3848_v29  ;;  %v4019_v29 = vsel %vm1930_vm11, %v4014_v9, %v12812_v27  ;;  %v4179_v9 = vld [vmem:[%s22443_s3] sm:$0xff] }
 0x352   :  { %v3924_v30 = vpop.permute.xlu1 %3923  ;;  %v4003_v36 = vsel %vm1906_vm7, %v3998_v34, %v3868_v62 }
 0x353   :  { %v4005_v38 = vsel %vm1912_vm8, %v4000_v23, %v12831_v20  ;;  %v4007_v37 = vsel %vm1912_vm8, %v4002_v58, %v12832_v13 }
 0x354   :  { %v3888_v28 = vpop.permute.xlu0 %3887  ;;  %v4010_v22 = vsel %vm1918_vm9, %v4005_v38, %v12836_v15  ;;  %v4012_v26 = vsel %vm1918_vm9, %v4007_v37, %v12837_v16 }
 0x355   :  { %v4008_v21 = vsel %vm1912_vm8, %v4003_v36, %v3888_v28  ;;  %v3958_v28 = vsel %vm1894_vm5, %v15536_v56, %v15844_v32 }
 0x356   :  { %v12845_v2 = vpop.permute.xlu1 %12844  ;;  %v4013_v62 = vsel %vm1918_vm9, %v4008_v21, %v15927_v19  ;;  %v3963_v52 = vsel %vm1900_vm6, %v3958_v28, %v15848_v17 }
 0x357   :  { %v12846_v44 = vunpack.i.l.bf16 %v12845_v2  ;;  %v12847_v40 = vunpack.i.h.bf16 %v12845_v2  ;;  %v3968_v6 = vsel %vm1906_vm7, %v3963_v52, %v15852_v47 }
 0x358   :  { %v3904_v54 = vpop.permute.xlu0 %3903  ;;  %v3973_v56 = vsel %vm1912_vm8, %v3968_v6, %v15856_v45 }
 0x359   :  { %v4011_v20 = vsel %vm1918_vm9, %v4006_v11, %v3904_v54  ;;  %v3978_v17 = vsel %vm1918_vm9, %v3973_v56, %v15878_v24 }
 0x35a   :  { %v4016_v39 = vsel %vm1924_vm10, %v4011_v20, %v3924_v30  ;;  %v3983_v47 = vsel %vm1924_vm10, %v3978_v17, %v15906_v35 }
 0x35c   :  { %v12840_v4 = vpop.permute.xlu0 %12839 }
 0x35d   :  { %v12841_v61 = vunpack.i.l.bf16 %v12840_v4  ;;  %v12842_v0 = vunpack.i.h.bf16 %v12840_v4 }
 0x35f   :  { %v4015_v46 = vsel %vm1924_vm10, %v4010_v22, %v12841_v61  ;;  %v4017_v60 = vsel %vm1924_vm10, %v4012_v26, %v12842_v0  ;;  %v4178_v0 = vld [vmem:[%s22442_s2] sm:$0xff] }
 0x360   :  { %v3928_v55 = vpop.permute.xlu0 %3927  ;;  %v4020_v5 = vsel %vm1930_vm11, %v4015_v46, %v12846_v44  ;;  %v4022_v25 = vsel %vm1930_vm11, %v4017_v60, %v12847_v40 }
 0x361   :  { %v12579_v3 = vpack.c.bf16 %v4020_v5, %v4019_v29  ;;  %v4018_v7 = vsel %vm1924_vm10, %v4013_v62, %v3928_v55 }
 0x363   :  { %12580 = vmatprep.subr.bf16.mxu1 %v12579_v3 }
 0x364   :  { %v3944_v49 = vpop.permute.xlu0 %3943  ;;  %12582 = vmatpush1.bf16.msra.mxu1 %v12581_v57  ;;  %v3948_v57 = vpop.permute.xlu1 %3947 }
 0x365   :  { %v4021_v54 = vsel %vm1930_vm11, %v4016_v39, %v3944_v49  ;;  %v4023_v32 = vsel %vm1930_vm11, %v4018_v7, %v3948_v57 }
 0x366   :  { %v12583_v14 = vpack.c.bf16 %v4022_v25, %v4021_v54  ;;  %12566 = vmatprep.subr.msk.mxu0 %vm1975_vm12, %v4021_v54 }
 0x367   :  { %12567 = vmatpush1.msk.msra.mxu0 %vm1975_vm12, %v15921_v18 }
 0x368   :  { %12584 = vmatprep.subr.bf16.mxu1 %v12583_v14  ;;  %12568 = vmatmul.mubr.msk.f32.vlgmr.msra.gmra.mrb[2].mxu0 %vm2053_vm13, %v15820_v31  ;;  %v3988_v31 = vsel %vm1930_vm11, %v3983_v47, %v15925_v42 }
 0x369   :  { %12586 = vmatpush1.bf16.msra.mxu1 %v12585_v50  ;;  %12423 = vmatprep.mubr.f32.mxu0 %v23538_v51 }
 0x36a   :  { %12563 = vmatprep.subr.msk.mxu1 %vm1975_vm12, %v4023_v32 }
 0x36d   :  { %12564 = vmatpush1.msk.msra.mxu1 %vm1975_vm12, %v3988_v31 }
 0x36e   :  { %12565 = vmatmul.mubr.msk.f32.vlgmr.msra.gmra.mrb[2].mxu1 %vm1971_vm14, %v15831_v48 }
 0x36f   :  { %8326 = vmatprep.mubr.f32.mxu1 %v23538_v51 }
 0x398   :  { %v16017_v45 = vpop.f32.mrb[0].mxu1 }
 0x399   :  { %23592 = vst [vmem:[#allocation10_spill] sm:$0xff] %v16017_v45  ;;  %v16019_v43 = vpop.f32.mrb[1].mxu1  ;;  %v12471_v10 = vmul.f32 %v16017_v45, %v16017_v45 }
 0x39a   :  { %23593 = vst [vmem:[#allocation40_spill] sm:$0xff] %v16019_v43  ;;  %v16023_v24 = vadd.f32 %v16019_v43, %v16017_v45  ;;  %v2048_v18 = vpop.f32.mrb[0].mxu0  ;;  %v12472_v38 = vmul.f32 %v16019_v43, %v16019_v43 }
 0x39b   :  { %v4188_v35 = vmul.f32 %v2048_v18, %v2048_v18  ;;  %v2050_v50 = vpop.f32.mrb[1].mxu0 }
 0x39c   :  { %23594 = vst [vmem:[#allocation39_spill] sm:$0xff] %v16023_v24  ;;  %v4180_v19 = vadd.f32 %v2050_v50, %v2048_v18  ;;  %v4189_v42 = vmul.f32 %v2050_v50, %v2050_v50  ;;  %v16029_v2 = vadd.f32 %v12472_v38, %v12471_v10 }
 0x39e   :  { %4181 = vadd.xlane.f32.xlu0 %v4180_v19  ;;  %v4190_v30 = vadd.f32 %v4189_v42, %v4188_v35  ;;  %23595 = vst [vmem:[#allocation22_spill] sm:$0xff] %v16029_v2 }
 0x3a2   :  { %4191 = vadd.xlane.f32.xlu0 %v4190_v30 }
 0x42b   :  { %v4182_v27 = vpop.xlane.xlu0 %4181 }
 0x42f   :  { %v4192_v41 = vpop.xlane.xlu0 %4191 }
 0x441   :  { %v4096_v59 = vpop.f32.mrb[2].mxu1 }
 0x442   :  { %v4194_v48 = vmul.f32 %v4096_v59, %v4096_v59  ;;  %v4098_v13 = vpop.f32.mrb[3].mxu1 }
 0x443   :  { %v4184_v51 = vadd.f32 %v4098_v13, %v4096_v59  ;;  %v4195_v23 = vmul.f32 %v4098_v13, %v4098_v13 }
 0x445   :  { %4185 = vadd.xlane.f32.xlu1 %v4184_v51  ;;  %v4196_v12 = vadd.f32 %v4195_v23, %v4194_v48 }
 0x447   :  { %4197 = vadd.xlane.f32.xlu0 %v4196_v12 }
 0x4d2   :  { %v4186_v15 = vpop.xlane.xlu1 %4185 }
 0x4d3   :  { %v4187_v33 = vadd.f32 %v4186_v15, %v4182_v27 }
 0x4d4   :  { %v4198_v4 = vpop.xlane.xlu0 %4197 }
 0x4d5   :  { %v4201_v34 = vmul.f32 0.001953125, %v4187_v33  ;;  %v4199_v63 = vadd.f32 %v4198_v4, %v4192_v41 }
 0x4d7   :  { %v4203_v58 = vmul.f32 %v4201_v34, %v4201_v34  ;;  %v4202_v61 = vmul.f32 0.001953125, %v4199_v63 }
 0x4d9   :  { %v4204_v37 = vsub.f32 %v4202_v61, %v4203_v58 }
 0x4db   :  { %v4205_v44 = vadd.f32 1e-05, %v4204_v37 }
 0x4dd   :  { %13410 = vrsqrt.f32 %v4205_v44 }
 0x4e7   :  { %v13411_v22 = vpop.eup %13410 }
 0x4e8   :  { %v4207_v16 = vmul.f32 %v13411_v22, %v4178_v0 }
 0x4ea   :  { %4212 = vperm.xlu1 %12848, %v4207_v16   ;;  %v4208_v46 = vmul.f32 %v4207_v16, %v4201_v34 }
 0x4ec   :  { %v4209_v11 = vsub.f32 %v4179_v9, %v4208_v46 }
 0x4ee   :  { %4219 = vperm.xlu0 %12849, %v4209_v11  }
 0x569   :  { %v4213_v55 = vpop.permute.xlu1 %4212 }
 0x56a   :  { %v4215_v29 = vmul.f32 %v4213_v55, %v2048_v18  ;;  %v4216_v5 = vmul.f32 %v4213_v55, %v2050_v50  ;;  %v4226_v60 = vmul.f32 %v4213_v55, %v4096_v59  ;;  %v4227_v49 = vmul.f32 %v4213_v55, %v4098_v13 }
 0x56d   :  { %v4220_v36 = vpop.permute.xlu0 %4219 }
 0x56e   :  { %v4222_v20 = vadd.f32 %v4220_v36, %v4215_v29  ;;  %v4223_v3 = vadd.f32 %v4220_v36, %v4216_v5  ;;  %v4228_v40 = vadd.f32 %v4226_v60, %v4220_v36  ;;  %v4229_v62 = vadd.f32 %v4227_v49, %v4220_v36 }
 0x570   :  { %v16037_v26 = vmax.f32 %v4222_v20, 0.0  ;;  %v16039_v21 = vmax.f32 %v4223_v3, 0.0  ;;  %v16053_v39 = vmax.f32 %v4228_v40, 0.0  ;;  %v16071_v54 = vmax.f32 %v4229_v62, 0.0 }
 0x572   :  { %4258 = vrot.lane.b32.xlu0 %v16039_v21, %s13477_s13  ;;  %4233 = vrot.lane.b32.xlu1 %v16037_v26, %s13479_s15 }
 0x576   :  { %4264 = vrot.lane.b32.xlu0 %v16039_v21, %s13475_s11  ;;  %4236 = vrot.lane.b32.xlu1 %v16037_v26, %s13477_s13 }
 0x57a   :  { %4270 = vrot.lane.b32.xlu0 %v16039_v21, %s13474_s30  ;;  %4239 = vrot.lane.b32.xlu1 %v16037_v26, %s13478_s14 }
 0x57e   :  { %4242 = vrot.lane.b32.xlu1 %v16037_v26, %s13475_s11  ;;  %8334 = vrot.lane.b32.xlu0 %v16053_v39, %s13479_s15 }
 0x582   :  { %4245 = vrot.lane.b32.xlu1 %v16037_v26, %s13476_s12  ;;  %8340 = vrot.lane.b32.xlu0 %v16053_v39, %s13478_s14 }
 0x586   :  { %4248 = vrot.lane.b32.xlu1 %v16037_v26, %s13474_s30  ;;  %8346 = vrot.lane.b32.xlu0 %v16053_v39, %s13476_s12 }
 0x58a   :  { %4251 = vrot.lane.b32.xlu1 %v16037_v26, %s13473_s29  ;;  %8352 = vrot.lane.b32.xlu0 %v16053_v39, %s13473_s29 }
 0x58e   :  { %4255 = vrot.lane.b32.xlu1 %v16039_v21, %s13479_s15  ;;  %8359 = vrot.lane.b32.xlu0 %v16071_v54, %s13477_s13 }
 0x592   :  { %4261 = vrot.lane.b32.xlu1 %v16039_v21, %s13478_s14  ;;  %8365 = vrot.lane.b32.xlu0 %v16071_v54, %s13475_s11 }
 0x596   :  { %4267 = vrot.lane.b32.xlu1 %v16039_v21, %s13476_s12  ;;  %8371 = vrot.lane.b32.xlu0 %v16071_v54, %s13474_s30 }
 0x59a   :  { %4273 = vrot.lane.b32.xlu1 %v16039_v21, %s13473_s29 }
 0x59e   :  { %8337 = vrot.lane.b32.xlu1 %v16053_v39, %s13477_s13 }
 0x5a2   :  { %8343 = vrot.lane.b32.xlu1 %v16053_v39, %s13475_s11 }
 0x5a6   :  { %8349 = vrot.lane.b32.xlu1 %v16053_v39, %s13474_s30 }
 0x5aa   :  { %8356 = vrot.lane.b32.xlu1 %v16071_v54, %s13479_s15 }
 0x5ae   :  { %8362 = vrot.lane.b32.xlu1 %v16071_v54, %s13478_s14 }
 0x5b2   :  { %8368 = vrot.lane.b32.xlu1 %v16071_v54, %s13476_s12 }
 0x5b6   :  { %8374 = vrot.lane.b32.xlu1 %v16071_v54, %s13473_s29 }
 0x5e4   :  { %v16101_v25 = vpop.permute.xlu1 %4233  ;;  %v16109_v6 = vpop.permute.xlu0 %4258 }
 0x5e5   :  { %v4412_v15 = vcombine.low %v16039_v21, %v16109_v6 }
 0x5e7   :  { %v4420_v58 = vrot.slane %v4412_v15, %v13617_v1 }
 0x5e8   :  { %v16103_v28 = vpop.permute.xlu1 %4236  ;;  %v16120_v31 = vpop.permute.xlu0 %4264 }
 0x5e9   :  { %v4276_v32 = vcombine.low %v16037_v26, %v16103_v28 }
 0x5eb   :  { %v4284_v35 = vrot.slane %v4276_v32, %v13617_v1 }
 0x5ec   :  { %v16105_v7 = vpop.permute.xlu1 %4239  ;;  %v16127_v13 = vpop.permute.xlu0 %4270 }
 0x5ed   :  { %v4292_v57 = vcombine.low %v16101_v25, %v16105_v7  ;;  %v4444_v4 = vcombine.low %v16120_v31, %v16127_v13 }
 0x5ef   :  { %v4300_v17 = vrot.slane %v4292_v57, %v13617_v1  ;;  %v4452_v44 = vrot.slane %v4444_v4, %v13617_v1  ;;  %v4293_v57 = vcombine.high %v16101_v25, %v16105_v7 }
 0x5f0   :  { %v16107_v14 = vpop.permute.xlu1 %4242  ;;  %v16135_v27 = vpop.permute.xlu0 %8334 }
 0x5f1   :  { %v4340_v19 = vcombine.low %v4284_v35, %v4300_v17  ;;  %v4341_v11 = vcombine.high %v4284_v35, %v4300_v17 }
 0x5f3   :  { %v4348_v51 = vrot.slane %v4340_v19, %v14031_v8  ;;  %v4355_v17 = vrot.slane %v4341_v11, %v14031_v8 }
 0x5f4   :  { %v4246_v52 = vpop.permute.xlu1 %4245  ;;  %v16145_v37 = vpop.permute.xlu0 %8340 }
 0x5f8   :  { %v16113_v56 = vpop.permute.xlu1 %4248  ;;  %v16153_v5 = vpop.permute.xlu0 %8346 }
 0x5f9   :  { %v4308_v47 = vcombine.low %v16107_v14, %v16113_v56  ;;  %v4309_v32 = vcombine.high %v16107_v14, %v16113_v56 }
 0x5fb   :  { %v4316_v42 = vrot.slane %v4308_v47, %v13617_v1  ;;  %v4277_v47 = vcombine.high %v16037_v26, %v16103_v28  ;;  %v16177_v26 = vrot.slane %v4309_v32, %v13617_v1 }
 0x5fc   :  { %v4252_v18 = vpop.permute.xlu1 %4251  ;;  %v16179_v28 = vpop.permute.xlu0 %8352 }
 0x5fd   :  { %v4324_v50 = vcombine.low %v4246_v52, %v4252_v18  ;;  %v4325_v36 = vcombine.high %v4246_v52, %v4252_v18 }
 0x5ff   :  { %v4332_v30 = vrot.slane %v4324_v50, %v13617_v1  ;;  %v16166_v35 = vrot.slane %v4325_v36, %v13617_v1 }
 0x600   :  { %v16125_v59 = vpop.permute.xlu1 %4255 }
 0x601   :  { %v4372_v48 = vcombine.low %v4316_v42, %v4332_v30  ;;  %v4373_v16 = vcombine.high %v4316_v42, %v4332_v30 }
 0x603   :  { %v4380_v23 = vrot.slane %v4372_v48, %v14031_v8  ;;  %v4387_v60 = vrot.slane %v4373_v16, %v14031_v8  ;;  %v16174_v48 = vrot.slane %v4293_v57, %v13617_v1 }
 0x604   :  { %v16131_v12 = vpop.permute.xlu1 %4261 }
 0x605   :  { %v4404_v53 = vcombine.low %v4348_v51, %v4380_v23  ;;  %v4428_v10 = vcombine.low %v16125_v59, %v16131_v12  ;;  %v4405_v3 = vcombine.high %v4348_v51, %v4380_v23  ;;  %v4406_v30 = vcombine.low %v4355_v17, %v4387_v60 }
 0x606   :  { %v4445_v51 = vcombine.high %v16120_v31, %v16127_v13  ;;  %v4429_v23 = vcombine.high %v16125_v59, %v16131_v12 }
 0x607   :  { %v4564_v38 = vrot.slane %v4404_v53, 7  ;;  %v4436_v34 = vrot.slane %v4428_v10, %v13617_v1  ;;  %v4567_v42 = vrot.slane %v4405_v3, 7  ;;  %v4413_v10 = vcombine.high %v16039_v21, %v16109_v6 }
 0x608   :  { %v4268_v41 = vpop.permute.xlu1 %4267  ;;  %v4459_v21 = vrot.slane %v4445_v51, %v13617_v1  ;;  %v16205_v6 = vrot.slane %v4429_v23, %v13617_v1 }
 0x609   :  { %v4604_v33 = vsel %vm77_vm0, 0.0, %v4564_v38  ;;  %v4476_v0 = vcombine.low %v4420_v58, %v4436_v34  ;;  %v4477_v52 = vcombine.high %v4420_v58, %v4436_v34  ;;  %v4605_v31 = vsel %vm77_vm0, 0.0, %v4567_v42 }
 0x60a   :  { %4636 = vrot.lane.b32.xlu0 %v4604_v33, %s13467_s27  ;;  %v4570_v33 = vrot.slane %v4406_v30, 7  ;;  %v16208_v34 = vrot.slane %v4413_v10, %v13617_v1 }
 0x60b   :  { %v4484_v55 = vrot.slane %v4476_v0, %v14031_v8  ;;  %v4491_v53 = vrot.slane %v4477_v52, %v14031_v8  ;;  %v8394_v52 = vcombine.high %v16135_v27, %v16145_v37 }
 0x60c   :  { %v4274_v63 = vpop.permute.xlu1 %4273 }
 0x60d   :  { %v4460_v61 = vcombine.low %v4268_v41, %v4274_v63  ;;  %v4461_v50 = vcombine.high %v4268_v41, %v4274_v63  ;;  %v4388_v41 = vcombine.low %v16177_v26, %v16166_v35  ;;  %v16210_v63 = vpop.permute.xlu0 %8359 }
 0x60f   :  { %v4468_v22 = vrot.slane %v4460_v61, %v13617_v1  ;;  %v16196_v4 = vrot.slane %v4461_v50, %v13617_v1  ;;  %v4606_v61 = vsel %vm77_vm0, 0.0, %v4570_v33  ;;  %v4396_v0 = vrot.slane %v4388_v41, %v14031_v8 }
 0x610   :  { %v16149_v9 = vpop.permute.xlu1 %8337  ;;  %v4389_v50 = vcombine.high %v16177_v26, %v16166_v35  ;;  %v8426_v35 = vcombine.high %v16153_v5, %v16179_v28 }
 0x611   :  { %v4508_v46 = vcombine.low %v4452_v44, %v4468_v22  ;;  %v4509_v40 = vcombine.high %v4452_v44, %v4468_v22  ;;  %v4407_v44 = vcombine.high %v4355_v17, %v4387_v60  ;;  %v4524_v22 = vcombine.low %v4459_v21, %v16196_v4  ;;  %v16228_v32 = vpop.permute.xlu0 %8365 }
 0x612   :  { %v4525_v51 = vcombine.high %v4459_v21, %v16196_v4  ;;  %v4403_v10 = vrot.slane %v4389_v50, %v14031_v8  ;;  %v4493_v4 = vcombine.high %v16208_v34, %v16205_v6 }
 0x613   :  { %v4516_v29 = vrot.slane %v4508_v46, %v14031_v8  ;;  %v4523_v25 = vrot.slane %v4509_v40, %v14031_v8  ;;  %v4573_v3 = vrot.slane %v4407_v44, 7  ;;  %v4532_v40 = vrot.slane %v4524_v22, %v14031_v8 }
 0x614   :  { %v16155_v20 = vpop.permute.xlu1 %8343 }
 0x615   :  { %v4540_v49 = vcombine.low %v4484_v55, %v4516_v29  ;;  %v4541_v62 = vcombine.high %v4484_v55, %v4516_v29  ;;  %v4542_v13 = vcombine.low %v4491_v53, %v4523_v25  ;;  %v4543_v11 = vcombine.high %v4491_v53, %v4523_v25  ;;  %v8372_v26 = vpop.permute.xlu0 %8371 }
 0x616   :  { %v4492_v29 = vcombine.low %v16208_v34, %v16205_v6  ;;  %v4607_v30 = vsel %vm77_vm0, 0.0, %v4573_v3  ;;  %v8377_v6 = vcombine.low %v16053_v39, %v16149_v9 }
 0x617   :  { %v4565_v18 = vrot.slane %v4540_v49, 7  ;;  %v4568_v56 = vrot.slane %v4541_v62, 7  ;;  %v4571_v46 = vrot.slane %v4542_v13, 7  ;;  %v4574_v57 = vrot.slane %v4543_v11, 7 }
 0x618   :  { %v16168_v19 = vpop.permute.xlu1 %8349  ;;  %v8545_v13 = vcombine.low %v16228_v32, %v8372_v26  ;;  %v4507_v11 = vrot.slane %v4493_v4, %v14031_v8 }
 0x619   :  { %v4566_v7 = vsel %vm77_vm0, %v4564_v38, %v4565_v18  ;;  %v4612_v14 = vsel %vm77_vm0, %v4565_v18, 0.0  ;;  %v4291_v38 = vrot.slane %v4277_v47, %v13617_v1  ;;  %v4569_v59 = vsel %vm77_vm0, %v4567_v42, %v4568_v56 }
 0x61a   :  { %4638 = vrot.lane.b32.xlu1 %v4566_v7, %s13467_s27  ;;  %4640 = vrot.lane.b32.xlu0 %v4612_v14, %s13467_s27  ;;  %v4613_v16 = vsel %vm77_vm0, %v4568_v56, 0.0  ;;  %v4572_v49 = vsel %vm77_vm0, %v4570_v33, %v4571_v46  ;;  %v4614_v62 = vsel %vm77_vm0, %v4571_v46, 0.0  ;;  %v8393_v47 = vcombine.low %v16135_v27, %v16145_v37 }
 0x61b   :  { %v4356_v12 = vcombine.low %v4291_v38, %v16174_v48  ;;  %v4357_v17 = vcombine.high %v4291_v38, %v16174_v48  ;;  %v4500_v18 = vrot.slane %v4492_v29, %v14031_v8  ;;  %v4575_v25 = vsel %vm77_vm0, %v4573_v3, %v4574_v57 }
 0x61c   :  { %v16193_v15 = vpop.permute.xlu1 %8356  ;;  %v8425_v14 = vcombine.low %v16153_v5, %v16179_v28  ;;  %v16249_v27 = vrot.slane %v8393_v47, %v13617_v1  ;;  %v16252_v37 = vrot.slane %v8394_v52, %v13617_v1  ;;  %v4615_v41 = vsel %vm77_vm0, %v4574_v57, 0.0 }
 0x61d   :  { %v4364_v55 = vrot.slane %v4356_v12, %v14031_v8  ;;  %v4544_v7 = vcombine.low %v4500_v18, %v4532_v40  ;;  %v16257_v48 = vrot.slane %v4357_v17, %v14031_v8  ;;  %v8513_v28 = vcombine.low %v16071_v54, %v16210_v63 }
 0x61e   :  { %4642 = vrot.lane.b32.xlu1 %v4605_v31, %s13467_s27  ;;  %4644 = vrot.lane.b32.xlu0 %v4569_v59, %s13467_s27  ;;  %v4545_v31 = vcombine.high %v4500_v18, %v4532_v40  ;;  %v16266_v5 = vrot.slane %v8425_v14, %v13617_v1  ;;  %v8514_v59 = vcombine.high %v16071_v54, %v16210_v63 }
 0x61f   :  { %v4408_v60 = vcombine.low %v4364_v55, %v4396_v0  ;;  %v4409_v53 = vcombine.high %v4364_v55, %v4396_v0  ;;  %v4577_v33 = vrot.slane %v4544_v7, 7  ;;  %v8409_v12 = vcombine.low %v16155_v20, %v16168_v19 }
 0x620   :  { %v16212_v58 = vpop.permute.xlu1 %8362  ;;  %v4410_v44 = vcombine.low %v16257_v48, %v4403_v10  ;;  %v4580_v22 = vrot.slane %v4545_v31, 7  ;;  %v8521_v46 = vrot.slane %v8513_v28, %v13617_v1  ;;  %v8546_v55 = vcombine.high %v16228_v32, %v8372_v26 }
 0x621   :  { %v4576_v42 = vrot.slane %v4408_v60, 7  ;;  %v8529_v21 = vcombine.low %v16193_v15, %v16212_v58  ;;  %v4579_v34 = vrot.slane %v4409_v53, 7  ;;  %v4616_v63 = vsel %vm77_vm0, %v4577_v33, 0.0 }
 0x622   :  { %4646 = vrot.lane.b32.xlu1 %v4613_v16, %s13467_s27  ;;  %4648 = vrot.lane.b32.xlu0 %v4606_v61, %s13467_s27  ;;  %v4539_v61 = vrot.slane %v4525_v51, %v14031_v8  ;;  %v16289_v16 = vrot.slane %v8426_v35, %v13617_v1  ;;  %v8553_v29 = vrot.slane %v8545_v13, %v13617_v1 }
 0x623   :  { %v4608_v23 = vsel %vm77_vm0, 0.0, %v4576_v42  ;;  %v4578_v54 = vsel %vm77_vm0, %v4576_v42, %v4577_v33  ;;  %v8417_v3 = vrot.slane %v8409_v12, %v13617_v1  ;;  %v8537_v60 = vrot.slane %v8529_v21, %v13617_v1 }
 0x624   :  { %v16223_v36 = vpop.permute.xlu1 %8368  ;;  %v16300_v40 = vrot.slane %v8514_v59, %v13617_v1  ;;  %v4546_v57 = vcombine.low %v4507_v11, %v4539_v61  ;;  %v4609_v52 = vsel %vm77_vm0, 0.0, %v4579_v34  ;;  %v4581_v32 = vsel %vm77_vm0, %v4579_v34, %v4580_v22 }
 0x625   :  { %v8378_v18 = vcombine.high %v16053_v39, %v16149_v9  ;;  %v8410_v50 = vcombine.high %v16155_v20, %v16168_v19  ;;  %v4411_v42 = vcombine.high %v16257_v48, %v4403_v10  ;;  %v8577_v7 = vcombine.low %v8521_v46, %v8537_v60 }
 0x626   :  { %4650 = vrot.lane.b32.xlu1 %v4572_v49, %s13467_s27  ;;  %4652 = vrot.lane.b32.xlu0 %v4614_v62, %s13467_s27  ;;  %v8385_v49 = vrot.slane %v8377_v6, %v13617_v1  ;;  %v4582_v62 = vrot.slane %v4410_v44, 7  ;;  %v4583_v9 = vrot.slane %v4546_v57, 7  ;;  %v4547_v20 = vcombine.high %v4507_v11, %v4539_v61 }
 0x627   :  { %v4617_v48 = vsel %vm77_vm0, %v4580_v22, 0.0  ;;  %v8392_v26 = vrot.slane %v8378_v18, %v13617_v1  ;;  %v8424_v51 = vrot.slane %v8410_v50, %v13617_v1  ;;  %v8578_v10 = vcombine.high %v8521_v46, %v8537_v60 }
 0x628   :  { %v16244_v56 = vpop.permute.xlu1 %8374  ;;  %v8441_v14 = vcombine.low %v8385_v49, %v16249_v27  ;;  %v4610_v39 = vsel %vm77_vm0, 0.0, %v4582_v62  ;;  %v4584_v31 = vsel %vm77_vm0, %v4582_v62, %v4583_v9  ;;  %v4586_v28 = vrot.slane %v4547_v20, 7 }
 0x629   :  { %v8561_v38 = vcombine.low %v16223_v36, %v16244_v56  ;;  %v8562_v17 = vcombine.high %v16223_v36, %v16244_v56  ;;  %v8473_v36 = vcombine.low %v8417_v3, %v16266_v5  ;;  %v4618_v59 = vsel %vm77_vm0, %v4583_v9, 0.0 }
 0x62a   :  { %4654 = vrot.lane.b32.xlu1 %v4607_v30, %s13467_s27  ;;  %4656 = vrot.lane.b32.xlu0 %v4575_v25, %s13467_s27  ;;  %v8560_v30 = vrot.slane %v8546_v55, %v13617_v1  ;;  %v8530_v25 = vcombine.high %v16193_v15, %v16212_v58  ;;  %v8474_v15 = vcombine.high %v8417_v3, %v16266_v5  ;;  %v4585_v58 = vrot.slane %v4411_v42, 7 }
 0x62b   :  { %v8569_v0 = vrot.slane %v8561_v38, %v13617_v1  ;;  %v8576_v19 = vrot.slane %v8562_v17, %v13617_v1  ;;  %v8585_v38 = vrot.slane %v8577_v7, %v14031_v8  ;;  %v8449_v33 = vrot.slane %v8441_v14, %v14031_v8 }
 0x62c   :  { %v8544_v53 = vrot.slane %v8530_v25, %v13617_v1  ;;  %v8457_v12 = vcombine.low %v8392_v26, %v16252_v37  ;;  %v8489_v21 = vcombine.low %v8424_v51, %v16289_v16  ;;  %v8488_v61 = vrot.slane %v8474_v15, %v14031_v8 }
 0x62d   :  { %v8609_v47 = vcombine.low %v8553_v29, %v8569_v0  ;;  %v8610_v56 = vcombine.high %v8553_v29, %v8569_v0  ;;  %v8625_v4 = vcombine.low %v8560_v30, %v8576_v19  ;;  %v8592_v6 = vrot.slane %v8578_v10, %v14031_v8 }
 0x62e   :  { %4658 = vrot.lane.b32.xlu1 %v4615_v41, %s13467_s27  ;;  %4660 = vrot.lane.b32.xlu0 %v4608_v23, %s13467_s27  ;;  %v8481_v23 = vrot.slane %v8473_v36, %v14031_v8  ;;  %v8442_v41 = vcombine.high %v8385_v49, %v16249_v27  ;;  %v4611_v27 = vsel %vm77_vm0, 0.0, %v4585_v58  ;;  %v8593_v34 = vcombine.low %v16300_v40, %v8544_v53 }
 0x62f   :  { %v8617_v35 = vrot.slane %v8609_v47, %v14031_v8  ;;  %v8624_v5 = vrot.slane %v8610_v56, %v14031_v8  ;;  %v4587_v22 = vsel %vm77_vm0, %v4585_v58, %v4586_v28  ;;  %v8633_v46 = vrot.slane %v8625_v4, %v14031_v8 }
 0x630   :  { %v8505_v44 = vcombine.low %v8449_v33, %v8481_v23  ;;  %v8456_v0 = vrot.slane %v8442_v41, %v14031_v8  ;;  %v8490_v3 = vcombine.high %v8424_v51, %v16289_v16  ;;  %v8497_v60 = vrot.slane %v8489_v21, %v14031_v8 }
 0x631   :  { %v8641_v13 = vcombine.low %v8585_v38, %v8617_v35  ;;  %v8642_v55 = vcombine.high %v8585_v38, %v8617_v35  ;;  %v8643_v29 = vcombine.low %v8592_v6, %v8624_v5  ;;  %v8594_v49 = vcombine.high %v16300_v40, %v8544_v53 }
 0x632   :  { %4662 = vrot.lane.b32.xlu1 %v4578_v54, %s13467_s27  ;;  %4664 = vrot.lane.b32.xlu0 %v4616_v63, %s13467_s27  ;;  %v8458_v54 = vcombine.high %v8392_v26, %v16252_v37  ;;  %v8626_v63 = vcombine.high %v8560_v30, %v8576_v19  ;;  %v8601_v37 = vrot.slane %v8593_v34, %v14031_v8  ;;  %v8665_v62 = vrot.slane %v8505_v44, 7 }
 0x633   :  { %v16348_v11 = vrot.slane %v8641_v13, 7  ;;  %v8506_v57 = vcombine.high %v8449_v33, %v8481_v23  ;;  %v8507_v17 = vcombine.low %v8456_v0, %v8488_v61  ;;  %v8465_v47 = vrot.slane %v8457_v12, %v14031_v8 }
 0x634   :  { %v8644_v16 = vcombine.high %v8592_v6, %v8624_v5  ;;  %v8669_v40 = vrot.slane %v8642_v55, 7  ;;  %v8672_v50 = vrot.slane %v8643_v29, 7  ;;  %v8645_v42 = vcombine.low %v8601_v37, %v8633_v46 }
 0x635   :  { %v8667_v18 = vsel %vm77_vm0, %v8665_v62, %v16348_v11  ;;  %v8504_v30 = vrot.slane %v8490_v3, %v14031_v8  ;;  %v8608_v36 = vrot.slane %v8594_v49, %v14031_v8  ;;  %v8668_v25 = vrot.slane %v8506_v57, 7 }
 0x636   :  { %4666 = vrot.lane.b32.xlu1 %v4609_v52, %s13467_s27  ;;  %4668 = vrot.lane.b32.xlu0 %v4581_v32, %s13467_s27  ;;  %v8640_v52 = vrot.slane %v8626_v63, %v14031_v8  ;;  %v4619_v32 = vsel %vm77_vm0, %v4586_v28, 0.0  ;;  %v8671_v7 = vrot.slane %v8507_v17, 7  ;;  %v8508_v14 = vcombine.high %v8456_v0, %v8488_v61 }
 0x637   :  { %v8472_v9 = vrot.slane %v8458_v54, %v14031_v8  ;;  %v8646_v20 = vcombine.high %v8601_v37, %v8633_v46  ;;  %v8670_v56 = vsel %vm77_vm0, %v8668_v25, %v8669_v40  ;;  %v8678_v26 = vrot.slane %v8645_v42, 7 }
 0x638   :  { %v8647_v19 = vcombine.low %v8608_v36, %v8640_v52  ;;  %v8673_v35 = vsel %vm77_vm0, %v8671_v7, %v8672_v50  ;;  %v8674_v51 = vrot.slane %v8508_v14, 7  ;;  %v8510_v58 = vcombine.high %v8465_v47, %v8497_v60 }
 0x639   :  { %v8511_v23 = vcombine.low %v8472_v9, %v8504_v30  ;;  %v8681_v53 = vrot.slane %v8646_v20, 7  ;;  %v8648_v33 = vcombine.high %v8608_v36, %v8640_v52  ;;  %v8512_v5 = vcombine.high %v8472_v9, %v8504_v30 }
 0x63a   :  { %4670 = vrot.lane.b32.xlu1 %v4617_v48, %s13467_s27  ;;  %4672 = vrot.lane.b32.xlu0 %v4610_v39, %s13467_s27  ;;  %v8509_v39 = vcombine.low %v8465_v47, %v8497_v60  ;;  %v8675_v48 = vrot.slane %v8644_v16, 7  ;;  %v8684_v41 = vrot.slane %v8647_v19, 7  ;;  %v8706_v61 = vsel %vm77_vm0, 0.0, %v8668_v25 }
 0x63b   :  { %v8683_v28 = vrot.slane %v8511_v23, 7  ;;  %v8687_v13 = vrot.slane %v8648_v33, 7  ;;  %v8686_v12 = vrot.slane %v8512_v5, 7  ;;  %v8707_v6 = vsel %vm77_vm0, 0.0, %v8671_v7 }
 0x63c   :  { %v8677_v15 = vrot.slane %v8509_v39, 7  ;;  %v8676_v10 = vsel %vm77_vm0, %v8674_v51, %v8675_v48  ;;  %v8708_v34 = vsel %vm77_vm0, 0.0, %v8674_v51  ;;  %v8714_v46 = vsel %vm77_vm0, %v8669_v40, 0.0 }
 0x63d   :  { %v8688_v21 = vsel %vm77_vm0, %v8686_v12, %v8687_v13  ;;  %v8711_v54 = vsel %vm77_vm0, 0.0, %v8683_v28  ;;  %v8712_v63 = vsel %vm77_vm0, 0.0, %v8686_v12  ;;  %v8715_v55 = vsel %vm77_vm0, %v8672_v50, 0.0 }
 0x63e   :  { %4674 = vrot.lane.b32.xlu1 %v4584_v31, %s13467_s27  ;;  %4676 = vrot.lane.b32.xlu0 %v4618_v59, %s13467_s27  ;;  %v8679_v38 = vsel %vm77_vm0, %v8677_v15, %v8678_v26  ;;  %v8680_v31 = vrot.slane %v8510_v58, 7  ;;  %v8685_v59 = vsel %vm77_vm0, %v8683_v28, %v8684_v41  ;;  %v8709_v44 = vsel %vm77_vm0, 0.0, %v8677_v15 }
 0x63f   :  { %v8716_v29 = vsel %vm77_vm0, %v8675_v48, 0.0  ;;  %v8717_v3 = vsel %vm77_vm0, %v8678_v26, 0.0  ;;  %v8719_v60 = vsel %vm77_vm0, %v8684_v41, 0.0  ;;  %v8720_v49 = vsel %vm77_vm0, %v8687_v13, 0.0 }
 0x640   :  { %v8682_v4 = vsel %vm77_vm0, %v8680_v31, %v8681_v53  ;;  %v8710_v0 = vsel %vm77_vm0, 0.0, %v8680_v31 }
 0x642   :  { %4678 = vrot.lane.b32.xlu1 %v4611_v27, %s13467_s27  ;;  %4680 = vrot.lane.b32.xlu0 %v4587_v22, %s13467_s27  ;;  %v8705_v27 = vsel %vm77_vm0, 0.0, %v8665_v62  ;;  %v8713_v22 = vsel %vm77_vm0, %v16348_v11, 0.0  ;;  %v8718_v11 = vsel %vm77_vm0, %v8681_v53, 0.0 }
 0x646   :  { %4682 = vrot.lane.b32.xlu1 %v4619_v32, %s13467_s27  ;;  %8739 = vrot.lane.b32.xlu0 %v8667_v18, %s13467_s27 }
 0x64a   :  { %8745 = vrot.lane.b32.xlu1 %v8670_v56, %s13467_s27  ;;  %8751 = vrot.lane.b32.xlu0 %v8673_v35, %s13467_s27 }
 0x64e   :  { %8757 = vrot.lane.b32.xlu1 %v8676_v10, %s13467_s27  ;;  %8763 = vrot.lane.b32.xlu0 %v8679_v38, %s13467_s27 }
 0x652   :  { %8769 = vrot.lane.b32.xlu1 %v8682_v4, %s13467_s27  ;;  %8775 = vrot.lane.b32.xlu0 %v8685_v59, %s13467_s27 }
 0x656   :  { %8781 = vrot.lane.b32.xlu1 %v8688_v21, %s13467_s27  ;;  %8737 = vrot.lane.b32.xlu0 %v8705_v27, %s13467_s27 }
 0x65a   :  { %8743 = vrot.lane.b32.xlu1 %v8706_v61, %s13467_s27  ;;  %8749 = vrot.lane.b32.xlu0 %v8707_v6, %s13467_s27 }
 0x65e   :  { %8755 = vrot.lane.b32.xlu1 %v8708_v34, %s13467_s27  ;;  %8761 = vrot.lane.b32.xlu0 %v8709_v44, %s13467_s27 }
 0x662   :  { %8767 = vrot.lane.b32.xlu1 %v8710_v0, %s13467_s27  ;;  %8773 = vrot.lane.b32.xlu0 %v8711_v54, %s13467_s27 }
 0x666   :  { %8779 = vrot.lane.b32.xlu1 %v8712_v63, %s13467_s27  ;;  %8741 = vrot.lane.b32.xlu0 %v8713_v22, %s13467_s27 }
 0x66a   :  { %8747 = vrot.lane.b32.xlu1 %v8714_v46, %s13467_s27  ;;  %8753 = vrot.lane.b32.xlu0 %v8715_v55, %s13467_s27 }
 0x66e   :  { %8759 = vrot.lane.b32.xlu1 %v8716_v29, %s13467_s27  ;;  %8765 = vrot.lane.b32.xlu0 %v8717_v3, %s13467_s27 }
 0x672   :  { %8771 = vrot.lane.b32.xlu1 %v8718_v11, %s13467_s27  ;;  %8777 = vrot.lane.b32.xlu0 %v8719_v60, %s13467_s27 }
 0x676   :  { %8783 = vrot.lane.b32.xlu1 %v8720_v49, %s13467_s27 }
 0x67c   :  { %v4637_v37 = vpop.permute.xlu0 %4636 }
 0x67d   :  { %v4708_v62 = vsel %vm150_vm1, 0.0, %v4637_v37 }
 0x67e   :  { %v16415_v57 = vsel %vm163_vm2, %v4708_v62, 0.0 }
 0x67f   :  { %4772 = vrot.lane.b32.xlu0 %v16415_v57, %s13468_s0  ;;  %v4876_v50 = vrot.slane %v16415_v57, 1  ;;  %v5028_v7 = vrot.slane %v16415_v57, 2 }
 0x68c   :  { %v4639_v17 = vpop.permute.xlu1 %4638  ;;  %v4641_v47 = vpop.permute.xlu0 %4640 }
 0x68d   :  { %v4709_v52 = vsel %vm150_vm1, 0.0, %v4639_v17  ;;  %v4710_v32 = vsel %vm150_vm1, 0.0, %v4641_v47 }
 0x68e   :  { %v16422_v16 = vsel %vm163_vm2, %v4709_v52, 0.0  ;;  %v16425_v18 = vsel %vm163_vm2, %v4710_v32, 0.0 }
 0x68f   :  { %v5031_v40 = vrot.slane %v16425_v18, 2  ;;  %4774 = vrot.lane.b32.xlu1 %v16422_v16, %s13468_s0  ;;  %v22590_v42 = vrot.slane %v16422_v16, 1  ;;  %v5029_v30 = vrot.slane %v16422_v16, 2 }
 0x690   :  { %v4643_v36 = vpop.permute.xlu1 %4642  ;;  %v4645_v25 = vpop.permute.xlu0 %4644 }
 0x691   :  { %v4711_v14 = vsel %vm150_vm1, 0.0, %v4643_v36  ;;  %v4712_v39 = vsel %vm150_vm1, 0.0, %v4645_v25  ;;  %v16439_v9 = vsel %vm236_vm3, %v4876_v50, %v22590_v42  ;;  %v16448_v56 = vsel %vm313_vm4, %v5029_v30, %v5031_v40 }
 0x692   :  { %v16442_v20 = vsel %vm163_vm2, %v4711_v14, 0.0  ;;  %v16445_v19 = vsel %vm163_vm2, %v4712_v39, 0.0  ;;  %23596 = vst [vmem:[#allocation28_spill] sm:$0xff] %v16448_v56  ;;  %v16451_v35 = vsel %vm313_vm4, %v5028_v7, %v5029_v30 }
 0x693   :  { %23597 = vst [vmem:[#allocation29_spill] sm:$0xff] %v16451_v35  ;;  %4776 = vrot.lane.b32.xlu0 %v16442_v20, %s13468_s0  ;;  %4778 = vrot.lane.b32.xlu1 %v16445_v19, %s13468_s0  ;;  %v4881_v48 = vrot.slane %v16442_v20, 1  ;;  %v22589_v26 = vrot.slane %v16445_v19, 1  ;;  %v5034_v51 = vrot.slane %v16445_v19, 2  ;;  %v5033_v15 = vrot.slane %v16442_v20, 2 }
 0x694   :  { %v4647_v58 = vpop.permute.xlu1 %4646  ;;  %v4649_v23 = vpop.permute.xlu0 %4648 }
 0x695   :  { %v4713_v53 = vsel %vm150_vm1, 0.0, %v4647_v58  ;;  %v4714_v10 = vsel %vm150_vm1, 0.0, %v4649_v23  ;;  %v16466_v38 = vsel %vm236_vm3, %v4881_v48, %v22589_v26  ;;  %v16469_v41 = vsel %vm313_vm4, %v5033_v15, %v5034_v51 }
 0x696   :  { %23598 = vst [vmem:[#allocation33_spill] sm:$0xff] %v16469_v41  ;;  %v16472_v33 = vsel %vm163_vm2, %v4713_v53, 0.0  ;;  %v16475_v31 = vsel %vm163_vm2, %v4714_v10, 0.0 }
 0x697   :  { %v5036_v28 = vrot.slane %v16472_v33, 2  ;;  %4780 = vrot.lane.b32.xlu0 %v16475_v31, %s13468_s0  ;;  %v4886_v54 = vrot.slane %v16475_v31, 1 }
 0x698   :  { %v4651_v59 = vpop.permute.xlu1 %4650  ;;  %v4653_v13 = vpop.permute.xlu0 %4652 }
 0x699   :  { %v4715_v12 = vsel %vm150_vm1, 0.0, %v4651_v59  ;;  %v16489_v27 = vsel %vm313_vm4, %v5034_v51, %v5036_v28  ;;  %v4716_v34 = vsel %vm150_vm1, 0.0, %v4653_v13 }
 0x69a   :  { %v16486_v21 = vsel %vm163_vm2, %v4715_v12, 0.0  ;;  %23599 = vst [vmem:[#allocation38_spill] sm:$0xff] %v16489_v27  ;;  %v16503_v55 = vsel %vm163_vm2, %v4716_v34, 0.0 }
 0x69b   :  { %4782 = vrot.lane.b32.xlu1 %v16486_v21, %s13468_s0  ;;  %v22586_v63 = vrot.slane %v16486_v21, 1  ;;  %v5041_v52 = vrot.slane %v16503_v55, 2  ;;  %v5039_v32 = vrot.slane %v16486_v21, 2 }
 0x69c   :  { %v4655_v44 = vpop.permute.xlu1 %4654  ;;  %v4657_v0 = vpop.permute.xlu0 %4656 }
 0x69d   :  { %v4717_v22 = vsel %vm150_vm1, 0.0, %v4655_v44  ;;  %v4718_v46 = vsel %vm150_vm1, 0.0, %v4657_v0  ;;  %v16514_v11 = vsel %vm236_vm3, %v4886_v54, %v22586_v63  ;;  %v16544_v39 = vsel %vm313_vm4, %v5039_v32, %v5041_v52 }
 0x69e   :  { %v16506_v29 = vsel %vm163_vm2, %v4717_v22, 0.0  ;;  %v16509_v3 = vsel %vm163_vm2, %v4718_v46, 0.0  ;;  %23600 = vst [vmem:[#allocation31_spill] sm:$0xff] %v16544_v39 }
 0x69f   :  { %4784 = vrot.lane.b32.xlu0 %v16506_v29, %s13468_s0  ;;  %4786 = vrot.lane.b32.xlu1 %v16509_v3, %s13468_s0  ;;  %v4891_v25 = vrot.slane %v16506_v29, 1  ;;  %v22585_v7 = vrot.slane %v16509_v3, 1 }
 0x6a0   :  { %v16528_v17 = vpop.permute.xlu1 %4658  ;;  %v4661_v47 = vpop.permute.xlu0 %4660 }
 0x6a1   :  { %v4720_v40 = vsel %vm150_vm1, 0.0, %v4661_v47  ;;  %v16552_v51 = vsel %vm236_vm3, %v4891_v25, %v22585_v7  ;;  %v4719_v62 = vsel %vm150_vm1, 0.0, %v16528_v17 }
 0x6a2   :  { %v16534_v50 = vsel %vm163_vm2, %v4720_v40, 0.0 }
 0x6a3   :  { %4788 = vrot.lane.b32.xlu0 %v16534_v50, %s13468_s0  ;;  %v4896_v13 = vrot.slane %v16534_v50, 1  ;;  %v5048_v60 = vrot.slane %v16534_v50, 2 }
 0x6a4   :  { %v4663_v30 = vpop.permute.xlu1 %4662  ;;  %v16538_v36 = vpop.permute.xlu0 %4664 }
 0x6a5   :  { %v4721_v14 = vsel %vm150_vm1, 0.0, %v4663_v30  ;;  %v4722_v17 = vsel %vm150_vm1, 0.0, %v16538_v36 }
 0x6a6   :  { %v16547_v48 = vsel %vm163_vm2, %v4721_v14, 0.0  ;;  %v16687_v42 = vsel %vm163_vm2, %v4722_v17, 0.0 }
 0x6a7   :  { %4790 = vrot.lane.b32.xlu1 %v16547_v48, %s13468_s0  ;;  %v22584_v10 = vrot.slane %v16547_v48, 1  ;;  %v5049_v17 = vrot.slane %v16547_v48, 2 }
 0x6a8   :  { %v4667_v15 = vpop.permute.xlu1 %4666  ;;  %v4669_v58 = vpop.permute.xlu0 %4668 }
 0x6a9   :  { %v4723_v23 = vsel %vm150_vm1, 0.0, %v4667_v15  ;;  %v4724_v53 = vsel %vm150_vm1, 0.0, %v4669_v58  ;;  %v16577_v54 = vsel %vm236_vm3, %v4896_v13, %v22584_v10  ;;  %v5038_v58 = vrot.slane %v16475_v31, 2 }
 0x6aa   :  { %v16560_v28 = vsel %vm163_vm2, %v4723_v23, 0.0  ;;  %v16563_v59 = vsel %vm163_vm2, %v4724_v53, 0.0 }
 0x6ab   :  { %4792 = vrot.lane.b32.xlu0 %v16560_v28, %s13468_s0  ;;  %4794 = vrot.lane.b32.xlu1 %v16563_v59, %s13468_s0  ;;  %v4901_v44 = vrot.slane %v16560_v28, 1  ;;  %v22583_v46 = vrot.slane %v16563_v59, 1 }
 0x6ac   :  { %v16570_v12 = vpop.permute.xlu1 %4670  ;;  %v4673_v34 = vpop.permute.xlu0 %4672 }
 0x6ad   :  { %v4726_v0 = vsel %vm150_vm1, 0.0, %v4673_v34  ;;  %v16594_v25 = vsel %vm236_vm3, %v4901_v44, %v22583_v46  ;;  %v4725_v47 = vsel %vm150_vm1, 0.0, %v16570_v12 }
 0x6ae   :  { %v16580_v22 = vsel %vm163_vm2, %v4726_v0, 0.0 }
 0x6af   :  { %4796 = vrot.lane.b32.xlu0 %v16580_v22, %s13468_s0  ;;  %v4906_v44 = vrot.slane %v16580_v22, 1  ;;  %v5058_v24 = vrot.slane %v16580_v22, 2 }
 0x6b0   :  { %v4675_v40 = vpop.permute.xlu1 %4674  ;;  %v16589_v30 = vpop.permute.xlu0 %4676 }
 0x6b1   :  { %v4727_v14 = vsel %vm150_vm1, 0.0, %v4675_v40  ;;  %v16610_v40 = vsel %vm313_vm4, %v5038_v58, %v5039_v32  ;;  %v16662_v58 = vsel %vm163_vm2, %v4719_v62, 0.0  ;;  %v5051_v62 = vrot.slane %v16687_v42, 2 }
 0x6b2   :  { %v16598_v15 = vsel %vm163_vm2, %v4727_v14, 0.0  ;;  %23601 = vst [vmem:[#allocation41_spill] sm:$0xff] %v16610_v40 }
 0x6b3   :  { %4798 = vrot.lane.b32.xlu1 %v16598_v15, %s13468_s0  ;;  %v22587_v0 = vrot.slane %v16598_v15, 1  ;;  %v16725_v12 = vsel %vm313_vm4, %v5049_v17, %v5051_v62 }
 0x6b4   :  { %v4679_v13 = vpop.permute.xlu1 %4678  ;;  %v4681_v34 = vpop.permute.xlu0 %4680  ;;  %23606 = vst [vmem:[#allocation36_spill] sm:$0xff] %v16725_v12 }
 0x6b5   :  { %v4729_v14 = vsel %vm150_vm1, 0.0, %v4679_v13  ;;  %v4730_v46 = vsel %vm150_vm1, 0.0, %v4681_v34  ;;  %v16623_v7 = vsel %vm236_vm3, %v4906_v44, %v22587_v0 }
 0x6b6   :  { %v16615_v10 = vsel %vm163_vm2, %v4729_v14, 0.0  ;;  %v16618_v53 = vsel %vm163_vm2, %v4730_v46, 0.0  ;;  %23602 = vst [vmem:[#allocation25_spill] sm:$0xff] %v16623_v7 }
 0x6b7   :  { %4800 = vrot.lane.b32.xlu0 %v16615_v10, %s13468_s0  ;;  %4802 = vrot.lane.b32.xlu1 %v16618_v53, %s13468_s0  ;;  %v4911_v0 = vrot.slane %v16615_v10, 1  ;;  %v22588_v13 = vrot.slane %v16618_v53, 1 }
 0x6b8   :  { %v16637_v46 = vpop.permute.xlu1 %4682  ;;  %v16639_v34 = vpop.permute.xlu0 %8739 }
 0x6b9   :  { %v16654_v6 = vsel %vm236_vm3, %v4911_v0, %v22588_v13 }
 0x6ba   :  { %23603 = vst [vmem:[#allocation32_spill] sm:$0xff] %v16654_v6 }
 0x6bb   :  { %4820 = vrot.lane.b32.xlu0 %v16415_v57, %s13470_s28  ;;  %4822 = vrot.lane.b32.xlu1 %v16422_v16, %s13470_s28 }
 0x6bc   :  { %v8746_v44 = vpop.permute.xlu1 %8745  ;;  %v16645_v14 = vpop.permute.xlu0 %8751 }
 0x6bd   :  { %v8813_v23 = vsel %vm150_vm1, 0.0, %v8746_v44 }
 0x6be   :  { %v16668_v0 = vsel %vm163_vm2, %v8813_v23, 0.0  ;;  %v5043_v23 = vrot.slane %v16506_v29, 2 }
 0x6bf   :  { %4824 = vrot.lane.b32.xlu0 %v16442_v20, %s13470_s28  ;;  %4826 = vrot.lane.b32.xlu1 %v16445_v19, %s13470_s28 }
 0x6c0   :  { %v8758_v61 = vpop.permute.xlu1 %8757  ;;  %v16673_v13 = vpop.permute.xlu0 %8763 }
 0x6c1   :  { %v8819_v37 = vsel %vm150_vm1, 0.0, %v8758_v61  ;;  %v5046_v61 = vrot.slane %v16662_v58, 2 }
 0x6c2   :  { %v16671_v44 = vsel %vm163_vm2, %v8819_v37, 0.0  ;;  %v5044_v37 = vrot.slane %v16509_v3, 2 }
 0x6c3   :  { %4828 = vrot.lane.b32.xlu0 %v16475_v31, %s13470_s28  ;;  %4830 = vrot.lane.b32.xlu1 %v16486_v21, %s13470_s28  ;;  %v22616_v35 = vrot.slane %v16671_v44, 1 }
 0x6c4   :  { %v8770_v36 = vpop.permute.xlu1 %8769  ;;  %v16693_v52 = vpop.permute.xlu0 %8775  ;;  %v16698_v32 = vsel %vm313_vm4, %v5044_v37, %v5046_v61  ;;  %v16701_v49 = vsel %vm313_vm4, %v5043_v23, %v5044_v37  ;;  %v16728_v23 = vsel %vm313_vm4, %v5048_v60, %v5049_v17  ;;  %v5054_v60 = vrot.slane %v16563_v59, 2 }
 0x6c5   :  { %v8825_v26 = vsel %vm150_vm1, 0.0, %v8770_v36  ;;  %23604 = vst [vmem:[#allocation34_spill] sm:$0xff] %v16698_v32  ;;  %23605 = vst [vmem:[#allocation35_spill] sm:$0xff] %v16701_v49 }
 0x6c6   :  { %v16708_v63 = vsel %vm163_vm2, %v8825_v26, 0.0  ;;  %23607 = vst [vmem:[#allocation42_spill] sm:$0xff] %v16728_v23  ;;  %v5059_v23 = vrot.slane %v16598_v15, 2 }
 0x6c7   :  { %4832 = vrot.lane.b32.xlu0 %v16506_v29, %s13470_s28  ;;  %4834 = vrot.lane.b32.xlu1 %v16509_v3, %s13470_s28 }
 0x6c8   :  { %v8782_v4 = vpop.permute.xlu1 %8781  ;;  %v8738_v37 = vpop.permute.xlu0 %8737  ;;  %v16777_v49 = vsel %vm313_vm4, %v5058_v24, %v5059_v23 }
 0x6c9   :  { %v8831_v36 = vsel %vm150_vm1, 0.0, %v8782_v4  ;;  %v4728_v4 = vsel %vm150_vm1, 0.0, %v16589_v30  ;;  %23614 = vst [vmem:[#allocation11_spill] sm:$0xff] %v16777_v49 }
 0x6ca   :  { %v16711_v5 = vsel %vm163_vm2, %v8831_v36, 0.0  ;;  %v16731_v36 = vsel %vm163_vm2, %v4725_v47, 0.0  ;;  %v16734_v61 = vsel %vm163_vm2, %v4728_v4, 0.0  ;;  %v5053_v47 = vrot.slane %v16560_v28, 2 }
 0x6cb   :  { %4836 = vrot.lane.b32.xlu0 %v16534_v50, %s13470_s28  ;;  %4838 = vrot.lane.b32.xlu1 %v16547_v48, %s13470_s28  ;;  %v5056_v30 = vrot.slane %v16731_v36, 2  ;;  %v5061_v4 = vrot.slane %v16734_v61, 2 }
 0x6cc   :  { %v8744_v26 = vpop.permute.xlu1 %8743 }
 0x6cd   :  { %v8812_v43 = vsel %vm150_vm1, 0.0, %v8744_v26  ;;  %v4731_v26 = vsel %vm150_vm1, 0.0, %v16637_v46  ;;  %v16774_v32 = vsel %vm313_vm4, %v5059_v23, %v5061_v4  ;;  %v5064_v4 = vrot.slane %v16618_v53, 2 }
 0x6ce   :  { %v16749_v45 = vsel %vm163_vm2, %v8812_v43, 0.0  ;;  %v16763_v43 = vsel %vm313_vm4, %v5054_v60, %v5056_v30  ;;  %v16771_v12 = vsel %vm163_vm2, %v4731_v26, 0.0  ;;  %23613 = vst [vmem:[#allocation58_spill] sm:$0xff] %v16774_v32  ;;  %v5063_v26 = vrot.slane %v16615_v10, 2 }
 0x6cf   :  { %4840 = vrot.lane.b32.xlu0 %v16560_v28, %s13470_s28  ;;  %4842 = vrot.lane.b32.xlu1 %v16563_v59, %s13470_s28  ;;  %23608 = vst [vmem:[#allocation30_spill] sm:$0xff] %v16749_v45  ;;  %23610 = vst [vmem:[#allocation12_spill] sm:$0xff] %v16763_v43  ;;  %v5066_v30 = vrot.slane %v16771_v12, 2  ;;  %v8822_v43 = vsel %vm150_vm1, 0.0, %v16673_v13  ;;  %v8982_v40 = vrot.slane %v16749_v45, 1 }
 0x6d0   :  { %v8756_v62 = vpop.permute.xlu1 %8755  ;;  %23612 = vst [vmem:[#allocation59_spill] sm:$0xff] %v16771_v12 }
 0x6d1   :  { %v8818_v17 = vsel %vm150_vm1, 0.0, %v8756_v62  ;;  %v8750_v62 = vpop.permute.xlu0 %8749 }
 0x6d2   :  { %v16752_v2 = vsel %vm163_vm2, %v8818_v17, 0.0  ;;  %v16766_v17 = vsel %vm313_vm4, %v5053_v47, %v5054_v60  ;;  %v8810_v60 = vsel %vm150_vm1, 0.0, %v16639_v34 }
 0x6d3   :  { %23609 = vst [vmem:[#allocation45_spill] sm:$0xff] %v16752_v2  ;;  %4844 = vrot.lane.b32.xlu0 %v16580_v22, %s13470_s28  ;;  %4846 = vrot.lane.b32.xlu1 %v16598_v15, %s13470_s28  ;;  %23611 = vst [vmem:[#allocation47_spill] sm:$0xff] %v16766_v17  ;;  %v16797_v49 = vsel %vm163_vm2, %v8810_v60, 0.0  ;;  %v16813_v60 = vsel %vm313_vm4, %v5063_v26, %v5064_v4  ;;  %v8992_v6 = vrot.slane %v16752_v2, 1 }
 0x6d4   :  { %v8768_v46 = vpop.permute.xlu1 %8767  ;;  %23618 = vst [vmem:[#allocation70_spill] sm:$0xff] %v16813_v60 }
 0x6d5   :  { %v8824_v39 = vsel %vm150_vm1, 0.0, %v8768_v46  ;;  %v8762_v23 = vpop.permute.xlu0 %8761 }
 0x6d6   :  { %v16791_v46 = vsel %vm163_vm2, %v8824_v39, 0.0  ;;  %v16810_v39 = vsel %vm313_vm4, %v5064_v4, %v5066_v30  ;;  %v8828_v4 = vsel %vm150_vm1, 0.0, %v16693_v52  ;;  %v8815_v52 = vsel %vm150_vm1, 0.0, %v8750_v62 }
 0x6d7   :  { %4848 = vrot.lane.b32.xlu0 %v16615_v10, %s13470_s28  ;;  %4850 = vrot.lane.b32.xlu1 %v16618_v53, %s13470_s28  ;;  %23615 = vst [vmem:[#allocation23_spill] sm:$0xff] %v16791_v46  ;;  %23617 = vst [vmem:[#allocation9_spill] sm:$0xff] %v16810_v39  ;;  %v16834_v13 = vsel %vm163_vm2, %v8828_v4, 0.0  ;;  %v8821_v4 = vsel %vm150_vm1, 0.0, %v8762_v23  ;;  %v22611_v23 = vrot.slane %v16797_v49, 1 }
 0x6d8   :  { %v8780_v47 = vpop.permute.xlu1 %8779  ;;  %v16866_v27 = vsel %vm163_vm2, %v8821_v4, 0.0 }
 0x6d9   :  { %v8830_v24 = vsel %vm150_vm1, 0.0, %v8780_v47  ;;  %v8816_v47 = vsel %vm150_vm1, 0.0, %v16645_v14  ;;  %v8774_v34 = vpop.permute.xlu0 %8773  ;;  %v16825_v14 = vsel %vm163_vm2, %v8822_v43, 0.0  ;;  %v8809_v43 = vsel %vm150_vm1, 0.0, %v8738_v37  ;;  %23620 = vst [vmem:[#allocation20_spill] sm:$0xff] %v16866_v27 }
 0x6da   :  { %v16794_v32 = vsel %vm163_vm2, %v8830_v24, 0.0  ;;  %v16816_v24 = vsel %vm163_vm2, %v8816_v47, 0.0  ;;  %v16842_v39 = vsel %vm163_vm2, %v8809_v43, 0.0  ;;  %v16853_v37 = vsel %vm163_vm2, %v8815_v52, 0.0 }
 0x6db   :  { %23616 = vst [vmem:[#allocation49_spill] sm:$0xff] %v16794_v32  ;;  %8879 = vrot.lane.b32.xlu0 %v16668_v0, %s13468_s0  ;;  %8875 = vrot.lane.b32.xlu1 %v16797_v49, %s13468_s0  ;;  %v8977_v43 = vrot.slane %v16842_v39, 1  ;;  %v22612_v52 = vrot.slane %v16668_v0, 1  ;;  %v8827_v4 = vsel %vm150_vm1, 0.0, %v8774_v34  ;;  %v16897_v34 = vsel %vm236_vm3, %v8992_v6, %v22616_v35 }
 0x6dc   :  { %v8748_v30 = vpop.permute.xlu1 %8747  ;;  %23625 = vst [vmem:[#allocation50_spill] sm:$0xff] %v16897_v34  ;;  %v23629_v6 = vrot.slane %v16708_v63, 1  ;;  %v16919_v34 = vsel %vm163_vm2, %v8827_v4, 0.0 }
 0x6dd   :  { %v8742_v26 = vpop.permute.xlu0 %8741 }
 0x6de   :  { %v8811_v62 = vsel %vm150_vm1, 0.0, %v8742_v26  ;;  %v16873_v26 = vsel %vm236_vm3, %v8977_v43, %v22611_v23 }
 0x6df   :  { %8887 = vrot.lane.b32.xlu0 %v16671_v44, %s13468_s0  ;;  %8883 = vrot.lane.b32.xlu1 %v16816_v24, %s13468_s0  ;;  %23621 = vst [vmem:[#allocation56_spill] sm:$0xff] %v16873_v26  ;;  %v16883_v7 = vsel %vm163_vm2, %v8811_v62, 0.0  ;;  %v8997_v62 = vrot.slane %v16866_v27, 1 }
 0x6e0   :  { %v8760_v47 = vpop.permute.xlu1 %8759  ;;  %23623 = vst [vmem:[#allocation16_spill] sm:$0xff] %v16883_v7 }
 0x6e1   :  { %v16847_v60 = vpop.permute.xlu0 %8753  ;;  %v8820_v41 = vsel %vm150_vm1, 0.0, %v8760_v47 }
 0x6e2   :  { %23619 = vst [vmem:[#allocation71_spill] sm:$0xff] %v16847_v60  ;;  %v8814_v60 = vsel %vm150_vm1, 0.0, %v8748_v30  ;;  %v16878_v30 = vsel %vm236_vm3, %v8982_v40, %v22612_v52  ;;  %v16902_v23 = vsel %vm163_vm2, %v8820_v41, 0.0  ;;  %v23627_v40 = vrot.slane %v16825_v14, 1 }
 0x6e3   :  { %8895 = vrot.lane.b32.xlu0 %v16708_v63, %s13468_s0  ;;  %8891 = vrot.lane.b32.xlu1 %v16825_v14, %s13468_s0  ;;  %23622 = vst [vmem:[#allocation52_spill] sm:$0xff] %v16878_v30  ;;  %v16886_v47 = vsel %vm163_vm2, %v8814_v60, 0.0  ;;  %v9002_v60 = vrot.slane %v16791_v46, 1  ;;  %23626 = vst [vmem:[#allocation67_spill] sm:$0xff] %v16902_v23  ;;  %v22620_v30 = vrot.slane %v16711_v5, 1  ;;  %v9012_v41 = vrot.slane %v16794_v32, 1 }
 0x6e4   :  { %v8772_v17 = vpop.permute.xlu1 %8771  ;;  %23624 = vst [vmem:[#allocation53_spill] sm:$0xff] %v16886_v47  ;;  %v16910_v12 = vsel %vm236_vm3, %v8997_v62, %v23627_v40 }
 0x6e5   :  { %v8766_v56 = vpop.permute.xlu0 %8765  ;;  %v8826_v43 = vsel %vm150_vm1, 0.0, %v8772_v17  ;;  %23628 = vst [vmem:[#allocation65_spill] sm:$0xff] %v16910_v12  ;;  %v16915_v35 = vsel %vm236_vm3, %v9002_v60, %v23629_v6  ;;  %v9137_v17 = vrot.slane %v16886_v47, 2  ;;  %v16934_v4 = vsel %vm236_vm3, %v9012_v41, %v22620_v30 }
 0x6e6   :  { %v8823_v52 = vsel %vm150_vm1, 0.0, %v8766_v56  ;;  %23630 = vst [vmem:[#allocation13_spill] sm:$0xff] %v16915_v35  ;;  %v9132_v56 = vrot.slane %v16883_v7, 2  ;;  %23632 = vst [vmem:[#allocation57_spill] sm:$0xff] %v16934_v4  ;;  %v9147_v60 = vrot.slane %v16902_v23, 2  ;;  %v16938_v6 = vsel %vm163_vm2, %v8826_v43, 0.0 }
 0x6e7   :  { %8903 = vrot.lane.b32.xlu0 %v16711_v5, %s13468_s0  ;;  %8899 = vrot.lane.b32.xlu1 %v16834_v13, %s13468_s0  ;;  %v16926_v40 = vsel %vm163_vm2, %v8823_v52, 0.0  ;;  %23633 = vst [vmem:[#allocation19_spill] sm:$0xff] %v16938_v6  ;;  %v9130_v7 = vrot.slane %v16797_v49, 2  ;;  %v9135_v52 = vrot.slane %v16668_v0, 2  ;;  %v9145_v30 = vrot.slane %v16671_v44, 2 }
 0x6e8   :  { %v8784_v26 = vpop.permute.xlu1 %8783  ;;  %23631 = vst [vmem:[#allocation17_spill] sm:$0xff] %v16926_v40  ;;  %v9152_v43 = vrot.slane %v16926_v40, 2  ;;  %v9157_v23 = vrot.slane %v16938_v6, 2  ;;  %v9134_v6 = vrot.slane %v16749_v45, 2  ;;  %v23664_v4 = vcombine.high %v16560_v28, %v16615_v10 }
 0x6e9   :  { %v8832_v62 = vsel %vm150_vm1, 0.0, %v8784_v26  ;;  %v16948_v26 = vsel %vm313_vm4, %v9130_v7, %v9132_v56  ;;  %v16951_v41 = vsel %vm313_vm4, %v9135_v52, %v9137_v17  ;;  %v9150_v56 = vrot.slane %v16825_v14, 2  ;;  %v16980_v40 = vpop.permute.xlu0 %8777 }
 0x6ea   :  { %v16943_v47 = vsel %vm163_vm2, %v8832_v62, 0.0  ;;  %23635 = vst [vmem:[#allocation64_spill] sm:$0xff] %v16948_v26  ;;  %23636 = vst [vmem:[#allocation63_spill] sm:$0xff] %v16951_v41  ;;  %v16959_v62 = vsel %vm313_vm4, %v9145_v30, %v9147_v60  ;;  %v9155_v26 = vrot.slane %v16708_v63, 2  ;;  %v9165_v60 = vrot.slane %v16711_v5, 2 }
 0x6eb   :  { %8877 = vrot.lane.b32.xlu0 %v16749_v45, %s13468_s0  ;;  %8873 = vrot.lane.b32.xlu1 %v16842_v39, %s13468_s0  ;;  %23634 = vst [vmem:[#allocation66_spill] sm:$0xff] %v16943_v47  ;;  %23637 = vst [vmem:[#allocation61_spill] sm:$0xff] %v16959_v62  ;;  %v9167_v12 = vrot.slane %v16943_v47, 2  ;;  %v16969_v17 = vsel %vm313_vm4, %v9150_v56, %v9152_v43  ;;  %v9129_v47 = vrot.slane %v16842_v39, 2 }
 0x6ec   :  { %23638 = vst [vmem:[#allocation46_spill] sm:$0xff] %v16969_v17  ;;  %v16972_v41 = vsel %vm313_vm4, %v9155_v26, %v9157_v23  ;;  %23641 = vst [vmem:[#allocation18_spill] sm:$0xff] %v16980_v40  ;;  %v16990_v43 = vsel %vm313_vm4, %v9134_v6, %v9135_v52  ;;  %v9149_v40 = vrot.slane %v16866_v27, 2 }
 0x6ed   :  { %23639 = vst [vmem:[#allocation51_spill] sm:$0xff] %v16972_v41  ;;  %v16976_v62 = vsel %vm313_vm4, %v9165_v60, %v9167_v12  ;;  %v16987_v23 = vsel %vm313_vm4, %v9129_v47, %v9130_v7  ;;  %23643 = vst [vmem:[#allocation60_spill] sm:$0xff] %v16990_v43  ;;  %v9144_v12 = vrot.slane %v16752_v2, 2  ;;  %v9154_v7 = vrot.slane %v16791_v46, 2 }
 0x6ee   :  { %23640 = vst [vmem:[#allocation26_spill] sm:$0xff] %v16976_v62  ;;  %23642 = vst [vmem:[#allocation62_spill] sm:$0xff] %v16987_v23  ;;  %v17007_v47 = vsel %vm313_vm4, %v9149_v40, %v9150_v56  ;;  %v23651_v40 = vcombine.low %v16442_v20, %v16506_v29  ;;  %v4884_v43 = vrot.slane %v16472_v33, 1 }
 0x6ef   :  { %8885 = vrot.lane.b32.xlu0 %v16752_v2, %s13468_s0  ;;  %8881 = vrot.lane.b32.xlu1 %v16853_v37, %s13468_s0  ;;  %v17000_v62 = vsel %vm313_vm4, %v9144_v12, %v9145_v30  ;;  %23647 = vst [vmem:[#allocation37_spill] sm:$0xff] %v17007_v47  ;;  %v17010_v6 = vsel %vm313_vm4, %v9154_v7, %v9155_v26  ;;  %v9164_v30 = vrot.slane %v16794_v32, 2 }
 0x6f0   :  { %23646 = vst [vmem:[#allocation27_spill] sm:$0xff] %v17000_v62  ;;  %23648 = vst [vmem:[#allocation54_spill] sm:$0xff] %v17010_v6  ;;  %v17025_v56 = vrot.slane %v23651_v40, %v13617_v1  ;;  %v23654_v7 = vcombine.low %v16415_v57, %v16475_v31  ;;  %v23656_v40 = vcombine.low %v16560_v28, %v16615_v10 }
 0x6f1   :  { %v16993_v17 = vpop.permute.xlu0 %4772  ;;  %v17028_v26 = vsel %vm313_vm4, %v9164_v30, %v9165_v60  ;;  %v23672_v6 = vcombine.low %v16445_v19, %v16509_v3 }
 0x6f2   :  { %23644 = vst [vmem:[#allocation21_spill] sm:$0xff] %v16993_v17  ;;  %23652 = vst [vmem:[#allocation69_spill] sm:$0xff] %v17025_v56  ;;  %v17036_v23 = vrot.slane %v23654_v7, %v13617_v1  ;;  %v17044_v47 = vrot.slane %v23656_v40, %v13617_v1  ;;  %v23660_v7 = vcombine.low %v16534_v50, %v16580_v22 }
 0x6f3   :  { %8893 = vrot.lane.b32.xlu0 %v16791_v46, %s13468_s0  ;;  %8889 = vrot.lane.b32.xlu1 %v16866_v27, %s13468_s0  ;;  %23653 = vst [vmem:[#allocation14_spill] sm:$0xff] %v17028_v26  ;;  %v4879_v26 = vrot.slane %v16425_v18, 1  ;;  %v23666_v18 = vcombine.high %v16415_v57, %v16475_v31  ;;  %v23670_v57 = vrot.slane %v16422_v16, 1 }
 0x6f4   :  { %23655 = vst [vmem:[#allocation48_spill] sm:$0xff] %v17036_v23  ;;  %23657 = vst [vmem:[#allocation43_spill] sm:$0xff] %v17044_v47  ;;  %v17056_v62 = vrot.slane %v23660_v7, %v13617_v1  ;;  %v23663_v7 = vcombine.high %v16442_v20, %v16506_v29  ;;  %v23667_v20 = vcombine.high %v16534_v50, %v16580_v22  ;;  %v23671_v50 = vrot.slane %v16445_v19, 1 }
 0x6f5   :  { %v5195_v33 = vrot.slane %v23666_v18, %v13617_v1  ;;  %v5245_v10 = vcombine.high %v17036_v23, %v17025_v56  ;;  %v17103_v31 = vsel %vm236_vm3, %v23670_v57, %v4879_v26  ;;  %v17114_v56 = vrot.slane %v23672_v6, %v13617_v1 }
 0x6f6   :  { %23661 = vst [vmem:[#allocation73_spill] sm:$0xff] %v17056_v62  ;;  %v5211_v35 = vrot.slane %v23663_v7, %v13617_v1  ;;  %v5227_v29 = vrot.slane %v23667_v20, %v13617_v1  ;;  %v5277_v28 = vcombine.high %v17056_v62, %v17044_v47  ;;  %v17108_v22 = vsel %vm236_vm3, %v23671_v50, %v4884_v43 }
 0x6f7   :  { %8901 = vrot.lane.b32.xlu0 %v16794_v32, %s13468_s0  ;;  %8897 = vrot.lane.b32.xlu1 %v16919_v34, %s13468_s0  ;;  %23673 = vst [vmem:[#allocation78_spill] sm:$0xff] %v17114_v56  ;;  %v23674_v23 = vcombine.low %v16563_v59, %v16618_v53  ;;  %v17125_v43 = vrot.slane %v5245_v10, %v14031_v8  ;;  %v4889_v50 = vrot.slane %v16503_v55, 1  ;;  %v4894_v10 = vrot.slane %v16662_v58, 1 }
 0x6f8   :  { %v5260_v18 = vcombine.low %v5195_v33, %v5211_v35  ;;  %v17128_v26 = vrot.slane %v5277_v28, %v14031_v8  ;;  %v23678_v6 = vcombine.low %v16422_v16, %v16486_v21  ;;  %v23682_v28 = vcombine.low %v16547_v48, %v16598_v15 }
 0x6f9   :  { %v17120_v47 = vrot.slane %v23674_v23, %v13617_v1  ;;  %23676 = vst [vmem:[#allocation80_spill] sm:$0xff] %v17125_v43  ;;  %v23685_v58 = vcombine.high %v16422_v16, %v16486_v21 }
 0x6fa   :  { %23677 = vst [vmem:[#allocation81_spill] sm:$0xff] %v17128_v26  ;;  %v17134_v57 = vrot.slane %v23678_v6, %v13617_v1  ;;  %v17138_v23 = vrot.slane %v5260_v18, %v14031_v8 }
 0x6fb   :  { %8927 = vrot.lane.b32.xlu0 %v16668_v0, %s13470_s28  ;;  %8923 = vrot.lane.b32.xlu1 %v16797_v49, %s13470_s28  ;;  %23675 = vst [vmem:[#allocation79_spill] sm:$0xff] %v17120_v47  ;;  %v17173_v26 = vrot.slane %v23685_v58, %v13617_v1  ;;  %v23690_v58 = vrot.slane %v16486_v21, 1 }
 0x6fc   :  { %23679 = vst [vmem:[#allocation82_spill] sm:$0xff] %v17134_v57  ;;  %23680 = vst [vmem:[#allocation83_spill] sm:$0xff] %v17138_v23 }
 0x6ff   :  { %8935 = vrot.lane.b32.xlu0 %v16671_v44, %s13470_s28  ;;  %8931 = vrot.lane.b32.xlu1 %v16816_v24, %s13470_s28 }
 0x701   :  { %v16995_v41 = vpop.permute.xlu1 %4774 }
 0x702   :  { %23645 = vst [vmem:[#allocation24_spill] sm:$0xff] %v16995_v41 }
 0x703   :  { %8943 = vrot.lane.b32.xlu0 %v16708_v63, %s13470_s28  ;;  %8939 = vrot.lane.b32.xlu1 %v16825_v14, %s13470_s28 }
 0x705   :  { %v17012_v52 = vpop.permute.xlu0 %4776  ;;  %v17019_v12 = vpop.permute.xlu1 %4778 }
 0x706   :  { %23649 = vst [vmem:[#allocation55_spill] sm:$0xff] %v17012_v52  ;;  %23650 = vst [vmem:[#allocation68_spill] sm:$0xff] %v17019_v12 }
 0x707   :  { %8951 = vrot.lane.b32.xlu0 %v16711_v5, %s13470_s28  ;;  %8947 = vrot.lane.b32.xlu1 %v16834_v13, %s13470_s28 }
 0x709   :  { %v17046_v60 = vpop.permute.xlu0 %4780 }
 0x70a   :  { %23658 = vst [vmem:[#allocation44_spill] sm:$0xff] %v17046_v60 }
 0x70b   :  { %8925 = vrot.lane.b32.xlu0 %v16749_v45, %s13470_s28  ;;  %8921 = vrot.lane.b32.xlu1 %v16842_v39, %s13470_s28 }
 0x70d   :  { %v17048_v30 = vpop.permute.xlu1 %4782 }
 0x70e   :  { %23659 = vst [vmem:[#allocation72_spill] sm:$0xff] %v17048_v30 }
 0x70f   :  { %8933 = vrot.lane.b32.xlu0 %v16752_v2, %s13470_s28  ;;  %8929 = vrot.lane.b32.xlu1 %v16853_v37, %s13470_s28 }
 0x711   :  { %v17062_v40 = vpop.permute.xlu0 %4784  ;;  %v17076_v2 = vpop.permute.xlu1 %4786 }
 0x712   :  { %23662 = vst [vmem:[#allocation74_spill] sm:$0xff] %v17062_v40  ;;  %23665 = vst [vmem:[#allocation75_spill] sm:$0xff] %v17076_v2  ;;  %v5332_v16 = vcombine.low %v17012_v52, %v17062_v40  ;;  %v6556_v6 = vcombine.low %v17019_v12, %v17076_v2  ;;  %v23743_v12 = vld [vmem:[#allocation23_spill] sm:$0xff] }
 0x713   :  { %8941 = vrot.lane.b32.xlu0 %v16791_v46, %s13470_s28  ;;  %8937 = vrot.lane.b32.xlu1 %v16866_v27, %s13470_s28  ;;  %v5243_v46 = vrot.slane %v23664_v4, %v13617_v1  ;;  %v4899_v27 = vrot.slane %v16687_v42, 1 }
 0x714   :  { %v17255_v23 = vrot.slane %v5332_v16, %v13617_v1 }
 0x715   :  { %v17094_v4 = vpop.permute.xlu0 %4788  ;;  %v5292_v20 = vcombine.low %v5227_v29, %v5243_v46 }
 0x716   :  { %23668 = vst [vmem:[#allocation76_spill] sm:$0xff] %v17094_v4  ;;  %23700 = vst [vmem:[#allocation94_spill] sm:$0xff] %v17255_v23 }
 0x717   :  { %8949 = vrot.lane.b32.xlu0 %v16794_v32, %s13470_s28  ;;  %8945 = vrot.lane.b32.xlu1 %v16919_v34, %s13470_s28  ;;  %v17141_v62 = vrot.slane %v5292_v20, %v14031_v8  ;;  %v17148_v32 = vrot.slane %v23682_v28, %v13617_v1  ;;  %v5261_v20 = vcombine.high %v5195_v33, %v5211_v35 }
 0x718   :  { %v5293_v28 = vcombine.high %v5227_v29, %v5243_v46  ;;  %v23689_v46 = vcombine.high %v16445_v19, %v16509_v3  ;;  %v10505_v29 = vcombine.low %v16797_v49, %v16816_v24  ;;  %v23691_v19 = vrot.slane %v16509_v3, 1 }
 0x719   :  { %v17096_v7 = vpop.permute.xlu1 %4790  ;;  %23681 = vst [vmem:[#allocation84_spill] sm:$0xff] %v17141_v62  ;;  %23683 = vst [vmem:[#allocation85_spill] sm:$0xff] %v17148_v32  ;;  %v17178_v35 = vrot.slane %v5261_v20, %v14031_v8  ;;  %v17196_v20 = vsel %vm236_vm3, %v23690_v58, %v4889_v50  ;;  %v4904_v50 = vrot.slane %v16731_v36, 1  ;;  %v5316_v58 = vcombine.low %v16993_v17, %v17046_v60 }
 0x71a   :  { %23669 = vst [vmem:[#allocation77_spill] sm:$0xff] %v17096_v7  ;;  %v17181_v42 = vrot.slane %v5293_v28, %v14031_v8  ;;  %v17187_v33 = vrot.slane %v23689_v46, %v13617_v1  ;;  %v10537_v28 = vcombine.low %v16825_v14, %v16834_v13  ;;  %v17205_v46 = vsel %vm236_vm3, %v23691_v19, %v4894_v10 }
 0x71b   :  { %4932 = vrot.lane.b32.xlu0 %v16439_v9, %s13468_s0  ;;  %4934 = vrot.lane.b32.xlu1 %v17103_v31, %s13468_s0  ;;  %23687 = vst [vmem:[#allocation88_spill] sm:$0xff] %v17178_v35  ;;  %v23692_v3 = vrot.slane %v16547_v48, 1  ;;  %v23693_v19 = vcombine.high %v16547_v48, %v16598_v15  ;;  %v23694_v36 = vcombine.high %v16563_v59, %v16618_v53 }
 0x71c   :  { %23688 = vst [vmem:[#allocation89_spill] sm:$0xff] %v17181_v42  ;;  %v17244_v48 = vrot.slane %v10505_v29, %v13617_v1  ;;  %v17258_v43 = vrot.slane %v10537_v28, %v13617_v1  ;;  %v23702_v29 = vcombine.low %v16708_v63, %v16711_v5  ;;  %v17275_v16 = vrot.slane %v5316_v58, %v13617_v1 }
 0x71d   :  { %v17154_v45 = vpop.permute.xlu0 %4792  ;;  %v17175_v18 = vpop.permute.xlu1 %4794  ;;  %v17221_v10 = vsel %vm236_vm3, %v23692_v3, %v4899_v27  ;;  %v17227_v21 = vrot.slane %v23693_v19, %v13617_v1  ;;  %v17233_v55 = vrot.slane %v23694_v36, %v13617_v1  ;;  %v6469_v27 = vcombine.high %v17134_v57, %v17114_v56 }
 0x71e   :  { %23684 = vst [vmem:[#allocation86_spill] sm:$0xff] %v17154_v45  ;;  %23686 = vst [vmem:[#allocation87_spill] sm:$0xff] %v17175_v18  ;;  %v6501_v3 = vcombine.high %v17148_v32, %v17120_v47  ;;  %v23698_v19 = vcombine.low %v16668_v0, %v16671_v44  ;;  %v6540_v36 = vcombine.low %v16995_v41, %v17048_v30 }
 0x71f   :  { %4936 = vrot.lane.b32.xlu0 %v16466_v38, %s13468_s0  ;;  %4938 = vrot.lane.b32.xlu1 %v17108_v22, %s13468_s0  ;;  %23697 = vst [vmem:[#allocation92_spill] sm:$0xff] %v17244_v48  ;;  %23701 = vst [vmem:[#allocation95_spill] sm:$0xff] %v17258_v43  ;;  %v17264_v56 = vrot.slane %v23702_v29, %v13617_v1  ;;  %v17278_v28 = vrot.slane %v6556_v6, %v13617_v1 }
 0x720   :  { %v17250_v62 = vrot.slane %v23698_v19, %v13617_v1  ;;  %v17269_v19 = vrot.slane %v6469_v27, %v14031_v8  ;;  %v17272_v57 = vrot.slane %v6501_v3, %v14031_v8  ;;  %23706 = vst [vmem:[#allocation99_spill] sm:$0xff] %v17275_v16  ;;  %v6484_v29 = vcombine.low %v17173_v26, %v17187_v33 }
 0x721   :  { %v17235_v42 = vpop.permute.xlu0 %4796  ;;  %23703 = vst [vmem:[#allocation96_spill] sm:$0xff] %v17264_v56  ;;  %23707 = vst [vmem:[#allocation100_spill] sm:$0xff] %v17278_v28  ;;  %v6516_v32 = vcombine.low %v17227_v21, %v17233_v55 }
 0x722   :  { %23695 = vst [vmem:[#allocation90_spill] sm:$0xff] %v17235_v42  ;;  %23699 = vst [vmem:[#allocation93_spill] sm:$0xff] %v17250_v62  ;;  %v5348_v47 = vcombine.low %v17094_v4, %v17235_v42  ;;  %v17297_v4 = vrot.slane %v6540_v36, %v13617_v1  ;;  %v5380_v42 = vcombine.low %v17275_v16, %v17255_v23 }
 0x723   :  { %4940 = vrot.lane.b32.xlu0 %v16514_v11, %s13468_s0  ;;  %4942 = vrot.lane.b32.xlu1 %v17196_v20, %s13468_s0  ;;  %23704 = vst [vmem:[#allocation97_spill] sm:$0xff] %v17269_v19  ;;  %23705 = vst [vmem:[#allocation98_spill] sm:$0xff] %v17272_v57  ;;  %v17312_v36 = vrot.slane %v6484_v29, %v14031_v8  ;;  %v17315_v57 = vrot.slane %v6516_v32, %v14031_v8 }
 0x724   :  { %23709 = vst [vmem:[#allocation102_spill] sm:$0xff] %v17297_v4  ;;  %v17322_v58 = vrot.slane %v5348_v47, %v13617_v1  ;;  %v6485_v29 = vcombine.high %v17173_v26, %v17187_v33  ;;  %v4909_v26 = vrot.slane %v16734_v61, 1 }
 0x725   :  { %v17237_v35 = vpop.permute.xlu1 %4798  ;;  %23711 = vst [vmem:[#allocation104_spill] sm:$0xff] %v17312_v36  ;;  %23712 = vst [vmem:[#allocation105_spill] sm:$0xff] %v17315_v57 }
 0x726   :  { %23696 = vst [vmem:[#allocation91_spill] sm:$0xff] %v17237_v35  ;;  %v6572_v27 = vcombine.low %v17096_v7, %v17237_v35  ;;  %v6604_v35 = vcombine.low %v17297_v4, %v17278_v28  ;;  %23713 = vst [vmem:[#allocation106_spill] sm:$0xff] %v17322_v58  ;;  %v23737_v4 = vld [vmem:[#allocation30_spill] sm:$0xff]  ;;  %v23738_v28 = vld [vmem:[#allocation45_spill] sm:$0xff] }
 0x727   :  { %4944 = vrot.lane.b32.xlu0 %v16552_v51, %s13468_s0  ;;  %4946 = vrot.lane.b32.xlu1 %v17205_v46, %s13468_s0  ;;  %v23739_v16 = vcombine.low %v23737_v4, %v23738_v28 }
 0x728   :  { %v17332_v32 = vrot.slane %v6572_v27, %v13617_v1  ;;  %v23719_v27 = vrot.slane %v16563_v59, 1  ;;  %v17366_v61 = vrot.slane %v6604_v35, %v14031_v8  ;;  %v23728_v35 = vrot.slane %v16598_v15, 1 }
 0x729   :  { %v17288_v3 = vpop.permute.xlu0 %4800  ;;  %v17301_v41 = vpop.permute.xlu1 %4802  ;;  %v17430_v23 = vrot.slane %v23739_v16, %v13617_v1 }
 0x72a   :  { %23708 = vst [vmem:[#allocation101_spill] sm:$0xff] %v17288_v3  ;;  %23710 = vst [vmem:[#allocation103_spill] sm:$0xff] %v17301_v41  ;;  %v5364_v7 = vcombine.low %v17154_v45, %v17288_v3  ;;  %v6588_v6 = vcombine.low %v17175_v18, %v17301_v41 }
 0x72b   :  { %4948 = vrot.lane.b32.xlu0 %v16577_v54, %s13468_s0  ;;  %4950 = vrot.lane.b32.xlu1 %v17221_v10, %s13468_s0  ;;  %23715 = vst [vmem:[#allocation108_spill] sm:$0xff] %v17332_v32  ;;  %23722 = vst [vmem:[#allocation114_spill] sm:$0xff] %v17366_v61 }
 0x72c   :  { %v17325_v18 = vrot.slane %v5364_v7, %v13617_v1  ;;  %v17335_v19 = vrot.slane %v6588_v6, %v13617_v1  ;;  %v17355_v6 = vsel %vm236_vm3, %v23719_v27, %v4904_v50  ;;  %v17358_v7 = vrot.slane %v5380_v42, %v14031_v8  ;;  %v23726_v42 = vld [vmem:[#allocation59_spill] sm:$0xff]  ;;  %23740 = vst [vmem:[#allocation30_spill] sm:$0xff] %v17430_v23 }
 0x72d   :  { %v17337_v41 = vpop.permute.xlu0 %4820  ;;  %v17345_v3 = vpop.permute.xlu1 %4822  ;;  %v4914_v27 = vrot.slane %v23726_v42, 1  ;;  %v23731_v42 = vld [vmem:[#allocation32_spill] sm:$0xff] }
 0x72e   :  { %23714 = vst [vmem:[#allocation107_spill] sm:$0xff] %v17325_v18  ;;  %23716 = vst [vmem:[#allocation109_spill] sm:$0xff] %v17335_v19  ;;  %v5412_v45 = vcombine.low %v17322_v58, %v17325_v18  ;;  %v6636_v33 = vcombine.low %v17332_v32, %v17335_v19  ;;  %v23727_v32 = vld [vmem:[#allocation25_spill] sm:$0xff]  ;;  %v10570_v58 = vcombine.high %v17244_v48, %v17250_v62 }
 0x72f   :  { %23717 = vst [vmem:[#allocation110_spill] sm:$0xff] %v17337_v41  ;;  %23718 = vst [vmem:[#allocation111_spill] sm:$0xff] %v17345_v3  ;;  %4952 = vrot.lane.b32.xlu0 %v16594_v25, %s13468_s0  ;;  %4954 = vrot.lane.b32.xlu1 %v17355_v6, %s13468_s0  ;;  %v10602_v18 = vcombine.high %v17258_v43, %v17264_v56  ;;  %v23744_v62 = vld [vmem:[#allocation49_spill] sm:$0xff] }
 0x730   :  { %23720 = vst [vmem:[#allocation112_spill] sm:$0xff] %v17358_v7  ;;  %v17361_v47 = vrot.slane %v5412_v45, %v14031_v8  ;;  %v17369_v57 = vrot.slane %v6636_v33, %v14031_v8  ;;  %v17385_v33 = vsel %vm236_vm3, %v23728_v35, %v4909_v26  ;;  %v23732_v45 = vrot.slane %v16618_v53, 1 }
 0x731   :  { %v17371_v36 = vpop.permute.xlu0 %4824  ;;  %v17375_v50 = vpop.permute.xlu1 %4826  ;;  %v10506_v35 = vcombine.high %v16797_v49, %v16816_v24  ;;  %v6517_v53 = vcombine.high %v17227_v21, %v17233_v55  ;;  %v23742_v21 = vcombine.high %v16668_v0, %v16671_v44  ;;  %v23745_v48 = vcombine.low %v23743_v12, %v23744_v62 }
 0x732   :  { %23721 = vst [vmem:[#allocation113_spill] sm:$0xff] %v17361_v47  ;;  %23723 = vst [vmem:[#allocation115_spill] sm:$0xff] %v17369_v57  ;;  %v17398_v61 = vsel %vm236_vm3, %v23732_v45, %v4914_v27  ;;  %v9281_v57 = vcombine.low %v16842_v39, %v16853_v37  ;;  %v10538_v27 = vcombine.high %v16825_v14, %v16834_v13  ;;  %v23735_v45 = vld [vmem:[#allocation20_spill] sm:$0xff] }
 0x733   :  { %23724 = vst [vmem:[#allocation116_spill] sm:$0xff] %v17371_v36  ;;  %23725 = vst [vmem:[#allocation117_spill] sm:$0xff] %v17375_v50  ;;  %4956 = vrot.lane.b32.xlu0 %v23727_v32, %s13468_s0  ;;  %4958 = vrot.lane.b32.xlu1 %v17385_v33, %s13468_s0  ;;  %v9313_v7 = vcombine.low %v23735_v45, %v16919_v34  ;;  %v17438_v30 = vrot.slane %v23742_v21, %v13617_v1 }
 0x734   :  { %v17444_v2 = vrot.slane %v23745_v48, %v13617_v1  ;;  %v17449_v16 = vrot.slane %v10506_v35, %v13617_v1  ;;  %v17452_v56 = vrot.slane %v9281_v57, %v13617_v1  ;;  %v17457_v21 = vrot.slane %v10538_v27, %v13617_v1 }
 0x735   :  { %v17389_v19 = vpop.permute.xlu0 %4828  ;;  %v17391_v59 = vpop.permute.xlu1 %4830  ;;  %v23748_v48 = vcombine.high %v16708_v63, %v16711_v5  ;;  %v17466_v17 = vrot.slane %v9313_v7, %v13617_v1  ;;  %v17471_v57 = vrot.slane %v6485_v29, %v14031_v8  ;;  %v17476_v52 = vrot.slane %v6517_v53, %v14031_v8 }
 0x736   :  { %23729 = vst [vmem:[#allocation59_spill] sm:$0xff] %v17389_v19  ;;  %23730 = vst [vmem:[#allocation25_spill] sm:$0xff] %v17391_v59  ;;  %v17479_v27 = vrot.slane %v10570_v58, %v14031_v8  ;;  %v17482_v40 = vrot.slane %v10602_v18, %v14031_v8  ;;  %v10585_v58 = vcombine.low %v17449_v16, %v17438_v30 }
 0x737   :  { %4960 = vrot.lane.b32.xlu0 %v23731_v42, %s13468_s0  ;;  %4962 = vrot.lane.b32.xlu1 %v17398_v61, %s13468_s0  ;;  %23746 = vst [vmem:[#allocation23_spill] sm:$0xff] %v17444_v2  ;;  %23747 = vst [vmem:[#allocation49_spill] sm:$0xff] %v17452_v56  ;;  %v17463_v43 = vrot.slane %v23748_v48, %v13617_v1  ;;  %v9346_v48 = vcombine.high %v17452_v56, %v17430_v23 }
 0x738   :  { %23749 = vst [vmem:[#allocation119_spill] sm:$0xff] %v17466_v17  ;;  %23751 = vst [vmem:[#allocation121_spill] sm:$0xff] %v17471_v57  ;;  %v9378_v53 = vcombine.high %v17466_v17, %v17444_v2  ;;  %v9282_v56 = vcombine.high %v16842_v39, %v16853_v37  ;;  %v9314_v29 = vcombine.high %v23735_v45, %v16919_v34 }
 0x739   :  { %v17402_v15 = vpop.permute.xlu0 %4832  ;;  %v17404_v26 = vpop.permute.xlu1 %4834  ;;  %23753 = vst [vmem:[#allocation123_spill] sm:$0xff] %v17476_v52  ;;  %23754 = vst [vmem:[#allocation124_spill] sm:$0xff] %v17479_v27  ;;  %v5452_v23 = vcombine.low %v17337_v41, %v17389_v19  ;;  %v10617_v39 = vcombine.low %v17457_v21, %v17463_v43  ;;  %v6676_v45 = vcombine.low %v17345_v3, %v17391_v59 }
 0x73a   :  { %23733 = vst [vmem:[#allocation32_spill] sm:$0xff] %v17402_v15  ;;  %23734 = vst [vmem:[#allocation118_spill] sm:$0xff] %v17404_v26  ;;  %v5468_v18 = vcombine.low %v17371_v36, %v17402_v15  ;;  %v6692_v2 = vcombine.low %v17375_v50, %v17404_v26  ;;  %v17513_v36 = vrot.slane %v9346_v48, %v14031_v8 }
 0x73b   :  { %4980 = vrot.lane.b32.xlu0 %v16439_v9, %s13470_s28  ;;  %4982 = vrot.lane.b32.xlu1 %v17103_v31, %s13470_s28  ;;  %23755 = vst [vmem:[#allocation125_spill] sm:$0xff] %v17482_v40  ;;  %v17516_v15 = vrot.slane %v9378_v53, %v14031_v8  ;;  %v23760_v40 = vcombine.high %v23737_v4, %v23738_v28 }
 0x73c   :  { %23757 = vst [vmem:[#allocation127_spill] sm:$0xff] %v17513_v36  ;;  %v23761_v53 = vcombine.high %v23743_v12, %v23744_v62  ;;  %v17545_v26 = vrot.slane %v5468_v18, %v13617_v1  ;;  %v17552_v62 = vrot.slane %v10585_v58, %v14031_v8  ;;  %v17555_v12 = vrot.slane %v10617_v39, %v14031_v8 }
 0x73d   :  { %v17420_v47 = vpop.permute.xlu0 %4836  ;;  %v17432_v55 = vpop.permute.xlu1 %4838  ;;  %23758 = vst [vmem:[#allocation128_spill] sm:$0xff] %v17516_v15  ;;  %v17530_v48 = vrot.slane %v23760_v40, %v13617_v1  ;;  %v17558_v4 = vrot.slane %v9282_v56, %v13617_v1  ;;  %v17561_v28 = vrot.slane %v6692_v2, %v13617_v1  ;;  %v17570_v58 = vrot.slane %v9314_v29, %v13617_v1 }
 0x73e   :  { %23736 = vst [vmem:[#allocation20_spill] sm:$0xff] %v17420_v47  ;;  %23741 = vst [vmem:[#allocation45_spill] sm:$0xff] %v17432_v55  ;;  %v17536_v27 = vrot.slane %v23761_v53, %v13617_v1  ;;  %v17573_v39 = vrot.slane %v5452_v23, %v13617_v1 }
 0x73f   :  { %4984 = vrot.lane.b32.xlu0 %v16466_v38, %s13470_s28  ;;  %4986 = vrot.lane.b32.xlu1 %v17108_v22, %s13470_s28  ;;  %23762 = vst [vmem:[#allocation130_spill] sm:$0xff] %v17545_v26  ;;  %23763 = vst [vmem:[#allocation131_spill] sm:$0xff] %v17552_v62  ;;  %v9361_v23 = vcombine.low %v17558_v4, %v17530_v48  ;;  %v10618_v62 = vcombine.high %v17457_v21, %v17463_v43 }
 0x740   :  { %23764 = vst [vmem:[#allocation132_spill] sm:$0xff] %v17555_v12  ;;  %23765 = vst [vmem:[#allocation133_spill] sm:$0xff] %v17561_v28  ;;  %v5516_v29 = vcombine.low %v17573_v39, %v17545_v26 }
 0x741   :  { %v17468_v35 = vpop.permute.xlu0 %4840  ;;  %v17473_v60 = vpop.permute.xlu1 %4842  ;;  %23767 = vst [vmem:[#allocation135_spill] sm:$0xff] %v17573_v39 }
 0x742   :  { %23750 = vst [vmem:[#allocation120_spill] sm:$0xff] %v17468_v35  ;;  %23752 = vst [vmem:[#allocation122_spill] sm:$0xff] %v17473_v60 }
 0x743   :  { %4988 = vrot.lane.b32.xlu0 %v16514_v11, %s13470_s28  ;;  %4990 = vrot.lane.b32.xlu1 %v17196_v20, %s13470_s28 }
 0x745   :  { %v17510_v17 = vpop.permute.xlu0 %4844  ;;  %v17522_v7 = vpop.permute.xlu1 %4846 }
 0x746   :  { %23756 = vst [vmem:[#allocation126_spill] sm:$0xff] %v17510_v17  ;;  %23759 = vst [vmem:[#allocation129_spill] sm:$0xff] %v17522_v7  ;;  %v5484_v40 = vcombine.low %v17420_v47, %v17510_v17  ;;  %v6708_v18 = vcombine.low %v17432_v55, %v17522_v7  ;;  %v17582_v55 = vrot.slane %v6676_v45, %v13617_v1 }
 0x747   :  { %4992 = vrot.lane.b32.xlu0 %v16552_v51, %s13470_s28  ;;  %4994 = vrot.lane.b32.xlu1 %v17205_v46, %s13470_s28  ;;  %v9393_v45 = vcombine.low %v17570_v58, %v17536_v27 }
 0x748   :  { %23769 = vst [vmem:[#allocation137_spill] sm:$0xff] %v17582_v55  ;;  %v17593_v15 = vrot.slane %v5484_v40, %v13617_v1  ;;  %v6740_v36 = vcombine.low %v17582_v55, %v17561_v28  ;;  %v17605_v7 = vrot.slane %v6708_v18, %v13617_v1  ;;  %v17621_v55 = vrot.slane %v5516_v29, %v14031_v8 }
 0x749   :  { %v17565_v53 = vpop.permute.xlu0 %4848  ;;  %v17575_v47 = vpop.permute.xlu1 %4850 }
 0x74a   :  { %23766 = vst [vmem:[#allocation134_spill] sm:$0xff] %v17565_v53  ;;  %23768 = vst [vmem:[#allocation136_spill] sm:$0xff] %v17575_v47  ;;  %v5500_v2 = vcombine.low %v17468_v35, %v17565_v53  ;;  %v6724_v50 = vcombine.low %v17473_v60, %v17575_v47  ;;  %v23853_v53 = vld [vmem:[#allocation65_spill] sm:$0xff] }
 0x74b   :  { %4996 = vrot.lane.b32.xlu0 %v16577_v54, %s13470_s28  ;;  %23770 = vst [vmem:[#allocation138_spill] sm:$0xff] %v17593_v15  ;;  %4998 = vrot.lane.b32.xlu1 %v17221_v10, %s13470_s28  ;;  %23772 = vst [vmem:[#allocation140_spill] sm:$0xff] %v17605_v7 }
 0x74c   :  { %v17596_v56 = vrot.slane %v5500_v2, %v13617_v1  ;;  %v17608_v60 = vrot.slane %v6724_v50, %v13617_v1  ;;  %23776 = vst [vmem:[#allocation144_spill] sm:$0xff] %v17621_v55  ;;  %v17629_v50 = vrot.slane %v6740_v36, %v14031_v8 }
 0x74d   :  { %v17610_v40 = vpop.permute.xlu0 %8879  ;;  %v17614_v47 = vpop.permute.xlu1 %8875 }
 0x74e   :  { %23771 = vst [vmem:[#allocation139_spill] sm:$0xff] %v17596_v56  ;;  %23773 = vst [vmem:[#allocation141_spill] sm:$0xff] %v17608_v60  ;;  %v5548_v2 = vcombine.low %v17593_v15, %v17596_v56  ;;  %v6772_v39 = vcombine.low %v17605_v7, %v17608_v60 }
 0x74f   :  { %23774 = vst [vmem:[#allocation142_spill] sm:$0xff] %v17610_v40  ;;  %23775 = vst [vmem:[#allocation143_spill] sm:$0xff] %v17614_v47  ;;  %5000 = vrot.lane.b32.xlu0 %v16594_v25, %s13470_s28  ;;  %5002 = vrot.lane.b32.xlu1 %v17355_v6, %s13470_s28 }
 0x750   :  { %v17624_v18 = vrot.slane %v5548_v2, %v14031_v8  ;;  %23778 = vst [vmem:[#allocation146_spill] sm:$0xff] %v17629_v50  ;;  %v17632_v15 = vrot.slane %v6772_v39, %v14031_v8 }
 0x751   :  { %v17634_v56 = vpop.permute.xlu0 %8887  ;;  %v17638_v60 = vpop.permute.xlu1 %8883 }
 0x752   :  { %23777 = vst [vmem:[#allocation145_spill] sm:$0xff] %v17624_v18  ;;  %23779 = vst [vmem:[#allocation147_spill] sm:$0xff] %v17632_v15  ;;  %v10641_v36 = vcombine.low %v17614_v47, %v17638_v60  ;;  %v10657_v39 = vcombine.low %v17610_v40, %v17634_v56 }
 0x753   :  { %23780 = vst [vmem:[#allocation148_spill] sm:$0xff] %v17634_v56  ;;  %23781 = vst [vmem:[#allocation149_spill] sm:$0xff] %v17638_v60  ;;  %5004 = vrot.lane.b32.xlu0 %v23727_v32, %s13470_s28  ;;  %5006 = vrot.lane.b32.xlu1 %v17385_v33, %s13470_s28  ;;  %v23788_v56 = vld [vmem:[#allocation29_spill] sm:$0xff] }
 0x754   :  { %v17659_v29 = vrot.slane %v10641_v36, %v13617_v1  ;;  %v17662_v50 = vrot.slane %v10657_v39, %v13617_v1  ;;  %v23790_v36 = vld [vmem:[#allocation28_spill] sm:$0xff] }
 0x755   :  { %v17650_v2 = vpop.permute.xlu0 %8895  ;;  %v17652_v7 = vpop.permute.xlu1 %8891 }
 0x756   :  { %23782 = vst [vmem:[#allocation150_spill] sm:$0xff] %v17650_v2  ;;  %23783 = vst [vmem:[#allocation151_spill] sm:$0xff] %v17652_v7  ;;  %v10705_v39 = vcombine.low %v17659_v29, %v17662_v50 }
 0x757   :  { %5008 = vrot.lane.b32.xlu0 %v23731_v42, %s13470_s28  ;;  %5010 = vrot.lane.b32.xlu1 %v17398_v61, %s13470_s28  ;;  %23784 = vst [vmem:[#allocation152_spill] sm:$0xff] %v17659_v29  ;;  %23785 = vst [vmem:[#allocation153_spill] sm:$0xff] %v17662_v50  ;;  %v23796_v29 = vld [vmem:[#allocation33_spill] sm:$0xff]  ;;  %v23803_v50 = vld [vmem:[#allocation31_spill] sm:$0xff] }
 0x759   :  { %v17664_v15 = vpop.permute.xlu0 %8903  ;;  %v17666_v55 = vpop.permute.xlu1 %8899 }
 0x75a   :  { %23786 = vst [vmem:[#allocation154_spill] sm:$0xff] %v17664_v15  ;;  %23787 = vst [vmem:[#allocation155_spill] sm:$0xff] %v17666_v55  ;;  %v10689_v18 = vcombine.low %v17650_v2, %v17664_v15  ;;  %v10673_v40 = vcombine.low %v17652_v7, %v17666_v55  ;;  %v17689_v15 = vrot.slane %v9361_v23, %v14031_v8 }
 0x75b   :  { %5084 = vrot.lane.b32.xlu0 %v23788_v56, %s13468_s0  ;;  %5086 = vrot.lane.b32.xlu1 %v23790_v36, %s13468_s0  ;;  %v17692_v7 = vrot.slane %v9393_v45, %v14031_v8  ;;  %v17705_v23 = vrot.slane %v10705_v39, %v14031_v8  ;;  %v9362_v39 = vcombine.high %v17558_v4, %v17530_v48 }
 0x75c   :  { %v17675_v47 = vrot.slane %v10689_v18, %v13617_v1  ;;  %v17682_v60 = vrot.slane %v10673_v40, %v13617_v1  ;;  %23794 = vst [vmem:[#allocation158_spill] sm:$0xff] %v17689_v15  ;;  %v23797_v40 = vld [vmem:[#allocation38_spill] sm:$0xff] }
 0x75d   :  { %v17684_v28 = vpop.permute.xlu0 %8877  ;;  %v17686_v2 = vpop.permute.xlu1 %8873  ;;  %23795 = vst [vmem:[#allocation159_spill] sm:$0xff] %v17692_v7  ;;  %23798 = vst [vmem:[#allocation33_spill] sm:$0xff] %v17705_v23  ;;  %v9394_v23 = vcombine.high %v17570_v58, %v17536_v27  ;;  %v17762_v4 = vrot.slane %v9362_v39, %v14031_v8 }
 0x75e   :  { %23789 = vst [vmem:[#allocation29_spill] sm:$0xff] %v17675_v47  ;;  %23791 = vst [vmem:[#allocation28_spill] sm:$0xff] %v17682_v60  ;;  %v10737_v55 = vcombine.low %v17682_v60, %v17675_v47  ;;  %v23802_v60 = vld [vmem:[#allocation41_spill] sm:$0xff] }
 0x75f   :  { %23792 = vst [vmem:[#allocation156_spill] sm:$0xff] %v17684_v28  ;;  %23793 = vst [vmem:[#allocation157_spill] sm:$0xff] %v17686_v2  ;;  %5088 = vrot.lane.b32.xlu0 %v23796_v29, %s13468_s0  ;;  %5090 = vrot.lane.b32.xlu1 %v23797_v40, %s13468_s0  ;;  %v17751_v43 = vrot.slane %v9394_v23, %v14031_v8 }
 0x760   :  { %v17708_v45 = vrot.slane %v10737_v55, %v14031_v8  ;;  %v10586_v55 = vcombine.high %v17449_v16, %v17438_v30  ;;  %v23806_v30 = vld [vmem:[#allocation35_spill] sm:$0xff]  ;;  %v23807_v16 = vld [vmem:[#allocation34_spill] sm:$0xff]  ;;  %23814 = vst [vmem:[#allocation166_spill] sm:$0xff] %v17762_v4 }
 0x761   :  { %v17710_v26 = vpop.permute.xlu0 %8885  ;;  %v17712_v18 = vpop.permute.xlu1 %8881  ;;  %23810 = vst [vmem:[#allocation162_spill] sm:$0xff] %v17751_v43  ;;  %v23828_v4 = vld [vmem:[#allocation11_spill] sm:$0xff]  ;;  %v23833_v43 = vld [vmem:[#allocation9_spill] sm:$0xff] }
 0x762   :  { %23799 = vst [vmem:[#allocation38_spill] sm:$0xff] %v17708_v45  ;;  %23800 = vst [vmem:[#allocation160_spill] sm:$0xff] %v17710_v26  ;;  %v9417_v47 = vcombine.low %v17686_v2, %v17712_v18  ;;  %v9433_v12 = vcombine.low %v17684_v28, %v17710_v26  ;;  %v17745_v45 = vrot.slane %v10586_v55, %v14031_v8  ;;  %v23816_v55 = vld [vmem:[#allocation42_spill] sm:$0xff]  ;;  %v23818_v26 = vld [vmem:[#allocation36_spill] sm:$0xff] }
 0x763   :  { %23801 = vst [vmem:[#allocation161_spill] sm:$0xff] %v17712_v18  ;;  %5092 = vrot.lane.b32.xlu0 %v23802_v60, %s13468_s0  ;;  %5094 = vrot.lane.b32.xlu1 %v23803_v50, %s13468_s0  ;;  %v17748_v28 = vrot.slane %v10618_v62, %v14031_v8  ;;  %v23822_v2 = vld [vmem:[#allocation47_spill] sm:$0xff] }
 0x764   :  { %23808 = vst [vmem:[#allocation35_spill] sm:$0xff] %v17745_v45  ;;  %v17754_v21 = vrot.slane %v9417_v47, %v13617_v1  ;;  %v17757_v27 = vrot.slane %v9433_v12, %v13617_v1 }
 0x765   :  { %v17730_v7 = vpop.permute.xlu0 %8893  ;;  %v17736_v15 = vpop.permute.xlu1 %8889  ;;  %23809 = vst [vmem:[#allocation34_spill] sm:$0xff] %v17748_v28 }
 0x766   :  { %23804 = vst [vmem:[#allocation41_spill] sm:$0xff] %v17730_v7  ;;  %23805 = vst [vmem:[#allocation31_spill] sm:$0xff] %v17736_v15  ;;  %v9481_v23 = vcombine.low %v17754_v21, %v17757_v27 }
 0x767   :  { %5096 = vrot.lane.b32.xlu0 %v23806_v30, %s13468_s0  ;;  %5098 = vrot.lane.b32.xlu1 %v23807_v16, %s13468_s0  ;;  %23811 = vst [vmem:[#allocation163_spill] sm:$0xff] %v17754_v21  ;;  %23812 = vst [vmem:[#allocation164_spill] sm:$0xff] %v17757_v27  ;;  %v23832_v27 = vld [vmem:[#allocation70_spill] sm:$0xff] }
 0x768   :  { %v17801_v28 = vrot.slane %v9481_v23, %v14031_v8 }
 0x769   :  { %v17759_v48 = vpop.permute.xlu0 %8901  ;;  %v17764_v58 = vpop.permute.xlu1 %8897 }
 0x76a   :  { %23813 = vst [vmem:[#allocation165_spill] sm:$0xff] %v17759_v48  ;;  %23815 = vst [vmem:[#allocation167_spill] sm:$0xff] %v17764_v58  ;;  %v9465_v62 = vcombine.low %v17730_v7, %v17759_v48  ;;  %v9449_v47 = vcombine.low %v17736_v15, %v17764_v58  ;;  %v23823_v7 = vld [vmem:[#allocation12_spill] sm:$0xff] }
 0x76b   :  { %5100 = vrot.lane.b32.xlu0 %v23816_v55, %s13468_s0  ;;  %5102 = vrot.lane.b32.xlu1 %v23818_v26, %s13468_s0  ;;  %23824 = vst [vmem:[#allocation47_spill] sm:$0xff] %v17801_v28 }
 0x76c   :  { %v17777_v39 = vrot.slane %v9465_v62, %v13617_v1  ;;  %v17786_v48 = vrot.slane %v9449_v47, %v13617_v1 }
 0x76d   :  { %v17788_v15 = vpop.permute.xlu0 %8927  ;;  %v17792_v58 = vpop.permute.xlu1 %8923 }
 0x76e   :  { %23817 = vst [vmem:[#allocation42_spill] sm:$0xff] %v17777_v39  ;;  %23819 = vst [vmem:[#allocation36_spill] sm:$0xff] %v17786_v48  ;;  %v9513_v62 = vcombine.low %v17786_v48, %v17777_v39  ;;  %v23829_v48 = vld [vmem:[#allocation58_spill] sm:$0xff] }
 0x76f   :  { %23820 = vst [vmem:[#allocation168_spill] sm:$0xff] %v17788_v15  ;;  %23821 = vst [vmem:[#allocation169_spill] sm:$0xff] %v17792_v58  ;;  %5104 = vrot.lane.b32.xlu0 %v23822_v2, %s13468_s0  ;;  %5106 = vrot.lane.b32.xlu1 %v23823_v7, %s13468_s0 }
 0x770   :  { %v17804_v47 = vrot.slane %v9513_v62, %v14031_v8 }
 0x771   :  { %v17806_v45 = vpop.permute.xlu0 %8935  ;;  %v17808_v12 = vpop.permute.xlu1 %8931 }
 0x772   :  { %23825 = vst [vmem:[#allocation12_spill] sm:$0xff] %v17804_v47  ;;  %23826 = vst [vmem:[#allocation170_spill] sm:$0xff] %v17806_v45  ;;  %v10777_v23 = vcombine.low %v17792_v58, %v17808_v12  ;;  %v10793_v62 = vcombine.low %v17788_v15, %v17806_v45 }
 0x773   :  { %23827 = vst [vmem:[#allocation171_spill] sm:$0xff] %v17808_v12  ;;  %5108 = vrot.lane.b32.xlu0 %v23828_v4, %s13468_s0  ;;  %5110 = vrot.lane.b32.xlu1 %v23829_v48, %s13468_s0 }
 0x774   :  { %v17829_v28 = vrot.slane %v10777_v23, %v13617_v1  ;;  %v17832_v47 = vrot.slane %v10793_v62, %v13617_v1 }
 0x775   :  { %v17820_v39 = vpop.permute.xlu0 %8943  ;;  %v17822_v21 = vpop.permute.xlu1 %8939 }
 0x776   :  { %23830 = vst [vmem:[#allocation11_spill] sm:$0xff] %v17820_v39  ;;  %23831 = vst [vmem:[#allocation58_spill] sm:$0xff] %v17822_v21  ;;  %v10841_v23 = vcombine.low %v17829_v28, %v17832_v47 }
 0x777   :  { %5112 = vrot.lane.b32.xlu0 %v23832_v27, %s13468_s0  ;;  %5114 = vrot.lane.b32.xlu1 %v23833_v43, %s13468_s0  ;;  %23834 = vst [vmem:[#allocation70_spill] sm:$0xff] %v17829_v28  ;;  %23835 = vst [vmem:[#allocation9_spill] sm:$0xff] %v17832_v47 }
 0x779   :  { %v17834_v58 = vpop.permute.xlu0 %8951  ;;  %v17836_v12 = vpop.permute.xlu1 %8947 }
 0x77a   :  { %23836 = vst [vmem:[#allocation172_spill] sm:$0xff] %v17834_v58  ;;  %23837 = vst [vmem:[#allocation173_spill] sm:$0xff] %v17836_v12  ;;  %v10825_v15 = vcombine.low %v17820_v39, %v17834_v58  ;;  %v10809_v45 = vcombine.low %v17822_v21, %v17836_v12  ;;  %v9007_v58 = vrot.slane %v16919_v34, 1  ;;  %v17868_v12 = vrot.slane %v10841_v23, %v14031_v8  ;;  %v23847_v23 = vld [vmem:[#allocation57_spill] sm:$0xff] }
 0x77b   :  { %5132 = vrot.lane.b32.xlu0 %v23788_v56, %s13470_s28  ;;  %5134 = vrot.lane.b32.xlu1 %v23790_v36, %s13470_s28 }
 0x77c   :  { %v17845_v18 = vrot.slane %v10825_v15, %v13617_v1  ;;  %v17852_v62 = vrot.slane %v10809_v45, %v13617_v1  ;;  %v22818_v15 = vrot.slane %v16834_v13, 1  ;;  %v8987_v45 = vrot.slane %v16853_v37, 1  ;;  %23842 = vst [vmem:[#allocation178_spill] sm:$0xff] %v17868_v12  ;;  %v23851_v12 = vld [vmem:[#allocation50_spill] sm:$0xff] }
 0x77d   :  { %v17854_v52 = vpop.permute.xlu0 %8925  ;;  %v17856_v39 = vpop.permute.xlu1 %8921 }
 0x77e   :  { %23838 = vst [vmem:[#allocation174_spill] sm:$0xff] %v17845_v18  ;;  %23839 = vst [vmem:[#allocation175_spill] sm:$0xff] %v17852_v62  ;;  %v10873_v21 = vcombine.low %v17852_v62, %v17845_v18  ;;  %v22827_v62 = vrot.slane %v16816_v24, 1  ;;  %v17881_v18 = vsel %vm236_vm3, %v9007_v58, %v22818_v15 }
 0x77f   :  { %23840 = vst [vmem:[#allocation176_spill] sm:$0xff] %v17854_v52  ;;  %23841 = vst [vmem:[#allocation177_spill] sm:$0xff] %v17856_v39  ;;  %5136 = vrot.lane.b32.xlu0 %v23796_v29, %s13470_s28  ;;  %5138 = vrot.lane.b32.xlu1 %v23797_v40, %s13470_s28  ;;  %v9721_v41 = vcombine.low %v23853_v53, %v17881_v18 }
 0x780   :  { %v17871_v28 = vrot.slane %v10873_v21, %v14031_v8  ;;  %23846 = vst [vmem:[#allocation182_spill] sm:$0xff] %v17881_v18  ;;  %v23848_v21 = vld [vmem:[#allocation13_spill] sm:$0xff]  ;;  %v17894_v59 = vsel %vm236_vm3, %v8987_v45, %v22827_v62  ;;  %v23855_v45 = vld [vmem:[#allocation56_spill] sm:$0xff] }
 0x781   :  { %v17873_v47 = vpop.permute.xlu0 %8933  ;;  %v17875_v57 = vpop.permute.xlu1 %8929  ;;  %v9737_v3 = vcombine.low %v23848_v21, %v23847_v23  ;;  %23849 = vst [vmem:[#allocation183_spill] sm:$0xff] %v17894_v59  ;;  %v9689_v62 = vcombine.low %v23855_v45, %v17894_v59  ;;  %v17929_v18 = vrot.slane %v9721_v41, %v13617_v1  ;;  %v5604_v41 = vcombine.low %v16466_v38, %v16552_v51 }
 0x782   :  { %23843 = vst [vmem:[#allocation179_spill] sm:$0xff] %v17871_v28  ;;  %23844 = vst [vmem:[#allocation180_spill] sm:$0xff] %v17873_v47  ;;  %v9553_v58 = vcombine.low %v17856_v39, %v17875_v57  ;;  %v9569_v17 = vcombine.low %v17854_v52, %v17873_v47  ;;  %v23852_v28 = vld [vmem:[#allocation52_spill] sm:$0xff] }
 0x783   :  { %23845 = vst [vmem:[#allocation181_spill] sm:$0xff] %v17875_v57  ;;  %5140 = vrot.lane.b32.xlu0 %v23802_v60, %s13470_s28  ;;  %5142 = vrot.lane.b32.xlu1 %v23803_v50, %s13470_s28  ;;  %v9705_v35 = vcombine.low %v23852_v28, %v23851_v12  ;;  %v17913_v39 = vrot.slane %v9737_v3, %v13617_v1  ;;  %23861 = vst [vmem:[#allocation191_spill] sm:$0xff] %v17929_v18  ;;  %v23918_v28 = vld [vmem:[#allocation14_spill] sm:$0xff] }
 0x784   :  { %v17918_v52 = vrot.slane %v9553_v58, %v13617_v1  ;;  %v17921_v47 = vrot.slane %v9569_v17, %v13617_v1  ;;  %v17940_v17 = vrot.slane %v9689_v62, %v13617_v1  ;;  %v23919_v12 = vld [vmem:[#allocation54_spill] sm:$0xff] }
 0x785   :  { %v17900_v15 = vpop.permute.xlu0 %8941  ;;  %v17906_v19 = vpop.permute.xlu1 %8937  ;;  %23856 = vst [vmem:[#allocation186_spill] sm:$0xff] %v17913_v39  ;;  %v17926_v53 = vrot.slane %v9705_v35, %v13617_v1  ;;  %v9785_v35 = vcombine.low %v17929_v18, %v17913_v39  ;;  %v5589_v18 = vcombine.high %v16439_v9, %v16514_v11 }
 0x786   :  { %23850 = vst [vmem:[#allocation184_spill] sm:$0xff] %v17900_v15  ;;  %23854 = vst [vmem:[#allocation185_spill] sm:$0xff] %v17906_v19 }
 0x787   :  { %5144 = vrot.lane.b32.xlu0 %v23806_v30, %s13470_s28  ;;  %5146 = vrot.lane.b32.xlu1 %v23807_v16, %s13470_s28  ;;  %23857 = vst [vmem:[#allocation187_spill] sm:$0xff] %v17918_v52  ;;  %23858 = vst [vmem:[#allocation188_spill] sm:$0xff] %v17921_v47 }
 0x788   :  { %23860 = vst [vmem:[#allocation190_spill] sm:$0xff] %v17926_v53  ;;  %23863 = vst [vmem:[#allocation193_spill] sm:$0xff] %v17940_v17 }
 0x789   :  { %v17923_v57 = vpop.permute.xlu0 %8949  ;;  %v17931_v45 = vpop.permute.xlu1 %8945 }
 0x78a   :  { %23859 = vst [vmem:[#allocation189_spill] sm:$0xff] %v17923_v57  ;;  %23862 = vst [vmem:[#allocation192_spill] sm:$0xff] %v17931_v45  ;;  %v9601_v3 = vcombine.low %v17900_v15, %v17923_v57  ;;  %v9585_v58 = vcombine.low %v17906_v19, %v17931_v45  ;;  %v5605_v15 = vcombine.high %v16466_v38, %v16552_v51 }
 0x78b   :  { %5148 = vrot.lane.b32.xlu0 %v23816_v55, %s13470_s28  ;;  %5150 = vrot.lane.b32.xlu1 %v23818_v26, %s13470_s28  ;;  %v9617_v57 = vcombine.low %v17918_v52, %v17921_v47  ;;  %v9753_v45 = vcombine.low %v17940_v17, %v17926_v53  ;;  %v6812_v38 = vcombine.low %v17103_v31, %v17196_v20  ;;  %v23904_v53 = vrot.slane %v16671_v44, 1 }
 0x78c   :  { %v17947_v59 = vrot.slane %v9601_v3, %v13617_v1  ;;  %v17956_v62 = vrot.slane %v9585_v58, %v13617_v1  ;;  %v5588_v3 = vcombine.low %v16439_v9, %v16514_v11  ;;  %v6828_v51 = vcombine.low %v17108_v22, %v17205_v46 }
 0x78d   :  { %v17958_v19 = vpop.permute.xlu0 %4932  ;;  %v17970_v52 = vpop.permute.xlu1 %4934  ;;  %v6813_v58 = vcombine.high %v17103_v31, %v17196_v20  ;;  %v17982_v9 = vrot.slane %v5604_v41, %v13617_v1  ;;  %v6829_v11 = vcombine.high %v17108_v22, %v17205_v46  ;;  %v17989_v31 = vrot.slane %v5605_v15, %v13617_v1 }
 0x78e   :  { %23864 = vst [vmem:[#allocation194_spill] sm:$0xff] %v17947_v59  ;;  %23865 = vst [vmem:[#allocation195_spill] sm:$0xff] %v17956_v62  ;;  %v9649_v47 = vcombine.low %v17956_v62, %v17947_v59  ;;  %v17992_v20 = vrot.slane %v9617_v57, %v14031_v8  ;;  %v18000_v41 = vrot.slane %v9753_v45, %v14031_v8 }
 0x78f   :  { %23866 = vst [vmem:[#allocation196_spill] sm:$0xff] %v17958_v19  ;;  %23867 = vst [vmem:[#allocation197_spill] sm:$0xff] %v17970_v52  ;;  %5152 = vrot.lane.b32.xlu0 %v23822_v2, %s13470_s28  ;;  %v17979_v19 = vrot.slane %v9785_v35, %v14031_v8  ;;  %5154 = vrot.lane.b32.xlu1 %v23823_v7, %s13470_s28  ;;  %v18003_v62 = vrot.slane %v5588_v3, %v13617_v1  ;;  %v23882_v3 = vld [vmem:[#allocation71_spill] sm:$0xff] }
 0x790   :  { %23869 = vst [vmem:[#allocation199_spill] sm:$0xff] %v17982_v9  ;;  %23870 = vst [vmem:[#allocation200_spill] sm:$0xff] %v17989_v31  ;;  %v17995_v52 = vrot.slane %v9649_v47, %v14031_v8  ;;  %v18006_v22 = vrot.slane %v5589_v18, %v13617_v1  ;;  %v18009_v46 = vrot.slane %v6812_v38, %v13617_v1  ;;  %v23902_v31 = vld [vmem:[#allocation19_spill] sm:$0xff] }
 0x791   :  { %23868 = vst [vmem:[#allocation198_spill] sm:$0xff] %v17979_v19  ;;  %23871 = vst [vmem:[#allocation201_spill] sm:$0xff] %v17992_v20  ;;  %v17997_v35 = vpop.permute.xlu0 %4936  ;;  %v18012_v57 = vrot.slane %v6828_v51, %v13617_v1  ;;  %v18014_v15 = vpop.permute.xlu1 %4938  ;;  %v18017_v47 = vrot.slane %v6813_v58, %v13617_v1  ;;  %v6044_v45 = vcombine.low %v23822_v2, %v23832_v27  ;;  %v8817_v20 = vsel %vm150_vm1, 0.0, %v23882_v3  ;;  %v23886_v19 = vld [vmem:[#allocation16_spill] sm:$0xff] }
 0x792   :  { %23872 = vst [vmem:[#allocation202_spill] sm:$0xff] %v17995_v52  ;;  %23873 = vst [vmem:[#allocation203_spill] sm:$0xff] %v17997_v35  ;;  %v18032_v58 = vrot.slane %v6829_v11, %v13617_v1  ;;  %v6012_v38 = vcombine.low %v23796_v29, %v23806_v30  ;;  %v6028_v51 = vcombine.low %v23816_v55, %v23828_v4  ;;  %v23884_v52 = vld [vmem:[#allocation53_spill] sm:$0xff]  ;;  %v8980_v9 = vrot.slane %v23886_v19, 1  ;;  %v23893_v19 = vld [vmem:[#allocation67_spill] sm:$0xff] }
 0x793   :  { %23874 = vst [vmem:[#allocation204_spill] sm:$0xff] %v18000_v41  ;;  %23875 = vst [vmem:[#allocation205_spill] sm:$0xff] %v18003_v62  ;;  %5156 = vrot.lane.b32.xlu0 %v23828_v4, %s13470_s28  ;;  %5158 = vrot.lane.b32.xlu1 %v23829_v48, %s13470_s28  ;;  %v8985_v59 = vrot.slane %v23884_v52, 1  ;;  %v7221_v3 = vcombine.high %v23790_v36, %v23803_v50  ;;  %v23887_v62 = vld [vmem:[#allocation18_spill] sm:$0xff]  ;;  %v18063_v52 = vrot.slane %v6044_v45, %v13617_v1 }
 0x794   :  { %23876 = vst [vmem:[#allocation206_spill] sm:$0xff] %v18006_v22  ;;  %23877 = vst [vmem:[#allocation207_spill] sm:$0xff] %v18009_v46  ;;  %v8829_v39 = vsel %vm150_vm1, 0.0, %v23887_v62  ;;  %v8841_v41 = vsel %vm163_vm2, %v8817_v20, 0.0  ;;  %v7236_v45 = vcombine.low %v23797_v40, %v23807_v16  ;;  %v18082_v20 = vrot.slane %v6012_v38, %v13617_v1 }
 0x795   :  { %23878 = vst [vmem:[#allocation208_spill] sm:$0xff] %v18012_v57  ;;  %23879 = vst [vmem:[#allocation209_spill] sm:$0xff] %v18014_v15  ;;  %v7220_v15 = vcombine.low %v23790_v36, %v23803_v50  ;;  %v18046_v11 = vpop.permute.xlu0 %4940  ;;  %v18055_v18 = vpop.permute.xlu1 %4942  ;;  %v18085_v50 = vrot.slane %v6028_v51, %v13617_v1  ;;  %v18091_v36 = vsel %vm163_vm2, %v8829_v39, 0.0  ;;  %v8990_v57 = vrot.slane %v8841_v41, 1 }
 0x796   :  { %23880 = vst [vmem:[#allocation210_spill] sm:$0xff] %v18017_v47  ;;  %23881 = vst [vmem:[#allocation211_spill] sm:$0xff] %v18032_v58  ;;  %v18094_v58 = vrot.slane %v7221_v3, %v13617_v1  ;;  %v23896_v47 = vrot.slane %v16668_v0, 1  ;;  %v23898_v39 = vrot.slane %v16797_v49, 1  ;;  %v9162_v49 = vrot.slane %v18091_v36, 2 }
 0x797   :  { %23883 = vst [vmem:[#allocation71_spill] sm:$0xff] %v18046_v11  ;;  %23885 = vst [vmem:[#allocation53_spill] sm:$0xff] %v18055_v18  ;;  %v5996_v11 = vcombine.low %v23788_v56, %v23802_v60  ;;  %5160 = vrot.lane.b32.xlu0 %v23832_v27, %s13470_s28  ;;  %5162 = vrot.lane.b32.xlu1 %v23833_v43, %s13470_s28  ;;  %v18077_v62 = vrot.slane %v7220_v15, %v13617_v1  ;;  %v8995_v18 = vrot.slane %v23893_v19, 1 }
 0x798   :  { %23888 = vst [vmem:[#allocation16_spill] sm:$0xff] %v18063_v52  ;;  %23890 = vst [vmem:[#allocation212_spill] sm:$0xff] %v18082_v20  ;;  %v18101_v38 = vsel %vm236_vm3, %v23896_v47, %v8985_v59  ;;  %v6092_v19 = vcombine.low %v18085_v50, %v18063_v52  ;;  %v7252_v47 = vcombine.low %v23818_v26, %v23829_v48  ;;  %v9159_v59 = vrot.slane %v16919_v34, 2 }
 0x799   :  { %23889 = vst [vmem:[#allocation18_spill] sm:$0xff] %v18077_v62  ;;  %23891 = vst [vmem:[#allocation213_spill] sm:$0xff] %v18085_v50  ;;  %v18087_v35 = vpop.permute.xlu0 %4944  ;;  %v18096_v15 = vpop.permute.xlu1 %4946  ;;  %v18104_v51 = vrot.slane %v5996_v11, %v13617_v1  ;;  %v7268_v11 = vcombine.low %v23823_v7, %v23833_v43  ;;  %v9142_v0 = vrot.slane %v8841_v41, 2  ;;  %v9005_v22 = vrot.slane %v23902_v31, 1  ;;  %v24013_v50 = vld [vmem:[#allocation72_spill] sm:$0xff] }
 0x79a   :  { %23892 = vst [vmem:[#allocation214_spill] sm:$0xff] %v18087_v35  ;;  %23894 = vst [vmem:[#allocation67_spill] sm:$0xff] %v18094_v58  ;;  %v18111_v35 = vsel %vm236_vm3, %v23898_v39, %v8980_v9  ;;  %v18127_v9 = vrot.slane %v7236_v45, %v13617_v1  ;;  %v18141_v21 = vsel %vm236_vm3, %v23904_v53, %v8995_v18  ;;  %v23905_v45 = vrot.slane %v16816_v24, 1 }
 0x79b   :  { %23895 = vst [vmem:[#allocation215_spill] sm:$0xff] %v18096_v15  ;;  %23897 = vst [vmem:[#allocation216_spill] sm:$0xff] %v18104_v51  ;;  %9039 = vrot.lane.b32.xlu0 %v18101_v38, %s13468_s0  ;;  %9035 = vrot.lane.b32.xlu1 %v18111_v35, %s13468_s0  ;;  %v6060_v3 = vcombine.low %v18104_v51, %v18082_v20  ;;  %v23901_v15 = vld [vmem:[#allocation17_spill] sm:$0xff]  ;;  %v9160_v34 = vrot.slane %v16834_v13, 2  ;;  %v9139_v41 = vrot.slane %v16853_v37, 2  ;;  %v9010_v44 = vrot.slane %v18091_v36, 1 }
 0x79c   :  { %23899 = vst [vmem:[#allocation217_spill] sm:$0xff] %v18127_v9  ;;  %v9000_v46 = vrot.slane %v23901_v15, 1  ;;  %v18146_v23 = vsel %vm236_vm3, %v23905_v45, %v8990_v57  ;;  %v18153_v31 = vrot.slane %v6092_v19, %v14031_v8  ;;  %v18157_v53 = vrot.slane %v7252_v47, %v13617_v1  ;;  %v23909_v15 = vld [vmem:[#allocation66_spill] sm:$0xff]  ;;  %v24004_v51 = vld [vmem:[#allocation44_spill] sm:$0xff] }
 0x79d   :  { %v18131_v39 = vpop.permute.xlu0 %4948  ;;  %v18136_v17 = vpop.permute.xlu1 %4950  ;;  %v18160_v18 = vrot.slane %v7268_v11, %v13617_v1  ;;  %v9140_v57 = vrot.slane %v16816_v24, 2  ;;  %v9015_v45 = vrot.slane %v23909_v15, 1  ;;  %v18169_v37 = vsel %vm313_vm4, %v9160_v34, %v9162_v49  ;;  %v23916_v15 = vld [vmem:[#allocation26_spill] sm:$0xff] }
 0x79e   :  { %23900 = vst [vmem:[#allocation218_spill] sm:$0xff] %v18131_v39  ;;  %23903 = vst [vmem:[#allocation17_spill] sm:$0xff] %v18136_v17  ;;  %v18172_v36 = vsel %vm313_vm4, %v9159_v59, %v9160_v34  ;;  %v18175_v19 = vrot.slane %v6060_v3, %v14031_v8  ;;  %v23915_v11 = vrot.slane %v16708_v63, 1  ;;  %v10145_v59 = vcombine.low %v23919_v12, %v23918_v28  ;;  %v23921_v63 = vld [vmem:[#allocation61_spill] sm:$0xff]  ;;  %v23925_v28 = vld [vmem:[#allocation60_spill] sm:$0xff] }
 0x79f   :  { %9047 = vrot.lane.b32.xlu0 %v18141_v21, %s13468_s0  ;;  %23906 = vst [vmem:[#allocation19_spill] sm:$0xff] %v18153_v31  ;;  %23907 = vst [vmem:[#allocation219_spill] sm:$0xff] %v18157_v53  ;;  %9043 = vrot.lane.b32.xlu1 %v18146_v23, %s13468_s0  ;;  %v18185_v24 = vsel %vm313_vm4, %v9140_v57, %v9142_v0  ;;  %v23920_v34 = vrot.slane %v16825_v14, 1  ;;  %v18201_v0 = vsel %vm313_vm4, %v9139_v41, %v9140_v57  ;;  %v23923_v14 = vld [vmem:[#allocation46_spill] sm:$0xff]  ;;  %v23928_v31 = vld [vmem:[#allocation64_spill] sm:$0xff] }
 0x7a0   :  { %23908 = vst [vmem:[#allocation220_spill] sm:$0xff] %v18160_v18  ;;  %23911 = vst [vmem:[#allocation221_spill] sm:$0xff] %v18169_v37  ;;  %v18182_v39 = vsel %vm236_vm3, %v23915_v11, %v9005_v22  ;;  %v23922_v22 = vld [vmem:[#allocation63_spill] sm:$0xff]  ;;  %v7316_v12 = vcombine.low %v18157_v53, %v18160_v18  ;;  %v6844_v41 = vcombine.low %v17221_v10, %v17385_v33  ;;  %v23994_v53 = vld [vmem:[#allocation60_spill] sm:$0xff] }
 0x7a1   :  { %v18166_v17 = vpop.permute.xlu0 %4952  ;;  %23912 = vst [vmem:[#allocation222_spill] sm:$0xff] %v18172_v36  ;;  %23913 = vst [vmem:[#allocation223_spill] sm:$0xff] %v18175_v19  ;;  %v18177_v47 = vpop.permute.xlu1 %4954  ;;  %v18194_v3 = vsel %vm236_vm3, %v23920_v34, %v9000_v46  ;;  %v11337_v11 = vcombine.low %v23922_v22, %v23921_v63  ;;  %v11353_v46 = vcombine.low %v23923_v14, %v18169_v37  ;;  %v23924_v34 = vld [vmem:[#allocation27_spill] sm:$0xff] }
 0x7a2   :  { %23910 = vst [vmem:[#allocation66_spill] sm:$0xff] %v18166_v17  ;;  %23914 = vst [vmem:[#allocation224_spill] sm:$0xff] %v18177_v47  ;;  %v23917_v17 = vld [vmem:[#allocation51_spill] sm:$0xff]  ;;  %v6845_v57 = vcombine.high %v17221_v10, %v17385_v33  ;;  %v7284_v47 = vcombine.low %v18077_v62, %v18127_v9  ;;  %v11321_v14 = vcombine.low %v23928_v31, %v18185_v24  ;;  %v23932_v10 = vld [vmem:[#allocation62_spill] sm:$0xff] }
 0x7a3   :  { %v11369_v49 = vcombine.low %v23917_v17, %v23916_v15  ;;  %9055 = vrot.lane.b32.xlu0 %v18182_v39, %s13468_s0  ;;  %9051 = vrot.lane.b32.xlu1 %v18194_v3, %s13468_s0  ;;  %v10113_v17 = vcombine.low %v23925_v28, %v23924_v34  ;;  %v23926_v15 = vld [vmem:[#allocation37_spill] sm:$0xff]  ;;  %v23930_v28 = vrot.slane %v16711_v5, 1  ;;  %v10097_v33 = vcombine.low %v23932_v10, %v18201_v0  ;;  %v23986_v9 = vld [vmem:[#allocation51_spill] sm:$0xff]  ;;  %v23992_v62 = vld [vmem:[#allocation46_spill] sm:$0xff] }
 0x7a4   :  { %v10129_v22 = vcombine.low %v23926_v15, %v18172_v36  ;;  %v18238_v34 = vrot.slane %v10145_v59, %v13617_v1  ;;  %v23934_v5 = vrot.slane %v16834_v13, 1  ;;  %v18266_v13 = vrot.slane %v7316_v12, %v14031_v8 }
 0x7a5   :  { %v18221_v19 = vpop.permute.xlu0 %4956  ;;  %v18225_v37 = vpop.permute.xlu1 %4958  ;;  %v18230_v15 = vsel %vm236_vm3, %v23930_v28, %v9015_v45  ;;  %v18233_v36 = vrot.slane %v11369_v49, %v13617_v1  ;;  %v18252_v45 = vrot.slane %v11337_v11, %v13617_v1  ;;  %v18257_v49 = vrot.slane %v11353_v46, %v13617_v1 }
 0x7a6   :  { %23927 = vst [vmem:[#allocation61_spill] sm:$0xff] %v18221_v19  ;;  %23929 = vst [vmem:[#allocation64_spill] sm:$0xff] %v18225_v37  ;;  %v5636_v19 = vcombine.low %v16594_v25, %v23731_v42  ;;  %v5637_v37 = vcombine.high %v16594_v25, %v23731_v42  ;;  %v18247_v28 = vsel %vm236_vm3, %v23934_v5, %v9010_v44 }
 0x7a7   :  { %23931 = vst [vmem:[#allocation225_spill] sm:$0xff] %v18233_v36  ;;  %23933 = vst [vmem:[#allocation226_spill] sm:$0xff] %v18238_v34  ;;  %9063 = vrot.lane.b32.xlu0 %v18230_v15, %s13468_s0  ;;  %9059 = vrot.lane.b32.xlu1 %v18247_v28, %s13468_s0  ;;  %v18260_v59 = vrot.slane %v10113_v17, %v13617_v1  ;;  %v18263_v25 = vrot.slane %v10129_v22, %v13617_v1 }
 0x7a8   :  { %23935 = vst [vmem:[#allocation227_spill] sm:$0xff] %v18252_v45  ;;  %23936 = vst [vmem:[#allocation228_spill] sm:$0xff] %v18257_v49  ;;  %v6860_v42 = vcombine.low %v17355_v6, %v17398_v61  ;;  %v6861_v44 = vcombine.high %v17355_v6, %v17398_v61  ;;  %v5997_v11 = vcombine.high %v23788_v56, %v23802_v60 }
 0x7a9   :  { %23937 = vst [vmem:[#allocation229_spill] sm:$0xff] %v18260_v59  ;;  %23938 = vst [vmem:[#allocation230_spill] sm:$0xff] %v18263_v25  ;;  %v18274_v46 = vpop.permute.xlu0 %4960  ;;  %v18277_v17 = vrot.slane %v11321_v14, %v13617_v1  ;;  %v18279_v5 = vpop.permute.xlu1 %4962  ;;  %v11417_v12 = vcombine.low %v18257_v49, %v18233_v36  ;;  %v18284_v22 = vrot.slane %v10097_v33, %v13617_v1  ;;  %v24026_v36 = vld [vmem:[#allocation205_spill] sm:$0xff]  ;;  %v24031_v49 = vld [vmem:[#allocation102_spill] sm:$0xff] }
 0x7aa   :  { %23939 = vst [vmem:[#allocation231_spill] sm:$0xff] %v18266_v13  ;;  %23940 = vst [vmem:[#allocation232_spill] sm:$0xff] %v18274_v46  ;;  %v10193_v10 = vcombine.low %v18263_v25, %v18238_v34  ;;  %v18289_v6 = vrot.slane %v7284_v47, %v14031_v8  ;;  %v23945_v60 = vcombine.low %v16577_v54, %v23727_v32  ;;  %v23991_v13 = vld [vmem:[#allocation221_spill] sm:$0xff]  ;;  %v24079_v34 = vld [vmem:[#allocation78_spill] sm:$0xff] }
 0x7ab   :  { %23941 = vst [vmem:[#allocation233_spill] sm:$0xff] %v18277_v17  ;;  %23942 = vst [vmem:[#allocation234_spill] sm:$0xff] %v18279_v5  ;;  %v23946_v56 = vcombine.high %v16577_v54, %v23727_v32  ;;  %v18304_v33 = vrot.slane %v5636_v19, %v13617_v1  ;;  %v18307_v5 = vrot.slane %v5637_v37, %v13617_v1  ;;  %9087 = vrot.lane.b32.xlu0 %v18101_v38, %s13470_s28 }
 0x7ac   :  { %23943 = vst [vmem:[#allocation235_spill] sm:$0xff] %v18284_v22  ;;  %23944 = vst [vmem:[#allocation236_spill] sm:$0xff] %v18289_v6  ;;  %v18295_v61 = vrot.slane %v23945_v60, %v13617_v1  ;;  %v7237_v47 = vcombine.high %v23797_v40, %v23807_v16  ;;  %9083 = vrot.lane.b32.xlu1 %v18111_v35, %s13470_s28  ;;  %v11385_v54 = vcombine.low %v18277_v17, %v18252_v45 }
 0x7ad   :  { %v18301_v14 = vrot.slane %v23946_v56, %v13617_v1  ;;  %v10161_v32 = vcombine.low %v18284_v22, %v18260_v59  ;;  %v18322_v37 = vrot.slane %v6844_v41, %v13617_v1  ;;  %v18325_v60 = vrot.slane %v6860_v42, %v13617_v1  ;;  %v18332_v56 = vpop.permute.xlu0 %4980  ;;  %v18340_v19 = vpop.permute.xlu1 %4982 }
 0x7ae   :  { %v18328_v40 = vrot.slane %v6861_v44, %v13617_v1  ;;  %v6013_v16 = vcombine.high %v23796_v29, %v23806_v30  ;;  %23948 = vst [vmem:[#allocation238_spill] sm:$0xff] %v18332_v56  ;;  %v18335_v46 = vrot.slane %v6845_v57, %v13617_v1  ;;  %v18338_v25 = vrot.slane %v5997_v11, %v13617_v1 }
 0x7af   :  { %23951 = vst [vmem:[#allocation241_spill] sm:$0xff] %v18340_v19  ;;  %v18343_v41 = vrot.slane %v11417_v12, %v14031_v8  ;;  %v18346_v42 = vrot.slane %v10193_v10, %v14031_v8  ;;  %9095 = vrot.lane.b32.xlu0 %v18141_v21, %s13470_s28  ;;  %v18359_v11 = vrot.slane %v7237_v47, %v13617_v1 }
 0x7b0   :  { %23947 = vst [vmem:[#allocation237_spill] sm:$0xff] %v18328_v40  ;;  %23949 = vst [vmem:[#allocation239_spill] sm:$0xff] %v18335_v46  ;;  %v7269_v10 = vcombine.high %v23823_v7, %v23833_v43  ;;  %9091 = vrot.lane.b32.xlu1 %v18146_v23, %s13470_s28  ;;  %v18366_v12 = vrot.slane %v11385_v54, %v14031_v8  ;;  %v18369_v30 = vrot.slane %v10161_v32, %v14031_v8 }
 0x7b1   :  { %23950 = vst [vmem:[#allocation240_spill] sm:$0xff] %v18338_v25  ;;  %23952 = vst [vmem:[#allocation242_spill] sm:$0xff] %v18343_v41  ;;  %v18378_v7 = vrot.slane %v6013_v16, %v13617_v1  ;;  %v18380_v43 = vpop.permute.xlu0 %4984  ;;  %v7253_v54 = vcombine.high %v23818_v26, %v23829_v48  ;;  %v6045_v32 = vcombine.high %v23822_v2, %v23832_v27  ;;  %v18386_v44 = vpop.permute.xlu1 %4986  ;;  %v23995_v25 = vld [vmem:[#allocation74_spill] sm:$0xff] }
 0x7b2   :  { %23953 = vst [vmem:[#allocation243_spill] sm:$0xff] %v18346_v42  ;;  %23954 = vst [vmem:[#allocation244_spill] sm:$0xff] %v18359_v11  ;;  %v6029_v26 = vcombine.high %v23816_v55, %v23828_v4  ;;  %v10929_v2 = vcombine.low %v18101_v38, %v18141_v21  ;;  %v18407_v29 = vrot.slane %v7269_v10, %v13617_v1 }
 0x7b3   :  { %23955 = vst [vmem:[#allocation245_spill] sm:$0xff] %v18366_v12  ;;  %23956 = vst [vmem:[#allocation246_spill] sm:$0xff] %v18369_v30  ;;  %9103 = vrot.lane.b32.xlu0 %v18182_v39, %s13470_s28  ;;  %v10930_v57 = vcombine.high %v18101_v38, %v18141_v21  ;;  %v10913_v48 = vcombine.low %v18111_v35, %v18146_v23  ;;  %v18424_v47 = vrot.slane %v7253_v54, %v13617_v1 }
 0x7b4   :  { %23957 = vst [vmem:[#allocation247_spill] sm:$0xff] %v18378_v7  ;;  %23958 = vst [vmem:[#allocation248_spill] sm:$0xff] %v18380_v43  ;;  %9099 = vrot.lane.b32.xlu1 %v18194_v3, %s13470_s28  ;;  %v18427_v21 = vrot.slane %v6045_v32, %v13617_v1  ;;  %v10914_v38 = vcombine.high %v18111_v35, %v18146_v23  ;;  %v10961_v55 = vcombine.low %v18182_v39, %v18230_v15  ;;  %v23968_v35 = vld [vmem:[#allocation50_spill] sm:$0xff] }
 0x7b5   :  { %23959 = vst [vmem:[#allocation249_spill] sm:$0xff] %v18386_v44  ;;  %23960 = vst [vmem:[#allocation250_spill] sm:$0xff] %v18407_v29  ;;  %v18421_v10 = vpop.permute.xlu0 %4988  ;;  %v18433_v4 = vpop.permute.xlu1 %4990  ;;  %v18436_v27 = vrot.slane %v6029_v26, %v13617_v1  ;;  %v18441_v54 = vrot.slane %v10929_v2, %v13617_v1  ;;  %v10962_v32 = vcombine.high %v18182_v39, %v18230_v15 }
 0x7b6   :  { %23961 = vst [vmem:[#allocation251_spill] sm:$0xff] %v18421_v10  ;;  %23962 = vst [vmem:[#allocation252_spill] sm:$0xff] %v18424_v47  ;;  %v18452_v26 = vrot.slane %v10930_v57, %v13617_v1  ;;  %v10945_v16 = vcombine.low %v18194_v3, %v18247_v28  ;;  %v10946_v2 = vcombine.high %v18194_v3, %v18247_v28  ;;  %v23969_v57 = vld [vmem:[#allocation52_spill] sm:$0xff]  ;;  %v23973_v10 = vld [vmem:[#allocation13_spill] sm:$0xff] }
 0x7b7   :  { %23963 = vst [vmem:[#allocation253_spill] sm:$0xff] %v18427_v21  ;;  %23964 = vst [vmem:[#allocation254_spill] sm:$0xff] %v18433_v4  ;;  %9111 = vrot.lane.b32.xlu0 %v18230_v15, %s13470_s28  ;;  %v18461_v15 = vrot.slane %v10913_v48, %v13617_v1  ;;  %v9706_v19 = vcombine.high %v23969_v57, %v23968_v35  ;;  %v18472_v44 = vrot.slane %v10914_v38, %v13617_v1  ;;  %v23972_v48 = vld [vmem:[#allocation57_spill] sm:$0xff]  ;;  %v23975_v38 = vld [vmem:[#allocation183_spill] sm:$0xff] }
 0x7b8   :  { %23965 = vst [vmem:[#allocation255_spill] sm:$0xff] %v18436_v27  ;;  %23966 = vst [vmem:[#allocation256_spill] sm:$0xff] %v18452_v26  ;;  %9107 = vrot.lane.b32.xlu1 %v18247_v28, %s13470_s28  ;;  %v18475_v56 = vrot.slane %v10961_v55, %v13617_v1  ;;  %v9738_v43 = vcombine.high %v23973_v10, %v23972_v48  ;;  %v23976_v55 = vld [vmem:[#allocation56_spill] sm:$0xff]  ;;  %v18497_v3 = vrot.slane %v10945_v16, %v13617_v1  ;;  %v23978_v28 = vld [vmem:[#allocation65_spill] sm:$0xff] }
 0x7b9   :  { %v18465_v23 = vpop.permute.xlu0 %4992  ;;  %23970 = vst [vmem:[#allocation50_spill] sm:$0xff] %v18472_v44  ;;  %v18477_v39 = vpop.permute.xlu1 %4994  ;;  %v9690_v4 = vcombine.high %v23976_v55, %v23975_v38  ;;  %v18506_v41 = vrot.slane %v10946_v2, %v13617_v1  ;;  %v23982_v16 = vld [vmem:[#allocation63_spill] sm:$0xff]  ;;  %v23985_v2 = vld [vmem:[#allocation26_spill] sm:$0xff]  ;;  %v11322_v29 = vcombine.high %v23928_v31, %v18185_v24  ;;  %v11354_v18 = vcombine.high %v23992_v62, %v23991_v13  ;;  %v24014_v44 = vld [vmem:[#allocation24_spill] sm:$0xff] }
 0x7ba   :  { %23967 = vst [vmem:[#allocation257_spill] sm:$0xff] %v18465_v23  ;;  %23971 = vst [vmem:[#allocation52_spill] sm:$0xff] %v18477_v39  ;;  %v18486_v23 = vrot.slane %v10962_v32, %v13617_v1  ;;  %v23977_v32 = vld [vmem:[#allocation182_spill] sm:$0xff]  ;;  %v18511_v39 = vrot.slane %v9706_v19, %v13617_v1  ;;  %v11338_v30 = vcombine.high %v23982_v16, %v23921_v63  ;;  %v23996_v21 = vld [vmem:[#allocation55_spill] sm:$0xff] }
 0x7bb   :  { %9037 = vrot.lane.b32.xlu0 %v23969_v57, %s13468_s0  ;;  %v9722_v42 = vcombine.high %v23978_v28, %v23977_v32  ;;  %23979 = vst [vmem:[#allocation13_spill] sm:$0xff] %v18506_v41  ;;  %v18522_v12 = vrot.slane %v9738_v43, %v13617_v1  ;;  %v18531_v6 = vrot.slane %v9690_v4, %v13617_v1  ;;  %v23993_v4 = vld [vmem:[#allocation27_spill] sm:$0xff] }
 0x7bc   :  { %23974 = vst [vmem:[#allocation57_spill] sm:$0xff] %v18486_v23  ;;  %9033 = vrot.lane.b32.xlu1 %v23976_v55, %s13468_s0  ;;  %23981 = vst [vmem:[#allocation56_spill] sm:$0xff] %v18511_v39  ;;  %v10114_v7 = vcombine.high %v23994_v53, %v23993_v4  ;;  %v5333_v27 = vcombine.high %v23996_v21, %v23995_v25  ;;  %v24003_v21 = vld [vmem:[#allocation62_spill] sm:$0xff]  ;;  %v24005_v39 = vld [vmem:[#allocation21_spill] sm:$0xff]  ;;  %v18579_v23 = vrot.slane %v11322_v29, %v13617_v1 }
 0x7bd   :  { %v18508_v11 = vpop.permute.xlu0 %4996  ;;  %v18519_v47 = vpop.permute.xlu1 %4998  ;;  %23984 = vst [vmem:[#allocation65_spill] sm:$0xff] %v18522_v12  ;;  %23987 = vst [vmem:[#allocation26_spill] sm:$0xff] %v18531_v6  ;;  %v18542_v19 = vrot.slane %v9722_v42, %v13617_v1  ;;  %v18557_v42 = vrot.slane %v11338_v30, %v13617_v1  ;;  %v10098_v20 = vcombine.high %v24003_v21, %v18201_v0  ;;  %v24006_v6 = vld [vmem:[#allocation75_spill] sm:$0xff]  ;;  %v24007_v30 = vld [vmem:[#allocation68_spill] sm:$0xff] }
 0x7be   :  { %23980 = vst [vmem:[#allocation183_spill] sm:$0xff] %v18508_v11  ;;  %23983 = vst [vmem:[#allocation182_spill] sm:$0xff] %v18519_v47  ;;  %v11370_v11 = vcombine.high %v23986_v9, %v23985_v2  ;;  %v6557_v41 = vcombine.high %v24007_v30, %v24006_v6  ;;  %v18589_v6 = vrot.slane %v10114_v7, %v13617_v1  ;;  %v24012_v30 = vld [vmem:[#allocation54_spill] sm:$0xff] }
 0x7bf   :  { %9045 = vrot.lane.b32.xlu0 %v23968_v35, %s13468_s0  ;;  %23990 = vst [vmem:[#allocation51_spill] sm:$0xff] %v18542_v19  ;;  %23998 = vst [vmem:[#allocation27_spill] sm:$0xff] %v18557_v42  ;;  %v6541_v12 = vcombine.high %v24014_v44, %v24013_v50  ;;  %v5347_v29 = vrot.slane %v5333_v27, %v13617_v1  ;;  %v18609_v50 = vrot.slane %v10098_v20, %v13617_v1  ;;  %v24018_v44 = vld [vmem:[#allocation222_spill] sm:$0xff]  ;;  %v24019_v27 = vld [vmem:[#allocation37_spill] sm:$0xff] }
 0x7c0   :  { %9041 = vrot.lane.b32.xlu1 %v23975_v38, %s13468_s0  ;;  %v18566_v25 = vrot.slane %v11370_v11, %v13617_v1  ;;  %24008 = vst [vmem:[#allocation44_spill] sm:$0xff] %v18579_v23  ;;  %24010 = vst [vmem:[#allocation75_spill] sm:$0xff] %v18589_v6  ;;  %v6571_v26 = vrot.slane %v6557_v41, %v13617_v1  ;;  %v24020_v45 = vcombine.low %v18295_v61, %v18304_v33  ;;  %v24030_v20 = vld [vmem:[#allocation100_spill] sm:$0xff] }
 0x7c1   :  { %v18554_v52 = vpop.permute.xlu0 %5000  ;;  %v18559_v47 = vpop.permute.xlu1 %5002  ;;  %24017 = vst [vmem:[#allocation54_spill] sm:$0xff] %v18609_v50  ;;  %v6605_v41 = vcombine.high %v24031_v49, %v24030_v20  ;;  %v24033_v50 = vld [vmem:[#allocation86_spill] sm:$0xff] }
 0x7c2   :  { %23997 = vst [vmem:[#allocation46_spill] sm:$0xff] %v18554_v52  ;;  %23999 = vst [vmem:[#allocation74_spill] sm:$0xff] %v18559_v47  ;;  %v5317_v52 = vcombine.high %v24005_v39, %v24004_v51  ;;  %v18586_v51 = vrot.slane %v11354_v18, %v13617_v1  ;;  %v24011_v39 = vld [vmem:[#allocation14_spill] sm:$0xff]  ;;  %v18623_v7 = vrot.slane %v24020_v45, %v14031_v8  ;;  %v24024_v45 = vld [vmem:[#allocation99_spill] sm:$0xff] }
 0x7c3   :  { %24002 = vst [vmem:[#allocation55_spill] sm:$0xff] %v18566_v25  ;;  %9053 = vrot.lane.b32.xlu0 %v23973_v10, %s13468_s0  ;;  %v10146_v47 = vcombine.high %v24012_v30, %v24011_v39  ;;  %v24023_v25 = vld [vmem:[#allocation94_spill] sm:$0xff] }
 0x7c4   :  { %9049 = vrot.lane.b32.xlu1 %v23978_v28, %s13468_s0  ;;  %24009 = vst [vmem:[#allocation21_spill] sm:$0xff] %v18586_v51  ;;  %v5331_v17 = vrot.slane %v5317_v52, %v13617_v1  ;;  %24021 = vst [vmem:[#allocation72_spill] sm:$0xff] %v18623_v7  ;;  %v5381_v51 = vcombine.high %v24024_v45, %v24023_v25  ;;  %v24027_v52 = vld [vmem:[#allocation199_spill] sm:$0xff] }
 0x7c5   :  { %v18596_v19 = vpop.permute.xlu0 %5004  ;;  %v18602_v11 = vpop.permute.xlu1 %5006  ;;  %v18634_v18 = vrot.slane %v10146_v47, %v13617_v1  ;;  %v24028_v59 = vcombine.low %v24026_v36, %v24027_v52  ;;  %v24032_v47 = vld [vmem:[#allocation101_spill] sm:$0xff] }
 0x7c6   :  { %24015 = vst [vmem:[#allocation68_spill] sm:$0xff] %v18596_v19  ;;  %24016 = vst [vmem:[#allocation14_spill] sm:$0xff] %v18602_v11  ;;  %v10130_v19 = vcombine.high %v24019_v27, %v24018_v44  ;;  %v6555_v11 = vrot.slane %v6541_v12, %v13617_v1  ;;  %v5396_v42 = vcombine.low %v5331_v17, %v5347_v29 }
 0x7c7   :  { %9061 = vrot.lane.b32.xlu0 %v23972_v48, %s13468_s0  ;;  %24022 = vst [vmem:[#allocation24_spill] sm:$0xff] %v18634_v18  ;;  %v18645_v22 = vrot.slane %v24028_v59, %v14031_v8  ;;  %v5397_v6 = vcombine.high %v5331_v17, %v5347_v29  ;;  %v5365_v43 = vcombine.high %v24033_v50, %v24032_v47  ;;  %v24037_v17 = vld [vmem:[#allocation90_spill] sm:$0xff]  ;;  %v24038_v29 = vld [vmem:[#allocation76_spill] sm:$0xff] }
 0x7c8   :  { %9057 = vrot.lane.b32.xlu1 %v23977_v32, %s13468_s0  ;;  %v18654_v25 = vrot.slane %v10130_v19, %v13617_v1  ;;  %v6620_v45 = vcombine.low %v6555_v11, %v6571_v26  ;;  %v5349_v20 = vcombine.high %v24038_v29, %v24037_v17  ;;  %v18677_v58 = vrot.slane %v5381_v51, %v14031_v8  ;;  %v24045_v19 = vld [vmem:[#allocation69_spill] sm:$0xff] }
 0x7c9   :  { %v18639_v23 = vpop.permute.xlu0 %5008  ;;  %24029 = vst [vmem:[#allocation94_spill] sm:$0xff] %v18645_v22  ;;  %v18651_v12 = vpop.permute.xlu1 %5010  ;;  %v18680_v17 = vrot.slane %v5396_v42, %v14031_v8  ;;  %v18697_v51 = vrot.slane %v6605_v41, %v14031_v8  ;;  %v18700_v42 = vrot.slane %v5397_v6, %v14031_v8  ;;  %v24051_v41 = vld [vmem:[#allocation103_spill] sm:$0xff] }
 0x7ca   :  { %24025 = vst [vmem:[#allocation37_spill] sm:$0xff] %v18639_v23  ;;  %24034 = vst [vmem:[#allocation99_spill] sm:$0xff] %v18651_v12  ;;  %v6621_v23 = vcombine.high %v6555_v11, %v6571_v26  ;;  %v24040_v11 = vld [vmem:[#allocation43_spill] sm:$0xff] }
 0x7cb   :  { %24035 = vst [vmem:[#allocation205_spill] sm:$0xff] %v18654_v25  ;;  %9085 = vrot.lane.b32.xlu0 %v23969_v57, %s13470_s28  ;;  %v24039_v57 = vld [vmem:[#allocation73_spill] sm:$0xff] }
 0x7cc   :  { %9081 = vrot.lane.b32.xlu1 %v23976_v55, %s13470_s28  ;;  %v24041_v50 = vcombine.low %v24039_v57, %v24040_v11  ;;  %v24044_v55 = vld [vmem:[#allocation48_spill] sm:$0xff]  ;;  %v24048_v57 = vcombine.high %v18295_v61, %v18304_v33  ;;  %v18712_v61 = vrot.slane %v6620_v45, %v14031_v8  ;;  %v18715_v33 = vrot.slane %v6621_v23, %v14031_v8  ;;  %v24054_v45 = vld [vmem:[#allocation206_spill] sm:$0xff] }
 0x7cd   :  { %v18682_v29 = vpop.permute.xlu0 %5084  ;;  %v24046_v49 = vcombine.low %v24044_v55, %v24045_v19  ;;  %v18703_v26 = vpop.permute.xlu1 %5086  ;;  %v24052_v55 = vld [vmem:[#allocation87_spill] sm:$0xff] }
 0x7ce   :  { %v18674_v47 = vrot.slane %v24041_v50, %v14031_v8  ;;  %24043 = vst [vmem:[#allocation100_spill] sm:$0xff] %v18682_v29  ;;  %v18694_v11 = vrot.slane %v24048_v57, %v14031_v8  ;;  %v5379_v50 = vrot.slane %v5365_v43, %v13617_v1  ;;  %24049 = vst [vmem:[#allocation101_spill] sm:$0xff] %v18703_v26  ;;  %v24060_v29 = vld [vmem:[#allocation107_spill] sm:$0xff] }
 0x7cf   :  { %v18688_v12 = vrot.slane %v24046_v49, %v14031_v8  ;;  %v24050_v49 = vcombine.low %v18301_v14, %v18307_v5  ;;  %v6589_v6 = vcombine.high %v24052_v55, %v24051_v41  ;;  %9093 = vrot.lane.b32.xlu0 %v23968_v35, %s13470_s28  ;;  %v24053_v43 = vcombine.high %v24026_v36, %v24027_v52  ;;  %v24055_v41 = vld [vmem:[#allocation200_spill] sm:$0xff]  ;;  %v24058_v52 = vld [vmem:[#allocation91_spill] sm:$0xff] }
 0x7d0   :  { %24042 = vst [vmem:[#allocation199_spill] sm:$0xff] %v18674_v47  ;;  %9089 = vrot.lane.b32.xlu1 %v23975_v38, %s13470_s28  ;;  %v24056_v55 = vcombine.low %v24054_v45, %v24055_v41  ;;  %v24057_v36 = vcombine.high %v18301_v14, %v18307_v5  ;;  %v24061_v38 = vld [vmem:[#allocation106_spill] sm:$0xff]  ;;  %v24064_v14 = vcombine.high %v24054_v45, %v24055_v41  ;;  %v24068_v45 = vld [vmem:[#allocation79_spill] sm:$0xff] }
 0x7d1   :  { %24047 = vst [vmem:[#allocation102_spill] sm:$0xff] %v18688_v12  ;;  %v18709_v19 = vrot.slane %v24050_v49, %v14031_v8  ;;  %v18725_v57 = vrot.slane %v24053_v43, %v14031_v8  ;;  %v5363_v49 = vrot.slane %v5349_v20, %v13617_v1  ;;  %v5309_v23 = vcombine.high %v18688_v12, %v18674_v47  ;;  %v24059_v20 = vld [vmem:[#allocation77_spill] sm:$0xff]  ;;  %v18748_v25 = vpop.permute.xlu0 %5088  ;;  %v18754_v12 = vpop.permute.xlu1 %5090 }
 0x7d2   :  { %v18736_v26 = vrot.slane %v24056_v55, %v14031_v8  ;;  %v18742_v35 = vrot.slane %v24057_v36, %v14031_v8  ;;  %v6573_v43 = vcombine.high %v24059_v20, %v24058_v52  ;;  %v5413_v18 = vcombine.high %v24061_v38, %v24060_v29  ;;  %24062 = vst [vmem:[#allocation86_spill] sm:$0xff] %v18748_v25  ;;  %v24067_v55 = vld [vmem:[#allocation85_spill] sm:$0xff] }
 0x7d3   :  { %v5428_v59 = vcombine.low %v5363_v49, %v5379_v50  ;;  %24063 = vst [vmem:[#allocation90_spill] sm:$0xff] %v18754_v12  ;;  %v18762_v36 = vrot.slane %v24064_v14, %v14031_v8  ;;  %v24065_v29 = vcombine.low %v18322_v37, %v18325_v60  ;;  %v6603_v20 = vrot.slane %v6589_v6, %v13617_v1  ;;  %v24072_v6 = vld [vmem:[#allocation208_spill] sm:$0xff] }
 0x7d4   :  { %v5429_v38 = vcombine.high %v5363_v49, %v5379_v50  ;;  %9101 = vrot.lane.b32.xlu0 %v23973_v10, %s13470_s28  ;;  %v24069_v41 = vcombine.low %v24067_v55, %v24068_v45  ;;  %9097 = vrot.lane.b32.xlu1 %v23978_v28, %s13470_s28  ;;  %v24071_v10 = vld [vmem:[#allocation207_spill] sm:$0xff]  ;;  %v24075_v55 = vcombine.high %v18322_v37, %v18325_v60  ;;  %v24078_v50 = vld [vmem:[#allocation82_spill] sm:$0xff]  ;;  %v24084_v37 = vld [vmem:[#allocation109_spill] sm:$0xff] }
 0x7d5   :  { %v18768_v52 = vrot.slane %v24065_v29, %v14031_v8  ;;  %v24073_v49 = vcombine.low %v24071_v10, %v24072_v6  ;;  %v6587_v28 = vrot.slane %v6573_v43, %v13617_v1  ;;  %v18801_v29 = vpop.permute.xlu0 %5092  ;;  %v24080_v12 = vcombine.low %v24078_v50, %v24079_v34  ;;  %v24085_v60 = vld [vmem:[#allocation108_spill] sm:$0xff] }
 0x7d6   :  { %v18779_v14 = vrot.slane %v24069_v41, %v14031_v8  ;;  %v18797_v45 = vrot.slane %v24075_v55, %v14031_v8  ;;  %v5427_v41 = vrot.slane %v5413_v18, %v14031_v8  ;;  %24077 = vst [vmem:[#allocation69_spill] sm:$0xff] %v18801_v29  ;;  %v6637_v55 = vcombine.high %v24085_v60, %v24084_v37  ;;  %v18818_v18 = vpop.permute.xlu1 %5094  ;;  %v24089_v37 = vld [vmem:[#allocation210_spill] sm:$0xff]  ;;  %v24090_v60 = vld [vmem:[#allocation211_spill] sm:$0xff] }
 0x7d7   :  { %24066 = vst [vmem:[#allocation76_spill] sm:$0xff] %v18768_v52  ;;  %v18791_v5 = vrot.slane %v24073_v49, %v14031_v8  ;;  %v18807_v25 = vrot.slane %v24080_v12, %v14031_v8  ;;  %v24082_v49 = vcombine.low %v18335_v46, %v18328_v40  ;;  %v5436_v43 = vrot.slane %v5428_v59, %v14031_v8  ;;  %v24106_v46 = vld [vmem:[#allocation115_spill] sm:$0xff] }
 0x7d8   :  { %24070 = vst [vmem:[#allocation73_spill] sm:$0xff] %v18779_v14  ;;  %24076 = vst [vmem:[#allocation48_spill] sm:$0xff] %v18797_v45  ;;  %v24087_v34 = vcombine.high %v24071_v10, %v24072_v6  ;;  %v6652_v50 = vcombine.low %v6587_v28, %v6603_v20  ;;  %9109 = vrot.lane.b32.xlu0 %v23972_v48, %s13470_s28  ;;  %v6653_v40 = vcombine.high %v6587_v28, %v6603_v20  ;;  %v24093_v10 = vld [vmem:[#allocation113_spill] sm:$0xff]  ;;  %v24094_v6 = vld [vmem:[#allocation112_spill] sm:$0xff] }
 0x7d9   :  { %24074 = vst [vmem:[#allocation43_spill] sm:$0xff] %v18791_v5  ;;  %24081 = vst [vmem:[#allocation103_spill] sm:$0xff] %v18807_v25  ;;  %v18813_v47 = vrot.slane %v24082_v49, %v14031_v8  ;;  %v5443_v49 = vrot.slane %v5429_v38, %v14031_v8  ;;  %v6533_v59 = vcombine.high %v18807_v25, %v18779_v14  ;;  %9105 = vrot.lane.b32.xlu1 %v23977_v32, %s13470_s28  ;;  %v18847_v25 = vpop.permute.xlu0 %5096  ;;  %v24100_v32 = vld [vmem:[#allocation93_spill] sm:$0xff] }
 0x7da   :  { %24086 = vst [vmem:[#allocation206_spill] sm:$0xff] %v18818_v18  ;;  %v18826_v12 = vrot.slane %v24087_v34, %v14031_v8  ;;  %v24091_v18 = vcombine.low %v24089_v37, %v24090_v60  ;;  %v5445_v34 = vcombine.high %v24094_v6, %v24093_v10  ;;  %24095 = vst [vmem:[#allocation77_spill] sm:$0xff] %v18847_v25  ;;  %v24096_v10 = vld [vmem:[#allocation32_spill] sm:$0xff]  ;;  %v18858_v60 = vpop.permute.xlu1 %5098  ;;  %v24114_v45 = vld [vmem:[#allocation81_spill] sm:$0xff] }
 0x7db   :  { %24083 = vst [vmem:[#allocation87_spill] sm:$0xff] %v18813_v47  ;;  %v5446_v14 = vcombine.low %v18677_v58, %v5427_v41  ;;  %v6651_v28 = vrot.slane %v6637_v55, %v14031_v8  ;;  %v24097_v6 = vld [vmem:[#allocation116_spill] sm:$0xff]  ;;  %24098 = vst [vmem:[#allocation107_spill] sm:$0xff] %v18858_v60  ;;  %v5448_v48 = vcombine.low %v18680_v17, %v5436_v43  ;;  %v24103_v60 = vld [vmem:[#allocation59_spill] sm:$0xff] }
 0x7dc   :  { %24088 = vst [vmem:[#allocation200_spill] sm:$0xff] %v18826_v12  ;;  %v18837_v29 = vrot.slane %v24091_v18, %v14031_v8  ;;  %v5447_v18 = vcombine.high %v18677_v58, %v5427_v41  ;;  %v5469_v38 = vcombine.high %v24097_v6, %v24096_v10  ;;  %v5449_v25 = vcombine.high %v18680_v17, %v5436_v43  ;;  %v24099_v55 = vld [vmem:[#allocation92_spill] sm:$0xff]  ;;  %v24104_v17 = vld [vmem:[#allocation110_spill] sm:$0xff]  ;;  %v24109_v47 = vld [vmem:[#allocation117_spill] sm:$0xff] }
 0x7dd   :  { %v6660_v37 = vrot.slane %v6652_v50, %v14031_v8  ;;  %9191 = vrot.lane.b32.xlu0 %v23982_v16, %s13468_s0  ;;  %v5450_v58 = vcombine.low %v18700_v42, %v5443_v49  ;;  %v5451_v41 = vcombine.high %v18700_v42, %v5443_v49  ;;  %v24101_v20 = vcombine.low %v24099_v55, %v24100_v32  ;;  %v24107_v16 = vld [vmem:[#allocation114_spill] sm:$0xff]  ;;  %v18888_v44 = vpop.permute.xlu0 %5100 }
 0x7de   :  { %24092 = vst [vmem:[#allocation91_spill] sm:$0xff] %v18837_v29  ;;  %v18874_v6 = vrot.slane %v6653_v40, %v14031_v8  ;;  %v5453_v43 = vcombine.high %v24104_v17, %v24103_v60  ;;  %9187 = vrot.lane.b32.xlu1 %v23928_v31, %s13468_s0  ;;  %v18880_v50 = vpack.i.bf16 %v5445_v34, %v5309_v23  ;;  %v24108_v49 = vld [vmem:[#allocation118_spill] sm:$0xff]  ;;  %24112 = vst [vmem:[#allocation79_spill] sm:$0xff] %v18888_v44  ;;  %v24113_v40 = vld [vmem:[#allocation80_spill] sm:$0xff] }
 0x7df   :  { %v18871_v10 = vrot.slane %v24101_v20, %v14031_v8  ;;  %v6669_v42 = vcombine.high %v24107_v16, %v24106_v46  ;;  %v6693_v29 = vcombine.high %v24109_v47, %v24108_v49  ;;  %v24110_v32 = vld [vmem:[#allocation134_spill] sm:$0xff]  ;;  %v24111_v20 = vld [vmem:[#allocation120_spill] sm:$0xff]  ;;  %v24115_v12 = vcombine.low %v24113_v40, %v24114_v45  ;;  %v18901_v46 = vpop.permute.xlu1 %5102  ;;  %v24120_v47 = vld [vmem:[#allocation83_spill] sm:$0xff] }
 0x7e0   :  { %24105 = vst [vmem:[#allocation85_spill] sm:$0xff] %v18880_v50  ;;  %v5501_v55 = vcombine.high %v24111_v20, %v24110_v32  ;;  %v24117_v23 = vcombine.high %v24113_v40, %v24114_v45  ;;  %v5483_v17 = vrot.slane %v5469_v38, %v13617_v1  ;;  %24119 = vst [vmem:[#allocation82_spill] sm:$0xff] %v18901_v46  ;;  %v24121_v49 = vld [vmem:[#allocation84_spill] sm:$0xff]  ;;  %v24127_v45 = vld [vmem:[#allocation111_spill] sm:$0xff] }
 0x7e1   :  { %24102 = vst [vmem:[#allocation106_spill] sm:$0xff] %v18871_v10  ;;  %v18893_v60 = vpack.i.bf16 %v5446_v14, %v24115_v12  ;;  %v24122_v16 = vcombine.low %v24120_v47, %v24121_v49  ;;  %v24124_v20 = vcombine.high %v24120_v47, %v24121_v49  ;;  %v6670_v14 = vcombine.low %v18697_v51, %v6651_v28  ;;  %v24126_v12 = vld [vmem:[#allocation25_spill] sm:$0xff]  ;;  %v24128_v40 = vld [vmem:[#allocation126_spill] sm:$0xff]  ;;  %v24130_v46 = vld [vmem:[#allocation88_spill] sm:$0xff] }
 0x7e2   :  { %v18898_v34 = vpack.i.bf16 %v5447_v18, %v24117_v23  ;;  %v6677_v18 = vcombine.high %v24127_v45, %v24126_v12  ;;  %v24129_v23 = vld [vmem:[#allocation20_spill] sm:$0xff]  ;;  %9199 = vrot.lane.b32.xlu0 %v23921_v63, %s13468_s0  ;;  %v5467_v49 = vrot.slane %v5453_v43, %v13617_v1  ;;  %9195 = vrot.lane.b32.xlu1 %v18185_v24, %s13468_s0  ;;  %v24191_v50 = vld [vmem:[#allocation121_spill] sm:$0xff] }
 0x7e3   :  { %24116 = vst [vmem:[#allocation207_spill] sm:$0xff] %v18893_v60  ;;  %v18906_v32 = vpack.i.bf16 %v5448_v48, %v24122_v16  ;;  %v18911_v44 = vpack.i.bf16 %v5449_v25, %v24124_v20  ;;  %v5485_v38 = vcombine.high %v24129_v23, %v24128_v40  ;;  %v18933_v20 = vpack.i.bf16 %v6669_v42, %v6533_v59  ;;  %v18939_v23 = vpop.permute.xlu0 %5104  ;;  %v24139_v43 = vld [vmem:[#allocation96_spill] sm:$0xff]  ;;  %v24142_v59 = vld [vmem:[#allocation130_spill] sm:$0xff]  ;;  %v24143_v42 = vld [vmem:[#allocation135_spill] sm:$0xff] }
 0x7e4   :  { %24118 = vst [vmem:[#allocation208_spill] sm:$0xff] %v18898_v34  ;;  %v24131_v34 = vld [vmem:[#allocation89_spill] sm:$0xff]  ;;  %v6671_v12 = vcombine.high %v18697_v51, %v6651_v28  ;;  %v6672_v45 = vcombine.low %v18712_v61, %v6660_v37  ;;  %v6707_v40 = vrot.slane %v6693_v29, %v13617_v1  ;;  %24137 = vst [vmem:[#allocation92_spill] sm:$0xff] %v18939_v23  ;;  %v24144_v28 = vld [vmem:[#allocation136_spill] sm:$0xff]  ;;  %v18952_v29 = vpop.permute.xlu1 %5106 }
 0x7e5   :  { %24123 = vst [vmem:[#allocation78_spill] sm:$0xff] %v18906_v32  ;;  %24125 = vst [vmem:[#allocation109_spill] sm:$0xff] %v18911_v44  ;;  %v24132_v16 = vcombine.low %v24130_v46, %v24131_v34  ;;  %v24134_v25 = vcombine.high %v24130_v46, %v24131_v34  ;;  %v6673_v46 = vcombine.high %v18712_v61, %v6660_v37  ;;  %v24151_v37 = vld [vmem:[#allocation133_spill] sm:$0xff] }
 0x7e6   :  { %24136 = vst [vmem:[#allocation116_spill] sm:$0xff] %v18933_v20  ;;  %v5532_v51 = vcombine.low %v5467_v49, %v5483_v17  ;;  %v24145_v20 = vld [vmem:[#allocation122_spill] sm:$0xff]  ;;  %24146 = vst [vmem:[#allocation59_spill] sm:$0xff] %v18952_v29  ;;  %v6691_v61 = vrot.slane %v6677_v18, %v13617_v1  ;;  %v5499_v32 = vrot.slane %v5485_v38, %v13617_v1  ;;  %9207 = vrot.lane.b32.xlu0 %v23986_v9, %s13468_s0 }
 0x7e7   :  { %v18923_v48 = vpack.i.bf16 %v5450_v58, %v24132_v16  ;;  %v18928_v47 = vpack.i.bf16 %v5451_v41, %v24134_v25  ;;  %v5515_v58 = vrot.slane %v5501_v55, %v13617_v1  ;;  %v24138_v41 = vld [vmem:[#allocation95_spill] sm:$0xff]  ;;  %v5517_v25 = vcombine.high %v24143_v42, %v24142_v59  ;;  %v24147_v55 = vld [vmem:[#allocation97_spill] sm:$0xff]  ;;  %v24156_v29 = vld [vmem:[#allocation138_spill] sm:$0xff]  ;;  %9203 = vrot.lane.b32.xlu1 %v23992_v62, %s13468_s0 }
 0x7e8   :  { %v24140_v34 = vcombine.low %v24138_v41, %v24139_v43  ;;  %v24152_v41 = vld [vmem:[#allocation137_spill] sm:$0xff] }
 0x7e9   :  { %24133 = vst [vmem:[#allocation108_spill] sm:$0xff] %v18923_v48  ;;  %24135 = vst [vmem:[#allocation32_spill] sm:$0xff] %v18928_v47  ;;  %v6725_v47 = vcombine.high %v24145_v20, %v24144_v28  ;;  %v24148_v48 = vld [vmem:[#allocation98_spill] sm:$0xff]  ;;  %v6741_v43 = vcombine.high %v24152_v41, %v24151_v37  ;;  %v24153_v59 = vld [vmem:[#allocation129_spill] sm:$0xff]  ;;  %v6756_v37 = vcombine.low %v6691_v61, %v6707_v40 }
 0x7ea   :  { %v18946_v16 = vrot.slane %v24140_v34, %v14031_v8  ;;  %v24149_v23 = vcombine.low %v24147_v55, %v24148_v48  ;;  %v5533_v34 = vcombine.high %v5467_v49, %v5483_v17  ;;  %v24154_v20 = vld [vmem:[#allocation45_spill] sm:$0xff]  ;;  %v24155_v28 = vld [vmem:[#allocation139_spill] sm:$0xff]  ;;  %v24159_v17 = vld [vmem:[#allocation104_spill] sm:$0xff]  ;;  %v5564_v41 = vcombine.low %v5499_v32, %v5515_v58  ;;  %9215 = vrot.lane.b32.xlu0 %v23985_v2, %s13468_s0 }
 0x7eb   :  { %v6709_v42 = vcombine.high %v24154_v20, %v24153_v59  ;;  %v5549_v60 = vcombine.high %v24156_v29, %v24155_v28  ;;  %v24160_v49 = vld [vmem:[#allocation105_spill] sm:$0xff]  ;;  %v18995_v28 = vpop.permute.xlu1 %5110  ;;  %v24173_v20 = vld [vmem:[#allocation148_spill] sm:$0xff]  ;;  %9211 = vrot.lane.b32.xlu1 %v23991_v13, %s13468_s0 }
 0x7ec   :  { %24141 = vst [vmem:[#allocation93_spill] sm:$0xff] %v18946_v16  ;;  %v18957_v44 = vpack.i.bf16 %v6670_v14, %v24149_v23  ;;  %v24157_v14 = vcombine.high %v24147_v55, %v24148_v48  ;;  %v24161_v38 = vcombine.low %v24159_v17, %v24160_v49  ;;  %v24164_v29 = vcombine.high %v24159_v17, %v24160_v49 }
 0x7ed   :  { %v6757_v48 = vcombine.high %v6691_v61, %v6707_v40  ;;  %v18992_v55 = vrot.slane %v5532_v51, %v14031_v8  ;;  %24166 = vst [vmem:[#allocation80_spill] sm:$0xff] %v18995_v28  ;;  %v19001_v17 = vrot.slane %v5533_v34, %v14031_v8  ;;  %v24167_v40 = vld [vmem:[#allocation119_spill] sm:$0xff]  ;;  %v5563_v49 = vrot.slane %v5549_v60, %v14031_v8  ;;  %v24174_v34 = vld [vmem:[#allocation142_spill] sm:$0xff] }
 0x7ee   :  { %24150 = vst [vmem:[#allocation110_spill] sm:$0xff] %v18957_v44  ;;  %v18974_v18 = vpack.i.bf16 %v6671_v12, %v24157_v14  ;;  %v18979_v23 = vpack.i.bf16 %v6672_v45, %v24161_v38  ;;  %v18981_v44 = vpop.permute.xlu0 %5108  ;;  %v18986_v59 = vpack.i.bf16 %v6673_v46, %v24164_v29  ;;  %v5531_v12 = vrot.slane %v5517_v25, %v14031_v8  ;;  %v24168_v25 = vld [vmem:[#allocation23_spill] sm:$0xff]  ;;  %v24171_v38 = vld [vmem:[#allocation149_spill] sm:$0xff] }
 0x7ef   :  { %24163 = vst [vmem:[#allocation134_spill] sm:$0xff] %v18981_v44  ;;  %v6739_v45 = vrot.slane %v6725_v47, %v13617_v1  ;;  %v18998_v14 = vrot.slane %v6741_v43, %v14031_v8  ;;  %v5565_v46 = vcombine.high %v5499_v32, %v5515_v58  ;;  %v24169_v61 = vcombine.low %v24167_v40, %v24168_v25  ;;  %v24172_v43 = vld [vmem:[#allocation143_spill] sm:$0xff]  ;;  %v24177_v25 = vld [vmem:[#allocation30_spill] sm:$0xff]  ;;  %v24184_v44 = vld [vmem:[#allocation140_spill] sm:$0xff] }
 0x7f0   :  { %24158 = vst [vmem:[#allocation118_spill] sm:$0xff] %v18974_v18  ;;  %24162 = vst [vmem:[#allocation117_spill] sm:$0xff] %v18979_v23  ;;  %v6723_v47 = vrot.slane %v6709_v42, %v13617_v1  ;;  %v10642_v29 = vcombine.high %v24172_v43, %v24171_v38  ;;  %v10658_v28 = vcombine.high %v24174_v34, %v24173_v20  ;;  %v24176_v42 = vld [vmem:[#allocation49_spill] sm:$0xff]  ;;  %v19044_v23 = vpop.permute.xlu1 %5114  ;;  %9189 = vrot.lane.b32.xlu0 %v23994_v53, %s13468_s0  ;;  %v24195_v53 = vld [vmem:[#allocation155_spill] sm:$0xff] }
 0x7f1   :  { %24165 = vst [vmem:[#allocation120_spill] sm:$0xff] %v18986_v59  ;;  %v19009_v51 = vrot.slane %v24169_v61, %v14031_v8  ;;  %v5572_v32 = vrot.slane %v5564_v41, %v14031_v8  ;;  %v6674_v40 = vcombine.low %v18715_v33, %v18874_v6  ;;  %v24178_v60 = vcombine.low %v24176_v42, %v24177_v25  ;;  %v24183_v34 = vld [vmem:[#allocation141_spill] sm:$0xff] }
 0x7f2   :  { %v19020_v58 = vpop.permute.xlu0 %5112  ;;  %v24180_v20 = vcombine.low %v18497_v3, %v18475_v56  ;;  %v19037_v43 = vrot.slane %v6756_v37, %v14031_v8  ;;  %v19040_v41 = vrot.slane %v6757_v48, %v14031_v8  ;;  %v6788_v59 = vcombine.low %v6723_v47, %v6739_v45  ;;  %24185 = vst [vmem:[#allocation126_spill] sm:$0xff] %v19044_v23 }
 0x7f3   :  { %24170 = vst [vmem:[#allocation81_spill] sm:$0xff] %v19009_v51  ;;  %24175 = vst [vmem:[#allocation83_spill] sm:$0xff] %v19020_v58  ;;  %v19028_v61 = vrot.slane %v24178_v60, %v14031_v8  ;;  %v6773_v58 = vcombine.high %v24184_v44, %v24183_v34  ;;  %v6789_v42 = vcombine.high %v6723_v47, %v6739_v45  ;;  %9185 = vrot.lane.b32.xlu1 %v24003_v21, %s13468_s0  ;;  %v24188_v45 = vld [vmem:[#allocation145_spill] sm:$0xff]  ;;  %v24192_v51 = vld [vmem:[#allocation123_spill] sm:$0xff] }
 0x7f4   :  { %v19034_v38 = vrot.slane %v24180_v20, %v14031_v8  ;;  %24182 = vst [vmem:[#allocation111_spill] sm:$0xff] %v19040_v41  ;;  %v5579_v25 = vrot.slane %v5565_v46, %v14031_v8  ;;  %v24186_v37 = vcombine.low %v18461_v15, %v18441_v54  ;;  %v10656_v44 = vrot.slane %v10642_v29, %v13617_v1  ;;  %v24189_v46 = vld [vmem:[#allocation144_spill] sm:$0xff]  ;;  %v24197_v41 = vld [vmem:[#allocation154_spill] sm:$0xff] }
 0x7f5   :  { %24179 = vst [vmem:[#allocation84_spill] sm:$0xff] %v19028_v61  ;;  %v10672_v20 = vrot.slane %v10658_v28, %v13617_v1  ;;  %v5581_v47 = vcombine.high %v24189_v46, %v24188_v45  ;;  %v5582_v34 = vcombine.low %v5531_v12, %v5563_v49  ;;  %v5583_v60 = vcombine.high %v5531_v12, %v5563_v49  ;;  %v24196_v45 = vld [vmem:[#allocation151_spill] sm:$0xff]  ;;  %v19079_v49 = vpop.permute.xlu1 %5134  ;;  %v24201_v28 = vld [vmem:[#allocation152_spill] sm:$0xff] }
 0x7f6   :  { %24181 = vst [vmem:[#allocation25_spill] sm:$0xff] %v19034_v38  ;;  %v19055_v48 = vrot.slane %v24186_v37, %v14031_v8  ;;  %v19063_v23 = vpop.permute.xlu0 %5132  ;;  %v5584_v18 = vcombine.low %v18992_v55, %v5572_v32  ;;  %v24193_v37 = vcombine.low %v24191_v50, %v24192_v51  ;;  %v6787_v29 = vrot.slane %v6773_v58, %v14031_v8 }
 0x7f7   :  { %24190 = vst [vmem:[#allocation88_spill] sm:$0xff] %v19063_v23  ;;  %v6796_v21 = vrot.slane %v6788_v59, %v14031_v8  ;;  %v10674_v46 = vcombine.high %v24196_v45, %v24195_v53  ;;  %v24198_v23 = vld [vmem:[#allocation150_spill] sm:$0xff]  ;;  %24199 = vst [vmem:[#allocation95_spill] sm:$0xff] %v19079_v49  ;;  %v19082_v13 = vrot.slane %v6789_v42, %v14031_v8  ;;  %9197 = vrot.lane.b32.xlu0 %v23993_v4, %s13468_s0 }
 0x7f8   :  { %24187 = vst [vmem:[#allocation20_spill] sm:$0xff] %v19055_v48  ;;  %v19069_v61 = vpack.i.bf16 %v6674_v40, %v24193_v37  ;;  %v10690_v12 = vcombine.high %v24198_v23, %v24197_v41  ;;  %v5585_v40 = vcombine.high %v18992_v55, %v5572_v32  ;;  %v5586_v58 = vcombine.low %v19001_v17, %v5579_v25  ;;  %v24200_v37 = vld [vmem:[#allocation153_spill] sm:$0xff] }
 0x7f9   :  { %v5587_v59 = vcombine.high %v19001_v17, %v5579_v25  ;;  %v10706_v53 = vcombine.high %v24201_v28, %v24200_v37  ;;  %v10721_v45 = vcombine.low %v10656_v44, %v10672_v20  ;;  %9193 = vrot.lane.b32.xlu1 %v18201_v0, %s13468_s0  ;;  %v24202_v23 = vcombine.high %v18645_v22, %v18623_v7  ;;  %v24331_v7 = vld [vmem:[#allocation131_spill] sm:$0xff]  ;;  %v24332_v22 = vld [vmem:[#allocation132_spill] sm:$0xff] }
 0x7fa   :  { %24194 = vst [vmem:[#allocation89_spill] sm:$0xff] %v19069_v61  ;;  %v24203_v42 = vcombine.low %v18725_v57, %v18694_v11  ;;  %v10722_v32 = vcombine.high %v10656_v44, %v10672_v20  ;;  %v19103_v61 = vpop.permute.xlu0 %5136  ;;  %v24206_v17 = vcombine.high %v18725_v57, %v18694_v11  ;;  %v24207_v28 = vcombine.low %v18736_v26, %v18709_v19  ;;  %v24210_v44 = vld [vmem:[#allocation161_spill] sm:$0xff]  ;;  %v19123_v57 = vpop.permute.xlu1 %5138 }
 0x7fb   :  { %v19096_v41 = vpack.i.bf16 %v24202_v23, %v5581_v47  ;;  %24205 = vst [vmem:[#allocation130_spill] sm:$0xff] %v19103_v61  ;;  %v24208_v47 = vld [vmem:[#allocation147_spill] sm:$0xff]  ;;  %v24209_v23 = vld [vmem:[#allocation146_spill] sm:$0xff]  ;;  %v10688_v38 = vrot.slane %v10674_v46, %v13617_v1  ;;  %v24211_v20 = vld [vmem:[#allocation157_spill] sm:$0xff]  ;;  %9205 = vrot.lane.b32.xlu0 %v24012_v30, %s13468_s0  ;;  %v24217_v46 = vcombine.low %v18762_v36, %v18742_v35 }
 0x7fc   :  { %v19101_v55 = vpack.i.bf16 %v24203_v42, %v5582_v34  ;;  %v19108_v25 = vpack.i.bf16 %v24206_v17, %v5583_v60  ;;  %v19113_v37 = vpack.i.bf16 %v24207_v28, %v5584_v18  ;;  %v6805_v48 = vcombine.high %v24209_v23, %v24208_v47  ;;  %v24212_v61 = vld [vmem:[#allocation160_spill] sm:$0xff]  ;;  %24214 = vst [vmem:[#allocation135_spill] sm:$0xff] %v19123_v57  ;;  %v24228_v47 = vld [vmem:[#allocation31_spill] sm:$0xff]  ;;  %v24230_v23 = vld [vmem:[#allocation41_spill] sm:$0xff] }
 0x7fd   :  { %v10704_v34 = vrot.slane %v10690_v12, %v13617_v1  ;;  %v9418_v42 = vcombine.high %v24211_v20, %v24210_v44  ;;  %v24215_v18 = vcombine.high %v18736_v26, %v18709_v19  ;;  %v19135_v12 = vpack.i.bf16 %v24217_v46, %v5586_v58  ;;  %9201 = vrot.lane.b32.xlu1 %v24019_v27, %s13468_s0 }
 0x7fe   :  { %24204 = vst [vmem:[#allocation96_spill] sm:$0xff] %v19101_v55  ;;  %v24213_v55 = vld [vmem:[#allocation156_spill] sm:$0xff]  ;;  %v24219_v17 = vcombine.high %v18762_v36, %v18742_v35  ;;  %v19147_v44 = vrot.slane %v10721_v45, %v14031_v8  ;;  %v6807_v26 = vcombine.high %v18998_v14, %v6787_v29  ;;  %v6808_v19 = vcombine.low %v19037_v43, %v6796_v21  ;;  %v24221_v35 = vld [vmem:[#allocation29_spill] sm:$0xff] }
 0x7ff   :  { %v9434_v11 = vcombine.high %v24213_v55, %v24212_v61  ;;  %v19130_v60 = vpack.i.bf16 %v24215_v18, %v5585_v40  ;;  %24218 = vst [vmem:[#allocation122_spill] sm:$0xff] %v19135_v12  ;;  %v6806_v61 = vcombine.low %v18998_v14, %v6787_v29  ;;  %v19144_v55 = vrot.slane %v10706_v53, %v14031_v8  ;;  %v24222_v36 = vld [vmem:[#allocation28_spill] sm:$0xff]  ;;  %v24305_v12 = vld [vmem:[#allocation58_spill] sm:$0xff] }
 0x800   :  { %v19140_v28 = vpack.i.bf16 %v24219_v17, %v5587_v59  ;;  %v19154_v40 = vrot.slane %v10722_v32, %v14031_v8  ;;  %v10738_v58 = vcombine.high %v24222_v36, %v24221_v35  ;;  %v19158_v59 = vpop.permute.xlu0 %5140  ;;  %v24224_v53 = vcombine.high %v18791_v5, %v18768_v52  ;;  %v19168_v32 = vpop.permute.xlu1 %5142  ;;  %v24227_v17 = vld [vmem:[#allocation167_spill] sm:$0xff]  ;;  %v24229_v36 = vld [vmem:[#allocation165_spill] sm:$0xff]  ;;  %9213 = vrot.lane.b32.xlu0 %v24011_v39, %s13468_s0 }
 0x801   :  { %24216 = vst [vmem:[#allocation136_spill] sm:$0xff] %v19130_v60  ;;  %24223 = vst [vmem:[#allocation98_spill] sm:$0xff] %v19158_v59  ;;  %v6809_v20 = vcombine.high %v19037_v43, %v6796_v21  ;;  %v10753_v18 = vcombine.low %v10688_v38, %v10704_v34  ;;  %v10754_v46 = vcombine.high %v10688_v38, %v10704_v34 }
 0x802   :  { %24220 = vst [vmem:[#allocation97_spill] sm:$0xff] %v19140_v28  ;;  %v19163_v45 = vpack.i.bf16 %v24224_v53, %v6805_v48  ;;  %v9432_v14 = vrot.slane %v9418_v42, %v13617_v1  ;;  %v9448_v29 = vrot.slane %v9434_v11, %v13617_v1  ;;  %24226 = vst [vmem:[#allocation137_spill] sm:$0xff] %v19168_v32  ;;  %v24231_v48 = vld [vmem:[#allocation200_spill] sm:$0xff]  ;;  %v24236_v42 = vld [vmem:[#allocation222_spill] sm:$0xff] }
 0x803   :  { %v9450_v35 = vcombine.high %v24228_v47, %v24227_v17  ;;  %v9466_v59 = vcombine.high %v24230_v23, %v24229_v36  ;;  %v24232_v53 = vld [vmem:[#allocation48_spill] sm:$0xff]  ;;  %v24235_v38 = vcombine.high %v18497_v3, %v18475_v56  ;;  %9209 = vrot.lane.b32.xlu1 %v24236_v42, %s13468_s0  ;;  %v24239_v11 = vld [vmem:[#allocation91_spill] sm:$0xff]  ;;  %v6675_v56 = vcombine.high %v18715_v33, %v18874_v6 }
 0x804   :  { %24225 = vst [vmem:[#allocation133_spill] sm:$0xff] %v19163_v45  ;;  %v24233_v21 = vcombine.low %v24231_v48, %v24232_v53  ;;  %v24237_v47 = vcombine.high %v24231_v48, %v24232_v53  ;;  %v24240_v17 = vld [vmem:[#allocation87_spill] sm:$0xff]  ;;  %v19204_v3 = vrot.slane %v10738_v58, %v14031_v8  ;;  %v19208_v48 = vpop.permute.xlu0 %5144  ;;  %v19222_v33 = vrot.slane %v10753_v18, %v14031_v8  ;;  %v24249_v58 = vld [vmem:[#allocation164_spill] sm:$0xff]  ;;  %v24262_v18 = vld [vmem:[#allocation169_spill] sm:$0xff] }
 0x805   :  { %v19185_v34 = vrot.slane %v24235_v38, %v14031_v8  ;;  %v24241_v36 = vcombine.low %v24239_v11, %v24240_v17  ;;  %v7493_v38 = vcombine.high %v19079_v49, %v19168_v32  ;;  %24245 = vst [vmem:[#allocation138_spill] sm:$0xff] %v19208_v48  ;;  %v19225_v6 = vrot.slane %v10754_v46, %v14031_v8  ;;  %v19229_v32 = vpop.permute.xlu1 %5146  ;;  %v24264_v48 = vld [vmem:[#allocation168_spill] sm:$0xff] }
 0x806   :  { %v19179_v43 = vpack.i.bf16 %v24233_v21, %v6806_v61  ;;  %v19192_v23 = vpack.i.bf16 %v24237_v47, %v6807_v26  ;;  %v24246_v26 = vcombine.high %v24239_v11, %v24240_v17  ;;  %v9497_v49 = vcombine.low %v9432_v14, %v9448_v29  ;;  %24251 = vst [vmem:[#allocation105_spill] sm:$0xff] %v19229_v32  ;;  %v24253_v17 = vld [vmem:[#allocation38_spill] sm:$0xff]  ;;  %v24299_v61 = vld [vmem:[#allocation211_spill] sm:$0xff] }
 0x807   :  { %v19197_v45 = vpack.i.bf16 %v24241_v36, %v6808_v19  ;;  %v24248_v19 = vcombine.high %v18461_v15, %v18441_v54  ;;  %v24250_v36 = vld [vmem:[#allocation163_spill] sm:$0xff]  ;;  %v9480_v11 = vrot.slane %v9466_v59, %v13617_v1  ;;  %v7509_v54 = vcombine.high %v19123_v57, %v19229_v32  ;;  %9235 = vrot.lane.b32.xlu1 %v23928_v31, %s13470_s28 }
 0x808   :  { %24234 = vst [vmem:[#allocation129_spill] sm:$0xff] %v19179_v43  ;;  %24238 = vst [vmem:[#allocation45_spill] sm:$0xff] %v19192_v23  ;;  %v19213_v53 = vpack.i.bf16 %v24246_v26, %v6809_v20  ;;  %v9482_v43 = vcombine.high %v24250_v36, %v24249_v58  ;;  %v9464_v20 = vrot.slane %v9450_v35, %v13617_v1  ;;  %v24252_v15 = vld [vmem:[#allocation63_spill] sm:$0xff]  ;;  %v24254_v26 = vld [vmem:[#allocation33_spill] sm:$0xff] }
 0x809   :  { %24242 = vst [vmem:[#allocation139_spill] sm:$0xff] %v19197_v45  ;;  %v19219_v47 = vrot.slane %v24248_v19, %v14031_v8  ;;  %9239 = vrot.lane.b32.xlu0 %v24252_v15, %s13470_s28  ;;  %v9498_v46 = vcombine.high %v9432_v14, %v9448_v29  ;;  %v10770_v19 = vcombine.high %v24254_v26, %v24253_v17  ;;  %v24257_v58 = vld [vmem:[#allocation193_spill] sm:$0xff]  ;;  %v24258_v36 = vld [vmem:[#allocation190_spill] sm:$0xff]  ;;  %v24261_v32 = vld [vmem:[#allocation171_spill] sm:$0xff] }
 0x80a   :  { %24247 = vst [vmem:[#allocation104_spill] sm:$0xff] %v19213_v53  ;;  %v24255_v35 = vcombine.high %v24191_v50, %v24192_v51  ;;  %v24259_v57 = vcombine.high %v24257_v58, %v24258_v36  ;;  %v10778_v14 = vcombine.high %v24262_v18, %v24261_v32  ;;  %v24263_v29 = vld [vmem:[#allocation170_spill] sm:$0xff]  ;;  %v19259_v53 = vrot.slane %v7493_v38, %v13617_v1  ;;  %v19264_v50 = vpop.permute.xlu0 %5148  ;;  %v24269_v32 = vld [vmem:[#allocation191_spill] sm:$0xff] }
 0x80b   :  { %v10794_v31 = vcombine.high %v24264_v48, %v24263_v29  ;;  %v19262_v17 = vrot.slane %v7509_v54, %v13617_v1  ;;  %24267 = vst [vmem:[#allocation148_spill] sm:$0xff] %v19264_v50  ;;  %v19267_v51 = vrot.slane %v9482_v43, %v14031_v8  ;;  %v24270_v18 = vld [vmem:[#allocation186_spill] sm:$0xff]  ;;  %v24273_v38 = vld [vmem:[#allocation51_spill] sm:$0xff]  ;;  %v24274_v54 = vld [vmem:[#allocation65_spill] sm:$0xff]  ;;  %9243 = vrot.lane.b32.xlu1 %v18185_v24, %s13470_s28 }
 0x80c   :  { %v19246_v59 = vpack.i.bf16 %v6675_v56, %v24255_v35  ;;  %v19252_v15 = vrot.slane %v24259_v57, %v14031_v8  ;;  %24265 = vst [vmem:[#allocation149_spill] sm:$0xff] %v19259_v53  ;;  %v19270_v57 = vrot.slane %v9497_v49, %v14031_v8  ;;  %v19272_v56 = vpop.permute.xlu1 %5150  ;;  %v24271_v48 = vcombine.high %v24269_v32, %v24270_v18  ;;  %v24277_v29 = vld [vmem:[#allocation42_spill] sm:$0xff]  ;;  %v24278_v43 = vld [vmem:[#allocation36_spill] sm:$0xff] }
 0x80d   :  { %24266 = vst [vmem:[#allocation143_spill] sm:$0xff] %v19262_v17  ;;  %24268 = vst [vmem:[#allocation142_spill] sm:$0xff] %v19272_v56  ;;  %v24275_v58 = vcombine.low %v24273_v38, %v24274_v54  ;;  %v9514_v26 = vcombine.high %v24278_v43, %v24277_v29  ;;  %v9530_v49 = vcombine.high %v9464_v20, %v9480_v11  ;;  %9247 = vrot.lane.b32.xlu0 %v23921_v63, %s13470_s28  ;;  %v24285_v43 = vld [vmem:[#allocation239_spill] sm:$0xff]  ;;  %v24286_v63 = vld [vmem:[#allocation237_spill] sm:$0xff] }
 0x80e   :  { %24256 = vst [vmem:[#allocation119_spill] sm:$0xff] %v19246_v59  ;;  %24260 = vst [vmem:[#allocation23_spill] sm:$0xff] %v19252_v15  ;;  %v19278_v35 = vrot.slane %v24271_v48, %v14031_v8  ;;  %v9529_v59 = vcombine.low %v9464_v20, %v9480_v11  ;;  %v19293_v32 = vrot.slane %v9498_v46, %v14031_v8  ;;  %v24282_v20 = vld [vmem:[#allocation57_spill] sm:$0xff]  ;;  %v19316_v17 = vpop.permute.xlu0 %5152 }
 0x80f   :  { %v19284_v36 = vrot.slane %v24275_v58, %v14031_v8  ;;  %v24279_v18 = vcombine.high %v18871_v10, %v18946_v16  ;;  %v24281_v58 = vld [vmem:[#allocation13_spill] sm:$0xff]  ;;  %v24287_v50 = vcombine.high %v24285_v43, %v24286_v63  ;;  %v10792_v53 = vrot.slane %v10778_v14, %v13617_v1  ;;  %24288 = vst [vmem:[#allocation121_spill] sm:$0xff] %v19316_v17  ;;  %v24295_v43 = vld [vmem:[#allocation256_spill] sm:$0xff] }
 0x810   :  { %24272 = vst [vmem:[#allocation49_spill] sm:$0xff] %v19278_v35  ;;  %v24283_v11 = vcombine.low %v24281_v58, %v24282_v20  ;;  %v10808_v24 = vrot.slane %v10794_v31, %v13617_v1  ;;  %v19326_v23 = vpop.permute.xlu1 %5154  ;;  %v24294_v31 = vld [vmem:[#allocation50_spill] sm:$0xff]  ;;  %v19345_v28 = vrot.slane %v9514_v26, %v14031_v8  ;;  %v19351_v14 = vrot.slane %v9530_v49, %v14031_v8  ;;  %v24301_v49 = vld [vmem:[#allocation9_spill] sm:$0xff] }
 0x811   :  { %24276 = vst [vmem:[#allocation30_spill] sm:$0xff] %v19284_v36  ;;  %v19300_v48 = vpack.i.bf16 %v10770_v19, %v24279_v18  ;;  %v19312_v46 = vrot.slane %v24287_v50, %v14031_v8  ;;  %v24289_v18 = vld [vmem:[#allocation26_spill] sm:$0xff]  ;;  %24293 = vst [vmem:[#allocation155_spill] sm:$0xff] %v19326_v23  ;;  %v24296_v63 = vcombine.low %v24294_v31, %v24295_v43  ;;  %9255 = vrot.lane.b32.xlu0 %v23986_v9, %s13470_s28 }
 0x812   :  { %v19306_v29 = vrot.slane %v24283_v11, %v14031_v8  ;;  %v24298_v19 = vld [vmem:[#allocation210_spill] sm:$0xff]  ;;  %v19348_v50 = vrot.slane %v9529_v59, %v14031_v8  ;;  %9251 = vrot.lane.b32.xlu1 %v23992_v62, %s13470_s28  ;;  %v10857_v35 = vcombine.low %v10792_v53, %v10808_v24  ;;  %v19369_v15 = vpop.permute.xlu0 %5156  ;;  %v10771_v59 = vcombine.low %v19144_v55, %v19204_v3 }
 0x813   :  { %24280 = vst [vmem:[#allocation141_spill] sm:$0xff] %v19300_v48  ;;  %v24290_v48 = vld [vmem:[#allocation56_spill] sm:$0xff]  ;;  %v19336_v17 = vrot.slane %v24296_v63, %v14031_v8  ;;  %v24300_v21 = vcombine.high %v24298_v19, %v24299_v61  ;;  %v24302_v9 = vld [vmem:[#allocation70_spill] sm:$0xff]  ;;  %v10858_v63 = vcombine.high %v10792_v53, %v10808_v24  ;;  %24303 = vst [vmem:[#allocation154_spill] sm:$0xff] %v19369_v15 }
 0x814   :  { %24284 = vst [vmem:[#allocation140_spill] sm:$0xff] %v19306_v29  ;;  %v24291_v11 = vcombine.low %v24289_v18, %v24290_v48  ;;  %v10842_v19 = vcombine.high %v24302_v9, %v24301_v49  ;;  %v24304_v61 = vld [vmem:[#allocation173_spill] sm:$0xff]  ;;  %v24307_v29 = vld [vmem:[#allocation11_spill] sm:$0xff]  ;;  %v19377_v26 = vpop.permute.xlu1 %5158  ;;  %v10772_v49 = vcombine.high %v19144_v55, %v19204_v3  ;;  %v10773_v53 = vcombine.low %v19147_v44, %v19222_v33  ;;  %v24329_v62 = vld [vmem:[#allocation66_spill] sm:$0xff] }
 0x815   :  { %24297 = vst [vmem:[#allocation151_spill] sm:$0xff] %v19336_v17  ;;  %v10810_v60 = vcombine.high %v24305_v12, %v24304_v61  ;;  %24308 = vst [vmem:[#allocation150_spill] sm:$0xff] %v19377_v26  ;;  %9263 = vrot.lane.b32.xlu0 %v23985_v2, %s13470_s28  ;;  %v10774_v12 = vcombine.high %v19147_v44, %v19222_v33  ;;  %v24311_v61 = vcombine.high %v24273_v38, %v24274_v54  ;;  %v24313_v2 = vld [vmem:[#allocation221_spill] sm:$0xff]  ;;  %v24314_v3 = vld [vmem:[#allocation111_spill] sm:$0xff] }
 0x816   :  { %v19324_v45 = vrot.slane %v24291_v11, %v14031_v8  ;;  %v19342_v11 = vrot.slane %v24300_v21, %v14031_v8  ;;  %v24306_v21 = vld [vmem:[#allocation172_spill] sm:$0xff]  ;;  %9259 = vrot.lane.b32.xlu1 %v24313_v2, %s13470_s28  ;;  %v24315_v44 = vcombine.high %v24294_v31, %v24295_v43  ;;  %v19420_v54 = vrot.slane %v10842_v19, %v14031_v8  ;;  %v19430_v43 = vpop.permute.xlu0 %5160  ;;  %v24323_v19 = vld [vmem:[#allocation125_spill] sm:$0xff] }
 0x817   :  { %v10826_v17 = vcombine.high %v24307_v29, %v24306_v21  ;;  %v24309_v29 = vcombine.high %v24289_v18, %v24290_v48  ;;  %v19399_v55 = vrot.slane %v24311_v61, %v14031_v8  ;;  %v24317_v48 = vcombine.high %v24281_v58, %v24282_v20  ;;  %24320 = vst [vmem:[#allocation156_spill] sm:$0xff] %v19430_v43  ;;  %v24322_v2 = vld [vmem:[#allocation124_spill] sm:$0xff] }
 0x818   :  { %24292 = vst [vmem:[#allocation123_spill] sm:$0xff] %v19324_v45  ;;  %v19409_v33 = vrot.slane %v24315_v44, %v14031_v8  ;;  %v19423_v9 = vrot.slane %v10857_v35, %v14031_v8  ;;  %v7525_v31 = vcombine.high %v19272_v56, %v19377_v26  ;;  %v10824_v58 = vrot.slane %v10810_v60, %v13617_v1  ;;  %v19434_v61 = vpop.permute.xlu1 %5162  ;;  %v24328_v38 = vld [vmem:[#allocation232_spill] sm:$0xff]  ;;  %v24383_v45 = vld [vmem:[#allocation189_spill] sm:$0xff] }
 0x819   :  { %v19393_v24 = vrot.slane %v24309_v29, %v14031_v8  ;;  %24312 = vst [vmem:[#allocation152_spill] sm:$0xff] %v19399_v55  ;;  %v19415_v18 = vrot.slane %v24317_v48, %v14031_v8  ;;  %v19426_v29 = vrot.slane %v10858_v63, %v14031_v8  ;;  %v10840_v20 = vrot.slane %v10826_v17, %v13617_v1  ;;  %v24330_v17 = vld [vmem:[#allocation60_spill] sm:$0xff] }
 0x81a   :  { %24316 = vst [vmem:[#allocation161_spill] sm:$0xff] %v19409_v33  ;;  %24321 = vst [vmem:[#allocation29_spill] sm:$0xff] %v19434_v61  ;;  %v24324_v44 = vcombine.low %v24322_v2, %v24323_v19  ;;  %v24326_v35 = vcombine.high %v24322_v2, %v24323_v19  ;;  %v5772_v21 = vcombine.low %v24329_v62, %v24328_v38  ;;  %9237 = vrot.lane.b32.xlu0 %v24330_v17, %s13470_s28  ;;  %v24338_v19 = vld [vmem:[#allocation175_spill] sm:$0xff]  ;;  %v24347_v17 = vld [vmem:[#allocation181_spill] sm:$0xff] }
 0x81b   :  { %24310 = vst [vmem:[#allocation153_spill] sm:$0xff] %v19393_v24  ;;  %24318 = vst [vmem:[#allocation157_spill] sm:$0xff] %v19415_v18  ;;  %v7541_v60 = vcombine.high %v19326_v23, %v19434_v61  ;;  %v24333_v56 = vcombine.low %v24331_v7, %v24332_v22  ;;  %v24341_v61 = vld [vmem:[#allocation203_spill] sm:$0xff]  ;;  %v10889_v23 = vcombine.low %v10824_v58, %v10840_v20  ;;  %v24353_v33 = vld [vmem:[#allocation196_spill] sm:$0xff] }
 0x81c   :  { %24319 = vst [vmem:[#allocation160_spill] sm:$0xff] %v19426_v29  ;;  %v19439_v48 = vpack.i.bf16 %v10771_v59, %v24324_v44  ;;  %v19444_v63 = vpack.i.bf16 %v10772_v49, %v24326_v35  ;;  %v24335_v59 = vcombine.high %v24331_v7, %v24332_v22  ;;  %v24337_v49 = vld [vmem:[#allocation174_spill] sm:$0xff]  ;;  %v24342_v7 = vld [vmem:[#allocation61_spill] sm:$0xff]  ;;  %v10890_v15 = vcombine.high %v10824_v58, %v10840_v20  ;;  %v24352_v18 = vld [vmem:[#allocation71_spill] sm:$0xff] }
 0x81d   :  { %v19455_v26 = vpack.i.bf16 %v10773_v53, %v24333_v56  ;;  %v10874_v44 = vcombine.high %v24338_v19, %v24337_v49  ;;  %v24339_v35 = vld [vmem:[#allocation62_spill] sm:$0xff]  ;;  %v19477_v49 = vrot.slane %v7525_v31, %v13617_v1  ;;  %v19480_v19 = vrot.slane %v7541_v60, %v13617_v1  ;;  %v24349_v56 = vld [vmem:[#allocation180_spill] sm:$0xff]  ;;  %v24354_v58 = vld [vmem:[#allocation213_spill] sm:$0xff] }
 0x81e   :  { %24325 = vst [vmem:[#allocation28_spill] sm:$0xff] %v19439_v48  ;;  %24327 = vst [vmem:[#allocation167_spill] sm:$0xff] %v19444_v63  ;;  %v19460_v2 = vpack.i.bf16 %v10774_v12, %v24335_v59  ;;  %9233 = vrot.lane.b32.xlu1 %v24339_v35, %s13470_s28  ;;  %v24340_v53 = vld [vmem:[#allocation214_spill] sm:$0xff]  ;;  %v19482_v35 = vpop.permute.xlu0 %9039  ;;  %v19488_v48 = vpop.permute.xlu1 %9035  ;;  %v5724_v29 = vcombine.low %v24353_v33, %v24352_v18  ;;  %v19493_v31 = vrot.slane %v5772_v21, %v13617_v1  ;;  %v24355_v20 = vld [vmem:[#allocation16_spill] sm:$0xff] }
 0x81f   :  { %24334 = vst [vmem:[#allocation31_spill] sm:$0xff] %v19455_v26  ;;  %v5740_v22 = vcombine.low %v24341_v61, %v24340_v53  ;;  %v24343_v12 = vld [vmem:[#allocation218_spill] sm:$0xff]  ;;  %24344 = vst [vmem:[#allocation41_spill] sm:$0xff] %v19477_v49  ;;  %v24350_v26 = vld [vmem:[#allocation176_spill] sm:$0xff]  ;;  %9245 = vrot.lane.b32.xlu0 %v23993_v4, %s13470_s28 }
 0x820   :  { %24336 = vst [vmem:[#allocation165_spill] sm:$0xff] %v19460_v2  ;;  %v5756_v59 = vcombine.low %v24343_v12, %v24342_v7  ;;  %24345 = vst [vmem:[#allocation200_spill] sm:$0xff] %v19480_v19  ;;  %v24348_v2 = vld [vmem:[#allocation177_spill] sm:$0xff]  ;;  %v9570_v63 = vcombine.high %v24350_v26, %v24349_v56  ;;  %v24360_v60 = vld [vmem:[#allocation216_spill] sm:$0xff]  ;;  %v19550_v56 = vrot.slane %v10890_v15, %v14031_v8 }
 0x821   :  { %24346 = vst [vmem:[#allocation48_spill] sm:$0xff] %v19482_v35  ;;  %v9554_v43 = vcombine.high %v24348_v2, %v24347_v17  ;;  %24351 = vst [vmem:[#allocation222_spill] sm:$0xff] %v19488_v48  ;;  %v24356_v2 = vcombine.high %v24354_v58, %v24355_v20  ;;  %v24361_v49 = vld [vmem:[#allocation212_spill] sm:$0xff]  ;;  %v24364_v48 = vld [vmem:[#allocation255_spill] sm:$0xff]  ;;  %v19553_v35 = vrot.slane %v5724_v29, %v13617_v1 }
 0x822   :  { %9241 = vrot.lane.b32.xlu1 %v18201_v0, %s13470_s28  ;;  %v24362_v19 = vcombine.high %v24360_v60, %v24361_v49  ;;  %v24365_v58 = vld [vmem:[#allocation253_spill] sm:$0xff]  ;;  %v19524_v0 = vrot.slane %v5740_v22, %v13617_v1  ;;  %v19527_v26 = vrot.slane %v5756_v59, %v13617_v1  ;;  %v19529_v55 = vpop.permute.xlu0 %9047  ;;  %v24371_v49 = vld [vmem:[#allocation240_spill] sm:$0xff]  ;;  %v19543_v22 = vrot.slane %v10889_v23, %v14031_v8  ;;  %v24380_v23 = vld [vmem:[#allocation187_spill] sm:$0xff] }
 0x823   :  { %v19503_v17 = vrot.slane %v24356_v2, %v14031_v8  ;;  %v24366_v20 = vcombine.low %v24364_v48, %v24365_v58  ;;  %24368 = vst [vmem:[#allocation163_spill] sm:$0xff] %v19529_v55  ;;  %v9568_v59 = vrot.slane %v9554_v43, %v13617_v1  ;;  %v9584_v36 = vrot.slane %v9570_v63, %v13617_v1  ;;  %v19547_v55 = vpop.permute.xlu1 %9043  ;;  %v24384_v43 = vld [vmem:[#allocation184_spill] sm:$0xff] }
 0x824   :  { %v19515_v4 = vrot.slane %v24362_v19, %v14031_v8  ;;  %v24372_v19 = vld [vmem:[#allocation247_spill] sm:$0xff]  ;;  %24375 = vst [vmem:[#allocation193_spill] sm:$0xff] %v19547_v55  ;;  %24376 = vst [vmem:[#allocation190_spill] sm:$0xff] %v19550_v56  ;;  %9253 = vrot.lane.b32.xlu0 %v24012_v30, %s13470_s28  ;;  %v24381_v55 = vld [vmem:[#allocation192_spill] sm:$0xff]  ;;  %v5788_v15 = vcombine.low %v19553_v35, %v19524_v0 }
 0x825   :  { %24357 = vst [vmem:[#allocation91_spill] sm:$0xff] %v19503_v17  ;;  %v19521_v2 = vrot.slane %v24366_v20, %v14031_v8  ;;  %v24373_v60 = vcombine.low %v24371_v49, %v24372_v19  ;;  %v19540_v20 = vrot.slane %v10874_v44, %v14031_v8  ;;  %v24377_v63 = vcombine.high %v24371_v49, %v24372_v19  ;;  %v24379_v44 = vld [vmem:[#allocation188_spill] sm:$0xff]  ;;  %v24388_v19 = vld [vmem:[#allocation47_spill] sm:$0xff] }
 0x826   :  { %24363 = vst [vmem:[#allocation87_spill] sm:$0xff] %v19515_v4  ;;  %9249 = vrot.lane.b32.xlu1 %v24019_v27, %s13470_s28  ;;  %v9618_v21 = vcombine.high %v24380_v23, %v24379_v44  ;;  %v24382_v27 = vld [vmem:[#allocation185_spill] sm:$0xff]  ;;  %v9602_v17 = vcombine.high %v24384_v43, %v24383_v45  ;;  %v19583_v4 = vpop.permute.xlu0 %9055  ;;  %v9633_v29 = vcombine.low %v9568_v59, %v9584_v36  ;;  %v24387_v49 = vld [vmem:[#allocation12_spill] sm:$0xff] }
 0x827   :  { %24367 = vst [vmem:[#allocation164_spill] sm:$0xff] %v19521_v2  ;;  %v19537_v24 = vrot.slane %v24373_v60, %v14031_v8  ;;  %v5820_v60 = vcombine.low %v19527_v26, %v19493_v31  ;;  %v19573_v30 = vrot.slane %v24377_v63, %v14031_v8  ;;  %v9586_v56 = vcombine.high %v24382_v27, %v24381_v55  ;;  %v24405_v43 = vld [vmem:[#allocation85_spill] sm:$0xff]  ;;  %v24407_v44 = vld [vmem:[#allocation128_spill] sm:$0xff] }
 0x828   :  { %24385 = vst [vmem:[#allocation169_spill] sm:$0xff] %v19583_v4  ;;  %v9634_v2 = vcombine.high %v9568_v59, %v9584_v36  ;;  %v9546_v63 = vcombine.high %v24388_v19, %v24387_v49  ;;  %v24389_v23 = vcombine.high %v24364_v48, %v24365_v58  ;;  %9261 = vrot.lane.b32.xlu0 %v24011_v39, %s13470_s28 }
 0x829   :  { %24374 = vst [vmem:[#allocation63_spill] sm:$0xff] %v19537_v24  ;;  %24378 = vst [vmem:[#allocation171_spill] sm:$0xff] %v19573_v30  ;;  %v19585_v24 = vpop.permute.xlu1 %9051  ;;  %v19596_v45 = vrot.slane %v5820_v60, %v14031_v8  ;;  %v9547_v36 = vcombine.low %v19267_v51, %v19345_v28  ;;  %v9548_v59 = vcombine.high %v19267_v51, %v19345_v28  ;;  %v24399_v60 = vld [vmem:[#allocation84_spill] sm:$0xff] }
 0x82a   :  { %24386 = vst [vmem:[#allocation170_spill] sm:$0xff] %v19585_v24  ;;  %v19593_v55 = vrot.slane %v24389_v23, %v14031_v8  ;;  %9257 = vrot.lane.b32.xlu1 %v24236_v42, %s13470_s28  ;;  %v9549_v48 = vcombine.low %v19270_v57, %v19348_v50  ;;  %v10775_v58 = vcombine.low %v19154_v40, %v19225_v6  ;;  %v19624_v27 = vpop.permute.xlu0 %9063  ;;  %v24460_v30 = vld [vmem:[#allocation20_spill] sm:$0xff] }
 0x82b   :  { %24391 = vst [vmem:[#allocation191_spill] sm:$0xff] %v19596_v45  ;;  %v10776_v39 = vcombine.high %v19154_v40, %v19225_v6  ;;  %v19617_v28 = vrot.slane %v9618_v21, %v14031_v8  ;;  %v9600_v51 = vrot.slane %v9586_v56, %v13617_v1  ;;  %v9616_v23 = vrot.slane %v9602_v17, %v13617_v1  ;;  %v24400_v21 = vld [vmem:[#allocation81_spill] sm:$0xff]  ;;  %v24403_v56 = vld [vmem:[#allocation234_spill] sm:$0xff] }
 0x82c   :  { %24390 = vst [vmem:[#allocation168_spill] sm:$0xff] %v19593_v55  ;;  %v19622_v42 = vrot.slane %v5788_v15, %v14031_v8  ;;  %24395 = vst [vmem:[#allocation51_spill] sm:$0xff] %v19624_v27  ;;  %v19627_v49 = vrot.slane %v9633_v29, %v14031_v8  ;;  %v19630_v40 = vrot.slane %v9634_v2, %v14031_v8  ;;  %v24404_v15 = vld [vmem:[#allocation224_spill] sm:$0xff]  ;;  %12851 = vrot.lane.b32.xlu0 %v24405_v43, %s13473_s29  ;;  %v24406_v29 = vld [vmem:[#allocation127_spill] sm:$0xff] }
 0x82d   :  { %v19632_v6 = vpop.permute.xlu1 %9059  ;;  %v24401_v52 = vcombine.high %v24399_v60, %v24400_v21  ;;  %v9550_v17 = vcombine.high %v19270_v57, %v19348_v50  ;;  %v6996_v19 = vcombine.low %v24404_v15, %v24403_v56  ;;  %v24408_v2 = vcombine.low %v24406_v29, %v24407_v44  ;;  %v24412_v57 = vld [vmem:[#allocation194_spill] sm:$0xff]  ;;  %v24413_v50 = vld [vmem:[#allocation195_spill] sm:$0xff]  ;;  %v24427_v45 = vld [vmem:[#allocation17_spill] sm:$0xff] }
 0x82e   :  { %24394 = vst [vmem:[#allocation186_spill] sm:$0xff] %v19622_v42  ;;  %24396 = vst [vmem:[#allocation65_spill] sm:$0xff] %v19627_v49  ;;  %v24410_v27 = vcombine.high %v24406_v29, %v24407_v44  ;;  %12856 = vrot.lane.b32.xlu1 %v19096_v41, %s13473_s29  ;;  %v24414_v43 = vld [vmem:[#allocation158_spill] sm:$0xff]  ;;  %v9665_v29 = vcombine.low %v9600_v51, %v9616_v23  ;;  %v24426_v42 = vld [vmem:[#allocation64_spill] sm:$0xff] }
 0x82f   :  { %24397 = vst [vmem:[#allocation42_spill] sm:$0xff] %v19630_v40  ;;  %24398 = vst [vmem:[#allocation36_spill] sm:$0xff] %v19632_v6  ;;  %v19637_v5 = vpack.i.bf16 %v9546_v63, %v24401_v52  ;;  %v19648_v4 = vpack.i.bf16 %v9547_v36, %v24408_v2  ;;  %v9650_v63 = vcombine.high %v24413_v50, %v24412_v57  ;;  %v24415_v6 = vld [vmem:[#allocation159_spill] sm:$0xff]  ;;  %v24419_v2 = vld [vmem:[#allocation34_spill] sm:$0xff] }
 0x830   :  { %v19653_v24 = vpack.i.bf16 %v9548_v59, %v24410_v27  ;;  %v24418_v36 = vld [vmem:[#allocation35_spill] sm:$0xff]  ;;  %v9666_v57 = vcombine.high %v9600_v51, %v9616_v23  ;;  %v24425_v52 = vld [vmem:[#allocation209_spill] sm:$0xff] }
 0x831   :  { %24402 = vst [vmem:[#allocation13_spill] sm:$0xff] %v19637_v5  ;;  %24409 = vst [vmem:[#allocation57_spill] sm:$0xff] %v19648_v4  ;;  %v24416_v5 = vcombine.low %v24414_v43, %v24415_v6  ;;  %v24420_v4 = vcombine.low %v24418_v36, %v24419_v2  ;;  %v24422_v59 = vcombine.high %v24418_v36, %v24419_v2  ;;  %v24424_v50 = vld [vmem:[#allocation215_spill] sm:$0xff]  ;;  %v24433_v36 = vld [vmem:[#allocation220_spill] sm:$0xff] }
 0x832   :  { %24411 = vst [vmem:[#allocation239_spill] sm:$0xff] %v19653_v24  ;;  %v6964_v41 = vcombine.low %v24425_v52, %v24424_v50  ;;  %v6980_v24 = vcombine.low %v24427_v45, %v24426_v42  ;;  %v24432_v23 = vld [vmem:[#allocation219_spill] sm:$0xff]  ;;  %v6965_v10 = vcombine.high %v24425_v52, %v24424_v50  ;;  %v9551_v52 = vcombine.low %v19293_v32, %v19351_v14  ;;  %v24465_v50 = vld [vmem:[#allocation233_spill] sm:$0xff] }
 0x833   :  { %v19664_v40 = vpack.i.bf16 %v9549_v48, %v24416_v5  ;;  %v19669_v44 = vpack.i.bf16 %v10775_v58, %v24420_v4  ;;  %v19674_v27 = vpack.i.bf16 %v10776_v39, %v24422_v59  ;;  %v19680_v5 = vpop.permute.xlu0 %9087  ;;  %v19682_v48 = vpop.permute.xlu1 %9083  ;;  %v24430_v4 = vcombine.high %v24414_v43, %v24415_v6  ;;  %v24438_v6 = vld [vmem:[#allocation96_spill] sm:$0xff] }
 0x834   :  { %24428 = vst [vmem:[#allocation50_spill] sm:$0xff] %v19680_v5  ;;  %24429 = vst [vmem:[#allocation256_spill] sm:$0xff] %v19682_v48  ;;  %v24434_v2 = vcombine.high %v24432_v23, %v24433_v36  ;;  %v24436_v5 = vld [vmem:[#allocation53_spill] sm:$0xff]  ;;  %12866 = vrot.lane.b32.xlu0 %v24438_v6, %s13474_s30  ;;  %v19711_v39 = vrot.slane %v9650_v63, %v14031_v8  ;;  %v24441_v23 = vld [vmem:[#allocation207_spill] sm:$0xff]  ;;  %v19730_v63 = vrot.slane %v9665_v29, %v14031_v8 }
 0x835   :  { %24417 = vst [vmem:[#allocation237_spill] sm:$0xff] %v19664_v40  ;;  %24421 = vst [vmem:[#allocation26_spill] sm:$0xff] %v19669_v44  ;;  %v19687_v58 = vpack.i.bf16 %v9550_v17, %v24430_v4  ;;  %v19702_v44 = vrot.slane %v6996_v19, %v13617_v1  ;;  %12861 = vrot.lane.b32.xlu1 %v24441_v23, %s13474_s30  ;;  %v24442_v36 = vld [vmem:[#allocation18_spill] sm:$0xff]  ;;  %v24446_v4 = vld [vmem:[#allocation252_spill] sm:$0xff]  ;;  %v19733_v23 = vrot.slane %v9666_v57, %v14031_v8 }
 0x836   :  { %24423 = vst [vmem:[#allocation56_spill] sm:$0xff] %v19674_v27  ;;  %v19697_v59 = vrot.slane %v24434_v2, %v14031_v8  ;;  %v24437_v27 = vld [vmem:[#allocation197_spill] sm:$0xff]  ;;  %v24447_v17 = vld [vmem:[#allocation250_spill] sm:$0xff]  ;;  %24450 = vst [vmem:[#allocation173_spill] sm:$0xff] %v19730_v63  ;;  %v19736_v16 = vrot.slane %v6964_v41, %v13617_v1 }
 0x837   :  { %24431 = vst [vmem:[#allocation210_spill] sm:$0xff] %v19687_v58  ;;  %v6948_v48 = vcombine.low %v24437_v27, %v24436_v5  ;;  %v24443_v2 = vld [vmem:[#allocation217_spill] sm:$0xff]  ;;  %v24448_v43 = vcombine.low %v24446_v4, %v24447_v17  ;;  %24451 = vst [vmem:[#allocation58_spill] sm:$0xff] %v19733_v23  ;;  %v19745_v6 = vpop.permute.xlu1 %9091  ;;  %v24455_v41 = vld [vmem:[#allocation244_spill] sm:$0xff] }
 0x838   :  { %24435 = vst [vmem:[#allocation211_spill] sm:$0xff] %v19697_v59  ;;  %v24444_v19 = vcombine.high %v24442_v36, %v24443_v2  ;;  %v19739_v36 = vrot.slane %v6980_v24, %v13617_v1  ;;  %v19741_v2 = vpop.permute.xlu0 %9095  ;;  %24453 = vst [vmem:[#allocation11_spill] sm:$0xff] %v19745_v6  ;;  %v24459_v29 = vld [vmem:[#allocation25_spill] sm:$0xff]  ;;  %v6949_v59 = vcombine.high %v24437_v27, %v24436_v5  ;;  %v24462_v57 = vld [vmem:[#allocation179_spill] sm:$0xff] }
 0x839   :  { %v19727_v51 = vrot.slane %v24448_v43, %v14031_v8  ;;  %24452 = vst [vmem:[#allocation172_spill] sm:$0xff] %v19741_v2  ;;  %v24454_v43 = vld [vmem:[#allocation67_spill] sm:$0xff]  ;;  %v6956_v24 = vrot.slane %v6948_v48, %v13617_v1  ;;  %12876 = vrot.lane.b32.xlu1 %v19108_v25, %s13476_s12  ;;  %v10907_v27 = vcombine.low %v19420_v54, %v19540_v20 }
 0x83a   :  { %v19719_v55 = vrot.slane %v24444_v19, %v14031_v8  ;;  %v5741_v19 = vcombine.high %v24341_v61, %v24340_v53  ;;  %v24456_v21 = vcombine.low %v24454_v43, %v24455_v41  ;;  %v7044_v61 = vcombine.low %v19739_v36, %v19702_v44  ;;  %v24458_v53 = vld [vmem:[#allocation208_spill] sm:$0xff]  ;;  %v24466_v6 = vld [vmem:[#allocation227_spill] sm:$0xff] }
 0x83b   :  { %24449 = vst [vmem:[#allocation70_spill] sm:$0xff] %v19727_v51  ;;  %12871 = vrot.lane.b32.xlu0 %v24458_v53, %s13476_s12  ;;  %v7012_v48 = vcombine.low %v6956_v24, %v19736_v16 }
 0x83c   :  { %24445 = vst [vmem:[#allocation9_spill] sm:$0xff] %v19719_v55  ;;  %v19755_v60 = vrot.slane %v24456_v21, %v14031_v8  ;;  %v5725_v21 = vcombine.high %v24353_v33, %v24352_v18  ;;  %v19777_v53 = vpop.permute.xlu0 %9103  ;;  %v24463_v55 = vld [vmem:[#allocation178_spill] sm:$0xff]  ;;  %v9552_v33 = vcombine.high %v19293_v32, %v19351_v14  ;;  %v5755_v25 = vrot.slane %v5741_v19, %v13617_v1  ;;  %v19786_v18 = vpop.permute.xlu1 %9099 }
 0x83d   :  { %24461 = vst [vmem:[#allocation111_spill] sm:$0xff] %v19777_v53  ;;  %v10906_v2 = vcombine.high %v24463_v55, %v24462_v57  ;;  %24464 = vst [vmem:[#allocation124_spill] sm:$0xff] %v19786_v18  ;;  %v24467_v53 = vcombine.high %v24465_v50, %v24466_v6  ;;  %v24469_v57 = vld [vmem:[#allocation228_spill] sm:$0xff]  ;;  %v24470_v55 = vld [vmem:[#allocation225_spill] sm:$0xff]  ;;  %v6979_v32 = vrot.slane %v6965_v10, %v13617_v1 }
 0x83e   :  { %24457 = vst [vmem:[#allocation221_spill] sm:$0xff] %v19755_v60  ;;  %v24471_v40 = vcombine.high %v24469_v57, %v24470_v55  ;;  %v19804_v14 = vrot.slane %v7044_v61, %v14031_v8  ;;  %v6811_v19 = vcombine.high %v24314_v3, %v19082_v13  ;;  %v24474_v6 = vld [vmem:[#allocation235_spill] sm:$0xff]  ;;  %v24475_v50 = vld [vmem:[#allocation229_spill] sm:$0xff]  ;;  %v6963_v55 = vrot.slane %v6949_v59, %v13617_v1  ;;  %v24478_v10 = vld [vmem:[#allocation78_spill] sm:$0xff] }
 0x83f   :  { %v19794_v58 = vrot.slane %v24467_v53, %v14031_v8  ;;  %12886 = vrot.lane.b32.xlu0 %v19113_v37, %s13475_s11  ;;  %v24476_v53 = vcombine.high %v24474_v6, %v24475_v50  ;;  %12881 = vrot.lane.b32.xlu1 %v24478_v10, %s13475_s11  ;;  %v24479_v57 = vld [vmem:[#allocation166_spill] sm:$0xff]  ;;  %v19828_v63 = vrot.slane %v7012_v48, %v14031_v8  ;;  %v24506_v18 = vld [vmem:[#allocation257_spill] sm:$0xff] }
 0x840   :  { %v19800_v23 = vrot.slane %v24471_v40, %v14031_v8  ;;  %24473 = vst [vmem:[#allocation66_spill] sm:$0xff] %v19804_v14  ;;  %v5739_v40 = vrot.slane %v5725_v21, %v13617_v1  ;;  %v24480_v61 = vld [vmem:[#allocation162_spill] sm:$0xff]  ;;  %v19830_v6 = vpop.permute.xlu0 %9111  ;;  %v24486_v59 = vcombine.high %v24460_v30, %v24459_v29  ;;  %v24487_v50 = vcombine.low %v19219_v47, %v19185_v34  ;;  %v19849_v60 = vpop.permute.xlu1 %9107 }
 0x841   :  { %24468 = vst [vmem:[#allocation125_spill] sm:$0xff] %v19794_v58  ;;  %v19814_v5 = vrot.slane %v24476_v53, %v14031_v8  ;;  %v24481_v51 = vcombine.low %v24479_v57, %v24480_v61  ;;  %24484 = vst [vmem:[#allocation131_spill] sm:$0xff] %v19828_v63  ;;  %v5789_v48 = vcombine.high %v19553_v35, %v19524_v0  ;;  %v24496_v35 = vld [vmem:[#allocation109_spill] sm:$0xff]  ;;  %v24503_v29 = vld [vmem:[#allocation226_spill] sm:$0xff] }
 0x842   :  { %24472 = vst [vmem:[#allocation232_spill] sm:$0xff] %v19800_v23  ;;  %24485 = vst [vmem:[#allocation132_spill] sm:$0xff] %v19830_v6  ;;  %v19835_v21 = vpack.i.bf16 %v24486_v59, %v10906_v2  ;;  %v19840_v53 = vpack.i.bf16 %v24487_v50, %v10907_v27  ;;  %v5804_v10 = vcombine.low %v5739_v40, %v5755_v25  ;;  %v24507_v0 = vld [vmem:[#allocation248_spill] sm:$0xff]  ;;  %v24520_v58 = vld [vmem:[#allocation122_spill] sm:$0xff] }
 0x843   :  { %24477 = vst [vmem:[#allocation60_spill] sm:$0xff] %v19814_v5  ;;  %v19823_v37 = vpack.i.bf16 %v9551_v52, %v24481_v51  ;;  %v24488_v51 = vcombine.high %v24479_v57, %v24480_v61  ;;  %v5805_v49 = vcombine.high %v5739_v40, %v5755_v25  ;;  %24490 = vst [vmem:[#allocation175_spill] sm:$0xff] %v19849_v60  ;;  %v24495_v61 = vld [vmem:[#allocation46_spill] sm:$0xff]  ;;  %12891 = vrot.lane.b32.xlu0 %v24496_v35, %s13478_s14 }
 0x844   :  { %v24491_v2 = vcombine.low %v24314_v3, %v19082_v13  ;;  %v24492_v59 = vcombine.low %v19342_v11, %v19312_v46  ;;  %v7013_v50 = vcombine.high %v6956_v24, %v19736_v16  ;;  %v7028_v57 = vcombine.low %v6963_v55, %v6979_v32  ;;  %v24497_v13 = vld [vmem:[#allocation136_spill] sm:$0xff]  ;;  %v19885_v6 = vpop.permute.xlu0 %9037 }
 0x845   :  { %v19845_v52 = vpack.i.bf16 %v9552_v33, %v24488_v51  ;;  %v24494_v33 = vld [vmem:[#allocation37_spill] sm:$0xff]  ;;  %v7029_v25 = vcombine.high %v6963_v55, %v6979_v32  ;;  %12896 = vrot.lane.b32.xlu1 %v24497_v13, %s13478_s14  ;;  %v24498_v3 = vcombine.high %v19342_v11, %v19312_v46  ;;  %v5876_v32 = vcombine.low %v24507_v0, %v24506_v18  ;;  %v24508_v55 = vld [vmem:[#allocation68_spill] sm:$0xff]  ;;  %v24518_v11 = vld [vmem:[#allocation251_spill] sm:$0xff] }
 0x846   :  { %v19857_v27 = vpack.i.bf16 %v24492_v59, %v24491_v2  ;;  %v5908_v51 = vcombine.low %v24495_v61, %v24494_v33  ;;  %v24502_v59 = vld [vmem:[#allocation230_spill] sm:$0xff]  ;;  %24510 = vst [vmem:[#allocation61_spill] sm:$0xff] %v19885_v6  ;;  %v24513_v2 = vld [vmem:[#allocation24_spill] sm:$0xff]  ;;  %v19909_v46 = vrot.slane %v7013_v50, %v14031_v8  ;;  %v24529_v50 = vld [vmem:[#allocation27_spill] sm:$0xff]  ;;  %v24539_v63 = vcombine.high %v24446_v4, %v24447_v17 }
 0x847   :  { %24489 = vst [vmem:[#allocation174_spill] sm:$0xff] %v19845_v52  ;;  %v19871_v40 = vpack.i.bf16 %v24498_v3, %v6811_v19  ;;  %v24504_v30 = vcombine.high %v24502_v59, %v24503_v29  ;;  %v19892_v19 = vrot.slane %v5789_v48, %v14031_v8  ;;  %v19898_v29 = vrot.slane %v5805_v49, %v14031_v8  ;;  %v19900_v3 = vpop.permute.xlu1 %9033  ;;  %v24512_v59 = vld [vmem:[#allocation205_spill] sm:$0xff] }
 0x848   :  { %24493 = vst [vmem:[#allocation62_spill] sm:$0xff] %v19857_v27  ;;  %v24509_v27 = vld [vmem:[#allocation183_spill] sm:$0xff]  ;;  %24511 = vst [vmem:[#allocation218_spill] sm:$0xff] %v19900_v3  ;;  %v24514_v16 = vcombine.low %v24512_v59, %v24513_v2  ;;  %v19912_v48 = vrot.slane %v7028_v57, %v14031_v8  ;;  %v19917_v49 = vrot.slane %v5908_v51, %v13617_v1  ;;  %12906 = vrot.lane.b32.xlu0 %v24520_v58, %s13477_s13  ;;  %v24523_v3 = vld [vmem:[#allocation54_spill] sm:$0xff]  ;;  %v19942_v52 = vpop.permute.xlu0 %9045 }
 0x849   :  { %24499 = vst [vmem:[#allocation214_spill] sm:$0xff] %v19871_v40  ;;  %v19879_v35 = vrot.slane %v24504_v30, %v14031_v8  ;;  %v5892_v13 = vcombine.low %v24509_v27, %v24508_v55  ;;  %v19895_v30 = vrot.slane %v5804_v10, %v14031_v8  ;;  %24516 = vst [vmem:[#allocation177_spill] sm:$0xff] %v19909_v46  ;;  %v24519_v10 = vld [vmem:[#allocation238_spill] sm:$0xff]  ;;  %v24524_v40 = vld [vmem:[#allocation75_spill] sm:$0xff] }
 0x84a   :  { %v19906_v24 = vrot.slane %v24514_v16, %v14031_v8  ;;  %24517 = vst [vmem:[#allocation180_spill] sm:$0xff] %v19912_v48  ;;  %v5860_v23 = vcombine.low %v24519_v10, %v24518_v11  ;;  %v19922_v6 = vrot.slane %v7029_v25, %v14031_v8  ;;  %v24522_v16 = vld [vmem:[#allocation108_spill] sm:$0xff]  ;;  %v24525_v51 = vcombine.low %v24523_v3, %v24524_v40  ;;  %v24532_v57 = vld [vmem:[#allocation21_spill] sm:$0xff] }
 0x84b   :  { %24505 = vst [vmem:[#allocation203_spill] sm:$0xff] %v19879_v35  ;;  %12901 = vrot.lane.b32.xlu1 %v24522_v16, %s13477_s13  ;;  %v19937_v58 = vrot.slane %v5876_v32, %v13617_v1  ;;  %v19940_v25 = vrot.slane %v5892_v13, %v13617_v1  ;;  %24527 = vst [vmem:[#allocation196_spill] sm:$0xff] %v19942_v52  ;;  %v24528_v16 = vld [vmem:[#allocation44_spill] sm:$0xff]  ;;  %v24533_v35 = vld [vmem:[#allocation55_spill] sm:$0xff]  ;;  %v5773_v32 = vcombine.high %v24329_v62, %v24328_v38  ;;  %v19958_v46 = vpop.permute.xlu1 %9041 }
 0x84c   :  { %24515 = vst [vmem:[#allocation181_spill] sm:$0xff] %v19906_v24  ;;  %24521 = vst [vmem:[#allocation176_spill] sm:$0xff] %v19922_v6  ;;  %v19934_v60 = vrot.slane %v24525_v51, %v14031_v8  ;;  %v24530_v6 = vcombine.low %v24528_v16, %v24529_v50  ;;  %v24534_v5 = vcombine.low %v24532_v57, %v24533_v35  ;;  %v24541_v38 = vld [vmem:[#allocation32_spill] sm:$0xff] }
 0x84d   :  { %24536 = vst [vmem:[#allocation216_spill] sm:$0xff] %v19958_v46  ;;  %v24537_v52 = vcombine.high %v24454_v43, %v24455_v41  ;;  %v19975_v14 = vrot.slane %v5860_v23, %v13617_v1  ;;  %v5956_v62 = vcombine.low %v19940_v25, %v19917_v49  ;;  %12911 = vrot.lane.b32.xlu0 %v24541_v38, %s13479_s15  ;;  %v24546_v38 = vld [vmem:[#allocation97_spill] sm:$0xff]  ;;  %v24557_v13 = vld [vmem:[#allocation116_spill] sm:$0xff]  ;;  %v24653_v46 = vld [vmem:[#allocation82_spill] sm:$0xff] }
 0x84e   :  { %24526 = vst [vmem:[#allocation71_spill] sm:$0xff] %v19934_v60  ;;  %v19948_v48 = vrot.slane %v24530_v6, %v14031_v8  ;;  %v19954_v51 = vrot.slane %v24534_v5, %v14031_v8  ;;  %v19972_v5 = vrot.slane %v24539_v63, %v14031_v8  ;;  %v24542_v43 = vcombine.high %v24528_v16, %v24529_v50  ;;  %v24548_v16 = vld [vmem:[#allocation202_spill] sm:$0xff] }
 0x84f   :  { %v19966_v6 = vrot.slane %v24537_v52, %v14031_v8  ;;  %v24544_v17 = vcombine.high %v24532_v57, %v24533_v35  ;;  %v6981_v63 = vcombine.high %v24427_v45, %v24426_v42  ;;  %v5757_v23 = vcombine.high %v24343_v12, %v24342_v7  ;;  %12916 = vrot.lane.b32.xlu1 %v24546_v38, %s13479_s15  ;;  %v20005_v57 = vpop.permute.xlu0 %9053  ;;  %v24552_v38 = vld [vmem:[#allocation133_spill] sm:$0xff] }
 0x850   :  { %24531 = vst [vmem:[#allocation213_spill] sm:$0xff] %v19948_v48  ;;  %24535 = vst [vmem:[#allocation16_spill] sm:$0xff] %v19954_v51  ;;  %v19985_v41 = vrot.slane %v24542_v43, %v14031_v8  ;;  %v6997_v52 = vcombine.high %v24404_v15, %v24403_v56  ;;  %v10908_v50 = vcombine.high %v19420_v54, %v19540_v20  ;;  %v24549_v43 = vld [vmem:[#allocation201_spill] sm:$0xff]  ;;  %v20014_v56 = vpop.permute.xlu1 %9049  ;;  %v24575_v48 = vld [vmem:[#allocation14_spill] sm:$0xff] }
 0x851   :  { %24538 = vst [vmem:[#allocation212_spill] sm:$0xff] %v19966_v6  ;;  %24540 = vst [vmem:[#allocation255_spill] sm:$0xff] %v19972_v5  ;;  %v19991_v4 = vrot.slane %v24544_v17, %v14031_v8  ;;  %v5924_v35 = vcombine.low %v19975_v14, %v19937_v58  ;;  %v9682_v45 = vcombine.high %v24549_v43, %v24548_v16  ;;  %12926 = vrot.lane.b32.xlu0 %v24552_v38, %s13473_s29  ;;  %v24591_v6 = vld [vmem:[#allocation139_spill] sm:$0xff] }
 0x852   :  { %24543 = vst [vmem:[#allocation253_spill] sm:$0xff] %v19985_v41  ;;  %24547 = vst [vmem:[#allocation247_spill] sm:$0xff] %v20005_v57  ;;  %v10909_v7 = vcombine.low %v19423_v9, %v19543_v22  ;;  %v10910_v12 = vcombine.high %v19423_v9, %v19543_v22  ;;  %v5787_v42 = vrot.slane %v5773_v32, %v13617_v1 }
 0x853   :  { %24545 = vst [vmem:[#allocation240_spill] sm:$0xff] %v19991_v4  ;;  %24550 = vst [vmem:[#allocation188_spill] sm:$0xff] %v20014_v56  ;;  %v20023_v17 = vrot.slane %v5956_v62, %v14031_v8  ;;  %v24553_v22 = vcombine.high %v24523_v3, %v24524_v40  ;;  %v24555_v20 = vcombine.high %v24512_v59, %v24513_v2  ;;  %12921 = vrot.lane.b32.xlu1 %v24557_v13, %s13473_s29  ;;  %v20054_v2 = vpop.permute.xlu0 %9061  ;;  %v24561_v59 = vld [vmem:[#allocation204_spill] sm:$0xff] }
 0x854   :  { %v6995_v62 = vrot.slane %v6981_v63, %v13617_v1  ;;  %v5771_v54 = vrot.slane %v5757_v23, %v13617_v1  ;;  %v7011_v38 = vrot.slane %v6997_v52, %v13617_v1  ;;  %v24558_v40 = vcombine.high %v19219_v47, %v19185_v34  ;;  %24560 = vst [vmem:[#allocation184_spill] sm:$0xff] %v20054_v2  ;;  %v24564_v23 = vld [vmem:[#allocation151_spill] sm:$0xff]  ;;  %v24565_v52 = vld [vmem:[#allocation140_spill] sm:$0xff] }
 0x855   :  { %24551 = vst [vmem:[#allocation187_spill] sm:$0xff] %v20023_v17  ;;  %v20033_v32 = vrot.slane %v24553_v22, %v14031_v8  ;;  %v20039_v15 = vrot.slane %v24555_v20, %v14031_v8  ;;  %v20052_v22 = vrot.slane %v5924_v35, %v14031_v8  ;;  %v24562_v20 = vld [vmem:[#allocation198_spill] sm:$0xff]  ;;  %v24566_v16 = vcombine.low %v24564_v23, %v24565_v52  ;;  %v20073_v35 = vpop.permute.xlu1 %9057  ;;  %v24632_v2 = vld [vmem:[#allocation28_spill] sm:$0xff] }
 0x856   :  { %v20049_v3 = vpack.i.bf16 %v24558_v40, %v10908_v50  ;;  %v24563_v63 = vcombine.high %v24561_v59, %v24562_v20  ;;  %v24567_v34 = vcombine.high %v24564_v23, %v24565_v52  ;;  %v5821_v13 = vcombine.high %v19527_v26, %v19493_v31  ;;  %24568 = vst [vmem:[#allocation234_spill] sm:$0xff] %v20073_v35  ;;  %v24571_v20 = vld [vmem:[#allocation110_spill] sm:$0xff]  ;;  %v24572_v40 = vld [vmem:[#allocation129_spill] sm:$0xff]  ;;  %v24573_v59 = vld [vmem:[#allocation52_spill] sm:$0xff] }
 0x857   :  { %24554 = vst [vmem:[#allocation192_spill] sm:$0xff] %v20033_v32  ;;  %24556 = vst [vmem:[#allocation185_spill] sm:$0xff] %v20039_v15  ;;  %v20064_v43 = vpack.i.bf16 %v24566_v16, %v10909_v7  ;;  %v5836_v50 = vcombine.low %v5771_v54, %v5787_v42  ;;  %v24570_v16 = vld [vmem:[#allocation74_spill] sm:$0xff]  ;;  %12931 = vrot.lane.b32.xlu0 %v24571_v20, %s13474_s30  ;;  %v7045_v23 = vcombine.high %v19739_v36, %v19702_v44  ;;  %v20099_v60 = vpop.permute.xlu0 %9085  ;;  %v24586_v32 = vld [vmem:[#allocation65_spill] sm:$0xff] }
 0x858   :  { %24559 = vst [vmem:[#allocation189_spill] sm:$0xff] %v20052_v22  ;;  %v20059_v9 = vpack.i.bf16 %v24563_v63, %v9682_v45  ;;  %v20069_v47 = vpack.i.bf16 %v24567_v34, %v10910_v12  ;;  %v24569_v63 = vld [vmem:[#allocation99_spill] sm:$0xff]  ;;  %v7060_v52 = vcombine.low %v6995_v62, %v7011_v38  ;;  %v5837_v34 = vcombine.high %v5771_v54, %v5787_v42  ;;  %v24574_v12 = vld [vmem:[#allocation249_spill] sm:$0xff]  ;;  %v24576_v31 = vld [vmem:[#allocation182_spill] sm:$0xff] }
 0x859   :  { %v7132_v7 = vcombine.low %v24570_v16, %v24569_v63  ;;  %v5877_v45 = vcombine.high %v24507_v0, %v24506_v18  ;;  %12936 = vrot.lane.b32.xlu1 %v24572_v40, %s13474_s30  ;;  %v7061_v20 = vcombine.high %v6995_v62, %v7011_v38  ;;  %v7100_v51 = vcombine.low %v24574_v12, %v24573_v59  ;;  %v20113_v54 = vpop.permute.xlu1 %9081  ;;  %v24579_v62 = vld [vmem:[#allocation254_spill] sm:$0xff]  ;;  %v24580_v38 = vld [vmem:[#allocation241_spill] sm:$0xff]  ;;  %v24636_v56 = vld [vmem:[#allocation92_spill] sm:$0xff] }
 0x85a   :  { %v7116_v24 = vcombine.low %v24576_v31, %v24575_v48  ;;  %24577 = vst [vmem:[#allocation224_spill] sm:$0xff] %v20099_v60  ;;  %v20104_v36 = vrot.slane %v5821_v13, %v14031_v8  ;;  %v20107_v18 = vrot.slane %v5836_v50, %v14031_v8  ;;  %v5861_v0 = vcombine.high %v24519_v10, %v24518_v11  ;;  %v24581_v50 = vld [vmem:[#allocation45_spill] sm:$0xff] }
 0x85b   :  { %v7101_v42 = vcombine.high %v24574_v12, %v24573_v59  ;;  %24578 = vst [vmem:[#allocation85_spill] sm:$0xff] %v20113_v54  ;;  %v7084_v40 = vcombine.low %v24580_v38, %v24579_v62  ;;  %v7085_v44 = vcombine.high %v24580_v38, %v24579_v62  ;;  %v20120_v13 = vrot.slane %v7132_v7, %v13617_v1  ;;  %v24582_v7 = vld [vmem:[#allocation118_spill] sm:$0xff] }
 0x85c   :  { %12946 = vrot.lane.b32.xlu0 %v24581_v50, %s13476_s12  ;;  %v9683_v11 = vcombine.low %v19617_v28, %v19711_v39  ;;  %v20127_v10 = vrot.slane %v7045_v23, %v14031_v8  ;;  %v20130_v59 = vrot.slane %v7060_v52, %v14031_v8  ;;  %v20133_v12 = vrot.slane %v5837_v34, %v14031_v8  ;;  %v20145_v23 = vpop.permute.xlu0 %9093 }
 0x85d   :  { %v5891_v62 = vrot.slane %v5877_v45, %v13617_v1  ;;  %12941 = vrot.lane.b32.xlu1 %v24582_v7, %s13476_s12  ;;  %v20139_v38 = vrot.slane %v7061_v20, %v14031_v8  ;;  %v7108_v50 = vrot.slane %v7100_v51, %v13617_v1  ;;  %v20143_v26 = vrot.slane %v7116_v24, %v13617_v1  ;;  %v20153_v15 = vpop.permute.xlu1 %9089  ;;  %v24585_v20 = vld [vmem:[#allocation173_spill] sm:$0xff] }
 0x85e   :  { %24583 = vst [vmem:[#allocation127_spill] sm:$0xff] %v20145_v23  ;;  %v9684_v52 = vcombine.high %v19617_v28, %v19711_v39  ;;  %v5875_v34 = vrot.slane %v5861_v0, %v13617_v1  ;;  %v7115_v45 = vrot.slane %v7101_v42, %v13617_v1  ;;  %v5909_v7 = vcombine.high %v24495_v61, %v24494_v33  ;;  %v24587_v28 = vld [vmem:[#allocation117_spill] sm:$0xff]  ;;  %v24588_v39 = vld [vmem:[#allocation23_spill] sm:$0xff] }
 0x85f   :  { %24584 = vst [vmem:[#allocation128_spill] sm:$0xff] %v20153_v15  ;;  %v9685_v51 = vcombine.low %v24586_v32, %v24585_v20  ;;  %v7092_v24 = vrot.slane %v7084_v40, %v13617_v1  ;;  %v7099_v4 = vrot.slane %v7085_v44, %v13617_v1  ;;  %v7180_v41 = vcombine.low %v20143_v26, %v20120_v13  ;;  %v24589_v0 = vld [vmem:[#allocation49_spill] sm:$0xff]  ;;  %v24625_v15 = vld [vmem:[#allocation58_spill] sm:$0xff] }
 0x860   :  { %12951 = vrot.lane.b32.xlu0 %v24587_v28, %s13475_s11  ;;  %v24590_v42 = vcombine.low %v24588_v39, %v24589_v0  ;;  %v5925_v33 = vcombine.high %v19975_v14, %v19937_v58  ;;  %v5940_v61 = vcombine.low %v5875_v34, %v5891_v62  ;;  %v5893_v40 = vcombine.high %v24509_v27, %v24508_v55  ;;  %v20176_v54 = vpop.permute.xlu0 %9101 }
 0x861   :  { %v7133_v44 = vcombine.high %v24570_v16, %v24569_v63  ;;  %12956 = vrot.lane.b32.xlu1 %v24591_v6, %s13475_s11  ;;  %v7148_v60 = vcombine.low %v7092_v24, %v7108_v50  ;;  %v7149_v28 = vcombine.high %v7092_v24, %v7108_v50  ;;  %v5941_v23 = vcombine.high %v5875_v34, %v5891_v62  ;;  %v20186_v63 = vpop.permute.xlu1 %9097  ;;  %v24596_v16 = vld [vmem:[#allocation104_spill] sm:$0xff]  ;;  %v24597_v62 = vld [vmem:[#allocation123_spill] sm:$0xff]  ;;  %v24598_v50 = vld [vmem:[#allocation30_spill] sm:$0xff] }
 0x862   :  { %v20166_v5 = vpack.i.bf16 %v24590_v42, %v9683_v11  ;;  %24592 = vst [vmem:[#allocation194_spill] sm:$0xff] %v20176_v54  ;;  %v24593_v11 = vcombine.high %v24588_v39, %v24589_v0  ;;  %v7164_v14 = vcombine.low %v7099_v4, %v7115_v45  ;;  %v7165_v58 = vcombine.high %v7099_v4, %v7115_v45  ;;  %v24600_v24 = vld [vmem:[#allocation190_spill] sm:$0xff]  ;;  %v24601_v4 = vld [vmem:[#allocation160_spill] sm:$0xff] }
 0x863   :  { %v7117_v27 = vcombine.high %v24576_v31, %v24575_v48  ;;  %v5923_v55 = vrot.slane %v5909_v7, %v13617_v1  ;;  %24594 = vst [vmem:[#allocation195_spill] sm:$0xff] %v20186_v63  ;;  %v20189_v6 = vrot.slane %v7180_v41, %v14031_v8  ;;  %v24599_v34 = vcombine.low %v24597_v62, %v24598_v50  ;;  %v24602_v0 = vld [vmem:[#allocation120_spill] sm:$0xff] }
 0x864   :  { %v20181_v42 = vpack.i.bf16 %v24593_v11, %v9684_v52  ;;  %12966 = vrot.lane.b32.xlu0 %v24596_v16, %s13478_s14  ;;  %v10911_v45 = vcombine.low %v24601_v4, %v24600_v24  ;;  %v10912_v48 = vcombine.high %v24601_v4, %v24600_v24  ;;  %v20203_v31 = vrot.slane %v5925_v33, %v14031_v8  ;;  %v24610_v4 = vld [vmem:[#allocation161_spill] sm:$0xff] }
 0x865   :  { %24595 = vst [vmem:[#allocation158_spill] sm:$0xff] %v20189_v6  ;;  %v20196_v52 = vpack.i.bf16 %v24599_v34, %v9685_v51  ;;  %v20206_v41 = vrot.slane %v5940_v61, %v14031_v8  ;;  %v5907_v7 = vrot.slane %v5893_v40, %v13617_v1  ;;  %v7147_v39 = vrot.slane %v7133_v44, %v13617_v1  ;;  %v20223_v61 = vpop.permute.xlu0 %9109  ;;  %v20232_v24 = vpop.permute.xlu1 %9105 }
 0x866   :  { %12961 = vrot.lane.b32.xlu1 %v24602_v0, %s13478_s14  ;;  %v20213_v51 = vrot.slane %v7148_v60, %v14031_v8  ;;  %v20216_v11 = vrot.slane %v7149_v28, %v14031_v8  ;;  %v20219_v16 = vrot.slane %v5941_v23, %v14031_v8  ;;  %v5957_v33 = vcombine.high %v19940_v25, %v19917_v49  ;;  %v24609_v23 = vld [vmem:[#allocation89_spill] sm:$0xff] }
 0x867   :  { %24605 = vst [vmem:[#allocation34_spill] sm:$0xff] %v20223_v61  ;;  %v20226_v40 = vrot.slane %v7164_v14, %v14031_v8  ;;  %v20229_v44 = vrot.slane %v7165_v58, %v14031_v8  ;;  %v7131_v60 = vrot.slane %v7117_v27, %v13617_v1  ;;  %v5972_v34 = vcombine.low %v5907_v7, %v5923_v55  ;;  %v24611_v0 = vld [vmem:[#allocation157_spill] sm:$0xff] }
 0x868   :  { %24603 = vst [vmem:[#allocation159_spill] sm:$0xff] %v20213_v51  ;;  %24604 = vst [vmem:[#allocation35_spill] sm:$0xff] %v20216_v11  ;;  %v5973_v28 = vcombine.high %v5907_v7, %v5923_v55  ;;  %12971 = vrot.lane.b32.xlu0 %v24609_v23, %s13477_s13  ;;  %v24612_v49 = vcombine.low %v24610_v4, %v24611_v0  ;;  %v24614_v14 = vcombine.high %v24610_v4, %v24611_v0  ;;  %v24616_v61 = vld [vmem:[#allocation77_spill] sm:$0xff]  ;;  %v24617_v23 = vld [vmem:[#allocation86_spill] sm:$0xff] }
 0x869   :  { %24606 = vst [vmem:[#allocation215_spill] sm:$0xff] %v20226_v40  ;;  %24607 = vst [vmem:[#allocation209_spill] sm:$0xff] %v20229_v44  ;;  %v7181_v27 = vcombine.high %v20143_v26, %v20120_v13  ;;  %v7196_v55 = vcombine.low %v7131_v60, %v7147_v39  ;;  %v7197_v7 = vcombine.high %v7131_v60, %v7147_v39  ;;  %v24619_v4 = vld [vmem:[#allocation69_spill] sm:$0xff]  ;;  %v20263_v13 = vpop.permute.xlu0 %9191  ;;  %v24622_v60 = vld [vmem:[#allocation107_spill] sm:$0xff]  ;;  %v20270_v58 = vpop.permute.xlu1 %9187 }
 0x86a   :  { %24608 = vst [vmem:[#allocation64_spill] sm:$0xff] %v20232_v24  ;;  %v20239_v25 = vpack.i.bf16 %v24612_v49, %v10911_v45  ;;  %v20244_v54 = vpack.i.bf16 %v24614_v14, %v10912_v48  ;;  %v6148_v63 = vcombine.low %v24617_v23, %v24616_v61  ;;  %v24618_v24 = vld [vmem:[#allocation141_spill] sm:$0xff]  ;;  %v20255_v45 = vrot.slane %v5957_v33, %v14031_v8  ;;  %v24620_v48 = vld [vmem:[#allocation100_spill] sm:$0xff]  ;;  %v24623_v14 = vld [vmem:[#allocation90_spill] sm:$0xff] }
 0x86b   :  { %12976 = vrot.lane.b32.xlu1 %v24618_v24, %s13473_s29  ;;  %v6132_v0 = vcombine.low %v24620_v48, %v24619_v4  ;;  %v6133_v49 = vcombine.high %v24620_v48, %v24619_v4  ;;  %v6149_v26 = vcombine.high %v24617_v23, %v24616_v61  ;;  %24621 = vst [vmem:[#allocation220_spill] sm:$0xff] %v20263_v13  ;;  %24624 = vst [vmem:[#allocation53_spill] sm:$0xff] %v20270_v58  ;;  %v24626_v44 = vld [vmem:[#allocation42_spill] sm:$0xff]  ;;  %v24628_v23 = vld [vmem:[#allocation101_spill] sm:$0xff] }
 0x86c   :  { %24613 = vst [vmem:[#allocation17_spill] sm:$0xff] %v20239_v25  ;;  %24615 = vst [vmem:[#allocation219_spill] sm:$0xff] %v20244_v54  ;;  %v20266_v39 = vrot.slane %v5972_v34, %v14031_v8  ;;  %v7372_v24 = vcombine.low %v24623_v14, %v24622_v60  ;;  %v9686_v33 = vcombine.high %v24586_v32, %v24585_v20  ;;  %v24627_v61 = vld [vmem:[#allocation206_spill] sm:$0xff]  ;;  %v24629_v58 = vld [vmem:[#allocation13_spill] sm:$0xff] }
 0x86d   :  { %v9687_v57 = vcombine.low %v24626_v44, %v24625_v15  ;;  %v20277_v4 = vrot.slane %v5973_v28, %v14031_v8  ;;  %v7356_v48 = vcombine.low %v24628_v23, %v24627_v61  ;;  %v7357_v34 = vcombine.high %v24628_v23, %v24627_v61  ;;  %12981 = vrot.lane.b32.xlu0 %v24629_v58, %s13473_s29  ;;  %v24647_v54 = vld [vmem:[#allocation59_spill] sm:$0xff]  ;;  %v24652_v25 = vld [vmem:[#allocation80_spill] sm:$0xff] }
 0x86e   :  { %v7373_v13 = vcombine.high %v24623_v14, %v24622_v60  ;;  %v20288_v32 = vrot.slane %v7181_v27, %v14031_v8  ;;  %v20291_v20 = vrot.slane %v7196_v55, %v14031_v8  ;;  %v6156_v28 = vrot.slane %v6148_v63, %v13617_v1  ;;  %v20304_v14 = vpop.permute.xlu0 %9199  ;;  %v24635_v63 = vld [vmem:[#allocation83_spill] sm:$0xff] }
 0x86f   :  { %12986 = vrot.lane.b32.xlu1 %v24632_v2, %s13474_s30  ;;  %v9688_v61 = vcombine.high %v24626_v44, %v24625_v15  ;;  %v20299_v23 = vrot.slane %v7197_v7, %v14031_v8  ;;  %v6140_v60 = vrot.slane %v6132_v0, %v13617_v1  ;;  %v6147_v58 = vrot.slane %v6133_v49, %v13617_v1  ;;  %v20309_v2 = vpop.permute.xlu1 %9195  ;;  %v24639_v7 = vld [vmem:[#allocation153_spill] sm:$0xff]  ;;  %v24640_v0 = vld [vmem:[#allocation152_spill] sm:$0xff] }
 0x870   :  { %24630 = vst [vmem:[#allocation197_spill] sm:$0xff] %v20288_v32  ;;  %24631 = vst [vmem:[#allocation96_spill] sm:$0xff] %v20291_v20  ;;  %v6163_v27 = vrot.slane %v6149_v26, %v13617_v1  ;;  %v7380_v55 = vrot.slane %v7372_v24, %v13617_v1  ;;  %v6180_v35 = vcombine.low %v24636_v56, %v24635_v63  ;;  %v24646_v20 = vld [vmem:[#allocation126_spill] sm:$0xff] }
 0x871   :  { %24633 = vst [vmem:[#allocation207_spill] sm:$0xff] %v20299_v23  ;;  %24634 = vst [vmem:[#allocation18_spill] sm:$0xff] %v20304_v14  ;;  %v24638_v15 = vcombine.high %v24597_v62, %v24598_v50  ;;  %v24641_v23 = vcombine.low %v24639_v7, %v24640_v0  ;;  %v7364_v26 = vrot.slane %v7356_v48, %v13617_v1  ;;  %v24644_v50 = vld [vmem:[#allocation134_spill] sm:$0xff] }
 0x872   :  { %24637 = vst [vmem:[#allocation217_spill] sm:$0xff] %v20309_v2  ;;  %v7371_v14 = vrot.slane %v7357_v34, %v13617_v1  ;;  %v7387_v24 = vrot.slane %v7373_v13, %v13617_v1  ;;  %v6181_v40 = vcombine.high %v24636_v56, %v24635_v63  ;;  %v24643_v2 = vld [vmem:[#allocation57_spill] sm:$0xff]  ;;  %v6196_v62 = vcombine.low %v6140_v60, %v6156_v28 }
 0x873   :  { %v20314_v44 = vpack.i.bf16 %v24638_v15, %v9686_v33  ;;  %v20319_v49 = vpack.i.bf16 %v24641_v23, %v9687_v57  ;;  %12991 = vrot.lane.b32.xlu0 %v24643_v2, %s13474_s30  ;;  %v24645_v33 = vld [vmem:[#allocation79_spill] sm:$0xff]  ;;  %v7404_v57 = vcombine.low %v24647_v54, %v24646_v20  ;;  %v24649_v48 = vcombine.high %v24639_v7, %v24640_v0  ;;  %v20348_v7 = vpop.permute.xlu1 %9203 }
 0x874   :  { %v6164_v15 = vcombine.low %v24645_v33, %v24644_v50  ;;  %v24648_v23 = vld [vmem:[#allocation167_spill] sm:$0xff]  ;;  %v6197_v34 = vcombine.high %v6140_v60, %v6156_v28  ;;  %v6212_v56 = vcombine.low %v6147_v58, %v6163_v27  ;;  %v6165_v63 = vcombine.high %v24645_v33, %v24644_v50  ;;  %24654 = vst [vmem:[#allocation244_spill] sm:$0xff] %v20348_v7 }
 0x875   :  { %24642 = vst [vmem:[#allocation252_spill] sm:$0xff] %v20319_v49  ;;  %12996 = vrot.lane.b32.xlu1 %v24648_v23, %s13476_s12  ;;  %v20337_v13 = vpack.i.bf16 %v24649_v48, %v9688_v61  ;;  %v7405_v2 = vcombine.high %v24647_v54, %v24646_v20  ;;  %v20343_v49 = vpop.permute.xlu0 %9207  ;;  %v7420_v11 = vcombine.low %v7364_v26, %v7380_v55  ;;  %v24655_v54 = vld [vmem:[#allocation239_spill] sm:$0xff] }
 0x876   :  { %24651 = vst [vmem:[#allocation67_spill] sm:$0xff] %v20343_v49  ;;  %v6213_v32 = vcombine.high %v6147_v58, %v6163_v27  ;;  %v7388_v23 = vcombine.low %v24653_v46, %v24652_v25  ;;  %v6188_v51 = vrot.slane %v6180_v35, %v13617_v1  ;;  %v7421_v61 = vcombine.high %v7364_v26, %v7380_v55  ;;  %v24657_v50 = vld [vmem:[#allocation31_spill] sm:$0xff] }
 0x877   :  { %24650 = vst [vmem:[#allocation250_spill] sm:$0xff] %v20337_v13  ;;  %v7436_v28 = vcombine.low %v7371_v14, %v7387_v24  ;;  %v7389_v60 = vcombine.high %v24653_v46, %v24652_v25  ;;  %v6195_v0 = vrot.slane %v6181_v40, %v13617_v1  ;;  %13001 = vrot.lane.b32.xlu0 %v24655_v54, %s13476_s12 }
 0x878   :  { %v7437_v20 = vcombine.high %v7371_v14, %v7387_v24  ;;  %v20356_v58 = vrot.slane %v6196_v62, %v14031_v8  ;;  %v6172_v27 = vrot.slane %v6164_v15, %v13617_v1  ;;  %v7412_v35 = vrot.slane %v7404_v57, %v13617_v1  ;;  %v20379_v15 = vpop.permute.xlu1 %9211 }
 0x879   :  { %13006 = vrot.lane.b32.xlu1 %v24657_v50, %s13475_s11  ;;  %v20363_v55 = vrot.slane %v6197_v34, %v14031_v8  ;;  %v20366_v46 = vrot.slane %v6212_v56, %v14031_v8  ;;  %v6179_v40 = vrot.slane %v6165_v63, %v13617_v1  ;;  %v7419_v25 = vrot.slane %v7405_v2, %v13617_v1  ;;  %v20370_v14 = vpop.permute.xlu0 %9215  ;;  %v24662_v63 = vld [vmem:[#allocation237_spill] sm:$0xff]  ;;  %v24665_v50 = vld [vmem:[#allocation138_spill] sm:$0xff] }
 0x87a   :  { %24656 = vst [vmem:[#allocation208_spill] sm:$0xff] %v20356_v58  ;;  %24658 = vst [vmem:[#allocation233_spill] sm:$0xff] %v20370_v14  ;;  %v20373_v26 = vrot.slane %v7420_v11, %v14031_v8  ;;  %v20376_v24 = vrot.slane %v6213_v32, %v14031_v8  ;;  %v7396_v62 = vrot.slane %v7388_v23, %v13617_v1 }
 0x87b   :  { %v6228_v33 = vcombine.low %v6172_v27, %v6188_v51  ;;  %24660 = vst [vmem:[#allocation228_spill] sm:$0xff] %v20379_v15  ;;  %v20382_v57 = vrot.slane %v7421_v61, %v14031_v8  ;;  %v7403_v48 = vrot.slane %v7389_v60, %v13617_v1  ;;  %v6229_v34 = vcombine.high %v6172_v27, %v6188_v51  ;;  %v24666_v60 = vld [vmem:[#allocation130_spill] sm:$0xff] }
 0x87c   :  { %24659 = vst [vmem:[#allocation227_spill] sm:$0xff] %v20373_v26  ;;  %v6244_v56 = vcombine.low %v6179_v40, %v6195_v0  ;;  %13011 = vrot.lane.b32.xlu0 %v24662_v63, %s13475_s11  ;;  %v20388_v11 = vrot.slane %v7436_v28, %v14031_v8  ;;  %v7452_v32 = vcombine.low %v7396_v62, %v7412_v35  ;;  %v24725_v26 = vld [vmem:[#allocation223_spill] sm:$0xff] }
 0x87d   :  { %24661 = vst [vmem:[#allocation225_spill] sm:$0xff] %v20382_v57  ;;  %v7453_v2 = vcombine.high %v7396_v62, %v7412_v35  ;;  %v6245_v54 = vcombine.high %v6179_v40, %v6195_v0  ;;  %13016 = vrot.lane.b32.xlu1 %v19835_v21, %s13473_s29  ;;  %v20393_v23 = vrot.slane %v7437_v20, %v14031_v8  ;;  %v20399_v63 = vpop.permute.xlu0 %9189  ;;  %v24669_v0 = vld [vmem:[#allocation98_spill] sm:$0xff]  ;;  %v24670_v35 = vld [vmem:[#allocation88_spill] sm:$0xff]  ;;  %v24671_v21 = vld [vmem:[#allocation105_spill] sm:$0xff] }
 0x87e   :  { %24663 = vst [vmem:[#allocation235_spill] sm:$0xff] %v20388_v11  ;;  %v7468_v61 = vcombine.low %v7403_v48, %v7419_v25  ;;  %v6284_v51 = vcombine.low %v24666_v60, %v24665_v50  ;;  %v6285_v27 = vcombine.high %v24666_v60, %v24665_v50  ;;  %24667 = vst [vmem:[#allocation78_spill] sm:$0xff] %v20399_v63  ;;  %v24672_v62 = vld [vmem:[#allocation135_spill] sm:$0xff]  ;;  %v24676_v60 = vld [vmem:[#allocation165_spill] sm:$0xff] }
 0x87f   :  { %24664 = vst [vmem:[#allocation229_spill] sm:$0xff] %v20393_v23  ;;  %v7469_v28 = vcombine.high %v7403_v48, %v7419_v25  ;;  %v20402_v49 = vrot.slane %v6228_v33, %v14031_v8  ;;  %v6268_v40 = vcombine.low %v24670_v35, %v24669_v0  ;;  %v7508_v20 = vcombine.low %v24672_v62, %v24671_v21  ;;  %v20408_v23 = vpop.permute.xlu1 %9185  ;;  %v24674_v48 = vld [vmem:[#allocation156_spill] sm:$0xff]  ;;  %v24675_v33 = vld [vmem:[#allocation121_spill] sm:$0xff]  ;;  %v24680_v62 = vld [vmem:[#allocation95_spill] sm:$0xff] }
 0x880   :  { %24673 = vst [vmem:[#allocation162_spill] sm:$0xff] %v20408_v23  ;;  %v20411_v14 = vrot.slane %v6229_v34, %v14031_v8  ;;  %v20414_v7 = vrot.slane %v6244_v56, %v14031_v8  ;;  %v6269_v25 = vcombine.high %v24670_v35, %v24669_v0  ;;  %v6316_v50 = vcombine.low %v24675_v33, %v24674_v48  ;;  %v24679_v56 = vld [vmem:[#allocation137_spill] sm:$0xff]  ;;  %v24706_v57 = vld [vmem:[#allocation222_spill] sm:$0xff] }
 0x881   :  { %24668 = vst [vmem:[#allocation166_spill] sm:$0xff] %v20402_v49  ;;  %13021 = vrot.lane.b32.xlu0 %v24676_v60, %s13478_s14  ;;  %v20423_v63 = vrot.slane %v7452_v32, %v14031_v8  ;;  %v20426_v21 = vrot.slane %v7453_v2, %v14031_v8  ;;  %v20429_v34 = vrot.slane %v6245_v54, %v14031_v8  ;;  %v24682_v2 = vld [vmem:[#allocation154_spill] sm:$0xff]  ;;  %v24683_v60 = vld [vmem:[#allocation148_spill] sm:$0xff]  ;;  %v20446_v54 = vpop.permute.xlu0 %9197 }
 0x882   :  { %v7492_v23 = vcombine.low %v24680_v62, %v24679_v56  ;;  %13026 = vrot.lane.b32.xlu1 %v20059_v9, %s13473_s29  ;;  %v20436_v0 = vrot.slane %v7468_v61, %v14031_v8  ;;  %v20439_v35 = vrot.slane %v6284_v51, %v13617_v1  ;;  %v20442_v32 = vrot.slane %v6285_v27, %v13617_v1 }
 0x883   :  { %24677 = vst [vmem:[#allocation37_spill] sm:$0xff] %v20423_v63  ;;  %24678 = vst [vmem:[#allocation46_spill] sm:$0xff] %v20426_v21  ;;  %v6300_v15 = vcombine.low %v24683_v60, %v24682_v2  ;;  %v20449_v11 = vrot.slane %v7469_v28, %v14031_v8  ;;  %v20452_v56 = vrot.slane %v6268_v40, %v13617_v1  ;;  %v20459_v51 = vpop.permute.xlu1 %9193  ;;  %v24689_v28 = vld [vmem:[#allocation155_spill] sm:$0xff] }
 0x884   :  { %24681 = vst [vmem:[#allocation109_spill] sm:$0xff] %v20436_v0  ;;  %24684 = vst [vmem:[#allocation136_spill] sm:$0xff] %v20446_v54  ;;  %v20455_v9 = vrot.slane %v7508_v20, %v13617_v1  ;;  %v6317_v61 = vcombine.high %v24675_v33, %v24674_v48  ;;  %v20462_v27 = vrot.slane %v6269_v25, %v13617_v1  ;;  %v24688_v54 = vld [vmem:[#allocation29_spill] sm:$0xff]  ;;  %v24690_v20 = vld [vmem:[#allocation210_spill] sm:$0xff] }
 0x885   :  { %24685 = vst [vmem:[#allocation230_spill] sm:$0xff] %v20449_v11  ;;  %24687 = vst [vmem:[#allocation257_spill] sm:$0xff] %v20459_v51  ;;  %v6301_v62 = vcombine.high %v24683_v60, %v24682_v2  ;;  %v7540_v11 = vcombine.low %v24689_v28, %v24688_v54  ;;  %v20469_v40 = vrot.slane %v6316_v50, %v13617_v1  ;;  %13031 = vrot.lane.b32.xlu0 %v24690_v20, %s13478_s14  ;;  %v24692_v48 = vld [vmem:[#allocation150_spill] sm:$0xff]  ;;  %v24694_v25 = vld [vmem:[#allocation191_spill] sm:$0xff] }
 0x886   :  { %24686 = vst [vmem:[#allocation226_spill] sm:$0xff] %v20455_v9  ;;  %v20474_v0 = vrot.slane %v7492_v23, %v13617_v1  ;;  %v24693_v33 = vld [vmem:[#allocation142_spill] sm:$0xff]  ;;  %13036 = vrot.lane.b32.xlu1 %v19840_v53, %s13474_s30  ;;  %v5989_v54 = vcombine.high %v20052_v22, %v20023_v17  ;;  %v6332_v50 = vcombine.low %v20452_v56, %v20439_v35  ;;  %v24707_v9 = vld [vmem:[#allocation163_spill] sm:$0xff] }
 0x887   :  { %v7524_v51 = vcombine.low %v24693_v33, %v24692_v48  ;;  %v24695_v2 = vld [vmem:[#allocation186_spill] sm:$0xff]  ;;  %v20491_v20 = vrot.slane %v6300_v15, %v13617_v1  ;;  %v20493_v48 = vpop.permute.xlu0 %9205  ;;  %v20504_v28 = vpop.permute.xlu1 %9201  ;;  %v20509_v22 = vrot.slane %v6301_v62, %v13617_v1  ;;  %v5854_v62 = vcombine.low %v19892_v19, %v20104_v36  ;;  %v24705_v15 = vld [vmem:[#allocation193_spill] sm:$0xff]  ;;  %v24728_v63 = vld [vmem:[#allocation87_spill] sm:$0xff] }
 0x888   :  { %24691 = vst [vmem:[#allocation248_spill] sm:$0xff] %v20474_v0  ;;  %v5853_v60 = vcombine.high %v24695_v2, %v24694_v25  ;;  %24696 = vst [vmem:[#allocation68_spill] sm:$0xff] %v20493_v48  ;;  %v20502_v2 = vrot.slane %v6317_v61, %v13617_v1  ;;  %v20512_v48 = vrot.slane %v7540_v11, %v13617_v1  ;;  %v24701_v53 = vld [vmem:[#allocation26_spill] sm:$0xff]  ;;  %v24703_v25 = vld [vmem:[#allocation119_spill] sm:$0xff] }
 0x889   :  { %24697 = vst [vmem:[#allocation183_spill] sm:$0xff] %v20504_v28  ;;  %v6364_v33 = vcombine.low %v20491_v20, %v20469_v40  ;;  %13041 = vrot.lane.b32.xlu0 %v24701_v53, %s13477_s13  ;;  %v20519_v61 = vrot.slane %v7524_v51, %v13617_v1  ;;  %v5855_v11 = vcombine.high %v19892_v19, %v20104_v36  ;;  %v24708_v0 = vld [vmem:[#allocation48_spill] sm:$0xff]  ;;  %v24729_v17 = vld [vmem:[#allocation91_spill] sm:$0xff] }
 0x88a   :  { %24700 = vst [vmem:[#allocation205_spill] sm:$0xff] %v20512_v48  ;;  %13046 = vrot.lane.b32.xlu1 %v24703_v25, %s13479_s15  ;;  %v20523_v28 = vpack.i.bf16 %v5989_v54, %v5853_v60  ;;  %v11049_v21 = vcombine.low %v24706_v57, %v24705_v15  ;;  %v11065_v53 = vcombine.low %v24708_v0, %v24707_v9  ;;  %v24722_v48 = vld [vmem:[#allocation51_spill] sm:$0xff] }
 0x88b   :  { %24702 = vst [vmem:[#allocation24_spill] sm:$0xff] %v20519_v61  ;;  %v20533_v13 = vpop.permute.xlu0 %9213  ;;  %v6365_v60 = vcombine.high %v20491_v20, %v20469_v40  ;;  %v11050_v36 = vcombine.high %v24706_v57, %v24705_v15  ;;  %v11066_v54 = vcombine.high %v24708_v0, %v24707_v9  ;;  %v20547_v23 = vpop.permute.xlu1 %9209  ;;  %v20556_v40 = vrot.slane %v6364_v33, %v14031_v8 }
 0x88c   :  { %24704 = vst [vmem:[#allocation251_spill] sm:$0xff] %v20523_v28  ;;  %24709 = vst [vmem:[#allocation238_spill] sm:$0xff] %v20533_v13  ;;  %v6261_v51 = vcombine.high %v20356_v58, %v20402_v49  ;;  %v11057_v33 = vrot.slane %v11049_v21, %v13617_v1  ;;  %v11073_v25 = vrot.slane %v11065_v53, %v13617_v1  ;;  %v24717_v21 = vld [vmem:[#allocation66_spill] sm:$0xff]  ;;  %v24718_v58 = vld [vmem:[#allocation131_spill] sm:$0xff] }
 0x88d   :  { %24710 = vst [vmem:[#allocation122_spill] sm:$0xff] %v20547_v23  ;;  %13051 = vrot.lane.b32.xlu0 %v20166_v5, %s13474_s30  ;;  %24711 = vst [vmem:[#allocation108_spill] sm:$0xff] %v20556_v40  ;;  %v6262_v5 = vcombine.low %v20363_v55, %v20411_v14  ;;  %v20575_v0 = vrot.slane %v6332_v50, %v14031_v8  ;;  %v11080_v19 = vrot.slane %v11066_v54, %v13617_v1  ;;  %v24719_v54 = vld [vmem:[#allocation177_spill] sm:$0xff]  ;;  %v24721_v23 = vld [vmem:[#allocation170_spill] sm:$0xff] }
 0x88e   :  { %13056 = vrot.lane.b32.xlu1 %v19823_v37, %s13477_s13  ;;  %v11064_v37 = vrot.slane %v11050_v36, %v13617_v1  ;;  %v5990_v15 = vcombine.low %v20203_v31, %v20255_v45  ;;  %v5991_v36 = vcombine.high %v20203_v31, %v20255_v45  ;;  %v24723_v53 = vld [vmem:[#allocation169_spill] sm:$0xff]  ;;  %v24726_v50 = vld [vmem:[#allocation19_spill] sm:$0xff]  ;;  %v24730_v31 = vcombine.low %v24728_v63, %v24729_v17 }
 0x88f   :  { %v20572_v57 = vpop.permute.xlu0 %9239  ;;  %24715 = vst [vmem:[#allocation75_spill] sm:$0xff] %v20575_v0  ;;  %v20581_v13 = vpop.permute.xlu1 %9235  ;;  %v11097_v61 = vcombine.low %v24723_v53, %v24722_v48  ;;  %v24727_v40 = vcombine.high %v24725_v26, %v24726_v50  ;;  %v11098_v20 = vcombine.high %v24723_v53, %v24722_v48  ;;  %v11114_v50 = vcombine.high %v11057_v33, %v11073_v25  ;;  %v24734_v53 = vld [vmem:[#allocation176_spill] sm:$0xff] }
 0x890   :  { %24714 = vst [vmem:[#allocation54_spill] sm:$0xff] %v20572_v57  ;;  %24716 = vst [vmem:[#allocation44_spill] sm:$0xff] %v20581_v13  ;;  %v24720_v13 = vld [vmem:[#allocation36_spill] sm:$0xff]  ;;  %v20611_v45 = vpack.i.bf16 %v6262_v5, %v24730_v31  ;;  %v11113_v57 = vcombine.low %v11057_v33, %v11073_v25 }
 0x891   :  { %13061 = vrot.lane.b32.xlu0 %v20049_v3, %s13476_s12  ;;  %v11081_v49 = vcombine.low %v24721_v23, %v24720_v13  ;;  %v24724_v3 = vld [vmem:[#allocation56_spill] sm:$0xff]  ;;  %v20606_v0 = vpack.i.bf16 %v6261_v51, %v24727_v40  ;;  %v11082_v9 = vcombine.high %v24721_v23, %v24720_v13  ;;  %v11129_v51 = vcombine.low %v11064_v37, %v11080_v19 }
 0x892   :  { %13066 = vrot.lane.b32.xlu1 %v24724_v3, %s13479_s15  ;;  %v11130_v40 = vcombine.high %v11064_v37, %v11080_v19  ;;  %v24733_v5 = vld [vmem:[#allocation180_spill] sm:$0xff]  ;;  %v20627_v13 = vpack.i.bf16 %v5990_v15, %v5854_v62  ;;  %v20629_v23 = vpack.i.bf16 %v5991_v36, %v5855_v11  ;;  %v11105_v33 = vrot.slane %v11097_v61, %v13617_v1  ;;  %v24735_v37 = vld [vmem:[#allocation11_spill] sm:$0xff]  ;;  %v24739_v62 = vld [vmem:[#allocation174_spill] sm:$0xff] }
 0x893   :  { %v20617_v28 = vpop.permute.xlu0 %9247  ;;  %v20621_v26 = vpop.permute.xlu1 %9243  ;;  %v11089_v19 = vrot.slane %v11081_v49, %v13617_v1  ;;  %v24736_v3 = vld [vmem:[#allocation256_spill] sm:$0xff]  ;;  %v20644_v11 = vrot.slane %v11113_v57, %v14031_v8  ;;  %v11096_v15 = vrot.slane %v11082_v9, %v13617_v1  ;;  %v11112_v36 = vrot.slane %v11098_v20, %v13617_v1 }
 0x894   :  { %24731 = vst [vmem:[#allocation27_spill] sm:$0xff] %v20617_v28  ;;  %24732 = vst [vmem:[#allocation21_spill] sm:$0xff] %v20621_v26  ;;  %v11185_v31 = vcombine.low %v24736_v3, %v24735_v37  ;;  %v24737_v28 = vld [vmem:[#allocation172_spill] sm:$0xff]  ;;  %v24738_v26 = vld [vmem:[#allocation50_spill] sm:$0xff]  ;;  %v20651_v49 = vrot.slane %v6365_v60, %v14031_v8  ;;  %v20654_v61 = vrot.slane %v11114_v50, %v14031_v8 }
 0x895   :  { %13071 = vrot.lane.b32.xlu0 %v20181_v42, %s13476_s12  ;;  %v11201_v42 = vcombine.low %v24738_v26, %v24737_v28  ;;  %24740 = vst [vmem:[#allocation55_spill] sm:$0xff] %v20644_v11  ;;  %v20657_v48 = vrot.slane %v11129_v51, %v14031_v8  ;;  %v6263_v9 = vcombine.high %v20363_v55, %v20411_v14 }
 0x896   :  { %13076 = vrot.lane.b32.xlu1 %v24739_v62, %s13479_s15  ;;  %24742 = vst [vmem:[#allocation97_spill] sm:$0xff] %v20654_v61  ;;  %v20660_v62 = vrot.slane %v11130_v40, %v14031_v8  ;;  %v11186_v20 = vcombine.high %v24736_v3, %v24735_v37  ;;  %v11202_v60 = vcombine.high %v24738_v26, %v24737_v28  ;;  %v24750_v40 = vld [vmem:[#allocation175_spill] sm:$0xff] }
 0x897   :  { %v20648_v25 = vpop.permute.xlu0 %9255  ;;  %24743 = vst [vmem:[#allocation133_spill] sm:$0xff] %v20657_v48  ;;  %v20662_v57 = vpop.permute.xlu1 %9251  ;;  %v24746_v50 = vcombine.high %v20452_v56, %v20439_v35  ;;  %v11193_v55 = vrot.slane %v11185_v31, %v13617_v1  ;;  %v11209_v14 = vrot.slane %v11201_v42, %v13617_v1  ;;  %v11146_v26 = vcombine.high %v11089_v19, %v11105_v33  ;;  %v24751_v56 = vld [vmem:[#allocation124_spill] sm:$0xff] }
 0x898   :  { %24741 = vst [vmem:[#allocation32_spill] sm:$0xff] %v20648_v25  ;;  %24744 = vst [vmem:[#allocation116_spill] sm:$0xff] %v20660_v62  ;;  %v11145_v25 = vcombine.low %v11089_v19, %v11105_v33  ;;  %v11161_v28 = vcombine.low %v11096_v15, %v11112_v36  ;;  %v11162_v37 = vcombine.high %v11096_v15, %v11112_v36  ;;  %v24752_v36 = vld [vmem:[#allocation132_spill] sm:$0xff] }
 0x899   :  { %24745 = vst [vmem:[#allocation151_spill] sm:$0xff] %v20662_v57  ;;  %13081 = vrot.lane.b32.xlu0 %v20064_v43, %s13475_s11  ;;  %v20676_v51 = vrot.slane %v24746_v50, %v14031_v8  ;;  %v6264_v43 = vcombine.low %v20366_v46, %v20414_v7  ;;  %v24749_v42 = vcombine.high %v24728_v63, %v24729_v17  ;;  %v24754_v17 = vld [vmem:[#allocation62_spill] sm:$0xff] }
 0x89a   :  { %13086 = vrot.lane.b32.xlu1 %v20196_v52, %s13475_s11  ;;  %v5992_v19 = vcombine.low %v20206_v41, %v20266_v39  ;;  %v5993_v33 = vcombine.high %v20206_v41, %v20266_v39  ;;  %v11200_v50 = vrot.slane %v11186_v20, %v13617_v1  ;;  %v11216_v35 = vrot.slane %v11202_v60, %v13617_v1  ;;  %v24756_v41 = vld [vmem:[#allocation63_spill] sm:$0xff]  ;;  %v24757_v39 = vld [vmem:[#allocation164_spill] sm:$0xff] }
 0x89b   :  { %v20686_v3 = vpop.permute.xlu0 %9263  ;;  %v20692_v31 = vpop.permute.xlu1 %9259  ;;  %v20697_v52 = vpack.i.bf16 %v6263_v9, %v24749_v42  ;;  %v11217_v15 = vcombine.low %v24751_v56, %v24750_v40  ;;  %v20712_v63 = vrot.slane %v11145_v25, %v14031_v8  ;;  %v11249_v9 = vcombine.low %v11193_v55, %v11209_v14 }
 0x89c   :  { %24747 = vst [vmem:[#allocation140_spill] sm:$0xff] %v20686_v3  ;;  %24748 = vst [vmem:[#allocation99_spill] sm:$0xff] %v20692_v31  ;;  %v24753_v3 = vld [vmem:[#allocation111_spill] sm:$0xff]  ;;  %v24758_v20 = vcombine.low %v24756_v41, %v24757_v39  ;;  %v24759_v42 = vcombine.low %v20509_v22, %v20502_v2  ;;  %v20731_v25 = vrot.slane %v11161_v28, %v14031_v8 }
 0x89d   :  { %v11233_v57 = vcombine.low %v24753_v3, %v24752_v36  ;;  %13096 = vrot.lane.b32.xlu0 %v24754_v17, %s13477_s13  ;;  %24755 = vst [vmem:[#allocation74_spill] sm:$0xff] %v20712_v63  ;;  %v20728_v17 = vrot.slane %v11146_v26, %v14031_v8  ;;  %v11234_v62 = vcombine.high %v24753_v3, %v24752_v36 }
 0x89e   :  { %13091 = vrot.lane.b32.xlu1 %v20069_v47, %s13478_s14  ;;  %v20719_v60 = vpack.i.bf16 %v6264_v43, %v24758_v20  ;;  %v20725_v31 = vrot.slane %v24759_v42, %v14031_v8  ;;  %24761 = vst [vmem:[#allocation129_spill] sm:$0xff] %v20731_v25  ;;  %v11218_v47 = vcombine.high %v24751_v56, %v24750_v40 }
 0x89f   :  { %24760 = vst [vmem:[#allocation110_spill] sm:$0xff] %v20728_v17  ;;  %v20737_v43 = vpop.permute.xlu0 %9237  ;;  %v20740_v20 = vrot.slane %v11162_v37, %v14031_v8  ;;  %v11250_v48 = vcombine.high %v11193_v55, %v11209_v14  ;;  %v20742_v42 = vpop.permute.xlu1 %9233  ;;  %v24765_v26 = vcombine.low %v19895_v30, %v20107_v18  ;;  %v24766_v40 = vcombine.low %v20462_v27, %v20442_v32 }
 0x8a0   :  { %24762 = vst [vmem:[#allocation52_spill] sm:$0xff] %v20737_v43  ;;  %24764 = vst [vmem:[#allocation14_spill] sm:$0xff] %v20742_v42  ;;  %v11265_v3 = vcombine.low %v11200_v50, %v11216_v35  ;;  %v11225_v56 = vrot.slane %v11217_v15, %v13617_v1  ;;  %v11241_v37 = vrot.slane %v11233_v57, %v13617_v1  ;;  %v24774_v15 = vld [vmem:[#allocation216_spill] sm:$0xff]  ;;  %v24777_v42 = vld [vmem:[#allocation61_spill] sm:$0xff] }
 0x8a1   :  { %24763 = vst [vmem:[#allocation249_spill] sm:$0xff] %v20740_v20  ;;  %v20747_v61 = vpack.i.bf16 %v5992_v19, %v24765_v26  ;;  %v20753_v28 = vrot.slane %v24766_v40, %v14031_v8  ;;  %13101 = vrot.lane.b32.xlu0 %v20314_v44, %s13478_s14  ;;  %v24767_v55 = vcombine.high %v19895_v30, %v20107_v18  ;;  %v24769_v26 = vld [vmem:[#allocation214_spill] sm:$0xff]  ;;  %v24776_v57 = vld [vmem:[#allocation196_spill] sm:$0xff] }
 0x8a2   :  { %v20765_v19 = vrot.slane %v11249_v9, %v14031_v8  ;;  %v11266_v36 = vcombine.high %v11200_v50, %v11216_v35  ;;  %13111 = vrot.lane.b32.xlu1 %v24769_v26, %s13479_s15  ;;  %v11232_v44 = vrot.slane %v11218_v47, %v13617_v1  ;;  %v11248_v40 = vrot.slane %v11234_v62, %v13617_v1  ;;  %v24773_v62 = vld [vmem:[#allocation159_spill] sm:$0xff] }
 0x8a3   :  { %v20762_v14 = vpack.i.bf16 %v5993_v33, %v24767_v55  ;;  %v20775_v30 = vpop.permute.xlu0 %9245  ;;  %v6265_v18 = vcombine.high %v20366_v46, %v20414_v7  ;;  %v6266_v35 = vcombine.low %v20376_v24, %v20429_v34  ;;  %v20782_v33 = vrot.slane %v11250_v48, %v14031_v8  ;;  %v20784_v50 = vpop.permute.xlu1 %9241  ;;  %v24775_v7 = vld [vmem:[#allocation218_spill] sm:$0xff]  ;;  %v24778_v48 = vld [vmem:[#allocation17_spill] sm:$0xff] }
 0x8a4   :  { %24768 = vst [vmem:[#allocation182_spill] sm:$0xff] %v20765_v19  ;;  %24770 = vst [vmem:[#allocation254_spill] sm:$0xff] %v20775_v30  ;;  %v5994_v9 = vcombine.low %v20219_v16, %v20277_v4  ;;  %v5995_v47 = vcombine.high %v20219_v16, %v20277_v4  ;;  %v7213_v55 = vcombine.high %v24773_v62, %v20189_v6  ;;  %v24780_v30 = vld [vmem:[#allocation35_spill] sm:$0xff]  ;;  %v24782_v62 = vld [vmem:[#allocation252_spill] sm:$0xff] }
 0x8a5   :  { %24771 = vst [vmem:[#allocation241_spill] sm:$0xff] %v20782_v33  ;;  %24772 = vst [vmem:[#allocation45_spill] sm:$0xff] %v20784_v50  ;;  %v11281_v26 = vcombine.low %v11225_v56, %v11241_v37  ;;  %v9825_v46 = vcombine.low %v24775_v7, %v24774_v15  ;;  %v9841_v43 = vcombine.low %v24777_v42, %v24776_v57  ;;  %13106 = vrot.lane.b32.xlu0 %v24778_v48, %s13477_s13  ;;  %v24779_v50 = vld [vmem:[#allocation197_spill] sm:$0xff] }
 0x8a6   :  { %v7214_v20 = vcombine.low %v24780_v30, %v24779_v50  ;;  %v20801_v25 = vrot.slane %v11265_v3, %v14031_v8  ;;  %v11282_v16 = vcombine.high %v11225_v56, %v11241_v37  ;;  %v9826_v4 = vcombine.high %v24775_v7, %v24774_v15  ;;  %13116 = vrot.lane.b32.xlu1 %v24782_v62, %s13477_s13  ;;  %v24786_v56 = vld [vmem:[#allocation171_spill] sm:$0xff]  ;;  %v24787_v37 = vld [vmem:[#allocation168_spill] sm:$0xff] }
 0x8a7   :  { %v9842_v6 = vcombine.high %v24777_v42, %v24776_v57  ;;  %v20810_v17 = vrot.slane %v11266_v36, %v14031_v8  ;;  %v11297_v48 = vcombine.low %v11232_v44, %v11248_v40  ;;  %v20812_v33 = vpop.permute.xlu0 %9253  ;;  %v24785_v3 = vcombine.high %v24756_v41, %v24757_v39  ;;  %v20824_v57 = vpop.permute.xlu1 %9249 }
 0x8a8   :  { %24781 = vst [vmem:[#allocation118_spill] sm:$0xff] %v20801_v25  ;;  %24784 = vst [vmem:[#allocation65_spill] sm:$0xff] %v20812_v33  ;;  %v24788_v15 = vcombine.low %v24786_v56, %v24787_v37  ;;  %v11298_v42 = vcombine.high %v11232_v44, %v11248_v40  ;;  %v24790_v36 = vcombine.low %v19898_v29, %v20133_v12 }
 0x8a9   :  { %24783 = vst [vmem:[#allocation173_spill] sm:$0xff] %v20810_v17  ;;  %v20817_v25 = vpack.i.bf16 %v6265_v18, %v24785_v3  ;;  %24789 = vst [vmem:[#allocation117_spill] sm:$0xff] %v20824_v57  ;;  %v24791_v33 = vcombine.high %v19898_v29, %v20133_v12  ;;  %v24792_v41 = vcombine.high %v24718_v58, %v24717_v21  ;;  %v24815_v58 = vld [vmem:[#allocation108_spill] sm:$0xff] }
 0x8aa   :  { %v20822_v7 = vpack.i.bf16 %v6266_v35, %v24788_v15  ;;  %v20829_v62 = vpack.i.bf16 %v5994_v9, %v24790_v36  ;;  %v20842_v18 = vrot.slane %v11281_v26, %v14031_v8  ;;  %v9833_v44 = vrot.slane %v9825_v46, %v13617_v1  ;;  %v24795_v35 = vld [vmem:[#allocation251_spill] sm:$0xff]  ;;  %v24800_v26 = vld [vmem:[#allocation200_spill] sm:$0xff]  ;;  %v24805_v36 = vld [vmem:[#allocation149_spill] sm:$0xff] }
 0x8ab   :  { %v20834_v17 = vpack.i.bf16 %v5995_v47, %v24791_v33  ;;  %v20839_v39 = vpack.i.bf16 %v7213_v55, %v24792_v41  ;;  %v9849_v40 = vrot.slane %v9841_v43, %v13617_v1  ;;  %13131 = vrot.lane.b32.xlu0 %v24795_v35, %s13473_s29  ;;  %v24796_v29 = vcombine.low %v24719_v54, %v20127_v10  ;;  %v24798_v55 = vld [vmem:[#allocation219_spill] sm:$0xff]  ;;  %v24799_v43 = vld [vmem:[#allocation41_spill] sm:$0xff]  ;;  %v24817_v57 = vld [vmem:[#allocation96_spill] sm:$0xff] }
 0x8ac   :  { %24794 = vst [vmem:[#allocation49_spill] sm:$0xff] %v20842_v18  ;;  %v20854_v33 = vrot.slane %v11282_v16, %v14031_v8  ;;  %v9840_v9 = vrot.slane %v9826_v4, %v13617_v1  ;;  %v9856_v47 = vrot.slane %v9842_v6, %v13617_v1  ;;  %13121 = vrot.lane.b32.xlu1 %v24798_v55, %s13479_s15  ;;  %v24806_v41 = vld [vmem:[#allocation143_spill] sm:$0xff]  ;;  %v20888_v55 = vpop.permute.xlu1 %9257 }
 0x8ad   :  { %24793 = vst [vmem:[#allocation23_spill] sm:$0xff] %v20839_v39  ;;  %v20851_v12 = vpack.i.bf16 %v7214_v20, %v24796_v29  ;;  %v24801_v46 = vcombine.high %v24799_v43, %v24800_v26  ;;  %v20867_v15 = vrot.slane %v11297_v48, %v14031_v8  ;;  %v20869_v20 = vpop.permute.xlu0 %9261  ;;  %v24804_v16 = vcombine.high %v20509_v22, %v20502_v2  ;;  %v24822_v39 = vld [vmem:[#allocation247_spill] sm:$0xff] }
 0x8ae   :  { %24803 = vst [vmem:[#allocation123_spill] sm:$0xff] %v20869_v20  ;;  %v6267_v6 = vcombine.high %v20376_v24, %v20429_v34  ;;  %v24807_v35 = vcombine.high %v24805_v36, %v24806_v41  ;;  %v20886_v48 = vrot.slane %v11298_v42, %v14031_v8  ;;  %24810 = vst [vmem:[#allocation160_spill] sm:$0xff] %v20888_v55  ;;  %v24818_v55 = vld [vmem:[#allocation215_spill] sm:$0xff] }
 0x8af   :  { %24797 = vst [vmem:[#allocation139_spill] sm:$0xff] %v20851_v12  ;;  %v20864_v3 = vrot.slane %v24801_v46, %v14031_v8  ;;  %v20875_v4 = vrot.slane %v24804_v16, %v14031_v8  ;;  %v24811_v22 = vcombine.high %v20462_v27, %v20442_v32  ;;  %v24812_v46 = vld [vmem:[#allocation37_spill] sm:$0xff]  ;;  %v24813_v16 = vld [vmem:[#allocation227_spill] sm:$0xff]  ;;  %v7215_v34 = vcombine.high %v24780_v30, %v24779_v50  ;;  %v24821_v50 = vld [vmem:[#allocation184_spill] sm:$0xff] }
 0x8b0   :  { %v20883_v29 = vrot.slane %v24807_v35, %v14031_v8  ;;  %24809 = vst [vmem:[#allocation190_spill] sm:$0xff] %v20886_v48  ;;  %v7485_v24 = vcombine.high %v24813_v16, %v24812_v46  ;;  %v9889_v21 = vcombine.low %v9833_v44, %v9849_v40  ;;  %v24814_v35 = vld [vmem:[#allocation75_spill] sm:$0xff]  ;;  %v7216_v20 = vcombine.low %v24818_v55, %v24817_v57  ;;  %v24819_v16 = vld [vmem:[#allocation234_spill] sm:$0xff]  ;;  %v24820_v48 = vld [vmem:[#allocation188_spill] sm:$0xff] }
 0x8b1   :  { %24802 = vst [vmem:[#allocation104_spill] sm:$0xff] %v20864_v3  ;;  %v20894_v2 = vrot.slane %v24811_v22, %v14031_v8  ;;  %v24816_v42 = vcombine.high %v24814_v35, %v24815_v58  ;;  %v9890_v22 = vcombine.high %v9833_v44, %v9849_v40  ;;  %v9905_v46 = vcombine.low %v9840_v9, %v9856_v47  ;;  %v24823_v35 = vld [vmem:[#allocation250_spill] sm:$0xff]  ;;  %v20916_v58 = vpop.permute.xlu0 %12851  ;;  %v24828_v32 = vld [vmem:[#allocation207_spill] sm:$0xff] }
 0x8b2   :  { %24808 = vst [vmem:[#allocation30_spill] sm:$0xff] %v20883_v29  ;;  %v9857_v30 = vcombine.low %v24820_v48, %v24819_v16  ;;  %v9873_v12 = vcombine.low %v24822_v39, %v24821_v50  ;;  %13126 = vrot.lane.b32.xlu1 %v24823_v35, %s13479_s15  ;;  %24824 = vst [vmem:[#allocation120_spill] sm:$0xff] %v20916_v58  ;;  %v24825_v44 = vcombine.high %v24786_v56, %v24787_v37  ;;  %v24829_v29 = vld [vmem:[#allocation209_spill] sm:$0xff]  ;;  %v24831_v56 = vld [vmem:[#allocation236_spill] sm:$0xff] }
 0x8b3   :  { %7653 = vrot.lane.b32.xlu0 %v24816_v42, %s13473_s29  ;;  %v9906_v42 = vcombine.high %v9840_v9, %v9856_v47  ;;  %v9858_v3 = vcombine.high %v24820_v48, %v24819_v16  ;;  %v9874_v35 = vcombine.high %v24822_v39, %v24821_v50  ;;  %v20931_v9 = vpop.permute.xlu1 %12856  ;;  %v7217_v47 = vcombine.high %v24818_v55, %v24817_v57  ;;  %v24832_v37 = vld [vmem:[#allocation231_spill] sm:$0xff] }
 0x8b4   :  { %v20925_v40 = vpack.i.bf16 %v6267_v6, %v24825_v44  ;;  %24827 = vst [vmem:[#allocation161_spill] sm:$0xff] %v20931_v9  ;;  %v7218_v58 = vcombine.low %v24829_v29, %v24828_v32  ;;  %v20938_v27 = vrot.slane %v9889_v21, %v14031_v8  ;;  %v24833_v6 = vcombine.high %v24831_v56, %v24832_v37  ;;  %v24842_v44 = vld [vmem:[#allocation127_spill] sm:$0xff] }
 0x8b5   :  { %v24835_v39 = vcombine.high %v24719_v54, %v20127_v10  ;;  %v24837_v57 = vcombine.low %v24733_v5, %v20130_v59  ;;  %v20958_v21 = vrot.slane %v9890_v22, %v14031_v8  ;;  %v9865_v50 = vrot.slane %v9857_v30, %v13617_v1  ;;  %v24840_v54 = vld [vmem:[#allocation128_spill] sm:$0xff] }
 0x8b6   :  { %24826 = vst [vmem:[#allocation89_spill] sm:$0xff] %v20925_v40  ;;  %24830 = vst [vmem:[#allocation157_spill] sm:$0xff] %v20938_v27  ;;  %v20945_v48 = vpack.i.bf16 %v7485_v24, %v24833_v6  ;;  %v9881_v24 = vrot.slane %v9873_v12, %v13617_v1  ;;  %13136 = vrot.lane.b32.xlu1 %v20606_v0, %s13473_s29  ;;  %v20968_v10 = vrot.slane %v9906_v42, %v14031_v8  ;;  %v24843_v6 = vld [vmem:[#allocation224_spill] sm:$0xff] }
 0x8b7   :  { %13146 = vrot.lane.b32.xlu0 %v20611_v45, %s13474_s30  ;;  %v20950_v16 = vpack.i.bf16 %v7215_v34, %v24835_v39  ;;  %v20955_v55 = vpack.i.bf16 %v7216_v20, %v24837_v57  ;;  %v20961_v45 = vrot.slane %v9905_v46, %v14031_v8  ;;  %v24841_v34 = vld [vmem:[#allocation85_spill] sm:$0xff]  ;;  %v9977_v22 = vcombine.low %v24843_v6, %v24842_v44  ;;  %v20974_v39 = vpop.permute.xlu0 %12866  ;;  %v20980_v57 = vpop.permute.xlu1 %12861 }
 0x8b8   :  { %24834 = vst [vmem:[#allocation77_spill] sm:$0xff] %v20945_v48  ;;  %24839 = vst [vmem:[#allocation69_spill] sm:$0xff] %v20968_v10  ;;  %v9961_v20 = vcombine.low %v24841_v34, %v24840_v54  ;;  %v7219_v46 = vcombine.high %v24829_v29, %v24828_v32  ;;  %v9872_v30 = vrot.slane %v9858_v3, %v13617_v1  ;;  %v24852_v29 = vld [vmem:[#allocation34_spill] sm:$0xff] }
 0x8b9   :  { %24836 = vst [vmem:[#allocation86_spill] sm:$0xff] %v20950_v16  ;;  %24838 = vst [vmem:[#allocation141_spill] sm:$0xff] %v20955_v55  ;;  %v9888_v12 = vrot.slane %v9874_v35, %v13617_v1  ;;  %v24846_v0 = vcombine.high %v24733_v5, %v20130_v59  ;;  %v24848_v37 = vcombine.low %v24734_v53, %v20139_v38  ;;  %v24851_v16 = vld [vmem:[#allocation195_spill] sm:$0xff]  ;;  %v24853_v32 = vld [vmem:[#allocation194_spill] sm:$0xff] }
 0x8ba   :  { %24844 = vst [vmem:[#allocation100_spill] sm:$0xff] %v20974_v39  ;;  %24845 = vst [vmem:[#allocation107_spill] sm:$0xff] %v20980_v57  ;;  %v24850_v39 = vld [vmem:[#allocation64_spill] sm:$0xff]  ;;  %v10009_v3 = vcombine.low %v24853_v32, %v24852_v29  ;;  %v24855_v57 = vld [vmem:[#allocation226_spill] sm:$0xff]  ;;  %v9978_v55 = vcombine.high %v24843_v6, %v24842_v44  ;;  %13141 = vrot.lane.b32.xlu1 %v20627_v13, %s13474_s30  ;;  %v9922_v10 = vcombine.high %v9865_v50, %v9881_v24 }
 0x8bb   :  { %v20985_v42 = vpack.i.bf16 %v7217_v47, %v24846_v0  ;;  %v20990_v56 = vpack.i.bf16 %v7218_v58, %v24848_v37  ;;  %v9993_v9 = vcombine.low %v24851_v16, %v24850_v39  ;;  %13151 = vrot.lane.b32.xlu0 %v20629_v23, %s13476_s12  ;;  %v24854_v35 = vld [vmem:[#allocation248_spill] sm:$0xff]  ;;  %v24859_v0 = vld [vmem:[#allocation205_spill] sm:$0xff]  ;;  %v9985_v40 = vrot.slane %v9977_v22, %v13617_v1  ;;  %v21024_v48 = vpop.permute.xlu0 %12871  ;;  %v21032_v6 = vpop.permute.xlu1 %12876 }
 0x8bc   :  { %v24856_v59 = vcombine.low %v24854_v35, %v24855_v57  ;;  %v24858_v47 = vld [vmem:[#allocation24_spill] sm:$0xff]  ;;  %v9937_v13 = vcombine.low %v9872_v30, %v9888_v12  ;;  %v9938_v44 = vcombine.high %v9872_v30, %v9888_v12  ;;  %v10017_v22 = vrot.slane %v10009_v3, %v13617_v1  ;;  %v24877_v30 = vld [vmem:[#allocation53_spill] sm:$0xff] }
 0x8bd   :  { %24847 = vst [vmem:[#allocation90_spill] sm:$0xff] %v20985_v42  ;;  %24849 = vst [vmem:[#allocation58_spill] sm:$0xff] %v20990_v56  ;;  %v24860_v58 = vcombine.low %v24858_v47, %v24859_v0  ;;  %v9921_v56 = vcombine.low %v9865_v50, %v9881_v24  ;;  %v9962_v42 = vcombine.high %v24841_v34, %v24840_v54 }
 0x8be   :  { %v21002_v5 = vrot.slane %v24856_v59, %v14031_v8  ;;  %v24862_v23 = vcombine.high %v24858_v47, %v24859_v0  ;;  %v24863_v54 = vcombine.high %v24854_v35, %v24855_v57  ;;  %v24864_v47 = vld [vmem:[#allocation46_spill] sm:$0xff]  ;;  %v24865_v0 = vld [vmem:[#allocation225_spill] sm:$0xff]  ;;  %v24866_v50 = vcombine.high %v24734_v53, %v20139_v38 }
 0x8bf   :  { %v21008_v37 = vrot.slane %v24860_v58, %v14031_v8  ;;  %v9969_v58 = vrot.slane %v9961_v20, %v13617_v1  ;;  %v10001_v20 = vrot.slane %v9993_v9, %v13617_v1  ;;  %v24868_v57 = vcombine.high %v20676_v51, %v20651_v49 }
 0x8c0   :  { %24857 = vst [vmem:[#allocation42_spill] sm:$0xff] %v21002_v5  ;;  %v21020_v59 = vrot.slane %v24862_v23, %v14031_v8  ;;  %v21030_v34 = vrot.slane %v24863_v54, %v14031_v8  ;;  %v7486_v23 = vcombine.low %v24865_v0, %v24864_v47  ;;  %v21039_v24 = vpack.i.bf16 %v7219_v46, %v24866_v50  ;;  %v24874_v50 = vld [vmem:[#allocation211_spill] sm:$0xff]  ;;  %v24879_v46 = vld [vmem:[#allocation220_spill] sm:$0xff] }
 0x8c1   :  { %24861 = vst [vmem:[#allocation206_spill] sm:$0xff] %v21008_v37  ;;  %7725 = vrot.lane.b32.xlu0 %v24868_v57, %s13476_s12  ;;  %v7487_v12 = vcombine.high %v24865_v0, %v24864_v47  ;;  %v21052_v35 = vrot.slane %v9921_v56, %v14031_v8  ;;  %v9976_v38 = vrot.slane %v9962_v42, %v13617_v1  ;;  %v21069_v47 = vpop.permute.xlu0 %12886  ;;  %v21077_v0 = vpop.permute.xlu1 %12881 }
 0x8c2   :  { %24867 = vst [vmem:[#allocation101_spill] sm:$0xff] %v21039_v24  ;;  %v9992_v53 = vrot.slane %v9978_v55, %v13617_v1  ;;  %v24870_v9 = vcombine.low %v20676_v51, %v20651_v49  ;;  %v21063_v3 = vrot.slane %v9922_v10, %v14031_v8  ;;  %v10025_v54 = vcombine.low %v9969_v58, %v9985_v40  ;;  %v24873_v10 = vld [vmem:[#allocation9_spill] sm:$0xff] }
 0x8c3   :  { %24869 = vst [vmem:[#allocation13_spill] sm:$0xff] %v21052_v35  ;;  %v9994_v56 = vcombine.high %v24851_v16, %v24850_v39  ;;  %v10010_v42 = vcombine.high %v24853_v32, %v24852_v29  ;;  %24871 = vst [vmem:[#allocation28_spill] sm:$0xff] %v21069_v47  ;;  %v21072_v55 = vrot.slane %v9937_v13, %v14031_v8  ;;  %v24876_v39 = vld [vmem:[#allocation217_spill] sm:$0xff]  ;;  %v24878_v32 = vld [vmem:[#allocation18_spill] sm:$0xff] }
 0x8c4   :  { %7689 = vrot.lane.b32.xlu1 %v24870_v9, %s13474_s30  ;;  %v21075_v49 = vrot.slane %v9938_v44, %v14031_v8  ;;  %v10026_v51 = vcombine.high %v9969_v58, %v9985_v40  ;;  %24872 = vst [vmem:[#allocation83_spill] sm:$0xff] %v21077_v0  ;;  %v24875_v57 = vcombine.low %v24873_v10, %v24874_v50 }
 0x8c5   :  { %v10058_v16 = vcombine.high %v10001_v20, %v10017_v22  ;;  %v11457_v29 = vcombine.low %v24877_v30, %v24876_v39  ;;  %v11473_v24 = vcombine.low %v24879_v46, %v24878_v32  ;;  %13166 = vrot.lane.b32.xlu0 %v20719_v60, %s13475_s11  ;;  %v24880_v40 = vcombine.high %v24873_v10, %v24874_v50 }
 0x8c6   :  { %v21082_v9 = vpack.i.bf16 %v7486_v23, %v24875_v57  ;;  %v10041_v13 = vcombine.low %v9976_v38, %v9992_v53  ;;  %v10042_v44 = vcombine.high %v9976_v38, %v9992_v53  ;;  %v11458_v23 = vcombine.high %v24877_v30, %v24876_v39 }
 0x8c7   :  { %v21093_v58 = vpack.i.bf16 %v7487_v12, %v24880_v40  ;;  %v11474_v57 = vcombine.high %v24879_v46, %v24878_v32  ;;  %v21102_v0 = vrot.slane %v10025_v54, %v14031_v8  ;;  %v10008_v60 = vrot.slane %v9994_v56, %v13617_v1  ;;  %v21106_v12 = vpop.permute.xlu0 %12891  ;;  %v21117_v46 = vpop.permute.xlu1 %12896  ;;  %v24886_v56 = vld [vmem:[#allocation109_spill] sm:$0xff] }
 0x8c8   :  { %13156 = vrot.lane.b32.xlu1 %v20697_v52, %s13476_s12  ;;  %v10024_v10 = vrot.slane %v10010_v42, %v13617_v1  ;;  %24882 = vst [vmem:[#allocation153_spill] sm:$0xff] %v21106_v12  ;;  %v24883_v38 = vcombine.low %v24799_v43, %v24800_v26  ;;  %v21115_v53 = vrot.slane %v10026_v51, %v14031_v8  ;;  %24884 = vst [vmem:[#allocation152_spill] sm:$0xff] %v21117_v46  ;;  %v24887_v42 = vld [vmem:[#allocation235_spill] sm:$0xff] }
 0x8c9   :  { %24881 = vst [vmem:[#allocation92_spill] sm:$0xff] %v21102_v0  ;;  %v24885_v52 = vcombine.low %v24805_v36, %v24806_v41  ;;  %v7488_v50 = vcombine.low %v24887_v42, %v24886_v56  ;;  %v7489_v39 = vcombine.high %v24887_v42, %v24886_v56  ;;  %v10057_v43 = vcombine.low %v10001_v20, %v10017_v22  ;;  %v24894_v42 = vld [vmem:[#allocation221_spill] sm:$0xff] }
 0x8ca   :  { %v21112_v30 = vrot.slane %v24883_v38, %v14031_v8  ;;  %v21130_v26 = vrot.slane %v10058_v16, %v14031_v8  ;;  %v11465_v51 = vrot.slane %v11457_v29, %v13617_v1  ;;  %v11481_v32 = vrot.slane %v11473_v24, %v13617_v1  ;;  %13171 = vrot.lane.b32.xlu0 %v20762_v14, %s13478_s14 }
 0x8cb   :  { %v21123_v54 = vrot.slane %v24885_v52, %v14031_v8  ;;  %v21137_v36 = vrot.slane %v10041_v13, %v14031_v8  ;;  %v21140_v41 = vrot.slane %v10042_v44, %v14031_v8  ;;  %v11472_v40 = vrot.slane %v11458_v23, %v13617_v1  ;;  %v21146_v29 = vpop.permute.xlu0 %12906  ;;  %v24889_v13 = vld [vmem:[#allocation228_spill] sm:$0xff]  ;;  %v24891_v52 = vld [vmem:[#allocation233_spill] sm:$0xff]  ;;  %v24892_v23 = vld [vmem:[#allocation67_spill] sm:$0xff] }
 0x8cc   :  { %v11488_v20 = vrot.slane %v11474_v57, %v13617_v1  ;;  %13161 = vrot.lane.b32.xlu1 %v20747_v61, %s13475_s11  ;;  %v10073_v22 = vcombine.low %v10008_v60, %v10024_v10  ;;  %v10074_v16 = vcombine.high %v10008_v60, %v10024_v10  ;;  %24888 = vst [vmem:[#allocation57_spill] sm:$0xff] %v21146_v29  ;;  %v24890_v44 = vld [vmem:[#allocation244_spill] sm:$0xff]  ;;  %v21156_v57 = vpop.permute.xlu1 %12901  ;;  %v24895_v61 = vld [vmem:[#allocation70_spill] sm:$0xff] }
 0x8cd   :  { %v11489_v38 = vcombine.low %v24890_v44, %v24889_v13  ;;  %v11505_v56 = vcombine.low %v24892_v23, %v24891_v52  ;;  %24893 = vst [vmem:[#allocation134_spill] sm:$0xff] %v21156_v57  ;;  %v24896_v46 = vcombine.low %v24894_v42, %v24895_v61  ;;  %v11314_v10 = vcombine.high %v20765_v19, %v20842_v18 }
 0x8ce   :  { %v21166_v14 = vrot.slane %v10057_v43, %v14031_v8  ;;  %v11521_v24 = vcombine.low %v11465_v51, %v11481_v32  ;;  %v24899_v29 = vcombine.high %v20753_v28, %v20725_v31  ;;  %v24900_v57 = vcombine.high %v24894_v42, %v24895_v61 }
 0x8cf   :  { %v21161_v60 = vpack.i.bf16 %v7488_v50, %v24896_v46  ;;  %v10091_v46 = vcombine.low %v21115_v53, %v21130_v26  ;;  %v11522_v50 = vcombine.high %v11465_v51, %v11481_v32  ;;  %v11538_v19 = vcombine.high %v11472_v40, %v11488_v20  ;;  %v21192_v51 = vpop.permute.xlu0 %12911 }
 0x8d0   :  { %24898 = vst [vmem:[#allocation126_spill] sm:$0xff] %v21166_v14  ;;  %7797 = vrot.lane.b32.xlu0 %v24899_v29, %s13478_s14  ;;  %v21175_v12 = vpack.i.bf16 %v7489_v39, %v24900_v57  ;;  %v24902_v43 = vcombine.low %v20753_v28, %v20725_v31  ;;  %v11178_v18 = vcombine.high %v20644_v11, %v20712_v63  ;;  %24903 = vst [vmem:[#allocation167_spill] sm:$0xff] %v21192_v51  ;;  %v24920_v63 = vld [vmem:[#allocation122_spill] sm:$0xff] }
 0x8d1   :  { %24897 = vst [vmem:[#allocation79_spill] sm:$0xff] %v21161_v60  ;;  %v11537_v60 = vcombine.low %v11472_v40, %v11488_v20  ;;  %v21186_v29 = vrot.slane %v10073_v22, %v14031_v8  ;;  %v11490_v39 = vcombine.high %v24890_v44, %v24889_v13  ;;  %v11506_v57 = vcombine.high %v24892_v23, %v24891_v52  ;;  %v21201_v20 = vpop.permute.xlu1 %12916  ;;  %v24916_v44 = vld [vmem:[#allocation78_spill] sm:$0xff] }
 0x8d2   :  { %24901 = vst [vmem:[#allocation59_spill] sm:$0xff] %v21175_v12  ;;  %7761 = vrot.lane.b32.xlu1 %v24902_v43, %s13475_s11  ;;  %v9955_v32 = vcombine.low %v20958_v21, %v21063_v3  ;;  %v21197_v31 = vrot.slane %v10074_v16, %v14031_v8  ;;  %v11497_v28 = vrot.slane %v11489_v38, %v13617_v1  ;;  %24904 = vst [vmem:[#allocation80_spill] sm:$0xff] %v21201_v20  ;;  %v24913_v43 = vld [vmem:[#allocation257_spill] sm:$0xff]  ;;  %v24921_v16 = vld [vmem:[#allocation183_spill] sm:$0xff] }
 0x8d3   :  { %v11513_v40 = vrot.slane %v11505_v56, %v13617_v1  ;;  %v21203_v22 = vpack.i.bf16 %v11314_v10, %v11178_v18  ;;  %v21206_v13 = vrot.slane %v11521_v24, %v14031_v8  ;;  %v21217_v56 = vrot.slane %v11522_v50, %v14031_v8  ;;  %v21231_v10 = vpop.permute.xlu0 %12926 }
 0x8d4   :  { %13186 = vrot.lane.b32.xlu0 %v20822_v7, %s13477_s13  ;;  %v21212_v52 = vpack.i.bf16 %v10091_v46, %v9955_v32  ;;  %v21220_v18 = vrot.slane %v11537_v60, %v14031_v8  ;;  %v21223_v24 = vrot.slane %v11538_v19, %v14031_v8  ;;  %v10090_v7 = vcombine.high %v21102_v0, %v21166_v14  ;;  %v24912_v60 = vld [vmem:[#allocation241_spill] sm:$0xff]  ;;  %v24914_v32 = vld [vmem:[#allocation162_spill] sm:$0xff] }
 0x8d5   :  { %24905 = vst [vmem:[#allocation82_spill] sm:$0xff] %v21203_v22  ;;  %24906 = vst [vmem:[#allocation239_spill] sm:$0xff] %v21206_v13  ;;  %v11504_v42 = vrot.slane %v11490_v39, %v13617_v1  ;;  %v11520_v61 = vrot.slane %v11506_v57, %v13617_v1  ;;  %v9954_v46 = vcombine.high %v20938_v27, %v21052_v35  ;;  %v21241_v0 = vpop.permute.xlu1 %12921  ;;  %v24918_v39 = vld [vmem:[#allocation110_spill] sm:$0xff]  ;;  %v24919_v14 = vld [vmem:[#allocation97_spill] sm:$0xff] }
 0x8d6   :  { %24907 = vst [vmem:[#allocation31_spill] sm:$0xff] %v21212_v52  ;;  %24910 = vst [vmem:[#allocation237_spill] sm:$0xff] %v21223_v24  ;;  %13176 = vrot.lane.b32.xlu1 %v20817_v25, %s13478_s14  ;;  %v11316_v50 = vcombine.high %v24912_v60, %v20854_v33  ;;  %v11553_v19 = vcombine.low %v11497_v28, %v11513_v40  ;;  %v10233_v38 = vcombine.low %v24914_v32, %v24913_v43  ;;  %v24915_v25 = vld [vmem:[#allocation136_spill] sm:$0xff]  ;;  %v24922_v24 = vld [vmem:[#allocation238_spill] sm:$0xff] }
 0x8d7   :  { %24911 = vst [vmem:[#allocation138_spill] sm:$0xff] %v21231_v10  ;;  %v10249_v11 = vcombine.low %v24916_v44, %v24915_v25  ;;  %24917 = vst [vmem:[#allocation130_spill] sm:$0xff] %v21241_v0  ;;  %v11180_v57 = vcombine.high %v24919_v14, %v24918_v39  ;;  %v10265_v23 = vcombine.low %v24921_v16, %v24920_v63  ;;  %v24923_v27 = vld [vmem:[#allocation68_spill] sm:$0xff] }
 0x8d8   :  { %v10281_v35 = vcombine.low %v24923_v27, %v24922_v24  ;;  %13191 = vrot.lane.b32.xlu0 %v20834_v17, %s13479_s15  ;;  %v11315_v10 = vcombine.low %v24912_v60, %v20854_v33  ;;  %v10092_v20 = vcombine.high %v21115_v53, %v21130_v26  ;;  %v11554_v52 = vcombine.high %v11497_v28, %v11513_v40  ;;  %v21263_v17 = vpop.permute.xlu0 %12931 }
 0x8d9   :  { %v10234_v0 = vcombine.high %v24914_v32, %v24913_v43  ;;  %v10250_v22 = vcombine.high %v24916_v44, %v24915_v25  ;;  %v21261_v51 = vpack.i.bf16 %v10090_v7, %v9954_v46  ;;  %v11569_v12 = vcombine.low %v11504_v42, %v11520_v61  ;;  %v21276_v44 = vpop.permute.xlu1 %12936  ;;  %v24932_v43 = vld [vmem:[#allocation133_spill] sm:$0xff] }
 0x8da   :  { %13181 = vrot.lane.b32.xlu1 %v20829_v62, %s13477_s13  ;;  %v21265_v47 = vpack.i.bf16 %v11316_v50, %v11180_v57  ;;  %v11179_v33 = vcombine.low %v24919_v14, %v24918_v39  ;;  %v9956_v53 = vcombine.high %v20958_v21, %v21063_v3  ;;  %v21272_v26 = vrot.slane %v11553_v19, %v14031_v8  ;;  %v24930_v50 = vld [vmem:[#allocation77_spill] sm:$0xff] }
 0x8db   :  { %v11570_v28 = vcombine.high %v11504_v42, %v11520_v61  ;;  %v10241_v40 = vrot.slane %v10233_v38, %v13617_v1  ;;  %v10257_v62 = vrot.slane %v10249_v11, %v13617_v1  ;;  %v10273_v7 = vrot.slane %v10265_v23, %v13617_v1  ;;  %v24931_v19 = vld [vmem:[#allocation129_spill] sm:$0xff] }
 0x8dc   :  { %24924 = vst [vmem:[#allocation98_spill] sm:$0xff] %v21272_v26  ;;  %v10289_v46 = vrot.slane %v10281_v35, %v13617_v1  ;;  %v24925_v14 = vcombine.high %v20894_v2, %v20875_v4  ;;  %v21284_v21 = vpack.i.bf16 %v11315_v10, %v11179_v33  ;;  %v21286_v3 = vpack.i.bf16 %v10092_v20, %v9956_v53  ;;  %v24933_v57 = vld [vmem:[#allocation89_spill] sm:$0xff] }
 0x8dd   :  { %v21289_v42 = vrot.slane %v11554_v52, %v14031_v8  ;;  %v10248_v11 = vrot.slane %v10234_v0, %v13617_v1  ;;  %v10264_v38 = vrot.slane %v10250_v22, %v13617_v1  ;;  %v24926_v35 = vcombine.low %v20894_v2, %v20875_v4  ;;  %v21306_v0 = vpop.permute.xlu0 %12946  ;;  %v24928_v22 = vld [vmem:[#allocation118_spill] sm:$0xff]  ;;  %v21310_v4 = vpop.permute.xlu1 %12941 }
 0x8de   :  { %7869 = vrot.lane.b32.xlu0 %v24925_v14, %s13479_s15  ;;  %v10093_v23 = vcombine.low %v21137_v36, %v21186_v29  ;;  %v21300_v61 = vrot.slane %v11569_v12, %v14031_v8  ;;  %v10266_v20 = vcombine.high %v24921_v16, %v24920_v63  ;;  %v10282_v52 = vcombine.high %v24923_v27, %v24922_v24 }
 0x8df   :  { %7833 = vrot.lane.b32.xlu1 %v24926_v35, %s13477_s13  ;;  %24927 = vst [vmem:[#allocation88_spill] sm:$0xff] %v21306_v0  ;;  %v11317_v10 = vcombine.low %v24928_v22, %v20867_v15  ;;  %v10297_v60 = vcombine.low %v10241_v40, %v10257_v62  ;;  %v9957_v2 = vcombine.low %v20961_v45, %v21072_v55 }
 0x8e0   :  { %v11318_v12 = vcombine.high %v24928_v22, %v20867_v15  ;;  %v11586_v63 = vcombine.high %v21206_v13, %v21272_v26  ;;  %v21319_v16 = vrot.slane %v11570_v28, %v14031_v8  ;;  %v10298_v27 = vcombine.high %v10241_v40, %v10257_v62  ;;  %v24937_v22 = vld [vmem:[#allocation242_spill] sm:$0xff] }
 0x8e1   :  { %v10329_v24 = vcombine.low %v10273_v7, %v10289_v46  ;;  %v11181_v32 = vcombine.low %v24932_v43, %v24931_v19  ;;  %v10313_v25 = vcombine.low %v10248_v11, %v10264_v38  ;;  %v10314_v39 = vcombine.high %v10248_v11, %v10264_v38  ;;  %v21333_v62 = vpop.permute.xlu0 %12951  ;;  %v21340_v11 = vpop.permute.xlu1 %12956 }
 0x8e2   :  { %24929 = vst [vmem:[#allocation105_spill] sm:$0xff] %v21319_v16  ;;  %13206 = vrot.lane.b32.xlu0 %v24930_v50, %s13473_s29  ;;  %v21327_v15 = vpack.i.bf16 %v10093_v23, %v9957_v2  ;;  %v11182_v33 = vcombine.high %v24932_v43, %v24931_v19  ;;  %v10280_v53 = vrot.slane %v10266_v20, %v13617_v1  ;;  %24935 = vst [vmem:[#allocation156_spill] sm:$0xff] %v21340_v11  ;;  %v24936_v23 = vld [vmem:[#allocation245_spill] sm:$0xff]  ;;  %v24939_v20 = vld [vmem:[#allocation230_spill] sm:$0xff] }
 0x8e3   :  { %13196 = vrot.lane.b32.xlu1 %v24933_v57, %s13479_s15  ;;  %v10296_v28 = vrot.slane %v10282_v52, %v13617_v1  ;;  %v10330_v40 = vcombine.high %v10273_v7, %v10289_v46  ;;  %v21335_v14 = vpack.i.bf16 %v11317_v10, %v11181_v32  ;;  %v21338_v35 = vrot.slane %v10297_v60, %v14031_v8  ;;  %v24940_v19 = vld [vmem:[#allocation229_spill] sm:$0xff]  ;;  %v24943_v60 = vld [vmem:[#allocation44_spill] sm:$0xff]  ;;  %v24944_v32 = vld [vmem:[#allocation27_spill] sm:$0xff] }
 0x8e4   :  { %v21342_v38 = vpack.i.bf16 %v11318_v12, %v11182_v33  ;;  %v24938_v2 = vcombine.high %v24936_v23, %v24937_v22  ;;  %v7490_v52 = vcombine.low %v24940_v19, %v24939_v20  ;;  %v21352_v7 = vrot.slane %v10298_v27, %v14031_v8  ;;  %v24942_v10 = vld [vmem:[#allocation21_spill] sm:$0xff]  ;;  %v24945_v12 = vld [vmem:[#allocation54_spill] sm:$0xff]  ;;  %v24946_v33 = vld [vmem:[#allocation139_spill] sm:$0xff] }
 0x8e5   :  { %24934 = vst [vmem:[#allocation135_spill] sm:$0xff] %v21338_v35  ;;  %v21355_v46 = vrot.slane %v10329_v24, %v14031_v8  ;;  %v11593_v43 = vcombine.low %v24943_v60, %v24942_v10  ;;  %v11609_v57 = vcombine.low %v24945_v12, %v24944_v32  ;;  %v24949_v27 = vld [vmem:[#allocation23_spill] sm:$0xff]  ;;  %v11587_v24 = vcombine.low %v21217_v56, %v21289_v42  ;;  %v21378_v26 = vpop.permute.xlu0 %12966  ;;  %v24950_v16 = vld [vmem:[#allocation190_spill] sm:$0xff] }
 0x8e6   :  { %v21347_v50 = vpack.i.bf16 %v11586_v63, %v24938_v2  ;;  %13211 = vrot.lane.b32.xlu0 %v24946_v33, %s13474_s30  ;;  %v21364_v63 = vrot.slane %v10313_v25, %v14031_v8  ;;  %v21367_v2 = vrot.slane %v10314_v39, %v14031_v8  ;;  %v7491_v22 = vcombine.high %v24940_v19, %v24939_v20  ;;  %v24951_v20 = vld [vmem:[#allocation173_spill] sm:$0xff]  ;;  %v24953_v11 = vld [vmem:[#allocation255_spill] sm:$0xff] }
 0x8e7   :  { %24941 = vst [vmem:[#allocation121_spill] sm:$0xff] %v21355_v46  ;;  %13201 = vrot.lane.b32.xlu1 %v24949_v27, %s13473_s29  ;;  %v21376_v23 = vrot.slane %v10330_v40, %v14031_v8  ;;  %v10345_v13 = vcombine.low %v10280_v53, %v10296_v28  ;;  %v10346_v33 = vcombine.high %v10280_v53, %v10296_v28  ;;  %v21384_v27 = vpop.permute.xlu1 %12961  ;;  %v24952_v40 = vld [vmem:[#allocation212_spill] sm:$0xff] }
 0x8e8   :  { %24947 = vst [vmem:[#allocation165_spill] sm:$0xff] %v21364_v63  ;;  %24948 = vst [vmem:[#allocation137_spill] sm:$0xff] %v21367_v2  ;;  %v10094_v25 = vcombine.high %v21137_v36, %v21186_v29  ;;  %v11610_v39 = vcombine.high %v24945_v12, %v24944_v32  ;;  %v9958_v2 = vcombine.high %v20961_v45, %v21072_v55  ;;  %v24964_v32 = vld [vmem:[#allocation249_spill] sm:$0xff]  ;;  %v24965_v12 = vld [vmem:[#allocation116_spill] sm:$0xff] }
 0x8e9   :  { %v11319_v19 = vcombine.low %v24951_v20, %v24950_v16  ;;  %v24954_v0 = vcombine.low %v24952_v40, %v24953_v11  ;;  %v11594_v28 = vcombine.high %v24943_v60, %v24942_v10  ;;  %v21398_v36 = vrot.slane %v11593_v43, %v13617_v1  ;;  %v24961_v10 = vld [vmem:[#allocation232_spill] sm:$0xff] }
 0x8ea   :  { %v21401_v29 = vrot.slane %v11609_v57, %v13617_v1  ;;  %v24958_v45 = vcombine.low %v21030_v34, %v21020_v59  ;;  %v10362_v55 = vcombine.high %v21338_v35, %v21355_v46  ;;  %v11183_v57 = vcombine.low %v24965_v12, %v24964_v32 }
 0x8eb   :  { %v21393_v53 = vpack.i.bf16 %v7490_v52, %v24954_v0  ;;  %24956 = vst [vmem:[#allocation154_spill] sm:$0xff] %v21398_v36  ;;  %v24959_v0 = vcombine.high %v21002_v5, %v21008_v37  ;;  %v24960_v52 = vld [vmem:[#allocation125_spill] sm:$0xff]  ;;  %v21428_v46 = vrot.slane %v10345_v13, %v14031_v8  ;;  %v21433_v5 = vpop.permute.xlu0 %12971  ;;  %v21440_v37 = vrot.slane %v11610_v39, %v13617_v1  ;;  %v24974_v39 = vld [vmem:[#allocation243_spill] sm:$0xff] }
 0x8ec   :  { %24957 = vst [vmem:[#allocation148_spill] sm:$0xff] %v21401_v29  ;;  %7941 = vrot.lane.b32.xlu0 %v24958_v45, %s13474_s30  ;;  %v24962_v60 = vcombine.low %v24960_v52, %v24961_v10  ;;  %v24966_v45 = vcombine.high %v24952_v40, %v24953_v11  ;;  %v21444_v11 = vpack.i.bf16 %v11319_v19, %v11183_v57  ;;  %v24971_v13 = vld [vmem:[#allocation69_spill] sm:$0xff] }
 0x8ed   :  { %24955 = vst [vmem:[#allocation95_spill] sm:$0xff] %v21393_v53  ;;  %7905 = vrot.lane.b32.xlu1 %v24959_v0, %s13473_s29  ;;  %v10095_v53 = vcombine.low %v21140_v41, %v21197_v31  ;;  %24968 = vst [vmem:[#allocation210_spill] sm:$0xff] %v21428_v46  ;;  %v21431_v0 = vrot.slane %v10346_v33, %v14031_v8  ;;  %v11320_v33 = vcombine.high %v24951_v20, %v24950_v16  ;;  %v24978_v20 = vld [vmem:[#allocation140_spill] sm:$0xff] }
 0x8ee   :  { %v21416_v43 = vpack.i.bf16 %v11587_v24, %v24962_v60  ;;  %v21425_v35 = vpack.i.bf16 %v7491_v22, %v24966_v45  ;;  %v21435_v24 = vpack.i.bf16 %v10094_v25, %v9958_v2  ;;  %v10363_v60 = vcombine.low %v21352_v7, %v21376_v23  ;;  %24970 = vst [vmem:[#allocation142_spill] sm:$0xff] %v21440_v37  ;;  %v24973_v25 = vld [vmem:[#allocation246_spill] sm:$0xff]  ;;  %v24976_v37 = vld [vmem:[#allocation99_spill] sm:$0xff] }
 0x8ef   :  { %24969 = vst [vmem:[#allocation150_spill] sm:$0xff] %v21431_v0  ;;  %v9959_v22 = vcombine.low %v24971_v13, %v21075_v49  ;;  %v21451_v40 = vrot.slane %v11594_v28, %v13617_v1  ;;  %v24975_v45 = vcombine.high %v24973_v25, %v24974_v39  ;;  %v11588_v57 = vcombine.high %v21217_v56, %v21289_v42  ;;  %v24979_v28 = vld [vmem:[#allocation32_spill] sm:$0xff]  ;;  %v24981_v42 = vld [vmem:[#allocation203_spill] sm:$0xff] }
 0x8f0   :  { %24963 = vst [vmem:[#allocation29_spill] sm:$0xff] %v21416_v43  ;;  %24967 = vst [vmem:[#allocation155_spill] sm:$0xff] %v21425_v35  ;;  %v21442_v43 = vpop.permute.xlu1 %12976  ;;  %13226 = vrot.lane.b32.xlu0 %v21093_v58, %s13476_s12  ;;  %v24977_v35 = vld [vmem:[#allocation151_spill] sm:$0xff]  ;;  %v11184_v58 = vcombine.high %v24965_v12, %v24964_v32  ;;  %v24980_v56 = vld [vmem:[#allocation60_spill] sm:$0xff]  ;;  %v10096_v8 = vcombine.high %v21140_v41, %v21197_v31 }
 0x8f1   :  { %24972 = vst [vmem:[#allocation26_spill] sm:$0xff] %v21451_v40  ;;  %v21460_v19 = vpack.i.bf16 %v10362_v55, %v24975_v45  ;;  %v11625_v16 = vcombine.low %v24977_v35, %v24976_v37  ;;  %v11641_v40 = vcombine.low %v24979_v28, %v24978_v20  ;;  %13216 = vrot.lane.b32.xlu1 %v21082_v9, %s13474_s30  ;;  %v21476_v45 = vpop.permute.xlu0 %12981  ;;  %v24984_v31 = vld [vmem:[#allocation141_spill] sm:$0xff]  ;;  %v24996_v0 = vld [vmem:[#allocation71_spill] sm:$0xff] }
 0x8f2   :  { %v21470_v2 = vpack.i.bf16 %v10095_v53, %v9959_v22  ;;  %v24982_v39 = vcombine.low %v24980_v56, %v24981_v42  ;;  %v10364_v9 = vcombine.high %v21352_v7, %v21376_v23  ;;  %v21491_v12 = vpack.i.bf16 %v11320_v33, %v11184_v58  ;;  %v24988_v20 = vld [vmem:[#allocation161_spill] sm:$0xff] }
 0x8f3   :  { %v10365_v22 = vcombine.low %v21364_v63, %v21428_v46  ;;  %v24985_v23 = vcombine.high %v24960_v52, %v24961_v10  ;;  %v9960_v33 = vcombine.high %v24971_v13, %v21075_v49  ;;  %v21509_v58 = vrot.slane %v11625_v16, %v13617_v1  ;;  %v24997_v10 = vld [vmem:[#allocation181_spill] sm:$0xff]  ;;  %v25007_v16 = vld [vmem:[#allocation199_spill] sm:$0xff] }
 0x8f4   :  { %v21481_v25 = vpack.i.bf16 %v10363_v60, %v24982_v39  ;;  %v21489_v32 = vpop.permute.xlu1 %12986  ;;  %v11589_v60 = vcombine.low %v21220_v18, %v21300_v61  ;;  %v24983_v39 = vld [vmem:[#allocation120_spill] sm:$0xff]  ;;  %13231 = vrot.lane.b32.xlu0 %v24984_v31, %s13475_s11  ;;  %v21512_v53 = vrot.slane %v11641_v40, %v13617_v1  ;;  %v12859_v28 = vunpack.i.h.bf16 %v24988_v20  ;;  %v24989_v31 = vld [vmem:[#allocation86_spill] sm:$0xff]  ;;  %v25000_v1 = vld [vmem:[#allocation213_spill] sm:$0xff] }
 0x8f5   :  { %v12854_v55 = vunpack.i.h.bf16 %v24983_v39  ;;  %v12853_v41 = vunpack.i.l.bf16 %v24983_v39  ;;  %v21504_v7 = vpack.i.bf16 %v11588_v57, %v24985_v23  ;;  %24986 = vst [vmem:[#allocation119_spill] sm:$0xff] %v21509_v58  ;;  %v12858_v39 = vunpack.i.l.bf16 %v24988_v20  ;;  %13221 = vrot.lane.b32.xlu1 %v24989_v31, %s13476_s12  ;;  %v24992_v57 = vld [vmem:[#allocation100_spill] sm:$0xff]  ;;  %v21521_v35 = vpop.permute.xlu0 %12991  ;;  %v25006_v20 = vld [vmem:[#allocation102_spill] sm:$0xff] }
 0x8f6   :  { %24987 = vst [vmem:[#allocation193_spill] sm:$0xff] %v21512_v53  ;;  %v12869_v23 = vunpack.i.h.bf16 %v24992_v57  ;;  %v21523_v49 = vpack.i.bf16 %v10096_v8, %v9960_v33  ;;  %v24993_v13 = vcombine.high %v24980_v56, %v24981_v42  ;;  %v12868_v29 = vunpack.i.l.bf16 %v24992_v57  ;;  %v25001_v8 = vld [vmem:[#allocation16_spill] sm:$0xff]  ;;  %v25004_v42 = vld [vmem:[#allocation113_spill] sm:$0xff]  ;;  %v25009_v53 = vld [vmem:[#allocation107_spill] sm:$0xff] }
 0x8f7   :  { %v24998_v37 = vcombine.low %v24996_v0, %v24997_v10  ;;  %v25002_v33 = vcombine.low %v25000_v1, %v25001_v8  ;;  %v25003_v56 = vld [vmem:[#allocation112_spill] sm:$0xff]  ;;  %v25008_v57 = vcombine.low %v25006_v20, %v25007_v16  ;;  %v12864_v63 = vunpack.i.h.bf16 %v25009_v53  ;;  %v25023_v8 = vld [vmem:[#allocation79_spill] sm:$0xff] }
 0x8f8   :  { %v21528_v40 = vpack.i.bf16 %v10364_v9, %v24993_v13  ;;  %v21533_v31 = vpop.permute.xlu1 %12996  ;;  %v25005_v9 = vcombine.low %v25003_v56, %v25004_v42  ;;  %v25015_v42 = vld [vmem:[#allocation145_spill] sm:$0xff]  ;;  %v12873_v20 = vunpack.i.l.bf16 %v21024_v48 }
 0x8f9   :  { %v21538_v52 = vpack.i.bf16 %v10365_v22, %v24998_v37  ;;  %v21543_v58 = vpack.i.bf16 %v11589_v60, %v25002_v33  ;;  %v8132_v36 = vsel %vm1894_vm5, %v25008_v57, %v12853_v41  ;;  %v12863_v37 = vunpack.i.l.bf16 %v25009_v53  ;;  %v25011_v60 = vld [vmem:[#allocation94_spill] sm:$0xff]  ;;  %v25012_v33 = vld [vmem:[#allocation72_spill] sm:$0xff] }
 0x8fa   :  { %v8133_v13 = vsel %vm1894_vm5, %v25005_v9, %v12854_v55  ;;  %v25010_v22 = vcombine.low %v21123_v54, %v21112_v30  ;;  %v25013_v10 = vcombine.low %v25011_v60, %v25012_v33  ;;  %v25014_v55 = vld [vmem:[#allocation144_spill] sm:$0xff]  ;;  %v12878_v41 = vunpack.i.l.bf16 %v21032_v6  ;;  %v21577_v33 = vpop.permute.xlu0 %13001 }
 0x8fb   :  { %24999 = vst [vmem:[#allocation222_spill] sm:$0xff] %v21538_v52  ;;  %v25016_v9 = vcombine.low %v25014_v55, %v25015_v42  ;;  %v25017_v53 = vcombine.high %v21030_v34, %v21020_v59  ;;  %v25019_v55 = vld [vmem:[#allocation83_spill] sm:$0xff]  ;;  %v8141_v34 = vsel %vm1900_vm6, %v8132_v36, %v12863_v37  ;;  %v25024_v37 = vld [vmem:[#allocation57_spill] sm:$0xff] }
 0x8fc   :  { %8013 = vrot.lane.b32.xlu0 %v25010_v22, %s13475_s11  ;;  %v8135_v56 = vsel %vm1894_vm5, %v25013_v10, %v12859_v28  ;;  %v12879_v22 = vunpack.i.h.bf16 %v21032_v6  ;;  %v12874_v28 = vunpack.i.h.bf16 %v21024_v48  ;;  %v25018_v10 = vld [vmem:[#allocation28_spill] sm:$0xff]  ;;  %v12884_v42 = vunpack.i.h.bf16 %v25019_v55  ;;  %v21583_v59 = vpop.permute.xlu1 %13006 }
 0x8fd   :  { %v8134_v16 = vsel %vm1894_vm5, %v25016_v9, %v12858_v39  ;;  %7977 = vrot.lane.b32.xlu1 %v25017_v53, %s13476_s12  ;;  %v8144_v57 = vsel %vm1900_vm6, %v8135_v56, %v12869_v23  ;;  %v12888_v60 = vunpack.i.l.bf16 %v25018_v10  ;;  %v12883_v9 = vunpack.i.l.bf16 %v25019_v55  ;;  %v25020_v23 = vld [vmem:[#allocation153_spill] sm:$0xff]  ;;  %v25021_v53 = vld [vmem:[#allocation59_spill] sm:$0xff]  ;;  %v25022_v55 = vld [vmem:[#allocation152_spill] sm:$0xff] }
 0x8fe   :  { %v8143_v39 = vsel %vm1900_vm6, %v8134_v16, %v12868_v29  ;;  %v12889_v0 = vunpack.i.h.bf16 %v25018_v10  ;;  %v8142_v6 = vsel %vm1900_vm6, %v8133_v13, %v12864_v63  ;;  %v12894_v48 = vunpack.i.h.bf16 %v25020_v23 }
 0x8ff   :  { %v12893_v56 = vunpack.i.l.bf16 %v25020_v23  ;;  %v8152_v29 = vsel %vm1906_vm7, %v8143_v39, %v12878_v41  ;;  %v8150_v16 = vsel %vm1906_vm7, %v8141_v34, %v12873_v20  ;;  %v12899_v46 = vunpack.i.h.bf16 %v25022_v55  ;;  %v25025_v34 = vld [vmem:[#allocation134_spill] sm:$0xff] }
 0x900   :  { %13246 = vrot.lane.b32.xlu0 %v25021_v53, %s13478_s14  ;;  %v12898_v10 = vunpack.i.l.bf16 %v25022_v55  ;;  %v8153_v63 = vsel %vm1906_vm7, %v8144_v57, %v12879_v22  ;;  %v8151_v36 = vsel %vm1906_vm7, %v8142_v6, %v12874_v28  ;;  %v8161_v13 = vsel %vm1912_vm8, %v8152_v29, %v12888_v60  ;;  %v21601_v53 = vpop.permute.xlu0 %13011  ;;  %v21607_v1 = vpop.permute.xlu1 %13016  ;;  %v25026_v28 = vld [vmem:[#allocation167_spill] sm:$0xff]  ;;  %v25027_v6 = vld [vmem:[#allocation82_spill] sm:$0xff] }
 0x901   :  { %13236 = vrot.lane.b32.xlu1 %v25023_v8, %s13475_s11  ;;  %v12908_v23 = vunpack.i.l.bf16 %v25024_v37  ;;  %v8159_v41 = vsel %vm1912_vm8, %v8150_v16, %v12883_v9  ;;  %v8160_v20 = vsel %vm1912_vm8, %v8151_v36, %v12884_v42  ;;  %v8162_v39 = vsel %vm1912_vm8, %v8153_v63, %v12889_v0  ;;  %v25028_v0 = vld [vmem:[#allocation130_spill] sm:$0xff] }
 0x902   :  { %v12903_v55 = vunpack.i.l.bf16 %v25025_v34  ;;  %v8168_v8 = vsel %vm1918_vm9, %v8159_v41, %v12893_v56  ;;  %v8169_v57 = vsel %vm1918_vm9, %v8160_v20, %v12894_v48  ;;  %v12904_v22 = vunpack.i.h.bf16 %v25025_v34  ;;  %v25029_v56 = vld [vmem:[#allocation90_spill] sm:$0xff]  ;;  %v25035_v48 = vld [vmem:[#allocation73_spill] sm:$0xff] }
 0x903   :  { %v12913_v60 = vunpack.i.l.bf16 %v25026_v28  ;;  %v8170_v9 = vsel %vm1918_vm9, %v8161_v13, %v12898_v10  ;;  %v21617_v42 = vsel %vm1918_vm9, %v8162_v39, %v12899_v46  ;;  %v12924_v29 = vunpack.i.h.bf16 %v25028_v0 }
 0x904   :  { %13251 = vrot.lane.b32.xlu0 %v25027_v6, %s13473_s29  ;;  %v12923_v16 = vunpack.i.l.bf16 %v25028_v0  ;;  %v21625_v63 = vsel %vm1924_vm10, %v8170_v9, %v12908_v23  ;;  %v12934_v36 = vunpack.i.h.bf16 %v21263_v17  ;;  %v12933_v41 = vunpack.i.l.bf16 %v21263_v17  ;;  %v21629_v10 = vpop.permute.xlu0 %13021  ;;  %v21635_v34 = vpop.permute.xlu1 %13026  ;;  %v25030_v0 = vld [vmem:[#allocation31_spill] sm:$0xff] }
 0x905   :  { %13241 = vrot.lane.b32.xlu1 %v25029_v56, %s13478_s14  ;;  %v8177_v46 = vsel %vm1924_vm10, %v8168_v8, %v12903_v55  ;;  %v12914_v13 = vunpack.i.h.bf16 %v25026_v28  ;;  %v12944_v20 = vunpack.i.h.bf16 %v21310_v4  ;;  %v12943_v39 = vunpack.i.l.bf16 %v21310_v4  ;;  %v25031_v55 = vld [vmem:[#allocation114_spill] sm:$0xff]  ;;  %v25032_v8 = vld [vmem:[#allocation115_spill] sm:$0xff] }
 0x906   :  { %v8178_v6 = vsel %vm1924_vm10, %v8169_v57, %v12904_v22  ;;  %v21639_v23 = vsel %vm1930_vm11, %v8177_v46, %v12913_v60  ;;  %v12954_v9 = vunpack.i.h.bf16 %v21333_v62  ;;  %v12953_v17 = vunpack.i.l.bf16 %v21333_v62  ;;  %v25034_v4 = vld [vmem:[#allocation103_spill] sm:$0xff] }
 0x907   :  { %v25033_v28 = vcombine.low %v25031_v55, %v25032_v8  ;;  %v25036_v52 = vcombine.low %v25034_v4, %v25035_v48  ;;  %v12964_v22 = vunpack.i.h.bf16 %v21384_v27  ;;  %v12963_v60 = vunpack.i.l.bf16 %v21384_v27 }
 0x908   :  { %13266 = vrot.lane.b32.xlu0 %v25030_v0, %s13474_s30  ;;  %v25037_v62 = vcombine.high %v21123_v54, %v21112_v30  ;;  %v12973_v55 = vunpack.i.l.bf16 %v21433_v5  ;;  %v21663_v48 = vpop.permute.xlu0 %13031  ;;  %v12978_v8 = vunpack.i.l.bf16 %v21442_v43  ;;  %v21669_v30 = vpop.permute.xlu1 %13036  ;;  %v25038_v54 = vld [vmem:[#allocation80_spill] sm:$0xff] }
 0x909   :  { %v8196_v56 = vsel %vm1894_vm5, %v25033_v28, %v12924_v29  ;;  %v8195_v57 = vsel %vm1894_vm5, %v25036_v52, %v12923_v16  ;;  %v12974_v29 = vunpack.i.h.bf16 %v21433_v5  ;;  %v8187_v52 = vsel %vm1930_vm11, %v8178_v6, %v12914_v13 }
 0x90a   :  { %8049 = vrot.lane.b32.xlu1 %v25037_v62, %s13478_s14  ;;  %v8205_v46 = vsel %vm1900_vm6, %v8196_v56, %v12934_v36  ;;  %v8204_v0 = vsel %vm1900_vm6, %v8195_v57, %v12933_v41  ;;  %v12919_v36 = vunpack.i.h.bf16 %v25038_v54  ;;  %v12918_v41 = vunpack.i.l.bf16 %v25038_v54  ;;  %v25039_v56 = vld [vmem:[#allocation138_spill] sm:$0xff] }
 0x90b   :  { %v8213_v16 = vsel %vm1906_vm7, %v8204_v0, %v12943_v39  ;;  %v8214_v27 = vsel %vm1906_vm7, %v8205_v46, %v12944_v20  ;;  %v12979_v20 = vunpack.i.h.bf16 %v21442_v43  ;;  %v12984_v6 = vunpack.i.h.bf16 %v21476_v45  ;;  %v25040_v62 = vld [vmem:[#allocation106_spill] sm:$0xff] }
 0x90c   :  { %v8222_v28 = vsel %vm1912_vm8, %v8213_v16, %v12953_v17  ;;  %v8223_v5 = vsel %vm1912_vm8, %v8214_v27, %v12954_v9  ;;  %13271 = vrot.lane.b32.xlu0 %v21265_v47, %s13476_s12  ;;  %v13042_v57 = vpop.permute.xlu0 %13041  ;;  %v12589_v47 = vpack.c.bf16 %v8187_v52, %v21639_v23  ;;  %v12989_v43 = vunpack.i.h.bf16 %v21489_v32  ;;  %v13047_v16 = vpop.permute.xlu1 %13046  ;;  %v25043_v23 = vld [vmem:[#allocation33_spill] sm:$0xff]  ;;  %v25044_v52 = vld [vmem:[#allocation38_spill] sm:$0xff] }
 0x90d   :  { %v8231_v13 = vsel %vm1918_vm9, %v8222_v28, %v12963_v60  ;;  %v8232_v39 = vsel %vm1918_vm9, %v8223_v5, %v12964_v22  ;;  %v25041_v60 = vld [vmem:[#allocation93_spill] sm:$0xff]  ;;  %v12988_v0 = vunpack.i.l.bf16 %v21489_v32  ;;  %v12994_v27 = vunpack.i.h.bf16 %v21521_v35 }
 0x90e   :  { %13256 = vrot.lane.b32.xlu1 %v21261_v51, %s13473_s29  ;;  %v8240_v17 = vsel %vm1924_vm10, %v8231_v13, %v12973_v55  ;;  %v8241_v9 = vsel %vm1924_vm10, %v8232_v39, %v12974_v29  ;;  %v25042_v46 = vcombine.low %v25040_v62, %v25041_v60  ;;  %v12983_v51 = vunpack.i.l.bf16 %v21476_v45  ;;  %v25046_v13 = vld [vmem:[#allocation47_spill] sm:$0xff]  ;;  %v25047_v39 = vld [vmem:[#allocation12_spill] sm:$0xff] }
 0x90f   :  { %v12993_v55 = vunpack.i.l.bf16 %v21521_v35  ;;  %v13049_v28 = vunpack.i.h.bf16 %v13047_v16  ;;  %v13048_v29 = vunpack.i.l.bf16 %v13047_v16  ;;  %v25045_v5 = vcombine.low %v25043_v23, %v25044_v52  ;;  %v25049_v23 = vld [vmem:[#allocation84_spill] sm:$0xff]  ;;  %v25050_v52 = vld [vmem:[#allocation81_spill] sm:$0xff] }
 0x910   :  { %v12296_v22 = vsel %vm1894_vm5, %v25042_v46, %v12978_v8  ;;  %13276 = vrot.lane.b32.xlu0 %v21286_v3, %s13476_s12  ;;  %v25048_v32 = vcombine.low %v25046_v13, %v25047_v39  ;;  %v12999_v62 = vunpack.i.h.bf16 %v21533_v31  ;;  %v12998_v60 = vunpack.i.l.bf16 %v21533_v31  ;;  %v21712_v46 = vpop.permute.xlu0 %13051 }
 0x911   :  { %v12297_v8 = vsel %vm1894_vm5, %v25045_v5, %v12979_v20  ;;  %v13009_v35 = vunpack.i.h.bf16 %v21583_v59  ;;  %v13008_v3 = vunpack.i.l.bf16 %v21583_v59  ;;  %v8249_v20 = vsel %vm1930_vm11, %v8240_v17, %v13048_v29 }
 0x912   :  { %v12234_v45 = vsel %vm1894_vm5, %v25048_v32, %v12984_v6  ;;  %13261 = vrot.lane.b32.xlu1 %v21284_v21, %s13474_s30  ;;  %v8250_v16 = vsel %vm1930_vm11, %v8241_v9, %v13049_v28  ;;  %v25051_v6 = vcombine.low %v25049_v23, %v25050_v52  ;;  %v13024_v31 = vunpack.i.h.bf16 %v21629_v10  ;;  %v13057_v21 = vpop.permute.xlu1 %13056 }
 0x913   :  { %v13023_v13 = vunpack.i.l.bf16 %v21629_v10  ;;  %v12587_v39 = vpack.c.bf16 %v8250_v16, %v8249_v20  ;;  %v12305_v32 = vsel %vm1900_vm6, %v12296_v22, %v12988_v0  ;;  %v12306_v59 = vsel %vm1900_vm6, %v12297_v8, %v12989_v43 }
 0x914   :  { %v12233_v5 = vsel %vm1894_vm5, %v25051_v6, %v12983_v51  ;;  %v12243_v17 = vsel %vm1900_vm6, %v12234_v45, %v12994_v27  ;;  %13281 = vrot.lane.b32.xlu0 %v21335_v14, %s13475_s11  ;;  %v12314_v9 = vsel %vm1906_vm7, %v12305_v32, %v12998_v60  ;;  %v12315_v51 = vsel %vm1906_vm7, %v12306_v59, %v12999_v62  ;;  %v21736_v14 = vpop.permute.xlu0 %13061  ;;  %v25052_v32 = vld [vmem:[#allocation58_spill] sm:$0xff] }
 0x915   :  { %v12242_v4 = vsel %vm1900_vm6, %v12233_v5, %v12993_v55  ;;  %v13044_v28 = vunpack.i.h.bf16 %v13042_v57  ;;  %v13043_v29 = vunpack.i.l.bf16 %v13042_v57  ;;  %12588 = vmatprep.subr.bf16.mxu1 %v12587_v39  ;;  %v12323_v10 = vsel %vm1912_vm8, %v12314_v9, %v13008_v3 }
 0x916   :  { %13286 = vrot.lane.b32.xlu1 %v21327_v15, %s13475_s11  ;;  %v12324_v22 = vsel %vm1912_vm8, %v12315_v51, %v13009_v35  ;;  %v13004_v43 = vunpack.i.h.bf16 %v21577_v33  ;;  %v13003_v0 = vunpack.i.l.bf16 %v21577_v33  ;;  %12590 = vmatpush1.bf16.msra.mxu1 %v12589_v47  ;;  %v13014_v27 = vunpack.i.h.bf16 %v21601_v53  ;;  %v13067_v8 = vpop.permute.xlu1 %13066 }
 0x917   :  { %v13013_v55 = vunpack.i.l.bf16 %v21601_v53  ;;  %v12333_v57 = vsel %vm1918_vm9, %v12324_v22, %v13024_v31  ;;  %v12332_v15 = vsel %vm1918_vm9, %v12323_v10, %v13023_v13  ;;  %v13034_v45 = vunpack.i.h.bf16 %v21663_v48 }
 0x918   :  { %v13033_v62 = vunpack.i.l.bf16 %v21663_v48  ;;  %v13069_v60 = vunpack.i.h.bf16 %v13067_v8  ;;  %v13068_v35 = vunpack.i.l.bf16 %v13067_v8  ;;  %13291 = vrot.lane.b32.xlu0 %v21347_v50, %s13473_s29  ;;  %v13059_v33 = vunpack.i.h.bf16 %v13057_v21  ;;  %v21752_v23 = vpop.permute.xlu0 %13071 }
 0x919   :  { %v13058_v47 = vunpack.i.l.bf16 %v13057_v21  ;;  %v12341_v53 = vsel %vm1924_vm10, %v12332_v15, %v13043_v29  ;;  %v12342_v3 = vsel %vm1924_vm10, %v12333_v57, %v13044_v28  ;;  %v12251_v20 = vsel %vm1906_vm7, %v12242_v4, %v13003_v0  ;;  %v25057_v57 = vld [vmem:[#allocation76_spill] sm:$0xff] }
 0x91a   :  { %13296 = vrot.lane.b32.xlu1 %v21342_v38, %s13478_s14  ;;  %v12252_v16 = vsel %vm1906_vm7, %v12243_v17, %v13004_v43  ;;  %v12350_v48 = vsel %vm1930_vm11, %v12341_v53, %v13068_v35  ;;  %v12351_v52 = vsel %vm1930_vm11, %v12342_v3, %v13069_v60  ;;  %v12928_v50 = vunpack.i.l.bf16 %v25039_v56  ;;  %v13077_v5 = vpop.permute.xlu1 %13076  ;;  %v25062_v60 = vld [vmem:[#allocation156_spill] sm:$0xff] }
 0x91b   :  { %v12260_v6 = vsel %vm1912_vm8, %v12251_v20, %v13013_v55  ;;  %v12261_v38 = vsel %vm1912_vm8, %v12252_v16, %v13014_v27  ;;  %v12603_v31 = vpack.c.bf16 %v12351_v52, %v12350_v48  ;;  %v13079_v21 = vunpack.i.h.bf16 %v13077_v5  ;;  %v25063_v20 = vld [vmem:[#allocation29_spill] sm:$0xff] }
 0x91c   :  { %v12269_v13 = vsel %vm1918_vm9, %v12260_v6, %v13033_v62  ;;  %v12270_v4 = vsel %vm1918_vm9, %v12261_v38, %v13034_v45  ;;  %v13078_v39 = vunpack.i.l.bf16 %v13077_v5  ;;  %13301 = vrot.lane.b32.xlu0 %v25052_v32, %s13477_s13  ;;  %v12939_v59 = vunpack.i.h.bf16 %v21276_v44  ;;  %v21781_v43 = vpop.permute.xlu0 %13081  ;;  %v25059_v45 = vld [vmem:[#allocation146_spill] sm:$0xff]  ;;  %v25060_v62 = vld [vmem:[#allocation147_spill] sm:$0xff] }
 0x91d   :  { %v12938_v17 = vunpack.i.l.bf16 %v21276_v44  ;;  %v12278_v9 = vsel %vm1924_vm10, %v12269_v13, %v13058_v47  ;;  %v12279_v51 = vsel %vm1924_vm10, %v12270_v4, %v13059_v33  ;;  %12604 = vmatprep.subr.bf16.mxu0 %v12603_v31  ;;  %v25053_v28 = vunpack.i.h.bf16 %v25024_v37  ;;  %v25054_v37 = vld [vmem:[#allocation88_spill] sm:$0xff]  ;;  %v25064_v13 = vld [vmem:[#allocation123_spill] sm:$0xff]  ;;  %v25065_v4 = vld [vmem:[#allocation65_spill] sm:$0xff] }
 0x91e   :  { %13306 = vrot.lane.b32.xlu1 %v21460_v19, %s13473_s29  ;;  %v21777_v10 = vsel %vm1930_vm11, %v21625_v63, %v12918_v41  ;;  %v12287_v44 = vsel %vm1930_vm11, %v12278_v9, %v13078_v39  ;;  %v12288_v22 = vsel %vm1930_vm11, %v12279_v51, %v13079_v21  ;;  %v12949_v0 = vunpack.i.h.bf16 %v25054_v37  ;;  %v21790_v27 = vpop.permute.xlu1 %13086  ;;  %v25056_v41 = vld [vmem:[#allocation43_spill] sm:$0xff]  ;;  %v25066_v51 = vld [vmem:[#allocation101_spill] sm:$0xff] }
 0x91f   :  { %v8180_v29 = vsel %vm1924_vm10, %v21617_v42, %v25053_v28  ;;  %v12948_v42 = vunpack.i.l.bf16 %v25054_v37  ;;  %v12605_v55 = vpack.c.bf16 %v12288_v22, %v12287_v44  ;;  %v25055_v63 = vunpack.i.h.bf16 %v25039_v56  ;;  %v25067_v28 = vld [vmem:[#allocation20_spill] sm:$0xff]  ;;  %v25070_v37 = vld [vmem:[#allocation178_spill] sm:$0xff] }
 0x920   :  { %v21786_v19 = vsel %vm1930_vm11, %v8180_v29, %v12919_v36  ;;  %v25058_v15 = vcombine.low %v25056_v41, %v25057_v57  ;;  %v25061_v54 = vcombine.low %v25059_v45, %v25060_v62  ;;  %v12959_v35 = vunpack.i.h.bf16 %v25062_v60  ;;  %13311 = vrot.lane.b32.xlu0 %v21435_v24, %s13478_s14  ;;  %v25068_v29 = vld [vmem:[#allocation25_spill] sm:$0xff]  ;;  %v25077_v57 = vld [vmem:[#allocation202_spill] sm:$0xff] }
 0x921   :  { %v12958_v33 = vunpack.i.l.bf16 %v25062_v60  ;;  %v12969_v53 = vunpack.i.h.bf16 %v21378_v26  ;;  %v12968_v3 = vunpack.i.l.bf16 %v21378_v26  ;;  %12606 = vmatpush1.bf16.msra.mxu0 %v12605_v55  ;;  %v13019_v16 = vunpack.i.h.bf16 %v21607_v1  ;;  %v25076_v41 = vld [vmem:[#allocation201_spill] sm:$0xff] }
 0x922   :  { %v8198_v8 = vsel %vm1894_vm5, %v25058_v15, %v25055_v63  ;;  %v8197_v36 = vsel %vm1894_vm5, %v25061_v54, %v12928_v50  ;;  %13316 = vrot.lane.b32.xlu1 %v25063_v20, %s13474_s30  ;;  %v13018_v48 = vunpack.i.l.bf16 %v21607_v1  ;;  %v13029_v52 = vunpack.i.h.bf16 %v21635_v34  ;;  %v13097_v50 = vpop.permute.xlu0 %13096  ;;  %v13092_v26 = vpop.permute.xlu1 %13091 }
 0x923   :  { %v8206_v47 = vsel %vm1900_vm6, %v8197_v36, %v12938_v17  ;;  %v8207_v56 = vsel %vm1900_vm6, %v8198_v8, %v12939_v59  ;;  %v13028_v24 = vunpack.i.l.bf16 %v21635_v34  ;;  %v13039_v5 = vunpack.i.h.bf16 %v21669_v30 }
 0x924   :  { %v8215_v6 = vsel %vm1906_vm7, %v8206_v47, %v12948_v42  ;;  %v8216_v38 = vsel %vm1906_vm7, %v8207_v56, %v12949_v0  ;;  %v11590_v31 = vcombine.high %v21220_v18, %v21300_v61  ;;  %v10417_v21 = vcombine.low %v25065_v4, %v25064_v13  ;;  %13321 = vrot.lane.b32.xlu0 %v21444_v11, %s13477_s13  ;;  %v25071_v0 = vld [vmem:[#allocation179_spill] sm:$0xff]  ;;  %v25102_v18 = vld [vmem:[#allocation254_spill] sm:$0xff] }
 0x925   :  { %v8224_v1 = vsel %vm1912_vm8, %v8215_v6, %v12958_v33  ;;  %v8225_v39 = vsel %vm1912_vm8, %v8216_v38, %v12959_v35  ;;  %v12593_v34 = vpack.c.bf16 %v21786_v19, %v21777_v10  ;;  %v13099_v17 = vunpack.i.h.bf16 %v13097_v50  ;;  %v25073_v10 = vld [vmem:[#allocation204_spill] sm:$0xff]  ;;  %v25074_v19 = vld [vmem:[#allocation198_spill] sm:$0xff] }
 0x926   :  { %v8233_v32 = vsel %vm1918_vm9, %v8224_v1, %v12968_v3  ;;  %v8234_v59 = vsel %vm1918_vm9, %v8225_v39, %v12969_v53  ;;  %v13098_v9 = vunpack.i.l.bf16 %v13097_v50  ;;  %13326 = vrot.lane.b32.xlu1 %v25066_v51, %s13479_s15  ;;  %v25069_v44 = vcombine.low %v25067_v28, %v25068_v29  ;;  %v21849_v45 = vpop.permute.xlu0 %13101  ;;  %v13112_v35 = vpop.permute.xlu1 %13111 }
 0x927   :  { %v25072_v11 = vcombine.low %v25070_v37, %v25071_v0  ;;  %v25075_v55 = vcombine.low %v25073_v10, %v25074_v19  ;;  %v25078_v15 = vcombine.low %v25076_v41, %v25077_v57  ;;  %v13038_v54 = vunpack.i.l.bf16 %v21669_v30  ;;  %v25080_v19 = vld [vmem:[#allocation187_spill] sm:$0xff] }
 0x928   :  { %v12299_v22 = vsel %vm1894_vm5, %v25069_v44, %v13019_v16  ;;  %v13054_v36 = vunpack.i.h.bf16 %v21712_v46  ;;  %v13053_v60 = vunpack.i.l.bf16 %v21712_v46  ;;  %v13064_v33 = vunpack.i.h.bf16 %v21736_v14  ;;  %13331 = vrot.lane.b32.xlu0 %v21481_v25, %s13474_s30  ;;  %v25083_v41 = vld [vmem:[#allocation191_spill] sm:$0xff] }
 0x929   :  { %v12298_v42 = vsel %vm1894_vm5, %v25072_v11, %v13018_v48  ;;  %v12236_v63 = vsel %vm1894_vm5, %v25075_v55, %v13029_v52  ;;  %v12235_v8 = vsel %vm1894_vm5, %v25078_v15, %v13028_v24  ;;  %v12308_v62 = vsel %vm1900_vm6, %v12299_v22, %v13039_v5 }
 0x92a   :  { %v13063_v47 = vunpack.i.l.bf16 %v21736_v14  ;;  %v13114_v56 = vunpack.i.h.bf16 %v13112_v35  ;;  %v13113_v53 = vunpack.i.l.bf16 %v13112_v35  ;;  %v13084_v3 = vunpack.i.h.bf16 %v21781_v43  ;;  %13336 = vrot.lane.b32.xlu1 %v21470_v2, %s13477_s13  ;;  %v13107_v52 = vpop.permute.xlu0 %13106  ;;  %v13117_v6 = vpop.permute.xlu1 %13116 }
 0x92b   :  { %v13083_v20 = vunpack.i.l.bf16 %v21781_v43  ;;  %v8242_v30 = vsel %vm1924_vm10, %v8233_v32, %v13098_v9  ;;  %v8243_v46 = vsel %vm1924_vm10, %v8234_v59, %v13099_v17  ;;  %v13094_v16 = vunpack.i.h.bf16 %v13092_v26 }
 0x92c   :  { %v13093_v48 = vunpack.i.l.bf16 %v13092_v26  ;;  %v8251_v14 = vsel %vm1930_vm11, %v8242_v30, %v13113_v53  ;;  %v8252_v24 = vsel %vm1930_vm11, %v8243_v46, %v13114_v56  ;;  %v12307_v25 = vsel %vm1900_vm6, %v12298_v42, %v13038_v54  ;;  %13341 = vrot.lane.b32.xlu0 %v21504_v7, %s13476_s12  ;;  %v25085_v56 = vld [vmem:[#allocation105_spill] sm:$0xff] }
 0x92d   :  { %v12245_v50 = vsel %vm1900_vm6, %v12236_v63, %v13054_v36  ;;  %v12244_v43 = vsel %vm1900_vm6, %v12235_v8, %v13053_v60  ;;  %v12591_v38 = vpack.c.bf16 %v8252_v24, %v8251_v14  ;;  %v12317_v2 = vsel %vm1906_vm7, %v12308_v62, %v13064_v33  ;;  %v25082_v63 = vld [vmem:[#allocation186_spill] sm:$0xff]  ;;  %v25086_v53 = vld [vmem:[#allocation237_spill] sm:$0xff] }
 0x92e   :  { %v12316_v5 = vsel %vm1906_vm7, %v12307_v25, %v13063_v47  ;;  %v13074_v1 = vunpack.i.h.bf16 %v21752_v23  ;;  %v13073_v26 = vunpack.i.l.bf16 %v21752_v23  ;;  %v12326_v32 = vsel %vm1912_vm8, %v12317_v2, %v13084_v3  ;;  %13346 = vrot.lane.b32.xlu1 %v21491_v12, %s13479_s15  ;;  %v13132_v7 = vpop.permute.xlu0 %13131  ;;  %v13122_v22 = vpop.permute.xlu1 %13121  ;;  %v25090_v2 = vld [vmem:[#allocation213_spill] sm:$0xff] }
 0x92f   :  { %v12325_v39 = vsel %vm1912_vm8, %v12316_v5, %v13083_v20  ;;  %v13109_v59 = vunpack.i.h.bf16 %v13107_v52  ;;  %v13108_v17 = vunpack.i.l.bf16 %v13107_v52  ;;  %12592 = vmatprep.subr.bf16.mxu1 %v12591_v38  ;;  %v13089_v9 = vunpack.i.h.bf16 %v21790_v27  ;;  %v25088_v52 = vld [vmem:[#allocation117_spill] sm:$0xff]  ;;  %v25091_v5 = vld [vmem:[#allocation16_spill] sm:$0xff] }
 0x930   :  { %v13088_v51 = vunpack.i.l.bf16 %v21790_v27  ;;  %v12334_v28 = vsel %vm1918_vm9, %v12325_v39, %v13093_v48  ;;  %v12335_v23 = vsel %vm1918_vm9, %v12326_v32, %v13094_v16  ;;  %12594 = vmatpush1.bf16.msra.mxu1 %v12593_v34  ;;  %v13104_v29 = vunpack.i.h.bf16 %v21849_v45  ;;  %13351 = vrot.lane.b32.xlu0 %v21528_v40, %s13476_s12  ;;  %v25079_v27 = vld [vmem:[#allocation189_spill] sm:$0xff]  ;;  %v25087_v48 = vld [vmem:[#allocation160_spill] sm:$0xff] }
 0x931   :  { %v13103_v44 = vunpack.i.l.bf16 %v21849_v45  ;;  %v13134_v37 = vunpack.i.h.bf16 %v13132_v7  ;;  %v13133_v0 = vunpack.i.l.bf16 %v13132_v7  ;;  %v13119_v11 = vunpack.i.h.bf16 %v13117_v6  ;;  %v25094_v39 = vld [vmem:[#allocation165_spill] sm:$0xff] }
 0x932   :  { %v13118_v12 = vunpack.i.l.bf16 %v13117_v6  ;;  %v13124_v42 = vunpack.i.h.bf16 %v13122_v22  ;;  %v13123_v10 = vunpack.i.l.bf16 %v13122_v22  ;;  %v25081_v55 = vcombine.low %v25079_v27, %v25080_v19  ;;  %13356 = vrot.lane.b32.xlu1 %v21523_v49, %s13479_s15  ;;  %v21906_v54 = vpop.permute.xlu0 %7653  ;;  %v13127_v47 = vpop.permute.xlu1 %13126  ;;  %v25099_v22 = vld [vmem:[#allocation45_spill] sm:$0xff]  ;;  %v25104_v19 = vld [vmem:[#allocation95_spill] sm:$0xff] }
 0x933   :  { %v25084_v57 = vcombine.low %v25082_v63, %v25083_v41  ;;  %v12343_v8 = vsel %vm1924_vm10, %v12334_v28, %v13108_v17  ;;  %v12344_v45 = vsel %vm1924_vm10, %v12335_v23, %v13109_v59  ;;  %v12253_v40 = vsel %vm1906_vm7, %v12244_v43, %v13073_v26  ;;  %v25093_v26 = vld [vmem:[#allocation210_spill] sm:$0xff]  ;;  %v25095_v59 = vld [vmem:[#allocation193_spill] sm:$0xff]  ;;  %v25096_v17 = vld [vmem:[#allocation119_spill] sm:$0xff] }
 0x934   :  { %v21892_v34 = vsel %vm1894_vm5, %v25081_v55, %v13134_v37  ;;  %v12254_v62 = vsel %vm1906_vm7, %v12245_v50, %v13074_v1  ;;  %v12352_v36 = vsel %vm1930_vm11, %v12343_v8, %v13123_v10  ;;  %v12353_v60 = vsel %vm1930_vm11, %v12344_v45, %v13124_v42  ;;  %13361 = vrot.lane.b32.xlu0 %v21543_v58, %s13475_s11  ;;  %v25089_v50 = vld [vmem:[#allocation222_spill] sm:$0xff]  ;;  %v25105_v55 = vld [vmem:[#allocation253_spill] sm:$0xff]  ;;  %v25106_v63 = vld [vmem:[#allocation240_spill] sm:$0xff] }
 0x935   :  { %v21898_v15 = vsel %vm1894_vm5, %v25084_v57, %v13133_v0  ;;  %v12262_v35 = vsel %vm1912_vm8, %v12253_v40, %v13088_v51  ;;  %v12263_v33 = vsel %vm1912_vm8, %v12254_v62, %v13089_v9  ;;  %v12607_v49 = vpack.c.bf16 %v12353_v60, %v12352_v36  ;;  %v25108_v8 = vld [vmem:[#allocation223_spill] sm:$0xff]  ;;  %v25111_v36 = vld [vmem:[#allocation208_spill] sm:$0xff]  ;;  %v25112_v60 = vld [vmem:[#allocation166_spill] sm:$0xff] }
 0x936   :  { %v11591_v3 = vcombine.low %v25086_v53, %v25085_v56  ;;  %v12271_v20 = vsel %vm1918_vm9, %v12262_v35, %v13103_v44  ;;  %v12272_v30 = vsel %vm1918_vm9, %v12263_v33, %v13104_v29  ;;  %v13129_v46 = vunpack.i.h.bf16 %v13127_v47  ;;  %13366 = vrot.lane.b32.xlu1 %v25089_v50, %s13475_s11  ;;  %v13147_v38 = vpop.permute.xlu0 %13146  ;;  %v13137_v28 = vpop.permute.xlu1 %13136  ;;  %v25097_v29 = vld [vmem:[#allocation8_spill] sm:$0xff]  ;;  %v25098_v44 = vld [vmem:[#allocation14_spill] sm:$0xff]  ;;  %v25109_v45 = vld [vmem:[#allocation19_spill] sm:$0xff] }
 0x937   :  { %v13128_v16 = vunpack.i.l.bf16 %v13127_v47  ;;  %v10401_v14 = vcombine.low %v25088_v52, %v25087_v48  ;;  %v12280_v24 = vsel %vm1924_vm10, %v12271_v20, %v13118_v12  ;;  %v12281_v25 = vsel %vm1924_vm10, %v12272_v30, %v13119_v11  ;;  %12608 = vmatprep.subr.bf16.mxu0 %v12607_v49  ;;  %v25101_v11 = vld [vmem:[#allocation52_spill] sm:$0xff]  ;;  %v25114_v47 = vld [vmem:[#allocation71_spill] sm:$0xff]  ;;  %v25115_v49 = vld [vmem:[#allocation181_spill] sm:$0xff] }
 0x938   :  { %v12290_v6 = vsel %vm1930_vm11, %v12281_v25, %v13129_v46  ;;  %v25092_v1 = vcombine.high %v25090_v2, %v25091_v5  ;;  %v10366_v32 = vcombine.high %v25094_v39, %v25093_v26  ;;  %v11689_v9 = vcombine.low %v25096_v17, %v25095_v59  ;;  %v25117_v46 = vld [vmem:[#allocation150_spill] sm:$0xff]  ;;  %v25121_v5 = vld [vmem:[#allocation108_spill] sm:$0xff] }
 0x939   :  { %v12289_v43 = vsel %vm1930_vm11, %v12280_v24, %v13128_v16  ;;  %v13149_v23 = vunpack.i.h.bf16 %v13147_v38  ;;  %v13148_v7 = vunpack.i.l.bf16 %v13147_v38  ;;  %v25100_v37 = vcombine.low %v25098_v44, %v25099_v22  ;;  %v25118_v16 = vld [vmem:[#allocation137_spill] sm:$0xff]  ;;  %v25120_v38 = vld [vmem:[#allocation154_spill] sm:$0xff] }
 0x93a   :  { %v13370_v58 = vpack.i.bf16 %v11590_v31, %v25092_v1  ;;  %v12609_v51 = vpack.c.bf16 %v12290_v6, %v12289_v43  ;;  %v25103_v61 = vcombine.low %v25101_v11, %v25102_v18  ;;  %v13139_v12 = vunpack.i.h.bf16 %v13137_v28  ;;  %13376 = vrot.lane.b32.xlu1 %v25104_v19, %s13477_s13  ;;  %v13142_v25 = vpop.permute.xlu1 %13141  ;;  %v25119_v6 = vld [vmem:[#allocation148_spill] sm:$0xff]  ;;  %v25122_v1 = vld [vmem:[#allocation75_spill] sm:$0xff] }
 0x93b   :  { %v21940_v0 = vrot.slane %v25100_v37, %v25097_v29  ;;  %v13138_v42 = vunpack.i.l.bf16 %v13137_v28  ;;  %v21950_v10 = vrot.slane %v10401_v14, %v25097_v29  ;;  %v21956_v27 = vrot.slane %v10417_v21, %v25097_v29  ;;  %v13152_v21 = vpop.permute.xlu0 %13151  ;;  %v25127_v37 = vld [vmem:[#allocation140_spill] sm:$0xff] }
 0x93c   :  { %v21946_v31 = vrot.slane %v25103_v61, %v25097_v29  ;;  %13371 = vrot.lane.b32.xlu0 %v13370_v58, %s13478_s14  ;;  %12610 = vmatpush1.bf16.msra.mxu0 %v12609_v51  ;;  %v25107_v41 = vcombine.low %v25105_v55, %v25106_v63  ;;  %v25110_v40 = vcombine.low %v25108_v8, %v25109_v45  ;;  %v13154_v50 = vunpack.i.h.bf16 %v13152_v21  ;;  %v25124_v51 = vld [vmem:[#allocation99_spill] sm:$0xff] }
 0x93d   :  { %v25113_v35 = vcombine.low %v25111_v36, %v25112_v60  ;;  %v25116_v20 = vcombine.high %v25114_v47, %v25115_v49  ;;  %v10367_v14 = vcombine.low %v25118_v16, %v25117_v46  ;;  %v13153_v43 = vunpack.i.l.bf16 %v13152_v21 }
 0x93e   :  { %v13385_v57 = vpack.i.bf16 %v11591_v3, %v25107_v41  ;;  %v8138_v62 = vsel %vm1894_vm5, %v25110_v40, %v13138_v42  ;;  %v11658_v2 = vcombine.high %v25120_v38, %v25119_v6  ;;  %v6396_v58 = vcombine.low %v25122_v1, %v25121_v5  ;;  %v25129_v40 = vld [vmem:[#allocation192_spill] sm:$0xff]  ;;  %v7690_v49 = vpop.permute.xlu1 %7689 }
 0x93f   :  { %v8139_v33 = vsel %vm1894_vm5, %v25113_v35, %v13139_v12  ;;  %v13380_v30 = vpack.i.bf16 %v10366_v32, %v25116_v20  ;;  %v8147_v24 = vsel %vm1900_vm6, %v8138_v62, %v13148_v7  ;;  %v13144_v26 = vunpack.i.h.bf16 %v13142_v25  ;;  %v25123_v32 = vld [vmem:[#allocation151_spill] sm:$0xff]  ;;  %v25126_v7 = vld [vmem:[#allocation32_spill] sm:$0xff]  ;;  %v7726_v45 = vpop.permute.xlu0 %7725  ;;  %v25130_v62 = vld [vmem:[#allocation185_spill] sm:$0xff] }
 0x940   :  { %v8148_v3 = vsel %vm1900_vm6, %v8139_v33, %v13149_v23  ;;  %v13143_v39 = vunpack.i.l.bf16 %v13142_v25  ;;  %v25125_v28 = vcombine.high %v25123_v32, %v25124_v51  ;;  %v25128_v61 = vcombine.high %v25126_v7, %v25127_v37  ;;  %13386 = vrot.lane.b32.xlu1 %v13385_v57, %s13477_s13  ;;  %v25132_v35 = vld [vmem:[#allocation15_spill] sm:$0xff] }
 0x941   :  { %13381 = vrot.lane.b32.xlu0 %v13380_v30, %s13478_s14  ;;  %v10433_v42 = vcombine.low %v21940_v0, %v21946_v31  ;;  %v10465_v19 = vcombine.low %v21950_v10, %v21956_v27  ;;  %v8146_v8 = vsel %vm1900_vm6, %v21892_v34, %v13144_v26  ;;  %v25131_v36 = vcombine.low %v25129_v40, %v25130_v62  ;;  %v25133_v30 = vld [vmem:[#allocation155_spill] sm:$0xff] }
 0x942   :  { %v21987_v23 = vrot.slane %v25125_v28, %v25097_v29  ;;  %v21993_v12 = vrot.slane %v25128_v61, %v25097_v29  ;;  %v8145_v41 = vsel %vm1900_vm6, %v21898_v15, %v13143_v39  ;;  %v22008_v33 = vrot.slane %v11689_v9, %v25132_v35 }
 0x943   :  { %v13395_v60 = vpack.i.bf16 %v10367_v14, %v25131_v36  ;;  %v8140_v21 = vsel %vm1894_vm5, %v6396_v58, %v21906_v54  ;;  %v8154_v47 = vsel %vm1906_vm7, %v8145_v41, %v13153_v43  ;;  %v8155_v57 = vsel %vm1906_vm7, %v8146_v8, %v13154_v50  ;;  %v13157_v50 = vpop.permute.xlu1 %13156 }
 0x944   :  { %v11592_v15 = vcombine.high %v25086_v53, %v25085_v56  ;;  %v10386_v34 = vcombine.high %v25101_v11, %v25102_v18  ;;  %v10418_v20 = vcombine.high %v25065_v4, %v25064_v13  ;;  %v8149_v9 = vsel %vm1900_vm6, %v8140_v21, %v7690_v49  ;;  %v25137_v21 = vld [vmem:[#allocation142_spill] sm:$0xff] }
 0x945   :  { %13391 = vrot.lane.b32.xlu0 %v25133_v30, %s13479_s15  ;;  %v25134_v54 = vcombine.low %v25120_v38, %v25119_v6  ;;  %v10402_v56 = vcombine.high %v25088_v52, %v25087_v48  ;;  %v8158_v53 = vsel %vm1906_vm7, %v8149_v9, %v7726_v45  ;;  %13396 = vrot.lane.b32.xlu1 %v13395_v60, %s13477_s13  ;;  %v13167_v48 = vpop.permute.xlu0 %13166  ;;  %v25138_v49 = vld [vmem:[#allocation26_spill] sm:$0xff] }
 0x946   :  { %v10368_v13 = vcombine.high %v25118_v16, %v25117_v46  ;;  %v22036_v4 = vrot.slane %v10465_v19, %v25132_v35  ;;  %v11690_v11 = vcombine.high %v25096_v17, %v25095_v59  ;;  %v10370_v18 = vcombine.high %v25098_v44, %v25099_v22 }
 0x947   :  { %v22027_v14 = vrot.slane %v25134_v54, %v25132_v35  ;;  %v10466_v25 = vcombine.high %v21950_v10, %v21956_v27  ;;  %v13169_v43 = vunpack.i.h.bf16 %v13167_v48  ;;  %v13168_v5 = vunpack.i.l.bf16 %v13167_v48  ;;  %v13162_v7 = vpop.permute.xlu1 %13161 }
 0x948   :  { %v25135_v46 = vcombine.high %v25105_v55, %v25106_v63  ;;  %v22050_v1 = vrot.slane %v10433_v42, %v25132_v35  ;;  %v22053_v59 = vrot.slane %v10386_v34, %v25097_v29  ;;  %v10434_v17 = vcombine.high %v21940_v0, %v21946_v31 }
 0x949   :  { %v11722_v52 = vcombine.high %v22027_v14, %v22008_v33  ;;  %v13159_v44 = vunpack.i.h.bf16 %v13157_v50  ;;  %v13158_v22 = vunpack.i.l.bf16 %v13157_v50  ;;  %v22059_v10 = vrot.slane %v10402_v56, %v25097_v29  ;;  %v13172_v26 = vpop.permute.xlu0 %13171 }
 0x94a   :  { %v13400_v16 = vpack.i.bf16 %v11592_v15, %v25135_v46  ;;  %v22062_v27 = vrot.slane %v10418_v20, %v25097_v29  ;;  %v25136_v55 = vcombine.high %v25129_v40, %v25130_v62  ;;  %v10498_v58 = vcombine.high %v22050_v1, %v22036_v4 }
 0x94b   :  { %12006 = vrot.lane.b32.xlu0 %v11722_v52, %s13473_s29  ;;  %v8156_v0 = vsel %vm1906_vm7, %v8147_v24, %v13158_v22  ;;  %v8157_v31 = vsel %vm1906_vm7, %v8148_v3, %v13159_v44  ;;  %v10480_v39 = vrot.slane %v10466_v25, %v25132_v35  ;;  %v11704_v32 = vrot.slane %v11690_v11, %v25132_v35  ;;  %v7762_v38 = vpop.permute.xlu1 %7761 }
 0x94c   :  { %13401 = vrot.lane.b32.xlu1 %v13400_v16, %s13479_s15  ;;  %v13405_v63 = vpack.i.bf16 %v10368_v13, %v25136_v55  ;;  %v8165_v51 = vsel %vm1912_vm8, %v8156_v0, %v13168_v5  ;;  %v8166_v28 = vsel %vm1912_vm8, %v8157_v31, %v13169_v43  ;;  %v13174_v37 = vunpack.i.h.bf16 %v13172_v26 }
 0x94d   :  { %v13173_v61 = vunpack.i.l.bf16 %v13172_v26  ;;  %v22077_v42 = vrot.slane %v10370_v18, %v25097_v29  ;;  %v13164_v19 = vunpack.i.h.bf16 %v13162_v7  ;;  %v13163_v41 = vunpack.i.l.bf16 %v13162_v7  ;;  %v7798_v62 = vpop.permute.xlu0 %7797 }
 0x94e   :  { %v11672_v3 = vrot.slane %v11658_v2, %v25132_v35  ;;  %v11705_v24 = vcombine.low %v21987_v23, %v21993_v12  ;;  %v10448_v8 = vrot.slane %v10434_v17, %v25132_v35  ;;  %v10481_v29 = vcombine.low %v22059_v10, %v22062_v27 }
 0x94f   :  { %11754 = vrot.lane.b32.xlu0 %v10498_v58, %s13473_s29  ;;  %v8163_v45 = vsel %vm1912_vm8, %v8154_v47, %v13163_v41  ;;  %v8164_v40 = vsel %vm1912_vm8, %v8155_v57, %v13164_v19  ;;  %v11673_v15 = vcombine.low %v25138_v49, %v25137_v21  ;;  %v10449_v34 = vcombine.low %v22077_v42, %v22053_v59  ;;  %v13177_v56 = vpop.permute.xlu1 %13176 }
 0x950   :  { %13406 = vrot.lane.b32.xlu1 %v13405_v63, %s13479_s15  ;;  %v11723_v36 = vcombine.low %v11672_v3, %v11704_v32  ;;  %v8172_v60 = vsel %vm1918_vm9, %v8163_v45, %v13173_v61  ;;  %v8173_v6 = vsel %vm1918_vm9, %v8164_v40, %v13174_v37  ;;  %v10499_v2 = vcombine.low %v10448_v8, %v10480_v39 }
 0x951   :  { %v8167_v20 = vsel %vm1912_vm8, %v8158_v53, %v7762_v38  ;;  %v13187_v57 = vpop.permute.xlu0 %13186  ;;  %v11724_v9 = vcombine.high %v11672_v3, %v11704_v32  ;;  %v10489_v30 = vrot.slane %v10481_v29, %v25132_v35  ;;  %v11713_v54 = vrot.slane %v11705_v24, %v25132_v35  ;;  %v25140_v24 = vld [vmem:[#allocation104_spill] sm:$0xff] }
 0x952   :  { %v8176_v47 = vsel %vm1918_vm9, %v8167_v20, %v7798_v62  ;;  %v13189_v13 = vunpack.i.h.bf16 %v13187_v57  ;;  %v13188_v11 = vunpack.i.l.bf16 %v13187_v57  ;;  %v10500_v18 = vcombine.high %v10448_v8, %v10480_v39  ;;  %v22143_v62 = vpop.f32.mrb[2].mxu0  ;;  %v25145_v57 = vld [vmem:[#allocation236_spill] sm:$0xff] }
 0x953   :  { %12042 = vrot.lane.b32.xlu0 %v11723_v36, %s13474_s30  ;;  %v13179_v25 = vunpack.i.h.bf16 %v13177_v56  ;;  %v13178_v48 = vunpack.i.l.bf16 %v13177_v56  ;;  %v10457_v53 = vrot.slane %v10449_v34, %v25132_v35  ;;  %v11681_v52 = vrot.slane %v11673_v15, %v25132_v35  ;;  %v13182_v55 = vpop.permute.xlu1 %13181  ;;  %v25142_v15 = vld [vmem:[#allocation227_spill] sm:$0xff]  ;;  %v25143_v34 = vld [vmem:[#allocation37_spill] sm:$0xff] }
 0x954   :  { %11790 = vrot.lane.b32.xlu1 %v10499_v2, %s13474_s30  ;;  %v11706_v50 = vcombine.high %v21987_v23, %v21993_v12  ;;  %v13184_v0 = vunpack.i.h.bf16 %v13182_v55  ;;  %v13183_v31 = vunpack.i.l.bf16 %v13182_v55  ;;  %v11674_v23 = vcombine.high %v25138_v49, %v25137_v21 }
 0x955   :  { %v8174_v43 = vsel %vm1918_vm9, %v8165_v51, %v13178_v48  ;;  %v8175_v5 = vsel %vm1918_vm9, %v8166_v28, %v13179_v25  ;;  %v13192_v46 = vpop.permute.xlu0 %13191  ;;  %v10501_v16 = vcombine.low %v10457_v53, %v10489_v30  ;;  %v11725_v17 = vcombine.low %v11681_v52, %v11713_v54 }
 0x956   :  { %v8183_v44 = vsel %vm1924_vm10, %v8174_v43, %v13188_v11  ;;  %v8184_v22 = vsel %vm1924_vm10, %v8175_v5, %v13189_v13  ;;  %v13194_v63 = vunpack.i.h.bf16 %v13192_v46  ;;  %v13193_v58 = vunpack.i.l.bf16 %v13192_v46 }
 0x957   :  { %12078 = vrot.lane.b32.xlu0 %v11724_v9, %s13476_s12  ;;  %v8181_v12 = vsel %vm1924_vm10, %v8172_v60, %v13183_v31  ;;  %v8182_v26 = vsel %vm1924_vm10, %v8173_v6, %v13184_v0  ;;  %v11726_v32 = vcombine.high %v11681_v52, %v11713_v54  ;;  %v10482_v51 = vcombine.high %v22059_v10, %v22062_v27  ;;  %v7834_v37 = vpop.permute.xlu1 %7833  ;;  %v25139_v27 = vld [vmem:[#allocation30_spill] sm:$0xff]  ;;  %v25146_v9 = vld [vmem:[#allocation231_spill] sm:$0xff] }
 0x958   :  { %11826 = vrot.lane.b32.xlu1 %v10500_v18, %s13476_s12  ;;  %v22123_v28 = vsel %vm1930_vm11, %v8181_v12, %v13193_v58  ;;  %v22126_v7 = vsel %vm1930_vm11, %v8182_v26, %v13194_v63  ;;  %v11720_v61 = vrot.slane %v11706_v50, %v25132_v35  ;;  %v8185_v41 = vsel %vm1924_vm10, %v8176_v47, %v7834_v37  ;;  %v25150_v50 = vld [vmem:[#allocation42_spill] sm:$0xff] }
 0x959   :  { %v7870_v39 = vpop.permute.xlu0 %7869  ;;  %v12597_v19 = vpack.c.bf16 %v22126_v7, %v22123_v28  ;;  %v10450_v3 = vcombine.high %v22077_v42, %v22053_v59  ;;  %v25141_v8 = vcombine.low %v25139_v27, %v25140_v24  ;;  %v11688_v29 = vrot.slane %v11674_v23, %v25132_v35  ;;  %v22146_v42 = vpop.f32.mrb[3].mxu0 }
 0x95a   :  { %v22136_v10 = vsel %vm1930_vm11, %v8185_v41, %v7870_v39  ;;  %v10502_v40 = vcombine.high %v10457_v53, %v10489_v30  ;;  %v10496_v59 = vrot.slane %v10482_v51, %v25132_v35  ;;  %v22151_v49 = vadd.f32 %v22146_v42, %v22143_v62 }
 0x95b   :  { %12114 = vrot.lane.b32.xlu0 %v11725_v17, %s13475_s11  ;;  %v13197_v36 = vpop.permute.xlu1 %13196  ;;  %v11727_v38 = vcombine.low %v11688_v29, %v11720_v61  ;;  %v25144_v20 = vcombine.low %v25142_v15, %v25143_v34  ;;  %v25147_v30 = vcombine.low %v25145_v57, %v25146_v9  ;;  %v10464_v56 = vrot.slane %v10450_v3, %v25132_v35  ;;  %v25149_v35 = vld [vmem:[#allocation206_spill] sm:$0xff] }
 0x95c   :  { %11862 = vrot.lane.b32.xlu1 %v10501_v16, %s13475_s11  ;;  %v13199_v2 = vunpack.i.h.bf16 %v13197_v36  ;;  %v13198_v21 = vunpack.i.l.bf16 %v13197_v36  ;;  %v25148_v52 = vcombine.high %v25139_v27, %v25140_v24  ;;  %v7620_v43 = vcombine.low %v25150_v50, %v25149_v35  ;;  %v25154_v35 = vld [vmem:[#allocation131_spill] sm:$0xff]  ;;  %v25155_v50 = vld [vmem:[#allocation66_spill] sm:$0xff] }
 0x95d   :  { %v13207_v45 = vpop.permute.xlu0 %13206  ;;  %v10503_v53 = vcombine.low %v10464_v56, %v10496_v59  ;;  %v11728_v46 = vcombine.high %v11688_v29, %v11720_v61  ;;  %v10504_v17 = vcombine.high %v10464_v56, %v10496_v59  ;;  %v25152_v56 = vld [vmem:[#allocation158_spill] sm:$0xff] }
 0x95e   :  { %v13209_v60 = vunpack.i.h.bf16 %v13207_v45  ;;  %v13208_v6 = vunpack.i.l.bf16 %v13207_v45  ;;  %v22164_v13 = vsel %vm1930_vm11, %v8183_v44, %v13198_v21  ;;  %v22167_v11 = vsel %vm1930_vm11, %v8184_v22, %v13199_v2 }
 0x95f   :  { %12150 = vrot.lane.b32.xlu0 %v11726_v32, %s13478_s14  ;;  %v12601_v25 = vpack.c.bf16 %v22167_v11, %v22164_v13  ;;  %v13202_v48 = vpop.permute.xlu1 %13201 }
 0x960   :  { %8085 = vrot.lane.b32.xlu1 %v25141_v8, %s13477_s13  ;;  %v8202_v47 = vsel %vm1894_vm5, %v25144_v20, %v13209_v60  ;;  %v8201_v54 = vsel %vm1894_vm5, %v25147_v30, %v13208_v6  ;;  %v13204_v34 = vunpack.i.h.bf16 %v13202_v48  ;;  %v13203_v20 = vunpack.i.l.bf16 %v13202_v48 }
 0x961   :  { %v13212_v18 = vpop.permute.xlu0 %13211 }
 0x962   :  { %v13214_v9 = vunpack.i.h.bf16 %v13212_v18  ;;  %v13213_v30 = vunpack.i.l.bf16 %v13212_v18  ;;  %v25157_v18 = vld [vmem:[#allocation74_spill] sm:$0xff] }
 0x963   :  { %11898 = vrot.lane.b32.xlu0 %v10502_v40, %s13478_s14  ;;  %v7906_v16 = vpop.permute.xlu1 %7905 }
 0x964   :  { %12186 = vrot.lane.b32.xlu1 %v11727_v38, %s13477_s13  ;;  %v8203_v44 = vsel %vm1894_vm5, %v7620_v43, %v7906_v16  ;;  %v25156_v43 = vcombine.low %v25154_v35, %v25155_v50 }
 0x965   :  { %v7942_v5 = vpop.permute.xlu0 %7941 }
 0x966   :  { %v8212_v22 = vsel %vm1900_vm6, %v8203_v44, %v7942_v5  ;;  %v8199_v5 = vsel %vm1894_vm5, %v25156_v43, %v13203_v20  ;;  %v25161_v20 = vld [vmem:[#allocation13_spill] sm:$0xff] }
 0x967   :  { %8121 = vrot.lane.b32.xlu0 %v25148_v52, %s13479_s15  ;;  %v13217_v63 = vpop.permute.xlu1 %13216 }
 0x968   :  { %11934 = vrot.lane.b32.xlu1 %v10503_v53, %s13477_s13  ;;  %v13219_v31 = vunpack.i.h.bf16 %v13217_v63  ;;  %v13218_v23 = vunpack.i.l.bf16 %v13217_v63 }
 0x969   :  { %v13227_v55 = vpop.permute.xlu0 %13226 }
 0x96a   :  { %v13229_v58 = vunpack.i.h.bf16 %v13227_v55  ;;  %v13228_v0 = vunpack.i.l.bf16 %v13227_v55  ;;  %v8210_v12 = vsel %vm1900_vm6, %v8201_v54, %v13218_v23  ;;  %v8211_v26 = vsel %vm1900_vm6, %v8202_v47, %v13219_v31  ;;  %v25151_v54 = vld [vmem:[#allocation159_spill] sm:$0xff] }
 0x96b   :  { %12222 = vrot.lane.b32.xlu0 %v11728_v46, %s13479_s15  ;;  %v13222_v37 = vpop.permute.xlu1 %13221  ;;  %v25153_v53 = vcombine.low %v25151_v54, %v25152_v56  ;;  %v25158_v55 = vld [vmem:[#allocation55_spill] sm:$0xff]  ;;  %v25163_v54 = vld [vmem:[#allocation126_spill] sm:$0xff] }
 0x96c   :  { %11970 = vrot.lane.b32.xlu1 %v10504_v17, %s13479_s15  ;;  %v22185_v32 = vsel %vm1906_vm7, %v8210_v12, %v13228_v0  ;;  %v22188_v51 = vsel %vm1906_vm7, %v8211_v26, %v13229_v58  ;;  %v13224_v16 = vunpack.i.h.bf16 %v13222_v37  ;;  %v13223_v17 = vunpack.i.l.bf16 %v13222_v37 }
 0x96d   :  { %v13232_v39 = vpop.permute.xlu0 %13231  ;;  %v8200_v52 = vsel %vm1894_vm5, %v25153_v53, %v13204_v34  ;;  %v11177_v63 = vcombine.low %v25158_v55, %v25157_v18 }
 0x96e   :  { %v8209_v44 = vsel %vm1900_vm6, %v8200_v52, %v13214_v9  ;;  %v13234_v58 = vunpack.i.h.bf16 %v13232_v39  ;;  %v13233_v0 = vunpack.i.l.bf16 %v13232_v39  ;;  %v25162_v9 = vld [vmem:[#allocation157_spill] sm:$0xff] }
 0x96f   :  { %v7978_v41 = vpop.permute.xlu1 %7977 }
 0x970   :  { %v8221_v3 = vsel %vm1906_vm7, %v8212_v22, %v7978_v41  ;;  %v8208_v22 = vsel %vm1900_vm6, %v8199_v5, %v13213_v30  ;;  %v9953_v30 = vcombine.low %v25162_v9, %v25161_v20 }
 0x971   :  { %v8014_v61 = vpop.permute.xlu0 %8013  ;;  %v8217_v26 = vsel %vm1906_vm7, %v8208_v22, %v13223_v17 }
 0x972   :  { %v8230_v27 = vsel %vm1912_vm8, %v8221_v3, %v8014_v61  ;;  %v8218_v61 = vsel %vm1906_vm7, %v8209_v44, %v13224_v16  ;;  %v8226_v43 = vsel %vm1912_vm8, %v8217_v26, %v13233_v0 }
 0x973   :  { %v22194_v8 = vpop.permute.xlu1 %13236 }
 0x975   :  { %v22192_v24 = vpop.permute.xlu0 %13246 }
 0x977   :  { %v13242_v45 = vpop.permute.xlu1 %13241 }
 0x978   :  { %v13244_v37 = vunpack.i.h.bf16 %v13242_v45  ;;  %v13243_v41 = vunpack.i.l.bf16 %v13242_v45  ;;  %v8227_v45 = vsel %vm1912_vm8, %v8218_v61, %v13234_v58 }
 0x979   :  { %v13252_v29 = vpop.permute.xlu0 %13251 }
 0x97a   :  { %v13254_v31 = vunpack.i.h.bf16 %v13252_v29  ;;  %v13253_v23 = vunpack.i.l.bf16 %v13252_v29  ;;  %v25164_v29 = vld [vmem:[#allocation92_spill] sm:$0xff]  ;;  %v8235_v44 = vsel %vm1918_vm9, %v8226_v43, %v13243_v41  ;;  %v8236_v22 = vsel %vm1918_vm9, %v8227_v45, %v13244_v37 }
 0x97b   :  { %v10089_v56 = vcombine.low %v25164_v29, %v25163_v54 }
 0x97c   :  { %v8050_v36 = vpop.permute.xlu1 %8049  ;;  %v12300_v16 = vsel %vm1894_vm5, %v11177_v63, %v13253_v23 }
 0x97d   :  { %v22196_v40 = vpop.permute.xlu0 %13266  ;;  %v22199_v60 = vsel %vm1918_vm9, %v8230_v27, %v8050_v36  ;;  %v25159_v27 = vld [vmem:[#allocation49_spill] sm:$0xff]  ;;  %v25160_v36 = vld [vmem:[#allocation182_spill] sm:$0xff] }
 0x97e   :  { %v11313_v34 = vcombine.low %v25160_v36, %v25159_v27  ;;  %v13268_v54 = vunpack.i.l.bf16 %v22196_v40 }
 0x980   :  { %v22203_v38 = vpop.permute.xlu1 %13256  ;;  %v12301_v5 = vsel %vm1894_vm5, %v11313_v34, %v13254_v31 }
 0x981   :  { %v22201_v6 = vpop.permute.xlu0 %13271  ;;  %v13258_v39 = vunpack.i.l.bf16 %v22203_v38  ;;  %v13259_v18 = vunpack.i.h.bf16 %v22203_v38 }
 0x982   :  { %v13274_v55 = vunpack.i.h.bf16 %v22201_v6  ;;  %v13273_v0 = vunpack.i.l.bf16 %v22201_v6 }
 0x983   :  { %v12238_v36 = vsel %vm1894_vm5, %v10089_v56, %v13259_v18 }
 0x984   :  { %v13262_v2 = vpop.permute.xlu1 %13261 }
 0x985   :  { %v22205_v59 = vpop.permute.xlu0 %13276  ;;  %v13264_v53 = vunpack.i.h.bf16 %v13262_v2  ;;  %v13263_v52 = vunpack.i.l.bf16 %v13262_v2 }
 0x986   :  { %v13278_v29 = vunpack.i.l.bf16 %v22205_v59 }
 0x987   :  { %v12309_v31 = vsel %vm1900_vm6, %v12300_v16, %v13263_v52  ;;  %v12310_v63 = vsel %vm1900_vm6, %v12301_v5, %v13264_v53 }
 0x988   :  { %v22209_v15 = vpop.permute.xlu1 %13286  ;;  %v12318_v53 = vsel %vm1906_vm7, %v12309_v31, %v13273_v0  ;;  %v12319_v52 = vsel %vm1906_vm7, %v12310_v63, %v13274_v55 }
 0x989   :  { %v22207_v21 = vpop.permute.xlu0 %13281  ;;  %v13288_v5 = vunpack.i.l.bf16 %v22209_v15 }
 0x98a   :  { %v13284_v37 = vunpack.i.h.bf16 %v22207_v21  ;;  %v13283_v38 = vunpack.i.l.bf16 %v22207_v21  ;;  %v13279_v21 = vunpack.i.h.bf16 %v22205_v59  ;;  %v13289_v59 = vunpack.i.h.bf16 %v22209_v15 }
 0x98c   :  { %v22213_v57 = vpop.permute.xlu1 %13296  ;;  %v12327_v43 = vsel %vm1912_vm8, %v12318_v53, %v13283_v38  ;;  %v12328_v45 = vsel %vm1912_vm8, %v12319_v52, %v13284_v37  ;;  %v13249_v52 = vunpack.i.h.bf16 %v22192_v24 }
 0x98d   :  { %v22211_v47 = vpop.permute.xlu0 %13291  ;;  %v13299_v34 = vunpack.i.h.bf16 %v22213_v57  ;;  %v13298_v20 = vunpack.i.l.bf16 %v22213_v57 }
 0x98f   :  { %v12336_v16 = vsel %vm1918_vm9, %v12327_v43, %v13298_v20 }
 0x990   :  { %v22223_v48 = vpop.permute.xlu1 %13306 }
 0x991   :  { %v13302_v46 = vpop.permute.xlu0 %13301 }
 0x992   :  { %v13304_v35 = vunpack.i.h.bf16 %v13302_v46  ;;  %v13303_v50 = vunpack.i.l.bf16 %v13302_v46  ;;  %v12237_v46 = vsel %vm1894_vm5, %v9953_v30, %v13258_v39  ;;  %v13269_v39 = vunpack.i.h.bf16 %v22196_v40 }
 0x994   :  { %v22233_v3 = vpop.permute.xlu1 %13316  ;;  %v8244_v23 = vsel %vm1924_vm10, %v8235_v44, %v13303_v50  ;;  %v8245_v61 = vsel %vm1924_vm10, %v8236_v22, %v13304_v35  ;;  %v12246_v50 = vsel %vm1900_vm6, %v12237_v46, %v13268_v54  ;;  %v12247_v57 = vsel %vm1900_vm6, %v12238_v36, %v13269_v39 }
 0x995   :  { %v22229_v12 = vpop.permute.xlu0 %13311  ;;  %v12255_v0 = vsel %vm1906_vm7, %v12246_v50, %v13278_v29  ;;  %v12256_v15 = vsel %vm1906_vm7, %v12247_v57, %v13279_v21  ;;  %v13239_v21 = vunpack.i.h.bf16 %v22194_v8  ;;  %v13238_v29 = vunpack.i.l.bf16 %v22194_v8 }
 0x996   :  { %v13314_v22 = vunpack.i.h.bf16 %v22229_v12  ;;  %v13313_v18 = vunpack.i.l.bf16 %v22229_v12  ;;  %v12264_v12 = vsel %vm1912_vm8, %v12255_v0, %v13288_v5  ;;  %v12265_v63 = vsel %vm1912_vm8, %v12256_v15, %v13289_v59  ;;  %v25165_v59 = vld [vmem:[#allocation98_spill] sm:$0xff]  ;;  %v25166_v5 = vld [vmem:[#allocation239_spill] sm:$0xff] }
 0x997   :  { %v13293_v50 = vunpack.i.l.bf16 %v22211_v47  ;;  %v8228_v43 = vsel %vm1912_vm8, %v22185_v32, %v13238_v29  ;;  %v11585_v8 = vcombine.low %v25166_v5, %v25165_v59 }
 0x998   :  { %v13327_v2 = vpop.permute.xlu1 %13326  ;;  %v12273_v37 = vsel %vm1918_vm9, %v12264_v12, %v13313_v18  ;;  %v12274_v38 = vsel %vm1918_vm9, %v12265_v63, %v13314_v22  ;;  %v25167_v22 = vld [vmem:[#allocation121_spill] sm:$0xff]  ;;  %v25168_v18 = vld [vmem:[#allocation135_spill] sm:$0xff]  ;;  %v25172_v63 = vld [vmem:[#allocation246_spill] sm:$0xff] }
 0x999   :  { %v13322_v17 = vpop.permute.xlu0 %13321  ;;  %v13329_v26 = vunpack.i.h.bf16 %v13327_v2  ;;  %v13328_v58 = vunpack.i.l.bf16 %v13327_v2 }
 0x99a   :  { %v13324_v35 = vunpack.i.h.bf16 %v13322_v17  ;;  %v13323_v56 = vunpack.i.l.bf16 %v13322_v17  ;;  %v12337_v17 = vsel %vm1918_vm9, %v12328_v45, %v13299_v34  ;;  %v8229_v45 = vsel %vm1912_vm8, %v22188_v51, %v13239_v21 }
 0x99b   :  { %v8253_v27 = vsel %vm1930_vm11, %v8244_v23, %v13328_v58  ;;  %v8254_v6 = vsel %vm1930_vm11, %v8245_v61, %v13329_v26 }
 0x99c   :  { %v13337_v9 = vpop.permute.xlu1 %13336  ;;  %v12595_v30 = vpack.c.bf16 %v8254_v6, %v8253_v27  ;;  %v12345_v28 = vsel %vm1924_vm10, %v12336_v16, %v13323_v56  ;;  %v12346_v7 = vsel %vm1924_vm10, %v12337_v17, %v13324_v35  ;;  %v13248_v35 = vunpack.i.l.bf16 %v22192_v24 }
 0x99d   :  { %v22258_v41 = vpop.permute.xlu0 %13331  ;;  %v13338_v46 = vunpack.i.l.bf16 %v13337_v9  ;;  %v13294_v56 = vunpack.i.h.bf16 %v22211_v47  ;;  %v13309_v16 = vunpack.i.h.bf16 %v22223_v48  ;;  %v13308_v17 = vunpack.i.l.bf16 %v22223_v48 }
 0x99e   :  { %12596 = vmatprep.subr.bf16.mxu1 %v12595_v30  ;;  %v13319_v24 = vunpack.i.h.bf16 %v22233_v3  ;;  %v13334_v47 = vunpack.i.h.bf16 %v22258_v41  ;;  %v13333_v32 = vunpack.i.l.bf16 %v22258_v41 }
 0x99f   :  { %12598 = vmatpush1.bf16.msra.mxu1 %v12597_v19  ;;  %v13339_v19 = vunpack.i.h.bf16 %v13337_v9  ;;  %v12282_v36 = vsel %vm1924_vm10, %v12273_v37, %v13338_v46  ;;  %v12303_v48 = vsel %vm1894_vm5, %v11585_v8, %v13294_v56  ;;  %v25170_v46 = vld [vmem:[#allocation242_spill] sm:$0xff] }
 0x9a0   :  { %v13347_v44 = vpop.permute.xlu1 %13346 }
 0x9a1   :  { %v22278_v40 = vpop.permute.xlu0 %13341  ;;  %v13349_v55 = vunpack.i.h.bf16 %v13347_v44  ;;  %v13348_v2 = vunpack.i.l.bf16 %v13347_v44  ;;  %v12283_v34 = vsel %vm1924_vm10, %v12274_v38, %v13339_v19  ;;  %v13318_v44 = vunpack.i.l.bf16 %v22233_v3  ;;  %v25169_v19 = vld [vmem:[#allocation245_spill] sm:$0xff] }
 0x9a2   :  { %v13343_v51 = vunpack.i.l.bf16 %v22278_v40  ;;  %v25171_v3 = vcombine.low %v25169_v19, %v25170_v46  ;;  %v13344_v41 = vunpack.i.h.bf16 %v22278_v40 }
 0x9a3   :  { %v12354_v58 = vsel %vm1930_vm11, %v12345_v28, %v13348_v2  ;;  %v12355_v31 = vsel %vm1930_vm11, %v12346_v7, %v13349_v55  ;;  %v10361_v55 = vcombine.low %v25168_v18, %v25167_v22  ;;  %v8237_v28 = vsel %vm1918_vm9, %v8228_v43, %v13248_v35 }
 0x9a4   :  { %v13357_v23 = vpop.permute.xlu1 %13356  ;;  %v12611_v61 = vpack.c.bf16 %v12355_v31, %v12354_v58  ;;  %v8238_v7 = vsel %vm1918_vm9, %v8229_v45, %v13249_v52  ;;  %v12302_v0 = vsel %vm1894_vm5, %v25171_v3, %v13293_v50 }
 0x9a5   :  { %v22290_v26 = vpop.permute.xlu0 %13351  ;;  %v13359_v27 = vunpack.i.h.bf16 %v13357_v23  ;;  %v13358_v6 = vunpack.i.l.bf16 %v13357_v23  ;;  %v12240_v58 = vsel %vm1894_vm5, %v10361_v55, %v13309_v16  ;;  %v25173_v23 = vld [vmem:[#allocation243_spill] sm:$0xff]  ;;  %v12311_v38 = vsel %vm1900_vm6, %v12302_v0, %v13318_v44 }
 0x9a6   :  { %12612 = vmatprep.subr.bf16.mxu0 %v12611_v61  ;;  %v25174_v61 = vcombine.low %v25172_v63, %v25173_v23  ;;  %v13354_v50 = vunpack.i.h.bf16 %v22290_v26  ;;  %v13353_v8 = vunpack.i.l.bf16 %v22290_v26 }
 0x9a7   :  { %v12291_v20 = vsel %vm1930_vm11, %v12282_v36, %v13358_v6  ;;  %v12292_v9 = vsel %vm1930_vm11, %v12283_v34, %v13359_v27  ;;  %v12312_v27 = vsel %vm1900_vm6, %v12303_v48, %v13319_v24  ;;  %v12249_v6 = vsel %vm1900_vm6, %v12240_v58, %v13334_v47 }
 0x9a8   :  { %v12613_v39 = vpack.c.bf16 %v12292_v9, %v12291_v20  ;;  %v22302_v54 = vpop.permute.xlu1 %13366  ;;  %v12239_v37 = vsel %vm1894_vm5, %v25174_v61, %v13308_v17  ;;  %v12320_v34 = vsel %vm1906_vm7, %v12311_v38, %v13343_v51  ;;  %v12321_v56 = vsel %vm1906_vm7, %v12312_v27, %v13344_v41 }
 0x9a9   :  { %v13362_v30 = vpop.permute.xlu0 %13361  ;;  %v12248_v36 = vsel %vm1900_vm6, %v12239_v37, %v13333_v32  ;;  %v13369_v44 = vunpack.i.h.bf16 %v22302_v54  ;;  %v13368_v47 = vunpack.i.l.bf16 %v22302_v54  ;;  %v12258_v3 = vsel %vm1906_vm7, %v12249_v6, %v13354_v50 }
 0x9aa   :  { %12614 = vmatpush1.bf16.msra.mxu0 %v12613_v39  ;;  %v13364_v20 = vunpack.i.h.bf16 %v13362_v30  ;;  %v13363_v9 = vunpack.i.l.bf16 %v13362_v30  ;;  %v12257_v54 = vsel %vm1906_vm7, %v12248_v36, %v13353_v8 }
 0x9ab   :  { %v12266_v58 = vsel %vm1912_vm8, %v12257_v54, %v13368_v47  ;;  %v12267_v41 = vsel %vm1912_vm8, %v12258_v3, %v13369_v44 }
 0x9ac   :  { %v13377_v57 = vpop.permute.xlu1 %13376  ;;  %v12330_v16 = vsel %vm1912_vm8, %v12321_v56, %v13364_v20  ;;  %v10497_v56 = vcombine.low %v22050_v1, %v22036_v4 }
 0x9ad   :  { %v13379_v31 = vunpack.i.h.bf16 %v13377_v57  ;;  %v13378_v12 = vunpack.i.l.bf16 %v13377_v57 }
 0x9ae   :  { %v13372_v53 = vpop.permute.xlu0 %13371 }
 0x9af   :  { %v13374_v39 = vunpack.i.h.bf16 %v13372_v53  ;;  %v13373_v21 = vunpack.i.l.bf16 %v13372_v53  ;;  %v8246_v57 = vsel %vm1924_vm10, %v8237_v28, %v13378_v12  ;;  %v8247_v43 = vsel %vm1924_vm10, %v8238_v7, %v13379_v31 }
 0x9b0   :  { %v12329_v53 = vsel %vm1912_vm8, %v12320_v34, %v13363_v9 }
 0x9b1   :  { %v12338_v22 = vsel %vm1918_vm9, %v12329_v53, %v13373_v21  ;;  %v12339_v18 = vsel %vm1918_vm9, %v12330_v16, %v13374_v39 }
 0x9b2   :  { %v13387_v15 = vpop.permute.xlu1 %13386 }
 0x9b3   :  { %v22325_v2 = vpop.permute.xlu0 %13381  ;;  %v13389_v45 = vunpack.i.h.bf16 %v13387_v15  ;;  %v13388_v59 = vunpack.i.l.bf16 %v13387_v15 }
 0x9b4   :  { %v13384_v32 = vunpack.i.h.bf16 %v22325_v2  ;;  %v13383_v51 = vunpack.i.l.bf16 %v22325_v2 }
 0x9b5   :  { %v12347_v7 = vsel %vm1924_vm10, %v12338_v22, %v13388_v59  ;;  %v12348_v48 = vsel %vm1924_vm10, %v12339_v18, %v13389_v45 }
 0x9b6   :  { %v12275_v63 = vsel %vm1918_vm9, %v12266_v58, %v13383_v51  ;;  %v12276_v13 = vsel %vm1918_vm9, %v12267_v41, %v13384_v32  ;;  %v25175_v58 = vld [vmem:[#allocation39_spill] sm:$0xff]  ;;  %v25176_v41 = vld [vmem:[#allocation22_spill] sm:$0xff] }
 0x9b7   :  { %v13392_v40 = vpop.permute.xlu0 %13391  ;;  %v13397_v29 = vpop.permute.xlu1 %13396 }
 0x9b8   :  { %v13394_v52 = vunpack.i.h.bf16 %v13392_v40  ;;  %v13393_v35 = vunpack.i.l.bf16 %v13392_v40  ;;  %v13399_v19 = vunpack.i.h.bf16 %v13397_v29  ;;  %v13398_v46 = vunpack.i.l.bf16 %v13397_v29 }
 0x9ba   :  { %v8255_v5 = vsel %vm1930_vm11, %v8246_v57, %v13393_v35  ;;  %v8256_v30 = vsel %vm1930_vm11, %v8247_v43, %v13394_v52  ;;  %v12284_v23 = vsel %vm1924_vm10, %v12275_v63, %v13398_v46  ;;  %v12285_v61 = vsel %vm1924_vm10, %v12276_v13, %v13399_v19 }
 0x9bb   :  { %v12599_v24 = vpack.c.bf16 %v8256_v30, %v8255_v5  ;;  %v11721_v52 = vcombine.low %v22027_v14, %v22008_v33  ;;  %v67_v14 = vld [vmem:[%s22444_s4] sm:$0xff] }
 0x9bd   :  { %v12007_v17 = vpop.permute.xlu0 %12006  ;;  %12600 = vmatprep.subr.bf16.mxu1 %v12599_v24 }
 0x9be   :  { %v13402_v55 = vpop.permute.xlu1 %13401  ;;  %12602 = vmatpush1.bf16.msra.mxu1 %v12601_v25  ;;  %v12304_v50 = vsel %vm1894_vm5, %v11721_v52, %v12007_v17 }
 0x9bf   :  { %v13404_v26 = vunpack.i.h.bf16 %v13402_v55  ;;  %v13403_v28 = vunpack.i.l.bf16 %v13402_v55  ;;  %v12478_v55 = vmul.f32 %v22146_v42, %v22146_v42 }
 0x9c1   :  { %v11755_v0 = vpop.permute.xlu0 %11754  ;;  %v12356_v2 = vsel %vm1930_vm11, %v12347_v7, %v13403_v28  ;;  %v12357_v15 = vsel %vm1930_vm11, %v12348_v48, %v13404_v26 }
 0x9c2   :  { %v13407_v31 = vpop.permute.xlu1 %13406  ;;  %v12615_v12 = vpack.c.bf16 %v12357_v15, %v12356_v2  ;;  %v12241_v57 = vsel %vm1894_vm5, %v10497_v56, %v11755_v0 }
 0x9c3   :  { %v13409_v11 = vunpack.i.h.bf16 %v13407_v31  ;;  %v13408_v25 = vunpack.i.l.bf16 %v13407_v31 }
 0x9c4   :  { %12616 = vmatprep.subr.bf16.mxu0 %v12615_v12 }
 0x9c5   :  { %v12293_v37 = vsel %vm1930_vm11, %v12284_v23, %v13408_v25  ;;  %v12294_v38 = vsel %vm1930_vm11, %v12285_v61, %v13409_v11  ;;  %v12043_v27 = vpop.permute.xlu0 %12042 }
 0x9c6   :  { %v12617_v6 = vpack.c.bf16 %v12294_v38, %v12293_v37  ;;  %v11791_v36 = vpop.permute.xlu1 %11790  ;;  %v12313_v43 = vsel %vm1900_vm6, %v12304_v50, %v12043_v27 }
 0x9c7   :  { %v12250_v5 = vsel %vm1900_vm6, %v12241_v57, %v11791_v36  ;;  %v12431_v57 = vld [vmem:[%s22446_s6] sm:$0xff] }
 0x9c8   :  { %12618 = vmatpush1.bf16.msra.mxu0 %v12617_v6 }
 0x9c9   :  { %v12079_v34 = vpop.permute.xlu0 %12078 }
 0x9ca   :  { %v11827_v20 = vpop.permute.xlu1 %11826  ;;  %v12322_v30 = vsel %vm1906_vm7, %v12313_v43, %v12079_v34  ;;  %v12461_v43 = vld [vmem:[%s22448_s8] sm:$0xff] }
 0x9cb   :  { %v12259_v4 = vsel %vm1906_vm7, %v12250_v5, %v11827_v20 }
 0x9cd   :  { %v12115_v9 = vpop.permute.xlu0 %12114 }
 0x9ce   :  { %v11863_v40 = vpop.permute.xlu1 %11862  ;;  %v12331_v1 = vsel %vm1912_vm8, %v12322_v30, %v12115_v9 }
 0x9d1   :  { %v12151_v39 = vpop.permute.xlu0 %12150 }
 0x9d2   :  { %v8086_v21 = vpop.permute.xlu1 %8085  ;;  %v12340_v53 = vsel %vm1918_vm9, %v12331_v1, %v12151_v39 }
 0x9d3   :  { %v8248_v45 = vsel %vm1924_vm10, %v22199_v60, %v8086_v21  ;;  %v12268_v60 = vsel %vm1912_vm8, %v12259_v4, %v11863_v40 }
 0x9d5   :  { %v11899_v29 = vpop.permute.xlu0 %11898 }
 0x9d6   :  { %v12187_v35 = vpop.permute.xlu1 %12186  ;;  %v12277_v17 = vsel %vm1918_vm9, %v12268_v60, %v11899_v29 }
 0x9d7   :  { %v12349_v16 = vsel %vm1924_vm10, %v12340_v53, %v12187_v35  ;;  %v12430_v35 = vld [vmem:[%s22445_s5] sm:$0xff]  ;;  %s13481_s5 = smov [#allocation5]  }
 0x9d8   :  { %s12545_s6 = sshll.u32 %s13481_s5, 4  ;;  %s12546_s6 = int_to_ptr.vmem [resolvable:$true] %s12545_s6 }
 0x9d9   :  { %v8122_v59 = vpop.permute.xlu0 %8121  ;;  %s13438_s8 = scalar_lea.vmem %s12546_s6, 512  ;;  %p13443_p9 = scmp.lt.s32.totalorder %s12546_s6, %s12546_s6 }
 0x9da   :  { %v11935_v8 = vpop.permute.xlu1 %11934  ;;  %v8257_v33 = vsel %vm1930_vm11, %v8248_v45, %v8122_v59  ;;  %p13439_p8 = scmp.ne.s32.totalorder %s12546_s6, %s13438_s8  ;;  %p13444_p10 = scmp.lt.s32.totalorder %s13438_s8, %s13438_s8 }
 0x9db   :  { %8278 = vmatprep.subr.mxu1 %v8257_v33  ;;  %v12286_v44 = vsel %vm1924_vm10, %v12277_v17, %v11935_v8  ;;  %v12462_v8 = vld [vmem:[%s22449_s9] sm:$0xff] }
 0x9dc   :  { %8279 = vmatpush1.msra.mxu1 %v22136_v10  ;;  %v12477_v10 = vmul.f32 %v22143_v62, %v22143_v62  ;;  %p13445_p11 = por %p13444_p10, %p13443_p9 }
 0x9dd   :  { %v12223_v24 = vpop.permute.xlu0 %12222  ;;  %12569 = vmatmul.mubr.msk.f32.vlgmr.msra.gmra.mrb[4].mxu1 %vm8258_vm15, %v67_v14 }
 0x9de   :  { %v11971_v47 = vpop.permute.xlu1 %11970  ;;  %v12358_v22 = vsel %vm1930_vm11, %v12349_v16, %v12223_v24  ;;  %v12479_v32 = vadd.f32 %v12478_v55, %v12477_v10  ;;  %v25177_v10 = vld [vmem:[#allocation10_spill] sm:$0xff]  ;;  %p13446_p12 = pnand %p13445_p11, %p13439_p8 }
 0x9df   :  { %v12295_v18 = vsel %vm1930_vm11, %v12286_v44, %v11971_v47  ;;  %12375 = vmatprep.subr.mxu0 %v12358_v22 }
 0x9e0   :  { %12376 = vmatpush1.msra.mxu0 %v12295_v18 }
 0x9e1   :  { %12570 = vmatmul.mubr.msk.f32.vlgmr.msra.gmra.mrb[4].mxu0 %vm8258_vm15, %v67_v14 }
 0xab0   :  { %v8328_v51 = vpop.f32.mrb[4].mxu1 }
 0xab1   :  { %v12440_v26 = vmul.f32 %v8328_v51, %v8328_v51  ;;  %v8330_v28 = vpop.f32.mrb[5].mxu1 }
 0xab2   :  { %v12432_v7 = vadd.f32 %v8330_v28, %v8328_v51  ;;  %v12441_v48 = vmul.f32 %v8330_v28, %v8330_v28 }
 0xab4   :  { %v12442_v19 = vadd.f32 %v12441_v48, %v12440_v26  ;;  %12433 = vadd.xlane.f32.xlu0 %v12432_v7  ;;  %v12425_v46 = vpop.f32.mrb[4].mxu0 }
 0xab5   :  { %v12446_v54 = vmul.f32 %v12425_v46, %v12425_v46  ;;  %v12427_v3 = vpop.f32.mrb[5].mxu0 }
 0xab6   :  { %v12436_v0 = vadd.f32 %v12427_v3, %v12425_v46  ;;  %v12447_v2 = vmul.f32 %v12427_v3, %v12427_v3 }
 0xab8   :  { %v12448_v15 = vadd.f32 %v12447_v2, %v12446_v54  ;;  %12468 = vadd.xlane.f32.xlu0 %v22151_v49  ;;  %12437 = vadd.xlane.f32.xlu1 %v12436_v0 }
 0xabc   :  { %12443 = vadd.xlane.f32.xlu0 %v12442_v19  ;;  %12464 = vadd.xlane.f32.xlu1 %v25175_v58 }
 0xac0   :  { %12449 = vadd.xlane.f32.xlu0 %v12448_v15  ;;  %12474 = vadd.xlane.f32.xlu1 %v25176_v41 }
 0xac4   :  { %12480 = vadd.xlane.f32.xlu0 %v12479_v32  ;;  %v25178_v32 = vld [vmem:[#allocation40_spill] sm:$0xff] }
 0xb41   :  { %v12434_v31 = vpop.xlane.xlu0 %12433 }
 0xb45   :  { %v12469_v12 = vpop.xlane.xlu0 %12468  ;;  %v12438_v63 = vpop.xlane.xlu1 %12437 }
 0xb46   :  { %v12439_v13 = vadd.f32 %v12438_v63, %v12434_v31 }
 0xb48   :  { %v12452_v23 = vmul.f32 0.001953125, %v12439_v13 }
 0xb49   :  { %v12444_v11 = vpop.xlane.xlu0 %12443  ;;  %v12465_v25 = vpop.xlane.xlu1 %12464 }
 0xb4a   :  { %v12470_v61 = vadd.f32 %v12469_v12, %v12465_v25  ;;  %v12454_v27 = vmul.f32 %v12452_v23, %v12452_v23 }
 0xb4c   :  { %v12483_v49 = vmul.f32 0.001953125, %v12470_v61 }
 0xb4d   :  { %v12450_v37 = vpop.xlane.xlu0 %12449  ;;  %v12475_v36 = vpop.xlane.xlu1 %12474 }
 0xb4e   :  { %v12451_v38 = vadd.f32 %v12450_v37, %v12444_v11  ;;  %v12485_v40 = vmul.f32 %v12483_v49, %v12483_v49 }
 0xb50   :  { %v12453_v6 = vmul.f32 0.001953125, %v12451_v38 }
 0xb51   :  { %v12481_v34 = vpop.xlane.xlu0 %12480 }
 0xb52   :  { %v12455_v20 = vsub.f32 %v12453_v6, %v12454_v27  ;;  %v12482_v9 = vadd.f32 %v12481_v34, %v12475_v36 }
 0xb54   :  { %v12456_v39 = vadd.f32 1e-05, %v12455_v20  ;;  %v12484_v21 = vmul.f32 0.001953125, %v12482_v9 }
 0xb56   :  { %13412 = vrsqrt.f32 %v12456_v39  ;;  %v12486_v29 = vsub.f32 %v12484_v21, %v12485_v40 }
 0xb58   :  { %v12487_v52 = vadd.f32 1e-05, %v12486_v29 }
 0xb5a   :  { %13414 = vrsqrt.f32 %v12487_v52 }
 0xb60   :  { %v13413_v56 = vpop.eup %13412 }
 0xb61   :  { %v12458_v50 = vmul.f32 %v13413_v56, %v12430_v35 }
 0xb63   :  { %12494 = vperm.xlu1 %12848, %v12458_v50   ;;  %v12459_v45 = vmul.f32 %v12458_v50, %v12452_v23 }
 0xb64   :  { %v13415_v59 = vpop.eup %13414 }
 0xb65   :  { %v12460_v5 = vsub.f32 %v12431_v57, %v12459_v45  ;;  %v12489_v30 = vmul.f32 %v13415_v59, %v12461_v43 }
 0xb67   :  { %12501 = vperm.xlu0 %12849, %v12460_v5   ;;  %12508 = vperm.xlu1 %12848, %v12489_v30   ;;  %v12490_v33 = vmul.f32 %v12489_v30, %v12483_v49 }
 0xb69   :  { %v12491_v14 = vsub.f32 %v12462_v8, %v12490_v33 }
 0xb6b   :  { %12517 = vperm.xlu1 %12848, %v12491_v14  }
 0xbe2   :  { %v12495_v4 = vpop.permute.xlu1 %12494 }
 0xbe3   :  { %v12497_v1 = vmul.f32 %v12495_v4, %v8328_v51  ;;  %v12498_v60 = vmul.f32 %v12495_v4, %v8330_v28  ;;  %v12524_v53 = vmul.f32 %v12495_v4, %v12425_v46  ;;  %v12525_v16 = vmul.f32 %v12495_v4, %v12427_v3 }
 0xbe6   :  { %v12502_v17 = vpop.permute.xlu0 %12501  ;;  %v12509_v24 = vpop.permute.xlu1 %12508 }
 0xbe7   :  { %v12504_v44 = vadd.f32 %v12502_v17, %v12497_v1  ;;  %v12505_v47 = vadd.f32 %v12502_v17, %v12498_v60  ;;  %v12526_v22 = vadd.f32 %v12524_v53, %v12502_v17  ;;  %v12527_v18 = vadd.f32 %v12525_v16, %v12502_v17 }
 0xbe8   :  { %v12511_v55 = vmul.f32 %v12509_v24, %v25177_v10  ;;  %v12512_v26 = vmul.f32 %v12509_v24, %v25178_v32  ;;  %v12528_v7 = vmul.f32 %v12509_v24, %v22143_v62  ;;  %v12529_v48 = vmul.f32 %v12509_v24, %v22146_v42 }
 0xbea   :  { %v12513_v19 = vadd.f32 %v12511_v55, %v12504_v44  ;;  %v12514_v54 = vadd.f32 %v12512_v26, %v12505_v47  ;;  %v12530_v51 = vadd.f32 %v12528_v7, %v12526_v22  ;;  %v12531_v28 = vadd.f32 %v12529_v48, %v12527_v18  ;;  %v12518_v46 = vpop.permute.xlu1 %12517 }
 0xbec   :  { %v12520_v3 = vadd.f32 %v12518_v46, %v12513_v19  ;;  %v12521_v0 = vadd.f32 %v12518_v46, %v12514_v54  ;;  %v12532_v2 = vadd.f32 %v12530_v51, %v12518_v46  ;;  %v12533_v15 = vadd.f32 %v12531_v28, %v12518_v46 }
 0xbee   :  { %v12522_v58 = vmax.f32 %v12520_v3, 0.0  ;;  %v12523_v41 = vmax.f32 %v12521_v0, 0.0  ;;  %v12534_v31 = vmax.f32 %v12532_v2, 0.0  ;;  %v12535_v12 = vmax.f32 %v12533_v15, 0.0 }
 0xbf0   :  { %12536 = vst [vmem:[#allocation5] sm:$0xff] %v12522_v58  ;;  %12537 = vst [vmem:[#allocation5 + $0x8] sm:$0xff] %v12523_v41 }
 0xbf1   :  { %12538 = vst [vmem:[#allocation5 + $0x10] sm:$0xff] %v12534_v31  ;;  %12539 = vst [vmem:[#allocation5 + $0x18] sm:$0xff] %v12535_v12 }
 0xbf2   :  { %13449 = shalt.err (!%p13446_p12)
}
 0xbf3   :  { %s13450_s30 = scalar_lea.hbm %s22450_s10, 512 }
 0xbf4   :  { %p13451_p13 = scmp.ne.s32.totalorder %s22450_s10, %s13450_s30  ;;  %p13454_p0 = scmp.lt.u32.totalorder %s13450_s30, %s22450_s10 }
 0xbf6   :  { %p13456_p1 = pnand %p13454_p0, %p13451_p13 }
 0xbf8   :  { %13459 = shalt.err (!%p13456_p1)
}
 0xbf9   :  { %s13482_s15 = smov 256  }
 0xbfa   :  { %12551 = dma.vmem_to_hbm [thread:$0]  %s12546_s6, 512, %s22450_s10, [#allocation4], %s13482_s15, %s13482_s15, %s13473_s29  }
 0xbfb   :  { %13462 = dma.done.wait [#allocation4], 512  }
 0xbfc   :  { %13463 = vsyncadd [#allocation4], 4294966784 }
 0xbfd   :  { %12555 = vsyncpa [#allocation3], 1 }
 0xbfe   :  { %12556 = vsyncpa [#allocation4], 1 }

</bundles_post_ra>
